<compile_context>
chip_gen: v7x
topology: tpu7x:2x2x1
jax: 0.10.0
libtpu: 0.0.40
codegen_flags: <defaults>
</compile_context>

<pallas_src>
import functools

import jax
import jax.numpy as jnp
from jax.experimental import pallas as pl
from jax.experimental.pallas import tpu as pltpu


def _gat_kernel(x_ref, adj_ref, m_ref,
                w1_ref, a1s_ref, a1n_ref,
                w2_ref, a2s_ref, a2n_ref,
                apred_ref, z_ref,
                e_scratch, *, alpha):
    f32 = jnp.float32
    x = x_ref[...].astype(f32)
    # adj travels as int8; only the {0,1} mask is needed in-kernel.
    adj_mask = adj_ref[...].astype(f32) > 0.0
    m = m_ref[...].astype(f32)

    def gat_layer(h_in, w_ref, a_self_ref, a_neigh_ref):
        w = w_ref[...].astype(f32)
        a_self = a_self_ref[...].astype(f32)     # (1, D)
        a_neigh = a_neigh_ref[...].astype(f32)   # (1, D)

        h = jnp.dot(h_in, w, preferred_element_type=f32)            # (N, D)

        # e[i, j] = h[i].a_self + h[j].a_neigh
        # "neighbour" scores produced directly as a lane-dense (1, N) row via
        # an NT matmul (contract last dims) -- no (N,1) column vectors.
        s_self = jnp.sum(h * a_self, axis=1, keepdims=True)         # (N, 1)
        s_neigh = jnp.einsum("od,nd->on", a_neigh, h,
                             preferred_element_type=f32)            # (1, N)
        e = (s_self + s_neigh) * m                                  # (N, N)
        # LeakyReLU(alpha), 0 < alpha < 1: max(e, alpha*e) == where(e>0, e, a*e)
        e = jnp.maximum(e, alpha * e)
        # Stage masked scores in VMEM scratch: phase boundary that bounds the
        # live range of the N*N score tensor before the softmax phase.
        e_scratch[...] = jnp.where(adj_mask, e, -9e15)

        # Row-wise softmax (dim=1), numerically stable, normalization deferred.
        e = e_scratch[...]
        e_max = jnp.max(e, axis=1, keepdims=True)
        p = jnp.exp(e - e_max)                                      # (N, N)
        row_sum = jnp.sum(p, axis=1, keepdims=True)                 # (N, 1)
        inv = pl.reciprocal(row_sum, approx=True)                   # 1 EUP op/row

        # softmax(e) @ h  ==  (p @ h) * inv   (deferred normalization)
        h_prime = jnp.dot(p, h, preferred_element_type=f32) * inv   # (N, D)
        # ELU(alpha=1) with the discarded branch's exp clamped.
        return jnp.where(h_prime > 0,
                         h_prime,
                         jnp.exp(jnp.minimum(h_prime, 0.0)) - 1.0)

    h1 = gat_layer(x, w1_ref, a1s_ref, a1n_ref)
    h2 = gat_layer(h1, w2_ref, a2s_ref, a2n_ref)

    # z = F.normalize(h2, p=2, dim=1): single rsqrt per row (EUP), no divide.
    sumsq = jnp.sum(h2 * h2, axis=1, keepdims=True)
    inv_norm = jax.lax.rsqrt(jnp.maximum(sumsq, 1e-24))
    z = h2 * inv_norm

    # A_pred = sigmoid(z @ z^T): NT matmul (contract last dims, lane-dense out).
    logits = jnp.einsum("ne,me->nm", z, z, preferred_element_type=f32)
    # sigmoid(x) = 0.5 * (tanh(x/2) + 1): one EUP op/element, no exp + divide.
    apred_ref[...] = (0.5 * (jnp.tanh(0.5 * logits) + 1.0)).astype(apred_ref.dtype)
    z_ref[...] = z.astype(z_ref.dtype)


def gat_forward(x, adj, m, params, alpha):
    """params: w1 (F,H), a1_self/a1_neigh (1,H), w2 (H,E), a2_self/a2_neigh (1,E)."""
    n, num_features = x.shape
    hidden = params["w1"].shape[1]
    emb = params["w2"].shape[1]

    # adjacency is only used as a {0,1} mask in the forward -> ship int8.
    adj_i8 = (adj > 0).astype(jnp.int8)

    vmem = pl.BlockSpec(memory_space=pltpu.MemorySpace.VMEM)
    out_shapes = (
        jax.ShapeDtypeStruct((n, n), jnp.float32),    # A_pred
        jax.ShapeDtypeStruct((n, emb), jnp.float32),  # z
    )

    # Advisory cost estimate for XLA's scheduler around the custom call.
    flops = (2 * n * num_features * hidden + 2 * n * n * hidden      # layer 1
             + 2 * n * hidden * emb + 2 * n * n * emb                # layer 2
             + 2 * n * n * emb                                       # z @ z^T
             + 12 * n * n)                                           # elementwise
    transcendentals = 2 * n * n + n * (hidden + emb) + n * n         # exp + tanh
    bytes_accessed = (x.size * 4 + adj_i8.size + m.size * 4
                      + sum(int(p.size) * 4 for p in params.values())
                      + n * n * 4 + n * emb * 4)

    fn = pl.pallas_call(
        functools.partial(_gat_kernel, alpha=alpha),
        out_shape=out_shapes,
        in_specs=[vmem] * 9,
        out_specs=(vmem, vmem),
        scratch_shapes=[pltpu.VMEM((n, n), jnp.float32)],
        compiler_params=pltpu.CompilerParams(
            vmem_limit_bytes=32 * 1024 * 1024),
        cost_estimate=pl.CostEstimate(flops=flops,
                                      transcendentals=transcendentals,
                                      bytes_accessed=bytes_accessed),
    )
    return fn(x, adj_i8, m,
              params["w1"], params["a1_self"], params["a1_neigh"],
              params["w2"], params["a2_self"], params["a2_neigh"])


def make_params(key, num_features, hidden_size, embedding_size):
    """Deterministic synthetic GAT parameters.

    PyTorch stores a_self / a_neighs as (out, 1); kept here as (1, out) rows so
    the kernel never handles lane-sparse column vectors.
    """
    def init(key, shape, fan_in):
        bound = jnp.sqrt(6.0 / fan_in)
        return jax.random.uniform(key, shape, jnp.float32, -bound, bound)

    k = jax.random.split(key, 6)
    return {
        "w1": init(k[0], (num_features, hidden_size), num_features),
        "a1_self": init(k[1], (1, hidden_size), hidden_size),
        "a1_neigh": init(k[2], (1, hidden_size), hidden_size),
        "w2": init(k[3], (hidden_size, embedding_size), hidden_size),
        "a2_self": init(k[4], (1, embedding_size), embedding_size),
        "a2_neigh": init(k[5], (1, embedding_size), embedding_size),
    }


def gat_reference(x, adj, m, params, alpha):
    """Pure-JAX reference of the PyTorch forward."""
    hp = jax.lax.Precision.HIGHEST

    def layer(h_in, w, a_self, a_neigh):
        h = jnp.dot(h_in, w, precision=hp)
        s_self = jnp.sum(h * a_self, axis=1, keepdims=True)              # (N,1)
        s_neigh = jnp.sum(h * a_neigh, axis=1, keepdims=True)            # (N,1)
        e = s_self + s_neigh.T
        e = e * m
        e = jnp.where(e > 0, e, alpha * e)
        e = jnp.where(adj > 0, e, -9e15)
        att = jax.nn.softmax(e, axis=1)
        h_prime = jnp.dot(att, h, precision=hp)
        return jnp.where(h_prime > 0, h_prime, jnp.exp(h_prime) - 1.0)

    h1 = layer(x, params["w1"], params["a1_self"], params["a1_neigh"])
    h2 = layer(h1, params["w2"], params["a2_self"], params["a2_neigh"])
    norm = jnp.sqrt(jnp.sum(h2 * h2, axis=1, keepdims=True))
    z = h2 / jnp.maximum(norm, 1e-12)
    a_pred = jax.nn.sigmoid(jnp.dot(z, z.T, precision=hp))
    return a_pred, z


if __name__ == "__main__":
    # Keep both sides (kernel trace + XLA reference) at full f32 matmul precision.
    jax.config.update("jax_default_matmul_precision", "highest")

    # Small but (8,128)-aligned shapes: 128 nodes, 256 features, H=128, E=128.
    n_nodes, num_features, hidden_size, embedding_size = 128, 256, 128, 128
    alpha = 0.2

    key = jax.random.PRNGKey(0)
    key, kx, ka = jax.random.split(key, 3)

    x = jax.random.normal(kx, (n_nodes, num_features), jnp.float32)

    # Symmetric random adjacency with self-loops.
    rand = jax.random.uniform(ka, (n_nodes, n_nodes), jnp.float32)
    adj = (rand < 0.2).astype(jnp.float32)
    adj = jnp.maximum(adj, adj.T)
    adj = jnp.maximum(adj, jnp.eye(n_nodes, dtype=jnp.float32))

    # M: 2-hop transition-proximity matrix (as in DAEGC's get_M).
    trans = adj / jnp.sum(adj, axis=1, keepdims=True)
    m = (trans + jnp.dot(trans, trans, precision=jax.lax.Precision.HIGHEST)) / 2.0

    params = make_params(key, num_features, hidden_size, embedding_size)

    outs = gat_forward(x, adj, m, params, alpha)
    outs = jax.block_until_ready(outs)

    refs = gat_reference(x, adj, m, params, alpha)
    # 5e-3: approx reciprocal (softmax norm) + tanh-form sigmoid perturb
    # numerics slightly relative to the HIGHEST-precision XLA reference.
    for o, r in zip(outs, refs):
        assert o.shape == r.shape and o.dtype == r.dtype
        assert float(jnp.max(jnp.abs(o - r))) < 5e-3

    print("KERNEL_OK")
</pallas_src>

<mosaic_0001>
module attributes {stable_mosaic.version = 11 : i64} {
  func.func @_gat_kernel(%arg0: memref<128x256xf32, #tpu.memory_space<vmem>>, %arg1: memref<128x128xi8, #tpu.memory_space<vmem>>, %arg2: memref<128x128xf32, #tpu.memory_space<vmem>>, %arg3: memref<256x128xf32, #tpu.memory_space<vmem>>, %arg4: memref<1x128xf32, #tpu.memory_space<vmem>>, %arg5: memref<1x128xf32, #tpu.memory_space<vmem>>, %arg6: memref<128x128xf32, #tpu.memory_space<vmem>>, %arg7: memref<1x128xf32, #tpu.memory_space<vmem>>, %arg8: memref<1x128xf32, #tpu.memory_space<vmem>>, %arg9: memref<128x128xf32, #tpu.memory_space<vmem>>, %arg10: memref<128x128xf32, #tpu.memory_space<vmem>>, %arg11: memref<128x128xf32, #tpu.memory_space<vmem>>) attributes {dimension_semantics = [], scalar_prefetch = 0 : i64, scratch_operands = 1 : i64, tpu.core_type = #tpu.core_type<tc>} {
    %c0 = arith.constant 0 : index
    %c0_0 = arith.constant 0 : index
    %0 = vector.load %arg0[%c0, %c0_0] : memref<128x256xf32, #tpu.memory_space<vmem>>, vector<128x256xf32>
    %c0_1 = arith.constant 0 : index
    %c0_2 = arith.constant 0 : index
    %1 = vector.load %arg1[%c0_1, %c0_2] : memref<128x128xi8, #tpu.memory_space<vmem>>, vector<128x128xi8>
    %2 = arith.sitofp %1 : vector<128x128xi8> to vector<128x128xf32>
    %cst = arith.constant 0.000000e+00 : f32
    %3 = vector.broadcast %cst : f32 to vector<128x128xf32>
    %4 = arith.cmpf ogt, %2, %3 : vector<128x128xf32>
    %c0_3 = arith.constant 0 : index
    %c0_4 = arith.constant 0 : index
    %5 = vector.load %arg2[%c0_3, %c0_4] : memref<128x128xf32, #tpu.memory_space<vmem>>, vector<128x128xf32>
    %c0_5 = arith.constant 0 : index
    %c0_6 = arith.constant 0 : index
    %6 = vector.load %arg3[%c0_5, %c0_6] : memref<256x128xf32, #tpu.memory_space<vmem>>, vector<256x128xf32>
    %c0_7 = arith.constant 0 : index
    %c0_8 = arith.constant 0 : index
    %7 = vector.load %arg4[%c0_7, %c0_8] : memref<1x128xf32, #tpu.memory_space<vmem>>, vector<1x128xf32>
    %c0_9 = arith.constant 0 : index
    %c0_10 = arith.constant 0 : index
    %8 = vector.load %arg5[%c0_9, %c0_10] : memref<1x128xf32, #tpu.memory_space<vmem>>, vector<1x128xf32>
    %cst_11 = arith.constant dense<0.000000e+00> : vector<128x128xf32>
    %9 = tpu.matmul %0, %6, %cst_11 {dimension_numbers = #tpu.dot_dimension_numbers<[1], [0], [0], [1], [0, 0, 1, 1], [], []>, precision = #tpu.contract_precision<fp32>} : vector<128x256xf32>, vector<256x128xf32>, vector<128x128xf32> -> vector<128x128xf32>
    %10 = vector.broadcast %7 : vector<1x128xf32> to vector<128x128xf32>
    %11 = arith.mulf %9, %10 : vector<128x128xf32>
    %cst_12 = arith.constant dense<0.000000e+00> : vector<128xf32>
    %12 = vector.multi_reduction <add>, %11, %cst_12 [1] : vector<128x128xf32> to vector<128xf32>
    %13 = vector.shape_cast %12 : vector<128xf32> to vector<128x1xf32>
    "tpu.trace_start"() <{level = 10 : i32, message = "od,nd->on"}> : () -> ()
    %cst_13 = arith.constant dense<0.000000e+00> : vector<1x128xf32>
    %14 = tpu.matmul %8, %9, %cst_13 {dimension_numbers = #tpu.dot_dimension_numbers<[1], [1], [0], [0], [0, 0, 1, 0], [], []>, precision = #tpu.contract_precision<fp32>} : vector<1x128xf32>, vector<128x128xf32>, vector<1x128xf32> -> vector<1x128xf32>
    "tpu.trace_stop"() : () -> ()
    %15 = vector.broadcast %13 : vector<128x1xf32> to vector<128x128xf32>
    %16 = vector.broadcast %14 : vector<1x128xf32> to vector<128x128xf32>
    %17 = arith.addf %15, %16 : vector<128x128xf32>
    %18 = arith.mulf %17, %5 : vector<128x128xf32>
    %cst_14 = arith.constant 2.000000e-01 : f32
    %19 = vector.broadcast %cst_14 : f32 to vector<128x128xf32>
    %20 = arith.mulf %19, %18 : vector<128x128xf32>
    %21 = arith.maximumf %18, %20 : vector<128x128xf32>
    %cst_15 = arith.constant -9.000000e+15 : f32
    %22 = vector.broadcast %cst_15 : f32 to vector<128x128xf32>
    %23 = arith.select %4, %21, %22 : vector<128x128xi1>, vector<128x128xf32>
    %c0_16 = arith.constant 0 : index
    %c0_17 = arith.constant 0 : index
    %24 = vector.load %arg11[%c0_16, %c0_17] : memref<128x128xf32, #tpu.memory_space<vmem>>, vector<128x128xf32>
    tpu.vector_store %arg11[%c0_16, %c0_17], %23 {strides = array<i32>} : memref<128x128xf32, #tpu.memory_space<vmem>>, vector<128x128xf32>,
    %c0_18 = arith.constant 0 : index
    %c0_19 = arith.constant 0 : index
    %25 = vector.load %arg11[%c0_18, %c0_19] : memref<128x128xf32, #tpu.memory_space<vmem>>, vector<128x128xf32>
    %cst_20 = arith.constant dense<0xFF800000> : vector<128xf32>
    %26 = vector.multi_reduction <maximumf>, %25, %cst_20 [1] : vector<128x128xf32> to vector<128xf32>
    %27 = vector.shape_cast %26 : vector<128xf32> to vector<128x1xf32>
    %28 = vector.broadcast %27 : vector<128x1xf32> to vector<128x128xf32>
    %29 = arith.subf %25, %28 : vector<128x128xf32>
    %30 = math.exp %29 : vector<128x128xf32>
    %cst_21 = arith.constant dense<0.000000e+00> : vector<128xf32>
    %31 = vector.multi_reduction <add>, %30, %cst_21 [1] : vector<128x128xf32> to vector<128xf32>
    %32 = vector.shape_cast %31 : vector<128xf32> to vector<128x1xf32>
    %33 = tpu.reciprocal %32 {approx = true} : vector<128x1xf32> -> vector<128x1xf32>
    %cst_22 = arith.constant dense<0.000000e+00> : vector<128x128xf32>
    %34 = tpu.matmul %30, %9, %cst_22 {dimension_numbers = #tpu.dot_dimension_numbers<[1], [0], [0], [1], [0, 0, 1, 1], [], []>, precision = #tpu.contract_precision<fp32>} : vector<128x128xf32>, vector<128x128xf32>, vector<128x128xf32> -> vector<128x128xf32>
    %35 = vector.broadcast %33 : vector<128x1xf32> to vector<128x128xf32>
    %36 = arith.mulf %34, %35 : vector<128x128xf32>
    %cst_23 = arith.constant 0.000000e+00 : f32
    %37 = vector.broadcast %cst_23 : f32 to vector<128x128xf32>
    %38 = arith.cmpf ogt, %36, %37 : vector<128x128xf32>
    %cst_24 = arith.constant 0.000000e+00 : f32
    %39 = vector.broadcast %cst_24 : f32 to vector<128x128xf32>
    %40 = arith.minimumf %36, %39 : vector<128x128xf32>
    %41 = math.exp %40 : vector<128x128xf32>
    %cst_25 = arith.constant 1.000000e+00 : f32
    %42 = vector.broadcast %cst_25 : f32 to vector<128x128xf32>
    %43 = arith.subf %41, %42 : vector<128x128xf32>
    %44 = arith.select %38, %36, %43 : vector<128x128xi1>, vector<128x128xf32>
    %c0_26 = arith.constant 0 : index
    %c0_27 = arith.constant 0 : index
    %45 = vector.load %arg6[%c0_26, %c0_27] : memref<128x128xf32, #tpu.memory_space<vmem>>, vector<128x128xf32>
    %c0_28 = arith.constant 0 : index
    %c0_29 = arith.constant 0 : index
    %46 = vector.load %arg7[%c0_28, %c0_29] : memref<1x128xf32, #tpu.memory_space<vmem>>, vector<1x128xf32>
    %c0_30 = arith.constant 0 : index
    %c0_31 = arith.constant 0 : index
    %47 = vector.load %arg8[%c0_30, %c0_31] : memref<1x128xf32, #tpu.memory_space<vmem>>, vector<1x128xf32>
    %cst_32 = arith.constant dense<0.000000e+00> : vector<128x128xf32>
    %48 = tpu.matmul %44, %45, %cst_32 {dimension_numbers = #tpu.dot_dimension_numbers<[1], [0], [0], [1], [0, 0, 1, 1], [], []>, precision = #tpu.contract_precision<fp32>} : vector<128x128xf32>, vector<128x128xf32>, vector<128x128xf32> -> vector<128x128xf32>
    %49 = vector.broadcast %46 : vector<1x128xf32> to vector<128x128xf32>
    %50 = arith.mulf %48, %49 : vector<128x128xf32>
    %cst_33 = arith.constant dense<0.000000e+00> : vector<128xf32>
    %51 = vector.multi_reduction <add>, %50, %cst_33 [1] : vector<128x128xf32> to vector<128xf32>
    %52 = vector.shape_cast %51 : vector<128xf32> to vector<128x1xf32>
    "tpu.trace_start"() <{level = 10 : i32, message = "od,nd->on"}> : () -> ()
    %cst_34 = arith.constant dense<0.000000e+00> : vector<1x128xf32>
    %53 = tpu.matmul %47, %48, %cst_34 {dimension_numbers = #tpu.dot_dimension_numbers<[1], [1], [0], [0], [0, 0, 1, 0], [], []>, precision = #tpu.contract_precision<fp32>} : vector<1x128xf32>, vector<128x128xf32>, vector<1x128xf32> -> vector<1x128xf32>
    "tpu.trace_stop"() : () -> ()
    %54 = vector.broadcast %52 : vector<128x1xf32> to vector<128x128xf32>
    %55 = vector.broadcast %53 : vector<1x128xf32> to vector<128x128xf32>
    %56 = arith.addf %54, %55 : vector<128x128xf32>
    %57 = arith.mulf %56, %5 : vector<128x128xf32>
    %cst_35 = arith.constant 2.000000e-01 : f32
    %58 = vector.broadcast %cst_35 : f32 to vector<128x128xf32>
    %59 = arith.mulf %58, %57 : vector<128x128xf32>
    %60 = arith.maximumf %57, %59 : vector<128x128xf32>
    %cst_36 = arith.constant -9.000000e+15 : f32
    %61 = vector.broadcast %cst_36 : f32 to vector<128x128xf32>
    %62 = arith.select %4, %60, %61 : vector<128x128xi1>, vector<128x128xf32>
    %c0_37 = arith.constant 0 : index
    %c0_38 = arith.constant 0 : index
    %63 = vector.load %arg11[%c0_37, %c0_38] : memref<128x128xf32, #tpu.memory_space<vmem>>, vector<128x128xf32>
    tpu.vector_store %arg11[%c0_37, %c0_38], %62 {strides = array<i32>} : memref<128x128xf32, #tpu.memory_space<vmem>>, vector<128x128xf32>,
    %c0_39 = arith.constant 0 : index
    %c0_40 = arith.constant 0 : index
    %64 = vector.load %arg11[%c0_39, %c0_40] : memref<128x128xf32, #tpu.memory_space<vmem>>, vector<128x128xf32>
    %cst_41 = arith.constant dense<0xFF800000> : vector<128xf32>
    %65 = vector.multi_reduction <maximumf>, %64, %cst_41 [1] : vector<128x128xf32> to vector<128xf32>
    %66 = vector.shape_cast %65 : vector<128xf32> to vector<128x1xf32>
    %67 = vector.broadcast %66 : vector<128x1xf32> to vector<128x128xf32>
    %68 = arith.subf %64, %67 : vector<128x128xf32>
    %69 = math.exp %68 : vector<128x128xf32>
    %cst_42 = arith.constant dense<0.000000e+00> : vector<128xf32>
    %70 = vector.multi_reduction <add>, %69, %cst_42 [1] : vector<128x128xf32> to vector<128xf32>
    %71 = vector.shape_cast %70 : vector<128xf32> to vector<128x1xf32>
    %72 = tpu.reciprocal %71 {approx = true} : vector<128x1xf32> -> vector<128x1xf32>
    %cst_43 = arith.constant dense<0.000000e+00> : vector<128x128xf32>
    %73 = tpu.matmul %69, %48, %cst_43 {dimension_numbers = #tpu.dot_dimension_numbers<[1], [0], [0], [1], [0, 0, 1, 1], [], []>, precision = #tpu.contract_precision<fp32>} : vector<128x128xf32>, vector<128x128xf32>, vector<128x128xf32> -> vector<128x128xf32>
    %74 = vector.broadcast %72 : vector<128x1xf32> to vector<128x128xf32>
    %75 = arith.mulf %73, %74 : vector<128x128xf32>
    %cst_44 = arith.constant 0.000000e+00 : f32
    %76 = vector.broadcast %cst_44 : f32 to vector<128x128xf32>
    %77 = arith.cmpf ogt, %75, %76 : vector<128x128xf32>
    %cst_45 = arith.constant 0.000000e+00 : f32
    %78 = vector.broadcast %cst_45 : f32 to vector<128x128xf32>
    %79 = arith.minimumf %75, %78 : vector<128x128xf32>
    %80 = math.exp %79 : vector<128x128xf32>
    %cst_46 = arith.constant 1.000000e+00 : f32
    %81 = vector.broadcast %cst_46 : f32 to vector<128x128xf32>
    %82 = arith.subf %80, %81 : vector<128x128xf32>
    %83 = arith.select %77, %75, %82 : vector<128x128xi1>, vector<128x128xf32>
    %84 = arith.mulf %83, %83 : vector<128x128xf32>
    %cst_47 = arith.constant dense<0.000000e+00> : vector<128xf32>
    %85 = vector.multi_reduction <add>, %84, %cst_47 [1] : vector<128x128xf32> to vector<128xf32>
    %86 = vector.shape_cast %85 : vector<128xf32> to vector<128x1xf32>
    %cst_48 = arith.constant 1.000000e-24 : f32
    %87 = vector.broadcast %cst_48 : f32 to vector<128x1xf32>
    %88 = arith.maximumf %86, %87 : vector<128x1xf32>
    %89 = math.rsqrt %88 : vector<128x1xf32>
    %90 = vector.broadcast %89 : vector<128x1xf32> to vector<128x128xf32>
    %91 = arith.mulf %83, %90 : vector<128x128xf32>
    "tpu.trace_start"() <{level = 10 : i32, message = "ne,me->nm"}> : () -> ()
    %cst_49 = arith.constant dense<0.000000e+00> : vector<128x128xf32>
    %92 = tpu.matmul %91, %91, %cst_49 {dimension_numbers = #tpu.dot_dimension_numbers<[1], [1], [0], [0], [0, 0, 1, 0], [], []>, precision = #tpu.contract_precision<fp32>} : vector<128x128xf32>, vector<128x128xf32>, vector<128x128xf32> -> vector<128x128xf32>
    "tpu.trace_stop"() : () -> ()
    %cst_50 = arith.constant 5.000000e-01 : f32
    %93 = vector.broadcast %cst_50 : f32 to vector<128x128xf32>
    %94 = arith.mulf %93, %92 : vector<128x128xf32>
    %95 = math.tanh %94 : vector<128x128xf32>
    %cst_51 = arith.constant 1.000000e+00 : f32
    %96 = vector.broadcast %cst_51 : f32 to vector<128x128xf32>
    %97 = arith.addf %95, %96 : vector<128x128xf32>
    %cst_52 = arith.constant 5.000000e-01 : f32
    %98 = vector.broadcast %cst_52 : f32 to vector<128x128xf32>
    %99 = arith.mulf %98, %97 : vector<128x128xf32>
    %c0_53 = arith.constant 0 : index
    %c0_54 = arith.constant 0 : index
    %100 = vector.load %arg9[%c0_53, %c0_54] : memref<128x128xf32, #tpu.memory_space<vmem>>, vector<128x128xf32>
    tpu.vector_store %arg9[%c0_53, %c0_54], %99 {strides = array<i32>} : memref<128x128xf32, #tpu.memory_space<vmem>>, vector<128x128xf32>,
    %c0_55 = arith.constant 0 : index
    %c0_56 = arith.constant 0 : index
    %101 = vector.load %arg10[%c0_55, %c0_56] : memref<128x128xf32, #tpu.memory_space<vmem>>, vector<128x128xf32>
    tpu.vector_store %arg10[%c0_55, %c0_56], %91 {strides = array<i32>} : memref<128x128xf32, #tpu.memory_space<vmem>>, vector<128x128xf32>,
    return
  }
}

</mosaic_0001>

<bundles_post_ra>
// kernel: tpu_custom_call.1
= control target key start
LH: loop header
LB: loop body
LE: loop exit
PB: predicated region body
PF: predicated region fallthrough
CT: control target
= control target key end

     0   :  { %16 = vsyncpa [#allocation4], 0  ;;  %s18730_s0 = inlined_call_operand.hbm [shape: f32[128,256], index: 0, kind: input, shape index: {}]   ;;  %s18731_s1 = inlined_call_operand.hbm [shape: s8[128,128], index: 1, kind: input, shape index: {}]   ;;  %s18732_s2 = inlined_call_operand.hbm [shape: f32[128,128], index: 2, kind: input, shape index: {}]   ;;  %s18733_s3 = inlined_call_operand.hbm [shape: f32[256,128], index: 3, kind: input, shape index: {}]   ;;  %s18734_s4 = inlined_call_operand.vmem [shape: f32[1,128], index: 4, kind: input, shape index: {}]   ;;  %s18735_s5 = inlined_call_operand.vmem [shape: f32[1,128], index: 5, kind: input, shape index: {}]   ;;  %s18736_s6 = inlined_call_operand.hbm [shape: f32[128,128], index: 6, kind: input, shape index: {}]   ;;  %s18737_s7 = inlined_call_operand.vmem [shape: f32[1,128], index: 7, kind: input, shape index: {}]   ;;  %s18738_s8 = inlined_call_operand.vmem [shape: f32[1,128], index: 8, kind: input, shape index: {}]   ;;  %s18739_s9 = inlined_call_operand.hbm [shape: f32[128,128], index: 9, kind: output, shape index: {0}]   ;;  %s18740_s10 = inlined_call_operand.hbm [shape: f32[128,128], index: 10, kind: output, shape index: {1}]  }
   0x1   :  { %17 = vsyncpa [#allocation7], 0 }
   0x2   :  { %18 = vsyncpa [#allocation10], 0 }
   0x3   :  { %19 = vsyncpa [#allocation5], 0 }
   0x4   :  { %20 = vsyncpa [#allocation14], 0  ;;  %s14719_s13 = smov [#allocation6]   ;;  %s14555_s17 = scalar_lea.hbm %s18731_s1, 512 }
   0x5   :  { %s38_s14 = sshll.u32 %s14719_s13, 4  ;;  %p14556_p0 = scmp.ne.s32.totalorder %s18731_s1, %s14555_s17  ;;  %s39_s14 = int_to_ptr.vmem [resolvable:$true] %s38_s14 }
   0x6   :  { %p14559_p1 = scmp.lt.u32.totalorder %s14555_s17, %s18731_s1 }
   0x8   :  { %p14561_p2 = pnand %p14559_p1, %p14556_p0 }
   0xa   :  { %14564 = shalt.err (!%p14561_p2)
}
   0xb   :  { %s14565_s22 = scalar_lea.vmem %s39_s14, 512  ;;  %p14570_p4 = scmp.lt.s32.totalorder %s39_s14, %s39_s14 }
   0xc   :  { %p14566_p3 = scmp.ne.s32.totalorder %s39_s14, %s14565_s22  ;;  %p14571_p5 = scmp.lt.s32.totalorder %s14565_s22, %s14565_s22 }
   0xe   :  { %p14572_p6 = por %p14571_p5, %p14570_p4 }
  0x10   :  { %p14573_p7 = pnand %p14572_p6, %p14566_p3 }
  0x12   :  { %14576 = shalt.err (!%p14573_p7)
}
  0x13   :  { %s14720_s23 = smov 128   ;;  %s14721_s24 = smov 8  }
  0x14   :  { %44 = dma.hbm_to_vmem [thread:$0]  %s18731_s1, 512, %s39_s14, [#allocation7], %s14720_s23, %s14720_s23, %s14721_s24  }
  0x15   :  { %s14722_s27 = smov [#allocation9]   ;;  %s14723_s29 = smov [#allocation3]  }
  0x16   :  { %s62_s28 = sshll.u32 %s14722_s27, 4  ;;  %s26_s30 = sshll.u32 %s14723_s29, 4  ;;  %s63_s28 = int_to_ptr.vmem [resolvable:$true] %s62_s28  ;;  %s27_s30 = int_to_ptr.vmem [resolvable:$true] %s26_s30 }
  0x17   :  { %s14577_s13 = scalar_lea.hbm %s18733_s3, 4096 }
  0x18   :  { %p14578_p8 = scmp.ne.s32.totalorder %s18733_s3, %s14577_s13  ;;  %p14581_p9 = scmp.lt.u32.totalorder %s14577_s13, %s18733_s3 }
  0x1a   :  { %p14583_p10 = pnand %p14581_p9, %p14578_p8 }
  0x1c   :  { %14586 = shalt.err (!%p14583_p10)
}
  0x1d   :  { %s14587_s1 = scalar_lea.vmem %s63_s28, 4096  ;;  %p14592_p12 = scmp.lt.s32.totalorder %s63_s28, %s63_s28 }
  0x1e   :  { %p14588_p11 = scmp.ne.s32.totalorder %s63_s28, %s14587_s1  ;;  %p14593_p13 = scmp.lt.s32.totalorder %s14587_s1, %s14587_s1 }
  0x20   :  { %p14594_p0 = por %p14593_p13, %p14592_p12 }
  0x22   :  { %p14595_p1 = pnand %p14594_p0, %p14588_p11 }
  0x24   :  { %14598 = shalt.err (!%p14595_p1)
}
  0x25   :  { %68 = dma.hbm_to_vmem [thread:$0]  %s18733_s3, 4096, %s63_s28, [#allocation10], %s14720_s23, %s14720_s23, %s14721_s24  }
  0x26   :  { %s14599_s22 = scalar_lea.hbm %s18730_s0, 4096 }
  0x27   :  { %p14600_p2 = scmp.ne.s32.totalorder %s18730_s0, %s14599_s22  ;;  %p14603_p3 = scmp.lt.u32.totalorder %s14599_s22, %s18730_s0 }
  0x29   :  { %p14605_p4 = pnand %p14603_p3, %p14600_p2 }
  0x2b   :  { %14608 = shalt.err (!%p14605_p4)
}
  0x2c   :  { %s14609_s11 = scalar_lea.vmem %s27_s30, 4096  ;;  %p14614_p6 = scmp.lt.s32.totalorder %s27_s30, %s27_s30 }
  0x2d   :  { %p14610_p5 = scmp.ne.s32.totalorder %s27_s30, %s14609_s11  ;;  %p14615_p7 = scmp.lt.s32.totalorder %s14609_s11, %s14609_s11 }
  0x2f   :  { %p14616_p8 = por %p14615_p7, %p14614_p6 }
  0x31   :  { %p14617_p9 = pnand %p14616_p8, %p14610_p5 }
  0x33   :  { %14620 = shalt.err (!%p14617_p9)
}
  0x34   :  { %s14724_s3 = smov 256   ;;  %s14725_s28 = smov 16  }
  0x35   :  { %32 = dma.hbm_to_vmem [thread:$0]  %s18730_s0, 4096, %s27_s30, [#allocation4], %s14724_s3, %s14724_s3, %s14725_s28  }
  0x36   :  { %s14726_s15 = smov [#allocation8]   ;;  %s14727_s17 = smov [#allocation11]  }
  0x37   :  { %s50_s16 = sshll.u32 %s14726_s15, 4  ;;  %s78_s18 = sshll.u32 %s14727_s17, 4  ;;  %s51_s16 = int_to_ptr.vmem [resolvable:$true] %s50_s16  ;;  %s79_s18 = int_to_ptr.vmem [resolvable:$true] %s78_s18 }
  0x38   :  { %s14621_s19 = scalar_lea.hbm %s18732_s2, 2048 }
  0x39   :  { %p14622_p10 = scmp.ne.s32.totalorder %s18732_s2, %s14621_s19  ;;  %p14625_p11 = scmp.lt.u32.totalorder %s14621_s19, %s18732_s2 }
  0x3b   :  { %p14627_p12 = pnand %p14625_p11, %p14622_p10 }
  0x3d   :  { %14630 = shalt.err (!%p14627_p12)
}
  0x3e   :  { %s14631_s0 = scalar_lea.vmem %s51_s16, 2048  ;;  %p14636_p0 = scmp.lt.s32.totalorder %s51_s16, %s51_s16 }
  0x3f   :  { %p14632_p13 = scmp.ne.s32.totalorder %s51_s16, %s14631_s0  ;;  %p14637_p1 = scmp.lt.s32.totalorder %s14631_s0, %s14631_s0 }
  0x41   :  { %p14638_p2 = por %p14637_p1, %p14636_p0 }
  0x43   :  { %p14639_p3 = pnand %p14638_p2, %p14632_p13 }
  0x45   :  { %14642 = shalt.err (!%p14639_p3)
}
  0x46   :  { %56 = dma.hbm_to_vmem [thread:$0]  %s18732_s2, 2048, %s51_s16, [#allocation7], %s14720_s23, %s14720_s23, %s14721_s24  }
  0x47   :  { %s14643_s11 = scalar_lea.hbm %s18736_s6, 2048 }
  0x48   :  { %p14644_p4 = scmp.ne.s32.totalorder %s18736_s6, %s14643_s11  ;;  %p14647_p5 = scmp.lt.u32.totalorder %s14643_s11, %s18736_s6 }
  0x4a   :  { %p14649_p6 = pnand %p14647_p5, %p14644_p4 }
  0x4c   :  { %14652 = shalt.err (!%p14649_p6)
}
  0x4d   :  { %s14653_s15 = scalar_lea.vmem %s79_s18, 2048  ;;  %p14658_p8 = scmp.lt.s32.totalorder %s79_s18, %s79_s18 }
  0x4e   :  { %p14654_p7 = scmp.ne.s32.totalorder %s79_s18, %s14653_s15  ;;  %p14659_p9 = scmp.lt.s32.totalorder %s14653_s15, %s14653_s15 }
  0x50   :  { %p14660_p10 = por %p14659_p9, %p14658_p8 }
  0x52   :  { %p14661_p11 = pnand %p14660_p10, %p14654_p7 }
  0x54   :  { %14664 = shalt.err (!%p14661_p11)
}
  0x55   :  { %84 = dma.hbm_to_vmem [thread:$0]  %s18736_s6, 2048, %s79_s18, [#allocation10], %s14720_s23, %s14720_s23, %s14721_s24  }
  0x56   :  { %14709 = dma.done.wait [#allocation4], 4096  }
  0x57   :  { %14710 = vsyncadd [#allocation4], 4294963200 }
  0x58   :  { %14711 = dma.done.wait [#allocation7], 2560  }
  0x59   :  { %14712 = vsyncadd [#allocation7], 4294964736 }
  0x5a   :  { %14713 = dma.done.wait [#allocation10], 6144  }
  0x5b   :  { %14714 = vsyncadd [#allocation10], 4294961152  ;;  %v220_v0 = vld [vmem:[#allocation9 + $0x80] sm:$0xff]  ;;  %v221_v1 = vld [vmem:[#allocation9 + $0x88] sm:$0xff]  ;;  %vm14729_vm0 = vmmov 0  }
  0x5c   :  { %v204_v2 = vld [vmem:[#allocation9] sm:$0xff]  ;;  %v287_v3 = vand.u32 4294901760, %v220_v0  ;;  %v290_v4 = vand.u32 4294901760, %v221_v1  ;;  %v205_v5 = vld [vmem:[#allocation9 + $0x8] sm:$0xff]  ;;  %v222_v7 = vld [vmem:[#allocation9 + $0x90] sm:$0xff] }
  0x5d   :  { %v239_v6 = vand.u32 4294901760, %v204_v2  ;;  %v223_v8 = vld [vmem:[#allocation9 + $0x98] sm:$0xff]  ;;  %v242_v9 = vand.u32 4294901760, %v205_v5  ;;  %v293_v10 = vand.u32 4294901760, %v222_v7  ;;  %v206_v12 = vld [vmem:[#allocation9 + $0x10] sm:$0xff]  ;;  %v224_v14 = vld [vmem:[#allocation9 + $0xa0] sm:$0xff] }
  0x5e   :  { %v296_v11 = vand.u32 4294901760, %v223_v8  ;;  %v207_v13 = vld [vmem:[#allocation9 + $0x18] sm:$0xff]  ;;  %v14860_v15 = vpack.c.bf16 %v290_v4, %v287_v3  ;;  %v14862_v16 = vsub.f32 %v220_v0, %v287_v3  ;;  %v14864_v17 = vsub.f32 %v221_v1, %v290_v4  ;;  %v225_v19 = vld [vmem:[#allocation9 + $0xa8] sm:$0xff]  ;;  %v208_v20 = vld [vmem:[#allocation9 + $0x20] sm:$0xff] }
  0x5f   :  { %v14866_v18 = vsub.f32 %v204_v2, %v239_v6  ;;  %v209_v21 = vld [vmem:[#allocation9 + $0x28] sm:$0xff]  ;;  %v14868_v22 = vpack.c.bf16 %v242_v9, %v239_v6  ;;  %v14870_v23 = vsub.f32 %v205_v5, %v242_v9  ;;  %v14874_v25 = vsub.f32 %v222_v7, %v293_v10  ;;  %v226_v26 = vld [vmem:[#allocation9 + $0xb0] sm:$0xff]  ;;  %v227_v31 = vld [vmem:[#allocation9 + $0xb8] sm:$0xff] }
  0x60   :  { %19060 = vst [vmem:[#allocation20_spill] sm:$0xff] %v14860_v15  ;;  %v14872_v24 = vpack.c.bf16 %v296_v11, %v293_v10  ;;  %12682 = vmatprep.subr.bf16.mxu0 %v14860_v15  ;;  %v14877_v27 = vsub.f32 %v223_v8, %v296_v11  ;;  %v245_v28 = vand.u32 4294901760, %v206_v12  ;;  %v248_v29 = vand.u32 4294901760, %v207_v13  ;;  %12842 = vmatprep.subr.bf16.mxu1 %v14860_v15  ;;  %v210_v36 = vld [vmem:[#allocation9 + $0x30] sm:$0xff]  ;;  %v211_v37 = vld [vmem:[#allocation9 + $0x38] sm:$0xff]  ;;  %v228_v42 = vld [vmem:[#allocation9 + $0xc0] sm:$0xff] }
  0x61   :  { %19061 = vst [vmem:[#allocation21_spill] sm:$0xff] %v14866_v18  ;;  %19062 = vst [vmem:[#allocation22_spill] sm:$0xff] %v14868_v22  ;;  %v299_v30 = vand.u32 4294901760, %v224_v14  ;;  %12684 = vmatpush3.bf16.msra.mxu0 %v14868_v22  ;;  %v302_v32 = vand.u32 4294901760, %v225_v19  ;;  %v251_v33 = vand.u32 4294901760, %v208_v20  ;;  %v254_v34 = vand.u32 4294901760, %v209_v21  ;;  %12844 = vmatpush3.bf16.msra.mxu1 %v14868_v22 }
  0x62   :  { %19063 = vst [vmem:[#allocation23_spill] sm:$0xff] %v14870_v23  ;;  %19064 = vst [vmem:[#allocation24_spill] sm:$0xff] %v14872_v24  ;;  %v305_v35 = vand.u32 4294901760, %v226_v26  ;;  %12686 = vmatprep.subr.bf16.mxu0 %v14872_v24  ;;  %v14883_v38 = vpack.c.bf16 %v248_v29, %v245_v28  ;;  %v14885_v39 = vsub.f32 %v206_v12, %v245_v28  ;;  %v229_v43 = vld [vmem:[#allocation9 + $0xc8] sm:$0xff]  ;;  %v212_v44 = vld [vmem:[#allocation9 + $0x40] sm:$0xff]  ;;  %12846 = vmatprep.subr.bf16.mxu1 %v14872_v24 }
  0x63   :  { %v14887_v40 = vsub.f32 %v207_v13, %v248_v29  ;;  %v14889_v41 = vsub.f32 %v224_v14, %v299_v30  ;;  %v14891_v45 = vpack.c.bf16 %v302_v32, %v299_v30  ;;  %v14893_v46 = vsub.f32 %v225_v19, %v302_v32  ;;  %v213_v49 = vld [vmem:[#allocation9 + $0x48] sm:$0xff]  ;;  %v230_v58 = vld [vmem:[#allocation9 + $0xd0] sm:$0xff]  ;;  %v231_v59 = vld [vmem:[#allocation9 + $0xd8] sm:$0xff] }
  0x64   :  { %19065 = vst [vmem:[#allocation25_spill] sm:$0xff] %v14883_v38  ;;  %v14895_v47 = vpack.c.bf16 %v254_v34, %v251_v33  ;;  %v14897_v48 = vsub.f32 %v208_v20, %v251_v33  ;;  %v14900_v50 = vsub.f32 %v209_v21, %v254_v34  ;;  %v308_v51 = vand.u32 4294901760, %v227_v31  ;;  %v214_v0 = vld [vmem:[#allocation9 + $0x50] sm:$0xff]  ;;  %v215_v1 = vld [vmem:[#allocation9 + $0x58] sm:$0xff]  ;;  %v232_v2 = vld [vmem:[#allocation9 + $0xe0] sm:$0xff] }
  0x65   :  { %19066 = vst [vmem:[#allocation26_spill] sm:$0xff] %v14891_v45  ;;  %v14902_v52 = vsub.f32 %v226_v26, %v305_v35  ;;  %v257_v53 = vand.u32 4294901760, %v210_v36  ;;  %12688 = vmatpush3.bf16.msra.mxu0 %v14883_v38  ;;  %v260_v54 = vand.u32 4294901760, %v211_v37  ;;  %v311_v55 = vand.u32 4294901760, %v228_v42  ;;  %12848 = vmatpush3.bf16.msra.mxu1 %v14883_v38  ;;  %v233_v7 = vld [vmem:[#allocation9 + $0xe8] sm:$0xff]  ;;  %v216_v8 = vld [vmem:[#allocation9 + $0x60] sm:$0xff] }
  0x66   :  { %19067 = vst [vmem:[#allocation27_spill] sm:$0xff] %v14895_v47  ;;  %v314_v56 = vand.u32 4294901760, %v229_v43  ;;  %v263_v57 = vand.u32 4294901760, %v212_v44  ;;  %12690 = vmatprep.subr.bf16.mxu0 %v14891_v45  ;;  %v14907_v60 = vpack.c.bf16 %v308_v51, %v305_v35  ;;  %v14909_v61 = vsub.f32 %v227_v31, %v308_v51  ;;  %12850 = vmatprep.subr.bf16.mxu1 %v14891_v45  ;;  %v217_v9 = vld [vmem:[#allocation9 + $0x68] sm:$0xff]  ;;  %v234_v31 = vld [vmem:[#allocation9 + $0xf0] sm:$0xff] }
  0x67   :  { %v14911_v62 = vsub.f32 %v210_v36, %v257_v53  ;;  %v266_v63 = vand.u32 4294901760, %v213_v49  ;;  %v14914_v3 = vpack.c.bf16 %v260_v54, %v257_v53  ;;  %v14916_v4 = vsub.f32 %v211_v37, %v260_v54  ;;  %v235_v36 = vld [vmem:[#allocation9 + $0xf8] sm:$0xff]  ;;  %v218_v37 = vld [vmem:[#allocation9 + $0x70] sm:$0xff]  ;;  %v105_v53 = vld [vmem:[#allocation3 + $0x8] sm:$0xff] }
  0x68   :  { %19068 = vst [vmem:[#allocation28_spill] sm:$0xff] %v14907_v60  ;;  %v14918_v5 = vpack.c.bf16 %v314_v56, %v311_v55  ;;  %v14920_v6 = vsub.f32 %v228_v42, %v311_v55  ;;  %v14922_v10 = vsub.f32 %v229_v43, %v314_v56  ;;  %v14926_v12 = vsub.f32 %v212_v44, %v263_v57  ;;  %v219_v42 = vld [vmem:[#allocation9 + $0x78] sm:$0xff]  ;;  %v104_v54 = vld [vmem:[#allocation3] sm:$0xff] }
  0x69   :  { %19069 = vst [vmem:[#allocation29_spill] sm:$0xff] %v14914_v3  ;;  %v14924_v11 = vpack.c.bf16 %v266_v63, %v263_v57  ;;  %v14928_v13 = vsub.f32 %v213_v49, %v266_v63  ;;  %12692 = vmatpush3.bf16.msra.mxu0 %v14895_v47  ;;  %v317_v14 = vand.u32 4294901760, %v230_v58  ;;  %v320_v19 = vand.u32 4294901760, %v231_v59  ;;  %12852 = vmatpush3.bf16.msra.mxu1 %v14895_v47 }
  0x6a   :  { %19070 = vst [vmem:[#allocation30_spill] sm:$0xff] %v14918_v5  ;;  %v269_v20 = vand.u32 4294901760, %v214_v0  ;;  %v272_v21 = vand.u32 4294901760, %v215_v1  ;;  %12694 = vmatprep.subr.bf16.mxu0 %v14907_v60  ;;  %v323_v26 = vand.u32 4294901760, %v232_v2  ;;  %v326_v28 = vand.u32 4294901760, %v233_v7  ;;  %12854 = vmatprep.subr.bf16.mxu1 %v14907_v60 }
  0x6b   :  { %19071 = vst [vmem:[#allocation31_spill] sm:$0xff] %v14924_v11  ;;  %19072 = vst [vmem:[#allocation32_spill] sm:$0xff] %v14928_v13  ;;  %v275_v29 = vand.u32 4294901760, %v216_v8  ;;  %v278_v30 = vand.u32 4294901760, %v217_v9  ;;  %v14934_v32 = vpack.c.bf16 %v320_v19, %v317_v14  ;;  %v14936_v33 = vsub.f32 %v230_v58, %v317_v14 }
  0x6c   :  { %v14938_v34 = vsub.f32 %v231_v59, %v320_v19  ;;  %v14940_v35 = vpack.c.bf16 %v272_v21, %v269_v20  ;;  %v14942_v43 = vsub.f32 %v214_v0, %v269_v20  ;;  %v14944_v44 = vsub.f32 %v215_v1, %v272_v21 }
  0x6d   :  { %19073 = vst [vmem:[#allocation33_spill] sm:$0xff] %v14934_v32  ;;  %v14946_v49 = vpack.c.bf16 %v326_v28, %v323_v26  ;;  %v14948_v51 = vsub.f32 %v232_v2, %v323_v26  ;;  %12696 = vmatpush3.bf16.msra.mxu0 %v14914_v3  ;;  %v14951_v55 = vsub.f32 %v233_v7, %v326_v28  ;;  %v329_v59 = vand.u32 4294901760, %v234_v31  ;;  %v107_v26 = vld [vmem:[#allocation3 + $0x18] sm:$0xff]  ;;  %v106_v28 = vld [vmem:[#allocation3 + $0x10] sm:$0xff] }
  0x6e   :  { %19074 = vst [vmem:[#allocation34_spill] sm:$0xff] %v14940_v35  ;;  %v14953_v56 = vpack.c.bf16 %v278_v30, %v275_v29  ;;  %v14955_v57 = vsub.f32 %v216_v8, %v275_v29  ;;  %v14957_v58 = vsub.f32 %v217_v9, %v278_v30  ;;  %12698 = vmatprep.subr.bf16.mxu0 %v14918_v5  ;;  %v332_v63 = vand.u32 4294901760, %v235_v36 }
  0x6f   :  { %19075 = vst [vmem:[#allocation35_spill] sm:$0xff] %v14946_v49  ;;  %v281_v0 = vand.u32 4294901760, %v218_v37  ;;  %v284_v1 = vand.u32 4294901760, %v219_v42  ;;  %12856 = vmatpush3.bf16.msra.mxu1 %v14914_v3  ;;  %v14961_v2 = vand.u32 4294901760, %v105_v53  ;;  %v14963_v14 = vand.u32 4294901760, %v104_v54 }
  0x70   :  { %19076 = vst [vmem:[#allocation36_spill] sm:$0xff] %v14953_v56  ;;  %12858 = vmatprep.subr.bf16.mxu1 %v14918_v5  ;;  %v14968_v8 = vpack.c.bf16 %v332_v63, %v329_v59  ;;  %v14970_v9 = vsub.f32 %v234_v31, %v329_v59  ;;  %v14972_v20 = vsub.f32 %v235_v36, %v332_v63  ;;  %v19083_v31 = vand.u32 4294901760, %v14862_v16  ;;  %v109_v5 = vld [vmem:[#allocation3 + $0x28] sm:$0xff] }
  0x71   :  { %19077 = vst [vmem:[#allocation37_spill] sm:$0xff] %v14961_v2  ;;  %19078 = vst [vmem:[#allocation38_spill] sm:$0xff] %v14963_v14  ;;  %v14974_v21 = vpack.c.bf16 %v284_v1, %v281_v0  ;;  %12700 = vmatpush3.bf16.msra.mxu0 %v14924_v11  ;;  %v14977_v29 = vsub.f32 %v218_v37, %v281_v0  ;;  %v14979_v30 = vsub.f32 %v219_v42, %v284_v1 }
  0x72   :  { %19079 = vst [vmem:[#allocation39_spill] sm:$0xff] %v14968_v8  ;;  %v14982_v19 = vsub.f32 %v105_v53, %v14961_v2  ;;  %v14985_v7 = vsub.f32 %v104_v54, %v14963_v14  ;;  %12702 = vmatprep.subr.bf16.mxu0 %v14934_v32  ;;  %v691_v36 = vsub.f32 %v14862_v16, %v19083_v31  ;;  %v19084_v59 = vand.u32 4294901760, %v14864_v17 }
  0x73   :  { %19080 = vst [vmem:[#allocation40_spill] sm:$0xff] %v14974_v21  ;;  %v18746_v37 = vand.u32 4294901760, %v14866_v18  ;;  %12860 = vmatpush3.bf16.msra.mxu1 %v14924_v11  ;;  %v14999_v0 = vand.u32 4294901760, %v107_v26  ;;  %v15001_v1 = vand.u32 4294901760, %v106_v28  ;;  %1828 = vmatprep.mubr.f32.mxu1 %v14961_v2  ;;  %v19087_v11 = vand.u32 4294901760, %v14870_v23 }
  0x74   :  { %19081 = vst [vmem:[#allocation41_spill] sm:$0xff] %v14982_v19  ;;  %19082 = vst [vmem:[#allocation42_spill] sm:$0xff] %v14985_v7  ;;  %v698_v63 = vsub.f32 %v14864_v17, %v19084_v59  ;;  %12862 = vmatprep.subr.bf16.mxu1 %v14934_v32  ;;  %v692_v31 = vand.u32 4294901760, %v691_v36  ;;  %v19088_v54 = vand.u32 4294901760, %v14982_v19  ;;  %v19089_v32 = vand.u32 4294901760, %v14985_v7 }
  0x75   :  { %19085 = vst [vmem:[#allocation43_spill] sm:$0xff] %v14999_v0  ;;  %19086 = vst [vmem:[#allocation44_spill] sm:$0xff] %v15001_v1  ;;  %v579_v42 = vsub.f32 %v14866_v18, %v18746_v37  ;;  %v586_v53 = vsub.f32 %v14870_v23, %v19087_v11  ;;  %12704 = vmatpush3.bf16.msra.mxu0 %v14940_v35  ;;  %v15019_v36 = vsub.f32 %v107_v26, %v14999_v0  ;;  %v108_v37 = vld [vmem:[#allocation3 + $0x20] sm:$0xff] }
  0x76   :  { %v699_v59 = vand.u32 4294901760, %v698_v63  ;;  %v337_v3 = vsub.f32 %v14982_v19, %v19088_v54  ;;  %v343_v60 = vsub.f32 %v14985_v7, %v19089_v32  ;;  %v15022_v63 = vsub.f32 %v106_v28, %v15001_v1  ;;  %12706 = vmatprep.subr.bf16.mxu0 %v14946_v49 }
  0x77   :  { %19090 = vst [vmem:[#allocation45_spill] sm:$0xff] %v15019_v36  ;;  %v580_v47 = vand.u32 4294901760, %v579_v42  ;;  %v587_v45 = vand.u32 4294901760, %v586_v53  ;;  %v15025_v38 = vand.u32 4294901760, %v109_v5  ;;  %12864 = vmatpush3.bf16.msra.mxu1 %v14940_v35  ;;  %v18754_v32 = vand.u32 4294901760, %v15019_v36  ;;  %v113_v35 = vld [vmem:[#allocation3 + $0x48] sm:$0xff] }
  0x78   :  { %19091 = vst [vmem:[#allocation46_spill] sm:$0xff] %v15022_v63  ;;  %v12713_v11 = vpack.c.bf16 %v699_v59, %v692_v31  ;;  %v338_v54 = vand.u32 4294901760, %v337_v3  ;;  %v344_v24 = vand.u32 4294901760, %v343_v60  ;;  %v18755_v26 = vand.u32 4294901760, %v15022_v63  ;;  %12866 = vmatprep.subr.bf16.mxu1 %v14946_v49 }
  0x79   :  { %19092 = vst [vmem:[#allocation47_spill] sm:$0xff] %v15025_v38  ;;  %v12715_v28 = vpack.c.bf16 %v587_v45, %v580_v47  ;;  %v15032_v22 = vsub.f32 %v109_v5, %v15025_v38  ;;  %v15034_v7 = vand.u32 4294901760, %v108_v37  ;;  %v18758_v42 = vand.u32 4294901760, %v14874_v25  ;;  %12708 = vmatpush3.bf16.msra.mxu0 %v14953_v56 }
  0x7a   :  { %339 = vmatprep.mubr.f32.mxu0 %v338_v54  ;;  %v352_v60 = vsub.f32 %v15019_v36, %v18754_v32  ;;  %v358_v3 = vsub.f32 %v15022_v63, %v18755_v26  ;;  %12710 = vmatprep.subr.bf16.mxu0 %v14968_v8  ;;  %v111_v54 = vld [vmem:[#allocation3 + $0x38] sm:$0xff]  ;;  %v110_v32 = vld [vmem:[#allocation3 + $0x30] sm:$0xff]  ;;  %v19096_v47 = vand.u32 4294901760, %v14877_v27  ;;  %v19097_v5 = vand.u32 4294901760, %v14885_v39  ;;  %v112_v36 = vld [vmem:[#allocation3 + $0x40] sm:$0xff] }
  0x7b   :  { %19093 = vst [vmem:[#allocation48_spill] sm:$0xff] %v15032_v22  ;;  %19094 = vst [vmem:[#allocation49_spill] sm:$0xff] %v15034_v7  ;;  %v15049_v53 = vsub.f32 %v108_v37, %v15034_v7  ;;  %v705_v31 = vsub.f32 %v14874_v25, %v18758_v42  ;;  %12868 = vmatpush3.bf16.msra.mxu1 %v14953_v56  ;;  %v19098_v42 = vand.u32 4294901760, %v15032_v22  ;;  %v15073_v15 = vand.u32 4294901760, %v110_v32 }
  0x7c   :  { %v353_v26 = vand.u32 4294901760, %v352_v60  ;;  %v359_v45 = vand.u32 4294901760, %v358_v3  ;;  %v712_v49 = vsub.f32 %v14877_v27, %v19096_v47  ;;  %v593_v37 = vsub.f32 %v14885_v39, %v19097_v5  ;;  %12870 = vmatprep.subr.bf16.mxu1 %v14968_v8 }
  0x7d   :  { %19095 = vst [vmem:[#allocation50_spill] sm:$0xff] %v15049_v53  ;;  %v367_v59 = vsub.f32 %v15032_v22, %v19098_v42  ;;  %v18774_v63 = vand.u32 4294901760, %v15049_v53  ;;  %v706_v56 = vand.u32 4294901760, %v705_v31  ;;  %v19099_v60 = vand.u32 4294901760, %v14887_v40  ;;  %12712 = vmatpush3.bf16.msra.mxu0 %v14974_v21  ;;  %19101 = vst [vmem:[#allocation52_spill] sm:$0xff] %v15073_v15 }
  0x7e   :  { %v713_v47 = vand.u32 4294901760, %v712_v49  ;;  %v594_v19 = vand.u32 4294901760, %v593_v37  ;;  %v15071_v5 = vand.u32 4294901760, %v111_v54  ;;  %12714 = vmatprep.subr.bf16.mxu0 %v12713_v11  ;;  %v15078_v22 = vand.u32 4294901760, %v113_v35 }
  0x7f   :  { %v600_v3 = vsub.f32 %v14887_v40, %v19099_v60  ;;  %v368_v8 = vand.u32 4294901760, %v367_v59  ;;  %v373_v42 = vsub.f32 %v15049_v53, %v18774_v63  ;;  %12872 = vmatpush3.bf16.msra.mxu1 %v14974_v21  ;;  %v15085_v49 = vsub.f32 %v110_v32, %v15073_v15  ;;  %v117_v21 = vld [vmem:[#allocation3 + $0x68] sm:$0xff] }
  0x80   :  { %19100 = vst [vmem:[#allocation51_spill] sm:$0xff] %v15071_v5  ;;  %19102 = vst [vmem:[#allocation53_spill] sm:$0xff] %v15078_v22  ;;  %v12717_v60 = vpack.c.bf16 %v713_v47, %v706_v56  ;;  %v15082_v23 = vsub.f32 %v111_v54, %v15071_v5  ;;  %v15087_v37 = vand.u32 4294901760, %v112_v36  ;;  %345 = vmatmul.mubr.f32.vlgmr.msra.gmra.mrb[0].mxu0 %v344_v24  ;;  %v18779_v32 = vand.u32 4294901760, %v14893_v46 }
  0x81   :  { %v601_v31 = vand.u32 4294901760, %v600_v3  ;;  %19104 = vst [vmem:[#allocation55_spill] sm:$0xff] %v15085_v49  ;;  %v374_v11 = vand.u32 4294901760, %v373_v42  ;;  %v15090_v18 = vsub.f32 %v113_v35, %v15078_v22  ;;  %v18775_v3 = vand.u32 4294901760, %v14889_v41  ;;  %12716 = vmatpush3.bf16.msra.mxu0 %v12715_v28  ;;  %354 = vmatprep.mubr.f32.mxu0 %v353_v26  ;;  %v114_v42 = vld [vmem:[#allocation3 + $0x50] sm:$0xff] }
  0x82   :  { %19103 = vst [vmem:[#allocation54_spill] sm:$0xff] %v15082_v23  ;;  %19105 = vst [vmem:[#allocation56_spill] sm:$0xff] %v15087_v37  ;;  %v18776_v56 = vand.u32 4294901760, %v15082_v23  ;;  %v18777_v54 = vand.u32 4294901760, %v15085_v49  ;;  %v15096_v47 = vsub.f32 %v112_v36, %v15087_v37  ;;  %12718 = vmatprep.subr.bf16.mxu0 %v12717_v60  ;;  %v18792_v26 = vand.u32 4294901760, %v14900_v50  ;;  %1830 = vmatmul.mubr.f32.vlgmr.msra.gmra.mrb[0].mxu1 %v14963_v14  ;;  %v115_v60 = vld [vmem:[#allocation3 + $0x58] sm:$0xff] }
  0x83   :  { %v12719_v59 = vpack.c.bf16 %v601_v31, %v594_v19  ;;  %19106 = vst [vmem:[#allocation57_spill] sm:$0xff] %v15090_v18  ;;  %v18784_v24 = vand.u32 4294901760, %v15090_v18  ;;  %v719_v35 = vsub.f32 %v14889_v41, %v18775_v3  ;;  %v18791_v19 = vand.u32 4294901760, %v14897_v48  ;;  %1835 = vmatprep.mubr.f32.mxu1 %v14999_v0 }
  0x84   :  { %19107 = vst [vmem:[#allocation58_spill] sm:$0xff] %v15096_v47  ;;  %v382_v36 = vsub.f32 %v15082_v23, %v18776_v56  ;;  %v388_v28 = vsub.f32 %v15085_v49, %v18777_v54  ;;  %v726_v31 = vsub.f32 %v14893_v46, %v18779_v32  ;;  %360 = vmatmul.mubr.f32.gmra.mrb[2].mxu0 %v359_v45  ;;  %v19108_v45 = vand.u32 4294901760, %v15096_v47 }
  0x85   :  { %v397_v63 = vsub.f32 %v15090_v18, %v18784_v24  ;;  %v720_v3 = vand.u32 4294901760, %v719_v35  ;;  %v607_v56 = vsub.f32 %v14897_v48, %v18791_v19  ;;  %v614_v54 = vsub.f32 %v14900_v50, %v18792_v26  ;;  %369 = vmatprep.mubr.f32.mxu0 %v368_v8  ;;  %12720 = vmatpush3.bf16.msra.mxu0 %v12719_v59  ;;  %v116_v35 = vld [vmem:[#allocation3 + $0x60] sm:$0xff] }
  0x86   :  { %v383_v32 = vand.u32 4294901760, %v382_v36  ;;  %v389_v49 = vand.u32 4294901760, %v388_v28  ;;  %v403_v23 = vsub.f32 %v15096_v47, %v19108_v45  ;;  %v727_v24 = vand.u32 4294901760, %v726_v31  ;;  %1837 = vmatmul.mubr.f32.gmra.mrb[2].mxu1 %v15001_v1  ;;  %v119_v31 = vld [vmem:[#allocation3 + $0x78] sm:$0xff] }
  0x87   :  { %v398_v18 = vand.u32 4294901760, %v397_v63  ;;  %v608_v53 = vand.u32 4294901760, %v607_v56  ;;  %v615_v0 = vand.u32 4294901760, %v614_v54  ;;  %v15129_v19 = vand.u32 4294901760, %v115_v60  ;;  %1842 = vmatprep.mubr.f32.mxu1 %v15025_v38 }
  0x88   :  { %v404_v26 = vand.u32 4294901760, %v403_v23  ;;  %v12721_v14 = vpack.c.bf16 %v727_v24, %v720_v3  ;;  %v15132_v2 = vand.u32 4294901760, %v114_v42  ;;  %v15134_v8 = vand.u32 4294901760, %v117_v21  ;;  %375 = vmatmul.mubr.f32.gmra.mrb[4].mxu0 %v374_v11 }
  0x89   :  { %19109 = vst [vmem:[#allocation59_spill] sm:$0xff] %v15129_v19  ;;  %v12723_v59 = vpack.c.bf16 %v615_v0, %v608_v53  ;;  %v15138_v36 = vsub.f32 %v115_v60, %v15129_v19  ;;  %v15140_v63 = vand.u32 4294901760, %v116_v35  ;;  %v18799_v56 = vand.u32 4294901760, %v14902_v52  ;;  %384 = vmatprep.mubr.f32.mxu0 %v383_v32 }
  0x8a   :  { %19110 = vst [vmem:[#allocation60_spill] sm:$0xff] %v15132_v2  ;;  %19111 = vst [vmem:[#allocation61_spill] sm:$0xff] %v15134_v8  ;;  %12722 = vmatprep.subr.bf16.mxu0 %v12721_v14  ;;  %v15144_v23 = vsub.f32 %v114_v42, %v15132_v2  ;;  %v15147_v3 = vsub.f32 %v117_v21, %v15134_v8  ;;  %v18797_v54 = vand.u32 4294901760, %v14909_v61  ;;  %v18798_v11 = vand.u32 4294901760, %v14911_v62 }
  0x8b   :  { %19112 = vst [vmem:[#allocation62_spill] sm:$0xff] %v15138_v36  ;;  %19113 = vst [vmem:[#allocation63_spill] sm:$0xff] %v15140_v63  ;;  %12724 = vmatpush3.bf16.msra.mxu0 %v12723_v59  ;;  %v18802_v0 = vand.u32 4294901760, %v15138_v36  ;;  %v15153_v53 = vsub.f32 %v116_v35, %v15140_v63  ;;  %v733_v14 = vsub.f32 %v14902_v52, %v18799_v56  ;;  %v18807_v32 = vand.u32 4294901760, %v14916_v4 }
  0x8c   :  { %19114 = vst [vmem:[#allocation64_spill] sm:$0xff] %v15144_v23  ;;  %19115 = vst [vmem:[#allocation65_spill] sm:$0xff] %v15147_v3  ;;  %1844 = vmatmul.mubr.f32.gmra.mrb[4].mxu1 %v15034_v7  ;;  %v18810_v21 = vand.u32 4294901760, %v15144_v23  ;;  %v18816_v24 = vand.u32 4294901760, %v15147_v3  ;;  %v740_v28 = vsub.f32 %v14909_v61, %v18797_v54  ;;  %v621_v42 = vsub.f32 %v14911_v62, %v18798_v11  ;;  %v118_v54 = vld [vmem:[#allocation3 + $0x70] sm:$0xff] }
  0x8d   :  { %19116 = vst [vmem:[#allocation66_spill] sm:$0xff] %v15153_v53  ;;  %1849 = vmatprep.mubr.f32.mxu1 %v15071_v5  ;;  %390 = vmatmul.mubr.f32.gmra.mrb[6].mxu0 %v389_v49  ;;  %v412_v60 = vsub.f32 %v15138_v36, %v18802_v0  ;;  %v18815_v45 = vand.u32 4294901760, %v15153_v53  ;;  %v734_v35 = vand.u32 4294901760, %v733_v14  ;;  %v628_v59 = vsub.f32 %v14916_v4, %v18807_v32  ;;  %v121_v0 = vld [vmem:[#allocation3 + $0x88] sm:$0xff] }
  0x8e   :  { %399 = vmatprep.mubr.f32.mxu0 %v398_v18  ;;  %v418_v11 = vsub.f32 %v15144_v23, %v18810_v21  ;;  %v427_v49 = vsub.f32 %v15147_v3, %v18816_v24  ;;  %v741_v56 = vand.u32 4294901760, %v740_v28  ;;  %v622_v47 = vand.u32 4294901760, %v621_v42  ;;  %v120_v18 = vld [vmem:[#allocation3 + $0x80] sm:$0xff]  ;;  %v123_v24 = vld [vmem:[#allocation3 + $0x98] sm:$0xff] }
  0x8f   :  { %v413_v36 = vand.u32 4294901760, %v412_v60  ;;  %v433_v14 = vsub.f32 %v15153_v53, %v18815_v45  ;;  %v629_v5 = vand.u32 4294901760, %v628_v59  ;;  %v15185_v32 = vand.u32 4294901760, %v119_v31 }
  0x90   :  { %1851 = vmatmul.mubr.f32.gmra.mrb[6].mxu1 %v15073_v15  ;;  %v419_v7 = vand.u32 4294901760, %v418_v11  ;;  %v428_v21 = vand.u32 4294901760, %v427_v49  ;;  %v12725_v23 = vpack.c.bf16 %v741_v56, %v734_v35  ;;  %v15188_v38 = vand.u32 4294901760, %v118_v54 }
  0x91   :  { %19117 = vst [vmem:[#allocation67_spill] sm:$0xff] %v15185_v32  ;;  %1856 = vmatprep.mubr.f32.mxu1 %v15078_v22  ;;  %405 = vmatmul.mubr.f32.gmra.mrb[8].mxu0 %v404_v26  ;;  %v434_v28 = vand.u32 4294901760, %v433_v14  ;;  %v12727_v42 = vpack.c.bf16 %v629_v5, %v622_v47  ;;  %v15192_v60 = vsub.f32 %v119_v31, %v15185_v32  ;;  %v15194_v45 = vand.u32 4294901760, %v121_v0  ;;  %v125_v14 = vld [vmem:[#allocation3 + $0xa8] sm:$0xff] }
  0x92   :  { %19118 = vst [vmem:[#allocation68_spill] sm:$0xff] %v15188_v38  ;;  %414 = vmatprep.mubr.f32.mxu0 %v413_v36  ;;  %12726 = vmatprep.subr.bf16.mxu0 %v12725_v23  ;;  %v15197_v59 = vsub.f32 %v118_v54, %v15188_v38  ;;  %v15199_v11 = vand.u32 4294901760, %v120_v18  ;;  %v18818_v56 = vand.u32 4294901760, %v14920_v6  ;;  %v18817_v35 = vand.u32 4294901760, %v14922_v10 }
  0x93   :  { %19119 = vst [vmem:[#allocation69_spill] sm:$0xff] %v15192_v60  ;;  %19120 = vst [vmem:[#allocation70_spill] sm:$0xff] %v15194_v45  ;;  %12728 = vmatpush3.bf16.msra.mxu0 %v12727_v42  ;;  %v18819_v26 = vand.u32 4294901760, %v15192_v60  ;;  %v15205_v5 = vsub.f32 %v121_v0, %v15194_v45  ;;  %v18826_v47 = vand.u32 4294901760, %v14926_v12  ;;  %v18831_v36 = vand.u32 4294901760, %v14928_v13 }
  0x94   :  { %19121 = vst [vmem:[#allocation71_spill] sm:$0xff] %v15197_v59  ;;  %19122 = vst [vmem:[#allocation72_spill] sm:$0xff] %v15199_v11  ;;  %1858 = vmatmul.mubr.f32.gmra.mrb[8].mxu1 %v15087_v37  ;;  %v18832_v23 = vand.u32 4294901760, %v15197_v59  ;;  %v15212_v54 = vsub.f32 %v120_v18, %v15199_v11  ;;  %v747_v31 = vsub.f32 %v14920_v6, %v18818_v56 }
  0x95   :  { %19123 = vst [vmem:[#allocation73_spill] sm:$0xff] %v15205_v5  ;;  %v754_v0 = vsub.f32 %v14922_v10, %v18817_v35  ;;  %1863 = vmatprep.mubr.f32.mxu1 %v15129_v19  ;;  %420 = vmatmul.mubr.f32.gmra.mrb[10].mxu0 %v419_v7  ;;  %v442_v49 = vsub.f32 %v15192_v60, %v18819_v26  ;;  %v122_v60 = vld [vmem:[#allocation3 + $0x90] sm:$0xff]  ;;  %v19125_v3 = vand.u32 4294901760, %v15205_v5 }
  0x96   :  { %19124 = vst [vmem:[#allocation74_spill] sm:$0xff] %v15212_v54  ;;  %v635_v18 = vsub.f32 %v14926_v12, %v18826_v47  ;;  %v642_v42 = vsub.f32 %v14928_v13, %v18831_v36  ;;  %429 = vmatprep.mubr.f32.mxu0 %v428_v21  ;;  %v448_v7 = vsub.f32 %v15197_v59, %v18832_v23  ;;  %v18837_v35 = vand.u32 4294901760, %v15212_v54  ;;  %v124_v36 = vld [vmem:[#allocation3 + $0xa0] sm:$0xff] }
  0x97   :  { %v748_v56 = vand.u32 4294901760, %v747_v31  ;;  %v755_v26 = vand.u32 4294901760, %v754_v0  ;;  %v443_v53 = vand.u32 4294901760, %v442_v49  ;;  %v457_v47 = vsub.f32 %v15205_v5, %v19125_v3 }
  0x98   :  { %v636_v19 = vand.u32 4294901760, %v635_v18  ;;  %v643_v37 = vand.u32 4294901760, %v642_v42  ;;  %1865 = vmatmul.mubr.f32.gmra.mrb[10].mxu1 %v15132_v2  ;;  %v449_v21 = vand.u32 4294901760, %v448_v7  ;;  %v463_v23 = vsub.f32 %v15212_v54, %v18837_v35 }
  0x99   :  { %v12729_v59 = vpack.c.bf16 %v755_v26, %v748_v56  ;;  %v15242_v31 = vand.u32 4294901760, %v123_v24  ;;  %1870 = vmatprep.mubr.f32.mxu1 %v15134_v8  ;;  %435 = vmatmul.mubr.f32.gmra.mrb[12].mxu0 %v434_v28  ;;  %v458_v0 = vand.u32 4294901760, %v457_v47  ;;  %v15245_v13 = vand.u32 4294901760, %v122_v60  ;;  %v126_v47 = vld [vmem:[#allocation3 + $0xb0] sm:$0xff]  ;;  %v128_v8 = vld [vmem:[#allocation3 + $0xc0] sm:$0xff] }
  0x9a   :  { %v12731_v49 = vpack.c.bf16 %v643_v37, %v636_v19  ;;  %v15247_v3 = vand.u32 4294901760, %v125_v14  ;;  %444 = vmatprep.mubr.f32.mxu0 %v443_v53  ;;  %v464_v18 = vand.u32 4294901760, %v463_v23  ;;  %v15252_v7 = vand.u32 4294901760, %v124_v36 }
  0x9b   :  { %19126 = vst [vmem:[#allocation75_spill] sm:$0xff] %v15242_v31  ;;  %19127 = vst [vmem:[#allocation76_spill] sm:$0xff] %v15245_v13  ;;  %12730 = vmatprep.subr.bf16.mxu0 %v12729_v59  ;;  %v15250_v42 = vsub.f32 %v123_v24, %v15242_v31  ;;  %v18838_v56 = vand.u32 4294901760, %v14936_v33  ;;  %v15256_v26 = vsub.f32 %v122_v60, %v15245_v13  ;;  %v18839_v19 = vand.u32 4294901760, %v14938_v34 }
  0x9c   :  { %19128 = vst [vmem:[#allocation77_spill] sm:$0xff] %v15247_v3  ;;  %19130 = vst [vmem:[#allocation79_spill] sm:$0xff] %v15252_v7  ;;  %12732 = vmatpush3.bf16.msra.mxu0 %v12731_v49  ;;  %v15259_v37 = vsub.f32 %v125_v14, %v15247_v3  ;;  %v18842_v53 = vand.u32 4294901760, %v14942_v43  ;;  %1872 = vmatmul.mubr.f32.gmra.mrb[12].mxu1 %v15140_v63  ;;  %v15266_v28 = vsub.f32 %v124_v36, %v15252_v7  ;;  %v127_v49 = vld [vmem:[#allocation3 + $0xb8] sm:$0xff]  ;;  %v129_v63 = vld [vmem:[#allocation3 + $0xc8] sm:$0xff] }
  0x9d   :  { %19129 = vst [vmem:[#allocation78_spill] sm:$0xff] %v15250_v42  ;;  %19131 = vst [vmem:[#allocation80_spill] sm:$0xff] %v15256_v26  ;;  %v18849_v24 = vand.u32 4294901760, %v15250_v42  ;;  %v761_v59 = vsub.f32 %v14936_v33, %v18838_v56  ;;  %v18850_v60 = vand.u32 4294901760, %v14944_v44  ;;  %1877 = vmatprep.mubr.f32.mxu1 %v15185_v32  ;;  %450 = vmatmul.mubr.f32.gmra.mrb[14].mxu0 %v449_v21 }
  0x9e   :  { %19132 = vst [vmem:[#allocation81_spill] sm:$0xff] %v15259_v37  ;;  %19133 = vst [vmem:[#allocation82_spill] sm:$0xff] %v15266_v28  ;;  %v768_v14 = vsub.f32 %v14938_v34, %v18839_v19  ;;  %v649_v36 = vsub.f32 %v14942_v43, %v18842_v53  ;;  %459 = vmatprep.mubr.f32.mxu0 %v458_v0  ;;  %v18861_v21 = vand.u32 4294901760, %v15266_v28  ;;  %v19134_v19 = vand.u32 4294901760, %v15256_v26 }
  0x9f   :  { %v472_v35 = vsub.f32 %v15250_v42, %v18849_v24  ;;  %v762_v56 = vand.u32 4294901760, %v761_v59  ;;  %v656_v23 = vsub.f32 %v14944_v44, %v18850_v60  ;;  %v19135_v53 = vand.u32 4294901760, %v15259_v37 }
  0xa0   :  { %v478_v54 = vsub.f32 %v15256_v26, %v19134_v19  ;;  %v769_v5 = vand.u32 4294901760, %v768_v14  ;;  %v650_v32 = vand.u32 4294901760, %v649_v36  ;;  %1879 = vmatmul.mubr.f32.gmra.mrb[14].mxu1 %v15188_v38  ;;  %v493_v59 = vsub.f32 %v15266_v28, %v18861_v21 }
  0xa1   :  { %v487_v0 = vsub.f32 %v15259_v37, %v19135_v53  ;;  %v473_v24 = vand.u32 4294901760, %v472_v35  ;;  %v657_v60 = vand.u32 4294901760, %v656_v23  ;;  %v15298_v42 = vand.u32 4294901760, %v127_v49  ;;  %1884 = vmatprep.mubr.f32.mxu1 %v15194_v45  ;;  %465 = vmatmul.mubr.f32.gmra.mrb[16].mxu0 %v464_v18 }
  0xa2   :  { %v479_v19 = vand.u32 4294901760, %v478_v54  ;;  %v12733_v53 = vpack.c.bf16 %v769_v5, %v762_v56  ;;  %v15301_v14 = vand.u32 4294901760, %v126_v47  ;;  %v494_v36 = vand.u32 4294901760, %v493_v59 }
  0xa3   :  { %19136 = vst [vmem:[#allocation83_spill] sm:$0xff] %v15298_v42  ;;  %v488_v26 = vand.u32 4294901760, %v487_v0  ;;  %474 = vmatprep.mubr.f32.mxu0 %v473_v24  ;;  %v12735_v37 = vpack.c.bf16 %v657_v60, %v650_v32  ;;  %v15304_v35 = vsub.f32 %v127_v49, %v15298_v42  ;;  %v15306_v38 = vand.u32 4294901760, %v129_v63 }
  0xa4   :  { %19137 = vst [vmem:[#allocation84_spill] sm:$0xff] %v15301_v14  ;;  %12734 = vmatprep.subr.bf16.mxu0 %v12733_v53  ;;  %v15309_v23 = vsub.f32 %v126_v47, %v15301_v14  ;;  %v15311_v21 = vand.u32 4294901760, %v128_v8  ;;  %v18863_v54 = vand.u32 4294901760, %v14948_v51  ;;  %v18862_v5 = vand.u32 4294901760, %v14951_v55  ;;  %1886 = vmatmul.mubr.f32.gmra.mrb[16].mxu1 %v15199_v11  ;;  %v132_v11 = vld [vmem:[#allocation3 + $0xe0] sm:$0xff] }
  0xa5   :  { %19138 = vst [vmem:[#allocation85_spill] sm:$0xff] %v15304_v35  ;;  %19139 = vst [vmem:[#allocation86_spill] sm:$0xff] %v15306_v38  ;;  %12736 = vmatpush3.bf16.msra.mxu0 %v12735_v37  ;;  %v18864_v32 = vand.u32 4294901760, %v15304_v35  ;;  %v15318_v18 = vsub.f32 %v129_v63, %v15306_v38  ;;  %v18867_v56 = vand.u32 4294901760, %v14955_v57  ;;  %v18872_v24 = vand.u32 4294901760, %v14957_v58  ;;  %1891 = vmatprep.mubr.f32.mxu1 %v15242_v31 }
  0xa6   :  { %19140 = vst [vmem:[#allocation87_spill] sm:$0xff] %v15309_v23  ;;  %19141 = vst [vmem:[#allocation88_spill] sm:$0xff] %v15311_v21  ;;  %480 = vmatmul.mubr.f32.gmra.mrb[18].mxu0 %v479_v19  ;;  %v18875_v60 = vand.u32 4294901760, %v15309_v23  ;;  %v15325_v47 = vsub.f32 %v128_v8, %v15311_v21  ;;  %v775_v37 = vsub.f32 %v14948_v51, %v18863_v54  ;;  %v131_v19 = vld [vmem:[#allocation3 + $0xd8] sm:$0xff] }
  0xa7   :  { %19142 = vst [vmem:[#allocation89_spill] sm:$0xff] %v15318_v18  ;;  %v782_v63 = vsub.f32 %v14951_v55, %v18862_v5  ;;  %489 = vmatprep.mubr.f32.mxu0 %v488_v26  ;;  %v502_v49 = vsub.f32 %v15304_v35, %v18864_v32  ;;  %v663_v8 = vsub.f32 %v14955_v57, %v18867_v56  ;;  %v130_v32 = vld [vmem:[#allocation3 + $0xd0] sm:$0xff]  ;;  %v133_v35 = vld [vmem:[#allocation3 + $0xe8] sm:$0xff]  ;;  %v19144_v56 = vand.u32 4294901760, %v15318_v18 }
  0xa8   :  { %19143 = vst [vmem:[#allocation90_spill] sm:$0xff] %v15325_v47  ;;  %v670_v59 = vsub.f32 %v14957_v58, %v18872_v24  ;;  %v508_v53 = vsub.f32 %v15309_v23, %v18875_v60  ;;  %v18882_v26 = vand.u32 4294901760, %v15325_v47  ;;  %v776_v5 = vand.u32 4294901760, %v775_v37  ;;  %1893 = vmatmul.mubr.f32.gmra.mrb[18].mxu1 %v15245_v13 }
  0xa9   :  { %v783_v54 = vand.u32 4294901760, %v782_v63  ;;  %v503_v0 = vand.u32 4294901760, %v502_v49  ;;  %v517_v28 = vsub.f32 %v15318_v18, %v19144_v56  ;;  %v664_v31 = vand.u32 4294901760, %v663_v8  ;;  %1898 = vmatprep.mubr.f32.mxu1 %v15247_v3 }
  0xaa   :  { %v671_v24 = vand.u32 4294901760, %v670_v59  ;;  %495 = vmatmul.mubr.f32.gmra.mrb[20].mxu0 %v494_v36  ;;  %v509_v60 = vand.u32 4294901760, %v508_v53  ;;  %v523_v37 = vsub.f32 %v15325_v47, %v18882_v26  ;;  %v15355_v23 = vand.u32 4294901760, %v131_v19 }
  0xab   :  { %v12737_v63 = vpack.c.bf16 %v783_v54, %v776_v5  ;;  %504 = vmatprep.mubr.f32.mxu0 %v503_v0  ;;  %v518_v49 = vand.u32 4294901760, %v517_v28  ;;  %v15357_v45 = vand.u32 4294901760, %v130_v32  ;;  %v15359_v56 = vand.u32 4294901760, %v133_v35 }
  0xac   :  { %19145 = vst [vmem:[#allocation91_spill] sm:$0xff] %v15355_v23  ;;  %v12739_v13 = vpack.c.bf16 %v671_v24, %v664_v31  ;;  %v524_v8 = vand.u32 4294901760, %v523_v37  ;;  %v15362_v59 = vsub.f32 %v131_v19, %v15355_v23  ;;  %v15364_v36 = vand.u32 4294901760, %v132_v11  ;;  %1900 = vmatmul.mubr.f32.gmra.mrb[20].mxu1 %v15252_v7  ;;  %v135_v37 = vld [vmem:[#allocation3 + $0xf8] sm:$0xff]  ;;  %v134_v19 = vld [vmem:[#allocation3 + $0xf0] sm:$0xff] }
  0xad   :  { %19146 = vst [vmem:[#allocation92_spill] sm:$0xff] %v15357_v45  ;;  %19147 = vst [vmem:[#allocation93_spill] sm:$0xff] %v15359_v56  ;;  %12738 = vmatprep.subr.bf16.mxu0 %v12737_v63  ;;  %v18883_v53 = vand.u32 4294901760, %v14970_v9  ;;  %v15369_v54 = vsub.f32 %v130_v32, %v15357_v45  ;;  %v15372_v31 = vsub.f32 %v133_v35, %v15359_v56  ;;  %v18884_v28 = vand.u32 4294901760, %v14972_v20 }
  0xae   :  { %19148 = vst [vmem:[#allocation94_spill] sm:$0xff] %v15362_v59  ;;  %19149 = vst [vmem:[#allocation95_spill] sm:$0xff] %v15364_v36  ;;  %12740 = vmatpush3.bf16.msra.mxu0 %v12739_v13  ;;  %v18885_v5 = vand.u32 4294901760, %v14977_v29  ;;  %1905 = vmatprep.mubr.f32.mxu1 %v15298_v42  ;;  %v18890_v24 = vand.u32 4294901760, %v15362_v59  ;;  %v15379_v0 = vsub.f32 %v132_v11, %v15364_v36  ;;  %v18891_v32 = vand.u32 4294901760, %v14979_v30 }
  0xaf   :  { %19150 = vst [vmem:[#allocation96_spill] sm:$0xff] %v15369_v54  ;;  %19151 = vst [vmem:[#allocation97_spill] sm:$0xff] %v15372_v31  ;;  %510 = vmatmul.mubr.f32.gmra.mrb[22].mxu0 %v509_v60  ;;  %v789_v13 = vsub.f32 %v14970_v9, %v18883_v53  ;;  %v18900_v35 = vand.u32 4294901760, %v15369_v54  ;;  %v796_v60 = vsub.f32 %v14972_v20, %v18884_v28 }
  0xb0   :  { %519 = vmatprep.mubr.f32.mxu0 %v518_v49  ;;  %v677_v11 = vsub.f32 %v14977_v29, %v18885_v5  ;;  %v532_v63 = vsub.f32 %v15362_v59, %v18890_v24  ;;  %v18905_v26 = vand.u32 4294901760, %v15379_v0  ;;  %v684_v53 = vsub.f32 %v14979_v30, %v18891_v32  ;;  %1907 = vmatmul.mubr.f32.gmra.mrb[22].mxu1 %v15301_v14 }
  0xb1   :  { %v790_v49 = vand.u32 4294901760, %v789_v13  ;;  %v538_v28 = vsub.f32 %v15369_v54, %v18900_v35  ;;  %v19152_v5 = vand.u32 4294901760, %v15372_v31  ;;  %v797_v18 = vand.u32 4294901760, %v796_v60  ;;  %1912 = vmatprep.mubr.f32.mxu1 %v15306_v38 }
  0xb2   :  { %v678_v24 = vand.u32 4294901760, %v677_v11  ;;  %v533_v13 = vand.u32 4294901760, %v532_v63  ;;  %v553_v32 = vsub.f32 %v15379_v0, %v18905_v26  ;;  %v685_v59 = vand.u32 4294901760, %v684_v53 }
  0xb3   :  { %v547_v47 = vsub.f32 %v15372_v31, %v19152_v5  ;;  %525 = vmatmul.mubr.f32.gmra.mrb[24].mxu0 %v524_v8  ;;  %v15411_v14 = vand.u32 4294901760, %v135_v37  ;;  %v539_v42 = vand.u32 4294901760, %v538_v28  ;;  %v12741_v35 = vpack.c.bf16 %v797_v18, %v790_v49  ;;  %v19156_v49 = vld [vmem:[#allocation37_spill] sm:$0xff] }
  0xb4   :  { %v15413_v54 = vand.u32 4294901760, %v134_v19  ;;  %534 = vmatprep.mubr.f32.mxu0 %v533_v13  ;;  %v12743_v5 = vpack.c.bf16 %v685_v59, %v678_v24  ;;  %v12745_v8 = vpack.c.bf16 %v14864_v17, %v14862_v16  ;;  %1914 = vmatmul.mubr.f32.gmra.mrb[24].mxu1 %v15311_v21  ;;  %v554_v11 = vand.u32 4294901760, %v553_v32  ;;  %v19157_v13 = vld [vmem:[#allocation21_spill] sm:$0xff] }
  0xb5   :  { %19153 = vst [vmem:[#allocation98_spill] sm:$0xff] %v15411_v14  ;;  %v548_v7 = vand.u32 4294901760, %v547_v47  ;;  %v15416_v60 = vsub.f32 %v135_v37, %v15411_v14  ;;  %12742 = vmatprep.subr.bf16.mxu0 %v12741_v35  ;;  %v12749_v18 = vpack.c.bf16 %v14877_v27, %v14874_v25  ;;  %v12751_v47 = vpack.c.bf16 %v14887_v40, %v14885_v39 }
  0xb6   :  { %19154 = vst [vmem:[#allocation99_spill] sm:$0xff] %v15413_v54  ;;  %v15422_v53 = vsub.f32 %v134_v19, %v15413_v54  ;;  %v12753_v28 = vpack.c.bf16 %v14893_v46, %v14889_v41  ;;  %v12755_v24 = vpack.c.bf16 %v14900_v50, %v14897_v48  ;;  %v12757_v32 = vpack.c.bf16 %v14909_v61, %v14902_v52 }
  0xb7   :  { %19155 = vst [vmem:[#allocation100_spill] sm:$0xff] %v15416_v60  ;;  %540 = vmatmul.mubr.f32.gmra.mrb[26].mxu0 %v539_v42  ;;  %v18904_v59 = vand.u32 4294901760, %v15416_v60  ;;  %1919 = vmatprep.mubr.f32.mxu1 %v15355_v23  ;;  %v12759_v42 = vpack.c.bf16 %v14916_v4, %v14911_v62  ;;  %v12773_v26 = vpack.c.bf16 %v14972_v20, %v14970_v9 }
  0xb8   :  { %549 = vmatprep.mubr.f32.mxu0 %v548_v7  ;;  %12744 = vmatpush3.bf16.msra.mxu0 %v12743_v5  ;;  %v18903_v35 = vand.u32 4294901760, %v15422_v53  ;;  %v19158_v5 = vld [vmem:[#allocation23_spill] sm:$0xff] }
  0xb9   :  { %v562_v19 = vsub.f32 %v15416_v60, %v18904_v59  ;;  %12746 = vmatprep.subr.bf16.mxu0 %v12745_v8  ;;  %1921 = vmatmul.mubr.f32.gmra.mrb[26].mxu1 %v15357_v45  ;;  %v12747_v8 = vpack.c.bf16 %v19158_v5, %v19157_v13  ;;  %v19166_v59 = vld [vmem:[#allocation59_spill] sm:$0xff] }
  0xba   :  { %v568_v37 = vsub.f32 %v15422_v53, %v18903_v35  ;;  %1926 = vmatprep.mubr.f32.mxu1 %v15359_v56  ;;  %v19159_v35 = vld [vmem:[#allocation38_spill] sm:$0xff] }
  0xbb   :  { %555 = vmatmul.mubr.f32.gmra.mrb[28].mxu0 %v554_v11  ;;  %v563_v63 = vand.u32 4294901760, %v562_v19  ;;  %v19160_v11 = vld [vmem:[#allocation43_spill] sm:$0xff] }
  0xbc   :  { %v569_v7 = vand.u32 4294901760, %v568_v37  ;;  %v19161_v19 = vld [vmem:[#allocation47_spill] sm:$0xff]  ;;  %v19162_v37 = vld [vmem:[#allocation49_spill] sm:$0xff] }
  0xbd   :  { %564 = vmatprep.mubr.f32.mxu0 %v563_v63  ;;  %1928 = vmatmul.mubr.f32.gmra.mrb[28].mxu1 %v15364_v36  ;;  %v19163_v63 = vld [vmem:[#allocation51_spill] sm:$0xff] }
  0xbe   :  { %1933 = vmatprep.mubr.f32.mxu1 %v15411_v14 }
  0xbf   :  { %570 = vmatmul.mubr.f32.gmra.mrb[30].mxu0 %v569_v7  ;;  %v12761_v7 = vpack.c.bf16 %v14922_v10, %v14920_v6 }
  0xc0   :  { %800 = vmatprep.mubr.f32.mxu0 %v19156_v49  ;;  %v19225_v49 = vand.u32 4294901760, %v19157_v13 }
  0xc1   :  { %1935 = vmatmul.mubr.f32.gmra.mrb[30].mxu1 %v15413_v54 }
  0xc3   :  { %802 = vmatmul.mubr.f32.vlgmr.msra.gmra.mrb[32].mxu0 %v19159_v35 }
  0xc4   :  { %12748 = vmatpush3.bf16.msra.mxu0 %v12747_v8  ;;  %807 = vmatprep.mubr.f32.mxu0 %v19160_v11  ;;  %v19215_v11 = vld [vmem:[#allocation80_spill] sm:$0xff] }
  0xc5   :  { %12750 = vmatprep.subr.bf16.mxu0 %v12749_v18  ;;  %v19164_v18 = vld [vmem:[#allocation32_spill] sm:$0xff] }
  0xc6   :  { %v12763_v8 = vpack.c.bf16 %v19164_v18, %v14926_v12 }
  0xc7   :  { %809 = vmatmul.mubr.f32.gmra.mrb[34].mxu0 %v15001_v1  ;;  %v19214_v1 = vld [vmem:[#allocation78_spill] sm:$0xff] }
  0xc8   :  { %814 = vmatprep.mubr.f32.mxu0 %v19161_v19  ;;  %12752 = vmatpush3.bf16.msra.mxu0 %v12751_v47  ;;  %v12765_v47 = vpack.c.bf16 %v14938_v34, %v14936_v33  ;;  %v19211_v19 = vld [vmem:[#allocation73_spill] sm:$0xff] }
  0xc9   :  { %12754 = vmatprep.subr.bf16.mxu0 %v12753_v28  ;;  %v19165_v28 = vld [vmem:[#allocation56_spill] sm:$0xff] }
  0xcb   :  { %816 = vmatmul.mubr.f32.gmra.mrb[36].mxu0 %v19162_v37  ;;  %v19210_v37 = vld [vmem:[#allocation71_spill] sm:$0xff] }
  0xcc   :  { %821 = vmatprep.mubr.f32.mxu0 %v19163_v63  ;;  %12756 = vmatpush3.bf16.msra.mxu0 %v12755_v24  ;;  %v12767_v24 = vpack.c.bf16 %v14944_v44, %v14942_v43 }
  0xcd   :  { %12758 = vmatprep.subr.bf16.mxu0 %v12757_v32  ;;  %v12769_v32 = vpack.c.bf16 %v14951_v55, %v14948_v51 }
  0xcf   :  { %823 = vmatmul.mubr.f32.gmra.mrb[38].mxu0 %v15073_v15  ;;  %v19207_v15 = vld [vmem:[#allocation39_spill] sm:$0xff] }
  0xd0   :  { %828 = vmatprep.mubr.f32.mxu0 %v15078_v22  ;;  %12760 = vmatpush3.bf16.msra.mxu0 %v12759_v42  ;;  %v19167_v42 = vld [vmem:[#allocation61_spill] sm:$0xff]  ;;  %v19175_v22 = vld [vmem:[#allocation76_spill] sm:$0xff] }
  0xd1   :  { %12762 = vmatprep.subr.bf16.mxu0 %v12761_v7  ;;  %v12771_v7 = vpack.c.bf16 %v14957_v58, %v14955_v57 }
  0xd3   :  { %830 = vmatmul.mubr.f32.gmra.mrb[40].mxu0 %v19165_v28  ;;  %v19174_v28 = vld [vmem:[#allocation75_spill] sm:$0xff] }
  0xd4   :  { %835 = vmatprep.mubr.f32.mxu0 %v19166_v59  ;;  %12764 = vmatpush3.bf16.msra.mxu0 %v12763_v8  ;;  %v19168_v8 = vld [vmem:[#allocation63_spill] sm:$0xff] }
  0xd5   :  { %12766 = vmatprep.subr.bf16.mxu0 %v12765_v47  ;;  %v19169_v59 = vld [vmem:[#allocation67_spill] sm:$0xff]  ;;  %v12775_v47 = vpack.c.bf16 %v14979_v30, %v14977_v29 }
  0xd7   :  { %837 = vmatmul.mubr.f32.gmra.mrb[42].mxu0 %v15132_v2  ;;  %v19170_v2 = vld [vmem:[#allocation68_spill] sm:$0xff] }
  0xd8   :  { %842 = vmatprep.mubr.f32.mxu0 %v19167_v42  ;;  %12768 = vmatpush3.bf16.msra.mxu0 %v12767_v24  ;;  %v19171_v42 = vld [vmem:[#allocation70_spill] sm:$0xff]  ;;  %v19172_v24 = vld [vmem:[#allocation20_spill] sm:$0xff] }
  0xd9   :  { %12770 = vmatprep.subr.bf16.mxu0 %v12769_v32  ;;  %v19173_v32 = vld [vmem:[#allocation72_spill] sm:$0xff] }
  0xdb   :  { %844 = vmatmul.mubr.f32.gmra.mrb[44].mxu0 %v19168_v8  ;;  %v19204_v8 = vld [vmem:[#allocation66_spill] sm:$0xff] }
  0xdc   :  { %849 = vmatprep.mubr.f32.mxu0 %v19169_v59  ;;  %12772 = vmatpush3.bf16.msra.mxu0 %v12771_v7  ;;  %v19176_v7 = vld [vmem:[#allocation79_spill] sm:$0xff] }
  0xdd   :  { %12774 = vmatprep.subr.bf16.mxu0 %v12773_v26  ;;  %v19177_v59 = vld [vmem:[#allocation83_spill] sm:$0xff]  ;;  %v19178_v26 = vld [vmem:[#allocation84_spill] sm:$0xff] }
  0xdf   :  { %851 = vmatmul.mubr.f32.gmra.mrb[46].mxu0 %v19170_v2  ;;  %v19203_v2 = vld [vmem:[#allocation35_spill] sm:$0xff] }
  0xe0   :  { %856 = vmatprep.mubr.f32.mxu0 %v19171_v42  ;;  %12776 = vmatpush3.bf16.msra.mxu0 %v12775_v47  ;;  %v19179_v47 = vld [vmem:[#allocation41_spill] sm:$0xff]  ;;  %v19200_v42 = vld [vmem:[#allocation64_spill] sm:$0xff] }
  0xe1   :  { %12778 = vmatprep.subr.bf16.mxu0 %v19172_v24  ;;  %v19180_v24 = vld [vmem:[#allocation42_spill] sm:$0xff]  ;;  %v19224_v35 = vand.u32 4294901760, %v19179_v47 }
  0xe3   :  { %858 = vmatmul.mubr.f32.gmra.mrb[48].mxu0 %v19173_v32  ;;  %v19199_v32 = vld [vmem:[#allocation33_spill] sm:$0xff] }
  0xe4   :  { %863 = vmatprep.mubr.f32.mxu0 %v19174_v28  ;;  %v19196_v28 = vld [vmem:[#allocation58_spill] sm:$0xff] }
  0xe7   :  { %865 = vmatmul.mubr.f32.gmra.mrb[50].mxu0 %v19175_v22  ;;  %v19195_v22 = vld [vmem:[#allocation30_spill] sm:$0xff] }
  0xe8   :  { %870 = vmatprep.mubr.f32.mxu0 %v15247_v3  ;;  %v19193_v3 = vld [vmem:[#allocation57_spill] sm:$0xff] }
  0xeb   :  { %872 = vmatmul.mubr.f32.gmra.mrb[52].mxu0 %v19176_v7  ;;  %v19191_v7 = vld [vmem:[#allocation28_spill] sm:$0xff] }
  0xec   :  { %877 = vmatprep.mubr.f32.mxu0 %v19177_v59  ;;  %v19190_v59 = vld [vmem:[#allocation27_spill] sm:$0xff] }
  0xef   :  { %879 = vmatmul.mubr.f32.gmra.mrb[54].mxu0 %v19178_v26  ;;  %v19181_v26 = vld [vmem:[#allocation22_spill] sm:$0xff] }
  0xf0   :  { %884 = vmatprep.mubr.f32.mxu0 %v15306_v38  ;;  %v19182_v38 = vld [vmem:[#allocation45_spill] sm:$0xff] }
  0xf3   :  { %886 = vmatmul.mubr.f32.gmra.mrb[56].mxu0 %v15311_v21  ;;  %v19183_v21 = vld [vmem:[#allocation24_spill] sm:$0xff] }
  0xf4   :  { %891 = vmatprep.mubr.f32.mxu0 %v15355_v23  ;;  %v19184_v23 = vld [vmem:[#allocation46_spill] sm:$0xff] }
  0xf7   :  { %893 = vmatmul.mubr.f32.gmra.mrb[58].mxu0 %v15357_v45  ;;  %v19185_v45 = vld [vmem:[#allocation48_spill] sm:$0xff] }
  0xf8   :  { %898 = vmatprep.mubr.f32.mxu0 %v15359_v56  ;;  %v19186_v56 = vld [vmem:[#allocation25_spill] sm:$0xff] }
  0xfb   :  { %900 = vmatmul.mubr.f32.gmra.mrb[60].mxu0 %v15364_v36  ;;  %v19187_v36 = vld [vmem:[#allocation26_spill] sm:$0xff] }
  0xfc   :  { %905 = vmatprep.mubr.f32.mxu0 %v15411_v14  ;;  %v19188_v14 = vld [vmem:[#allocation50_spill] sm:$0xff] }
  0xff   :  { %907 = vmatmul.mubr.f32.gmra.mrb[62].mxu0 %v15413_v54  ;;  %v19189_v54 = vld [vmem:[#allocation54_spill] sm:$0xff] }
 0x100   :  { %1042 = vmatprep.mubr.f32.mxu0 %v19179_v47  ;;  %v19231_v47 = vand.u32 4294901760, %v14885_v39  ;;  %v19238_v39 = vand.u32 4294901760, %v14900_v50  ;;  %v19245_v50 = vand.u32 4294901760, %v14920_v6  ;;  %v19252_v6 = vand.u32 4294901760, %v14938_v34 }
 0x103   :  { %1045 = vmatmul.mubr.f32.vlgmr.msra.gmra.mrb[64].mxu0 %v19180_v24 }
 0x104   :  { %12780 = vmatpush3.bf16.msra.mxu0 %v19181_v26  ;;  %1051 = vmatprep.mubr.f32.mxu0 %v19182_v38  ;;  %v19192_v26 = vld [vmem:[#allocation55_spill] sm:$0xff] }
 0x105   :  { %12782 = vmatprep.subr.bf16.mxu0 %v19183_v21  ;;  %v19194_v21 = vld [vmem:[#allocation29_spill] sm:$0xff] }
 0x107   :  { %1054 = vmatmul.mubr.f32.gmra.mrb[66].mxu0 %v19184_v23 }
 0x108   :  { %1060 = vmatprep.mubr.f32.mxu0 %v19185_v45  ;;  %12784 = vmatpush3.bf16.msra.mxu0 %v19186_v56  ;;  %v19197_v56 = vld [vmem:[#allocation62_spill] sm:$0xff] }
 0x109   :  { %12786 = vmatprep.subr.bf16.mxu0 %v19187_v36  ;;  %v19198_v36 = vld [vmem:[#allocation31_spill] sm:$0xff] }
 0x10b   :  { %1063 = vmatmul.mubr.f32.gmra.mrb[68].mxu0 %v19188_v14 }
 0x10c   :  { %1069 = vmatprep.mubr.f32.mxu0 %v19189_v54  ;;  %12788 = vmatpush3.bf16.msra.mxu0 %v19190_v59  ;;  %v19201_v59 = vld [vmem:[#allocation65_spill] sm:$0xff] }
 0x10d   :  { %12790 = vmatprep.subr.bf16.mxu0 %v19191_v7  ;;  %v19202_v7 = vld [vmem:[#allocation34_spill] sm:$0xff] }
 0x10f   :  { %1072 = vmatmul.mubr.f32.gmra.mrb[70].mxu0 %v19192_v26 }
 0x110   :  { %1078 = vmatprep.mubr.f32.mxu0 %v19193_v3  ;;  %12792 = vmatpush3.bf16.msra.mxu0 %v19194_v21  ;;  %v19205_v21 = vld [vmem:[#allocation69_spill] sm:$0xff] }
 0x111   :  { %12794 = vmatprep.subr.bf16.mxu0 %v19195_v22  ;;  %v19206_v22 = vld [vmem:[#allocation36_spill] sm:$0xff] }
 0x113   :  { %1081 = vmatmul.mubr.f32.gmra.mrb[72].mxu0 %v19196_v28 }
 0x114   :  { %1087 = vmatprep.mubr.f32.mxu0 %v19197_v56  ;;  %12796 = vmatpush3.bf16.msra.mxu0 %v19198_v36  ;;  %v19208_v36 = vand.u32 4294901760, %v14862_v16  ;;  %v19218_v16 = vld [vmem:[#allocation85_spill] sm:$0xff] }
 0x115   :  { %12798 = vmatprep.subr.bf16.mxu0 %v19199_v32  ;;  %v19209_v32 = vand.u32 4294901760, %v14864_v17  ;;  %v19219_v17 = vld [vmem:[#allocation87_spill] sm:$0xff] }
 0x117   :  { %1090 = vmatmul.mubr.f32.gmra.mrb[74].mxu0 %v19200_v42  ;;  %v12809_v63 = vpack.c.bf16 %v19209_v32, %v19208_v36  ;;  %v19220_v36 = vld [vmem:[#allocation89_spill] sm:$0xff]  ;;  %v19221_v32 = vld [vmem:[#allocation90_spill] sm:$0xff] }
 0x118   :  { %1096 = vmatprep.mubr.f32.mxu0 %v19201_v59  ;;  %12800 = vmatpush3.bf16.msra.mxu0 %v19202_v7  ;;  %v19212_v7 = vld [vmem:[#allocation40_spill] sm:$0xff] }
 0x119   :  { %12802 = vmatprep.subr.bf16.mxu0 %v19203_v2  ;;  %v19213_v2 = vld [vmem:[#allocation74_spill] sm:$0xff] }
 0x11b   :  { %1099 = vmatmul.mubr.f32.gmra.mrb[76].mxu0 %v19204_v8 }
 0x11c   :  { %1105 = vmatprep.mubr.f32.mxu0 %v19205_v21  ;;  %12804 = vmatpush3.bf16.msra.mxu0 %v19206_v22  ;;  %v19216_v22 = vld [vmem:[#allocation81_spill] sm:$0xff] }
 0x11d   :  { %12806 = vmatprep.subr.bf16.mxu0 %v19207_v15  ;;  %v19217_v15 = vld [vmem:[#allocation82_spill] sm:$0xff] }
 0x11f   :  { %1108 = vmatmul.mubr.f32.gmra.mrb[78].mxu0 %v19210_v37 }
 0x120   :  { %1114 = vmatprep.mubr.f32.mxu0 %v19211_v19  ;;  %12808 = vmatpush3.bf16.msra.mxu0 %v19212_v7  ;;  %v19222_v7 = vld [vmem:[#allocation94_spill] sm:$0xff] }
 0x121   :  { %12810 = vmatprep.subr.bf16.mxu0 %v12809_v63  ;;  %v19223_v63 = vld [vmem:[#allocation96_spill] sm:$0xff] }
 0x123   :  { %1117 = vmatmul.mubr.f32.gmra.mrb[80].mxu0 %v19213_v2 }
 0x124   :  { %1123 = vmatprep.mubr.f32.mxu0 %v19214_v1 }
 0x127   :  { %1126 = vmatmul.mubr.f32.gmra.mrb[82].mxu0 %v19215_v11 }
 0x128   :  { %1132 = vmatprep.mubr.f32.mxu0 %v19216_v22 }
 0x12b   :  { %1135 = vmatmul.mubr.f32.gmra.mrb[84].mxu0 %v19217_v15 }
 0x12c   :  { %1141 = vmatprep.mubr.f32.mxu0 %v19218_v16 }
 0x12f   :  { %1144 = vmatmul.mubr.f32.gmra.mrb[86].mxu0 %v19219_v17 }
 0x130   :  { %1150 = vmatprep.mubr.f32.mxu0 %v19220_v36  ;;  %v19226_v36 = vand.u32 4294901760, %v19158_v5 }
 0x133   :  { %1153 = vmatmul.mubr.f32.gmra.mrb[88].mxu0 %v19221_v32  ;;  %v12811_v32 = vpack.c.bf16 %v19226_v36, %v19225_v49  ;;  %v19233_v49 = vand.u32 4294901760, %v14889_v41  ;;  %v19240_v41 = vand.u32 4294901760, %v14909_v61  ;;  %v19247_v61 = vand.u32 4294901760, %v19192_v26 }
 0x134   :  { %1159 = vmatprep.mubr.f32.mxu0 %v19222_v7  ;;  %v19227_v7 = vand.u32 4294901760, %v14874_v25  ;;  %v19234_v25 = vand.u32 4294901760, %v14893_v46  ;;  %v19241_v46 = vand.u32 4294901760, %v19188_v14  ;;  %v19248_v14 = vand.u32 4294901760, %v19193_v3 }
 0x135   :  { %v19254_v26 = vand.u32 4294901760, %v19197_v56  ;;  %v19255_v3 = vand.u32 4294901760, %v14942_v43  ;;  %v19260_v56 = vand.u32 4294901760, %v19201_v59  ;;  %v19261_v43 = vand.u32 4294901760, %v14955_v57 }
 0x136   :  { %v12817_v5 = vpack.c.bf16 %v19234_v25, %v19233_v49  ;;  %v19266_v59 = vand.u32 4294901760, %v19205_v21  ;;  %v19267_v57 = vand.u32 4294901760, %v14977_v29 }
 0x137   :  { %1162 = vmatmul.mubr.f32.gmra.mrb[90].mxu0 %v19223_v63  ;;  %v19228_v63 = vand.u32 4294901760, %v14877_v27  ;;  %v19235_v27 = vand.u32 4294901760, %v19184_v23  ;;  %v19242_v23 = vand.u32 4294901760, %v19189_v54  ;;  %v19249_v54 = vand.u32 4294901760, %v14926_v12 }
 0x138   :  { %1168 = vmatprep.mubr.f32.mxu0 %v15372_v31  ;;  %v19229_v31 = vand.u32 4294901760, %v19180_v24  ;;  %v19256_v12 = vand.u32 4294901760, %v14944_v44  ;;  %v19262_v44 = vand.u32 4294901760, %v14957_v58  ;;  %v19268_v58 = vand.u32 4294901760, %v14979_v30 }
 0x139   :  { %v12813_v17 = vpack.c.bf16 %v19228_v63, %v19227_v7  ;;  %v19272_v30 = vand.u32 4294901760, %v19214_v1  ;;  %v19276_v1 = vand.u32 4294901760, %v19218_v16 }
 0x13a   :  { %v12831_v63 = vpack.c.bf16 %v19256_v12, %v19255_v3  ;;  %v12835_v49 = vpack.c.bf16 %v19262_v44, %v19261_v43 }
 0x13b   :  { %1171 = vmatmul.mubr.f32.gmra.mrb[92].mxu0 %v15379_v0 }
 0x13c   :  { %1177 = vmatprep.mubr.f32.mxu0 %v15416_v60  ;;  %v19230_v60 = vand.u32 4294901760, %v19182_v38  ;;  %v19237_v38 = vand.u32 4294901760, %v14897_v48  ;;  %v19244_v48 = vand.u32 4294901760, %v14916_v4  ;;  %v19251_v4 = vand.u32 4294901760, %v14936_v33 }
 0x13d   :  { %v19258_v33 = vand.u32 4294901760, %v14951_v55  ;;  %v19264_v55 = vand.u32 4294901760, %v14972_v20 }
 0x13e   :  { %v12829_v7 = vpack.c.bf16 %v19252_v6, %v19251_v4  ;;  %v19283_v6 = vld [vmem:[#allocation94_spill] sm:$0xff] }
 0x13f   :  { %1180 = vmatmul.mubr.f32.gmra.mrb[94].mxu0 %v15422_v53  ;;  %v19284_v16 = vand.u32 4294901760, %v19283_v6 }
 0x140   :  { %1284 = vmatprep.mubr.f32.mxu0 %v19224_v35  ;;  %v19232_v35 = vand.u32 4294901760, %v14887_v40  ;;  %v19239_v40 = vand.u32 4294901760, %v14902_v52  ;;  %v19246_v52 = vand.u32 4294901760, %v14922_v10  ;;  %v19253_v10 = vand.u32 4294901760, %v19196_v28 }
 0x141   :  { %v19259_v28 = vand.u32 4294901760, %v19200_v42 }
 0x142   :  { %v12815_v13 = vpack.c.bf16 %v19232_v35, %v19231_v47  ;;  %v12821_v24 = vpack.c.bf16 %v19240_v41, %v19239_v40  ;;  %v12825_v36 = vpack.c.bf16 %v19246_v52, %v19245_v50  ;;  %v19271_v41 = vand.u32 4294901760, %v19213_v2 }
 0x143   :  { %1288 = vmatmul.mubr.f32.vlgmr.msra.gmra.mrb[96].mxu0 %v19229_v31  ;;  %v19236_v31 = vand.u32 4294901760, %v19185_v45  ;;  %v19243_v45 = vand.u32 4294901760, %v14911_v62  ;;  %v19250_v62 = vand.u32 4294901760, %v19164_v18  ;;  %v19257_v18 = vand.u32 4294901760, %v14948_v51 }
 0x144   :  { %12812 = vmatpush3.bf16.msra.mxu0 %v12811_v32  ;;  %1295 = vmatprep.mubr.f32.mxu0 %v19230_v60  ;;  %v12819_v60 = vpack.c.bf16 %v19238_v39, %v19237_v38  ;;  %v19263_v51 = vand.u32 4294901760, %v14970_v9  ;;  %v12839_v38 = vpack.c.bf16 %v19268_v58, %v19267_v57  ;;  %v19269_v39 = vand.u32 4294901760, %v19210_v37  ;;  %v19296_v58 = vld [vmem:[#allocation44_spill] sm:$0xff] }
 0x145   :  { %12814 = vmatprep.subr.bf16.mxu0 %v12813_v17  ;;  %v12823_v17 = vpack.c.bf16 %v19244_v48, %v19243_v45  ;;  %v12827_v32 = vpack.c.bf16 %v19250_v62, %v19249_v54  ;;  %v12833_v47 = vpack.c.bf16 %v19258_v33, %v19257_v18  ;;  %v19273_v37 = vand.u32 4294901760, %v19215_v11 }
 0x146   :  { %v12837_v25 = vpack.c.bf16 %v19264_v55, %v19263_v51  ;;  %v19275_v2 = vand.u32 4294901760, %v19217_v15  ;;  %v19293_v55 = vld [vmem:[#allocation37_spill] sm:$0xff] }
 0x147   :  { %1299 = vmatmul.mubr.f32.gmra.mrb[98].mxu0 %v19235_v27  ;;  %v19265_v27 = vand.u32 4294901760, %v19204_v8  ;;  %v19270_v8 = vand.u32 4294901760, %v19211_v19  ;;  %v19274_v19 = vand.u32 4294901760, %v19216_v22 }
 0x148   :  { %1306 = vmatprep.mubr.f32.mxu0 %v19236_v31  ;;  %12816 = vmatpush3.bf16.msra.mxu0 %v12815_v13 }
 0x149   :  { %12818 = vmatprep.subr.bf16.mxu0 %v12817_v5 }
 0x14b   :  { %1310 = vmatmul.mubr.f32.gmra.mrb[100].mxu0 %v19241_v46 }
 0x14c   :  { %1317 = vmatprep.mubr.f32.mxu0 %v19242_v23  ;;  %12820 = vmatpush3.bf16.msra.mxu0 %v12819_v60 }
 0x14d   :  { %12822 = vmatprep.subr.bf16.mxu0 %v12821_v24 }
 0x14f   :  { %1321 = vmatmul.mubr.f32.gmra.mrb[102].mxu0 %v19247_v61 }
 0x150   :  { %1328 = vmatprep.mubr.f32.mxu0 %v19248_v14  ;;  %12824 = vmatpush3.bf16.msra.mxu0 %v12823_v17  ;;  %v19279_v14 = vld [vmem:[#allocation89_spill] sm:$0xff] }
 0x151   :  { %12826 = vmatprep.subr.bf16.mxu0 %v12825_v36  ;;  %v19277_v36 = vld [vmem:[#allocation87_spill] sm:$0xff]  ;;  %v19280_v22 = vand.u32 4294901760, %v19279_v14 }
 0x152   :  { %v19278_v11 = vand.u32 4294901760, %v19277_v36 }
 0x153   :  { %1332 = vmatmul.mubr.f32.gmra.mrb[104].mxu0 %v19253_v10  ;;  %v9497_v34 = vpop.f32.mrb[0].mxu0 }
 0x154   :  { %1339 = vmatprep.mubr.f32.mxu0 %v19254_v26  ;;  %12828 = vmatpush3.bf16.msra.mxu0 %v12827_v32  ;;  %v9498_v35 = vpop.f32.mrb[1].mxu0  ;;  %v19281_v32 = vld [vmem:[#allocation90_spill] sm:$0xff]  ;;  %v19285_v26 = vld [vmem:[#allocation96_spill] sm:$0xff] }
 0x155   :  { %12830 = vmatprep.subr.bf16.mxu0 %v12829_v7  ;;  %v15624_v13 = vadd.f32 %v9498_v35, %v9497_v34  ;;  %v19282_v15 = vand.u32 4294901760, %v19281_v32  ;;  %v19286_v3 = vand.u32 4294901760, %v19285_v26  ;;  %v19289_v34 = vand.u32 4294901760, %v15379_v0 }
 0x157   :  { %1343 = vmatmul.mubr.f32.gmra.mrb[106].mxu0 %v19259_v28  ;;  %v9500_v5 = vpop.f32.mrb[2].mxu0  ;;  %v19290_v28 = vld [vmem:[#allocation100_spill] sm:$0xff] }
 0x158   :  { %1350 = vmatprep.mubr.f32.mxu0 %v19260_v56  ;;  %12832 = vmatpush3.bf16.msra.mxu0 %v12831_v63  ;;  %v9501_v42 = vpop.f32.mrb[3].mxu0  ;;  %v19287_v63 = vld [vmem:[#allocation97_spill] sm:$0xff]  ;;  %v19291_v56 = vand.u32 4294901760, %v19290_v28 }
 0x159   :  { %12834 = vmatprep.subr.bf16.mxu0 %v12833_v47  ;;  %v15638_v31 = vadd.f32 %v9501_v42, %v9500_v5  ;;  %v19288_v18 = vand.u32 4294901760, %v19287_v63  ;;  %v19294_v42 = vld [vmem:[#allocation38_spill] sm:$0xff] }
 0x15b   :  { %1354 = vmatmul.mubr.f32.gmra.mrb[108].mxu0 %v19265_v27  ;;  %v9503_v9 = vpop.f32.mrb[4].mxu0  ;;  %v19295_v27 = vld [vmem:[#allocation43_spill] sm:$0xff] }
 0x15c   :  { %1361 = vmatprep.mubr.f32.mxu0 %v19266_v59  ;;  %12836 = vmatpush3.bf16.msra.mxu0 %v12835_v49  ;;  %v9504_v20 = vpop.f32.mrb[5].mxu0  ;;  %v19292_v49 = vand.u32 4294901760, %v15422_v53  ;;  %v19297_v53 = vld [vmem:[#allocation47_spill] sm:$0xff] }
 0x15d   :  { %12838 = vmatprep.subr.bf16.mxu0 %v12837_v25  ;;  %v15648_v60 = vadd.f32 %v9504_v20, %v9503_v9 }
 0x15f   :  { %1365 = vmatmul.mubr.f32.gmra.mrb[110].mxu0 %v19269_v39  ;;  %v19298_v39 = vld [vmem:[#allocation49_spill] sm:$0xff] }
 0x160   :  { %1372 = vmatprep.mubr.f32.mxu0 %v19270_v8  ;;  %12840 = vmatpush3.bf16.msra.mxu0 %v12839_v38  ;;  %v9506_v21 = vpop.f32.mrb[6].mxu0 }
 0x161   :  { %v9507_v40 = vpop.f32.mrb[7].mxu0 }
 0x162   :  { %v15654_v29 = vadd.f32 %v9507_v40, %v9506_v21  ;;  %v19299_v21 = vld [vmem:[#allocation51_spill] sm:$0xff] }
 0x163   :  { %1376 = vmatmul.mubr.f32.gmra.mrb[112].mxu0 %v19271_v41 }
 0x164   :  { %1383 = vmatprep.mubr.f32.mxu0 %v19272_v30  ;;  %v9509_v24 = vpop.f32.mrb[8].mxu0  ;;  %v19300_v30 = vld [vmem:[#allocation52_spill] sm:$0xff] }
 0x165   :  { %v9510_v46 = vpop.f32.mrb[9].mxu0 }
 0x166   :  { %v15660_v23 = vadd.f32 %v9510_v46, %v9509_v24  ;;  %v19301_v46 = vld [vmem:[#allocation53_spill] sm:$0xff] }
 0x167   :  { %1387 = vmatmul.mubr.f32.gmra.mrb[114].mxu0 %v19273_v37 }
 0x168   :  { %1394 = vmatprep.mubr.f32.mxu0 %v19274_v19  ;;  %v9512_v45 = vpop.f32.mrb[10].mxu0 }
 0x169   :  { %v9513_v48 = vpop.f32.mrb[11].mxu0 }
 0x16a   :  { %v15666_v17 = vadd.f32 %v9513_v48, %v9512_v45  ;;  %v19302_v45 = vld [vmem:[#allocation56_spill] sm:$0xff] }
 0x16b   :  { %1398 = vmatmul.mubr.f32.gmra.mrb[116].mxu0 %v19275_v2  ;;  %v19303_v2 = vld [vmem:[#allocation59_spill] sm:$0xff] }
 0x16c   :  { %1405 = vmatprep.mubr.f32.mxu0 %v19276_v1  ;;  %v9515_v50 = vpop.f32.mrb[12].mxu0 }
 0x16d   :  { %v9516_v52 = vpop.f32.mrb[13].mxu0 }
 0x16e   :  { %v15672_v61 = vadd.f32 %v9516_v52, %v9515_v50  ;;  %v19304_v52 = vld [vmem:[#allocation60_spill] sm:$0xff] }
 0x16f   :  { %1409 = vmatmul.mubr.f32.gmra.mrb[118].mxu0 %v19278_v11  ;;  %v19305_v11 = vld [vmem:[#allocation61_spill] sm:$0xff] }
 0x170   :  { %1416 = vmatprep.mubr.f32.mxu0 %v19280_v22  ;;  %v9518_v54 = vpop.f32.mrb[14].mxu0 }
 0x171   :  { %v9519_v62 = vpop.f32.mrb[15].mxu0 }
 0x172   :  { %v15678_v4 = vadd.f32 %v9519_v62, %v9518_v54  ;;  %v19306_v62 = vld [vmem:[#allocation63_spill] sm:$0xff] }
 0x173   :  { %1420 = vmatmul.mubr.f32.gmra.mrb[120].mxu0 %v19282_v15  ;;  %v19307_v15 = vld [vmem:[#allocation67_spill] sm:$0xff] }
 0x174   :  { %1427 = vmatprep.mubr.f32.mxu0 %v19284_v16  ;;  %v9521_v7 = vpop.f32.mrb[16].mxu0 }
 0x175   :  { %v9522_v10 = vpop.f32.mrb[17].mxu0 }
 0x176   :  { %v15684_v12 = vadd.f32 %v9522_v10, %v9521_v7  ;;  %v19308_v10 = vld [vmem:[#allocation68_spill] sm:$0xff] }
 0x177   :  { %1431 = vmatmul.mubr.f32.gmra.mrb[122].mxu0 %v19286_v3  ;;  %v19309_v3 = vld [vmem:[#allocation70_spill] sm:$0xff] }
 0x178   :  { %1438 = vmatprep.mubr.f32.mxu0 %v19288_v18 }
 0x179   :  { %v9524_v33 = vpop.f32.mrb[18].mxu0 }
 0x17a   :  { %v9525_v47 = vpop.f32.mrb[19].mxu0 }
 0x17b   :  { %1442 = vmatmul.mubr.f32.gmra.mrb[124].mxu0 %v19289_v34  ;;  %v15690_v35 = vadd.f32 %v9525_v47, %v9524_v33  ;;  %v19310_v33 = vld [vmem:[#allocation72_spill] sm:$0xff]  ;;  %v19311_v34 = vld [vmem:[#allocation75_spill] sm:$0xff] }
 0x17c   :  { %1449 = vmatprep.mubr.f32.mxu0 %v19291_v56 }
 0x17d   :  { %v9527_v43 = vpop.f32.mrb[20].mxu0 }
 0x17e   :  { %v9528_v44 = vpop.f32.mrb[21].mxu0 }
 0x17f   :  { %1453 = vmatmul.mubr.f32.gmra.mrb[126].mxu0 %v19292_v49  ;;  %v15696_v51 = vadd.f32 %v9528_v44, %v9527_v43  ;;  %v19312_v43 = vld [vmem:[#allocation76_spill] sm:$0xff]  ;;  %v19313_v49 = vld [vmem:[#allocation77_spill] sm:$0xff] }
 0x180   :  { %1619 = vmatprep.mubr.f32.mxu0 %v19293_v55 }
 0x182   :  { %v9530_v25 = vpop.f32.mrb[22].mxu0 }
 0x183   :  { %v9531_v5 = vpop.f32.mrb[23].mxu0  ;;  %1621 = vmatmul.mubr.f32.vlgmr.msra.gmra.mrb[128].mxu0 %v19294_v42 }
 0x184   :  { %v15700_v0 = vadd.f32 %v9531_v5, %v9530_v25  ;;  %1626 = vmatprep.mubr.f32.mxu0 %v19295_v27  ;;  %v19314_v5 = vld [vmem:[#allocation79_spill] sm:$0xff] }
 0x185   :  { %v19315_v27 = vld [vmem:[#allocation83_spill] sm:$0xff] }
 0x186   :  { %v9533_v59 = vpop.f32.mrb[24].mxu0 }
 0x187   :  { %v9534_v57 = vpop.f32.mrb[25].mxu0  ;;  %1628 = vmatmul.mubr.f32.gmra.mrb[130].mxu0 %v19296_v58  ;;  %v19316_v58 = vld [vmem:[#allocation84_spill] sm:$0xff] }
 0x188   :  { %v15704_v38 = vadd.f32 %v9534_v57, %v9533_v59  ;;  %1633 = vmatprep.mubr.f32.mxu0 %v19297_v53 }
 0x18a   :  { %v9536_v9 = vpop.f32.mrb[26].mxu0 }
 0x18b   :  { %v9537_v20 = vpop.f32.mrb[27].mxu0  ;;  %1635 = vmatmul.mubr.f32.gmra.mrb[132].mxu0 %v19298_v39 }
 0x18c   :  { %v15708_v8 = vadd.f32 %v9537_v20, %v9536_v9  ;;  %1640 = vmatprep.mubr.f32.mxu0 %v19299_v21  ;;  %v19317_v9 = vld [vmem:[#allocation86_spill] sm:$0xff]  ;;  %v19318_v21 = vld [vmem:[#allocation88_spill] sm:$0xff] }
 0x18e   :  { %v9539_v40 = vpop.f32.mrb[28].mxu0 }
 0x18f   :  { %v9540_v41 = vpop.f32.mrb[29].mxu0  ;;  %1642 = vmatmul.mubr.f32.gmra.mrb[134].mxu0 %v19300_v30 }
 0x190   :  { %v15712_v24 = vadd.f32 %v9540_v41, %v9539_v40  ;;  %1647 = vmatprep.mubr.f32.mxu0 %v19301_v46  ;;  %v19319_v41 = vld [vmem:[#allocation91_spill] sm:$0xff] }
 0x192   :  { %v9542_v37 = vpop.f32.mrb[30].mxu0 }
 0x193   :  { %v9543_v19 = vpop.f32.mrb[31].mxu0  ;;  %1649 = vmatmul.mubr.f32.gmra.mrb[136].mxu0 %v19302_v45  ;;  %v19321_v45 = vld [vmem:[#allocation93_spill] sm:$0xff] }
 0x194   :  { %v15716_v48 = vadd.f32 %v9543_v19, %v9542_v37  ;;  %1654 = vmatprep.mubr.f32.mxu0 %v19303_v2  ;;  %v19320_v37 = vld [vmem:[#allocation92_spill] sm:$0xff] }
 0x196   :  { %v9577_v1 = vpop.f32.mrb[32].mxu0 }
 0x197   :  { %v9578_v50 = vpop.f32.mrb[33].mxu0  ;;  %1656 = vmatmul.mubr.f32.gmra.mrb[138].mxu0 %v19304_v52 }
 0x198   :  { %v9579_v36 = vadd.f32 %v9578_v50, %v9577_v1  ;;  %1661 = vmatprep.mubr.f32.mxu0 %v19305_v11  ;;  %v19322_v50 = vld [vmem:[#allocation95_spill] sm:$0xff] }
 0x19a   :  { %v15722_v14 = vadd.f32 %v9579_v36, %v15624_v13  ;;  %v9580_v22 = vpop.f32.mrb[34].mxu0  ;;  %v19323_v36 = vld [vmem:[#allocation98_spill] sm:$0xff] }
 0x19b   :  { %v9581_v54 = vpop.f32.mrb[35].mxu0  ;;  %1663 = vmatmul.mubr.f32.gmra.mrb[140].mxu0 %v19306_v62 }
 0x19c   :  { %v9582_v32 = vadd.f32 %v9581_v54, %v9580_v22  ;;  %1668 = vmatprep.mubr.f32.mxu0 %v19307_v15  ;;  %v19324_v54 = vld [vmem:[#allocation99_spill] sm:$0xff] }
 0x19e   :  { %v15727_v6 = vadd.f32 %v9582_v32, %v15638_v31  ;;  %v9583_v16 = vpop.f32.mrb[36].mxu0 }
 0x19f   :  { %v9584_v7 = vpop.f32.mrb[37].mxu0  ;;  %1670 = vmatmul.mubr.f32.gmra.mrb[142].mxu0 %v19308_v10 }
 0x1a0   :  { %v9585_v26 = vadd.f32 %v9584_v7, %v9583_v16  ;;  %1675 = vmatprep.mubr.f32.mxu0 %v19309_v3 }
 0x1a2   :  { %v15732_v13 = vadd.f32 %v9585_v26, %v15648_v60  ;;  %v9586_v63 = vpop.f32.mrb[38].mxu0 }
 0x1a3   :  { %v9587_v18 = vpop.f32.mrb[39].mxu0  ;;  %1677 = vmatmul.mubr.f32.gmra.mrb[144].mxu0 %v19310_v33 }
 0x1a4   :  { %v9588_v47 = vadd.f32 %v9587_v18, %v9586_v63  ;;  %1682 = vmatprep.mubr.f32.mxu0 %v19311_v34 }
 0x1a6   :  { %v15737_v31 = vadd.f32 %v9588_v47, %v15654_v29  ;;  %v9589_v28 = vpop.f32.mrb[40].mxu0 }
 0x1a7   :  { %v9590_v56 = vpop.f32.mrb[41].mxu0  ;;  %1684 = vmatmul.mubr.f32.gmra.mrb[146].mxu0 %v19312_v43 }
 0x1a8   :  { %v9591_v44 = vadd.f32 %v9590_v56, %v9589_v28  ;;  %1689 = vmatprep.mubr.f32.mxu0 %v19313_v49 }
 0x1aa   :  { %v15742_v60 = vadd.f32 %v9591_v44, %v15660_v23  ;;  %v9592_v55 = vpop.f32.mrb[42].mxu0 }
 0x1ab   :  { %v9593_v25 = vpop.f32.mrb[43].mxu0  ;;  %1691 = vmatmul.mubr.f32.gmra.mrb[148].mxu0 %v19314_v5 }
 0x1ac   :  { %v9594_v42 = vadd.f32 %v9593_v25, %v9592_v55  ;;  %1696 = vmatprep.mubr.f32.mxu0 %v19315_v27  ;;  %v9897_v25 = vpop.f32.mrb[0].mxu1 }
 0x1ae   :  { %v15747_v29 = vadd.f32 %v9594_v42, %v15666_v17  ;;  %v9595_v59 = vpop.f32.mrb[44].mxu0  ;;  %v9898_v42 = vpop.f32.mrb[1].mxu1 }
 0x1af   :  { %v9596_v57 = vpop.f32.mrb[45].mxu0  ;;  %1698 = vmatmul.mubr.f32.gmra.mrb[150].mxu0 %v19316_v58  ;;  %v15788_v27 = vadd.f32 %v9898_v42, %v9897_v25 }
 0x1b0   :  { %v9597_v53 = vadd.f32 %v9596_v57, %v9595_v59  ;;  %1703 = vmatprep.mubr.f32.mxu0 %v19317_v9 }
 0x1b2   :  { %v15752_v23 = vadd.f32 %v9597_v53, %v15672_v61  ;;  %v9598_v20 = vpop.f32.mrb[46].mxu0 }
 0x1b3   :  { %v9599_v39 = vpop.f32.mrb[47].mxu0  ;;  %1705 = vmatmul.mubr.f32.gmra.mrb[152].mxu0 %v19318_v21 }
 0x1b4   :  { %v9600_v40 = vadd.f32 %v9599_v39, %v9598_v20  ;;  %1710 = vmatprep.mubr.f32.mxu0 %v19319_v41 }
 0x1b6   :  { %v15757_v17 = vadd.f32 %v9600_v40, %v15678_v4  ;;  %v9601_v30 = vpop.f32.mrb[48].mxu0 }
 0x1b7   :  { %v9602_v46 = vpop.f32.mrb[49].mxu0  ;;  %1712 = vmatmul.mubr.f32.gmra.mrb[154].mxu0 %v19320_v37 }
 0x1b8   :  { %v9603_v19 = vadd.f32 %v9602_v46, %v9601_v30  ;;  %1717 = vmatprep.mubr.f32.mxu0 %v19321_v45 }
 0x1ba   :  { %v15762_v61 = vadd.f32 %v9603_v19, %v15684_v12  ;;  %v9604_v2 = vpop.f32.mrb[50].mxu0 }
 0x1bb   :  { %v9605_v1 = vpop.f32.mrb[51].mxu0  ;;  %1719 = vmatmul.mubr.f32.gmra.mrb[156].mxu0 %v19322_v50  ;;  %v18924_v50 = vmov 0.0|0.0  }
 0x1bc   :  { %v9606_v52 = vadd.f32 %v9605_v1, %v9604_v2  ;;  %1724 = vmatprep.mubr.f32.mxu0 %v19323_v36  ;;  %12873 = vmatprep.subr.bf16.mxu0 %v18924_v50 }
 0x1be   :  { %v15767_v4 = vadd.f32 %v9606_v52, %v15690_v35  ;;  %v9607_v11 = vpop.f32.mrb[52].mxu0 }
 0x1bf   :  { %v9608_v22 = vpop.f32.mrb[53].mxu0  ;;  %1726 = vmatmul.mubr.f32.gmra.mrb[158].mxu0 %v19324_v54 }
 0x1c0   :  { %v9609_v62 = vadd.f32 %v9608_v22, %v9607_v11 }
 0x1c2   :  { %v15771_v32 = vadd.f32 %v9609_v62, %v15696_v51  ;;  %v9610_v12 = vpop.f32.mrb[54].mxu0 }
 0x1c3   :  { %v9611_v15 = vpop.f32.mrb[55].mxu0 }
 0x1c4   :  { %v9612_v16 = vadd.f32 %v9611_v15, %v9610_v12 }
 0x1c6   :  { %v15774_v7 = vadd.f32 %v9612_v16, %v15700_v0  ;;  %v9613_v10 = vpop.f32.mrb[56].mxu0 }
 0x1c7   :  { %v9614_v26 = vpop.f32.mrb[57].mxu0 }
 0x1c8   :  { %v9615_v3 = vadd.f32 %v9614_v26, %v9613_v10 }
 0x1ca   :  { %v15777_v35 = vadd.f32 %v9615_v3, %v15704_v38  ;;  %v9616_v63 = vpop.f32.mrb[58].mxu0 }
 0x1cb   :  { %v9617_v18 = vpop.f32.mrb[59].mxu0 }
 0x1cc   :  { %v9618_v33 = vadd.f32 %v9617_v18, %v9616_v63 }
 0x1ce   :  { %v15780_v47 = vadd.f32 %v9618_v33, %v15708_v8  ;;  %v9619_v51 = vpop.f32.mrb[60].mxu0 }
 0x1cf   :  { %v9620_v34 = vpop.f32.mrb[61].mxu0 }
 0x1d0   :  { %v9621_v28 = vadd.f32 %v9620_v34, %v9619_v51 }
 0x1d2   :  { %v15783_v56 = vadd.f32 %v9621_v28, %v15712_v24  ;;  %v9622_v0 = vpop.f32.mrb[62].mxu0  ;;  %v9900_v24 = vpop.f32.mrb[2].mxu1 }
 0x1d3   :  { %v9623_v43 = vpop.f32.mrb[63].mxu0  ;;  %v9901_v53 = vpop.f32.mrb[3].mxu1 }
 0x1d4   :  { %v9624_v44 = vadd.f32 %v9623_v43, %v9622_v0  ;;  %v15793_v9 = vadd.f32 %v9901_v53, %v9900_v24  ;;  %v9903_v21 = vpop.f32.mrb[4].mxu1 }
 0x1d5   :  { %v9904_v41 = vpop.f32.mrb[5].mxu1 }
 0x1d6   :  { %v15786_v49 = vadd.f32 %v9624_v44, %v15716_v48  ;;  %v9657_v38 = vpop.f32.mrb[64].mxu0  ;;  %v15798_v30 = vadd.f32 %v9904_v41, %v9903_v21  ;;  %v9906_v19 = vpop.f32.mrb[6].mxu1 }
 0x1d7   :  { %v9658_v55 = vpop.f32.mrb[65].mxu0  ;;  %v9907_v2 = vpop.f32.mrb[7].mxu1 }
 0x1d8   :  { %v9659_v5 = vadd.f32 %v9658_v55, %v9657_v38  ;;  %v15803_v1 = vadd.f32 %v9907_v2, %v9906_v19  ;;  %v9909_v11 = vpop.f32.mrb[8].mxu1 }
 0x1d9   :  { %v9910_v54 = vpop.f32.mrb[9].mxu1 }
 0x1da   :  { %v15791_v8 = vadd.f32 %v9659_v5, %v15722_v14  ;;  %v9660_v59 = vpop.f32.mrb[66].mxu0  ;;  %v9912_v16 = vpop.f32.mrb[10].mxu1 }
 0x1db   :  { %v9661_v57 = vpop.f32.mrb[67].mxu0  ;;  %v9913_v26 = vpop.f32.mrb[11].mxu1 }
 0x1dc   :  { %v9662_v58 = vadd.f32 %v9661_v57, %v9660_v59  ;;  %v15814_v3 = vadd.f32 %v9913_v26, %v9912_v16  ;;  %v9915_v33 = vpop.f32.mrb[12].mxu1 }
 0x1dd   :  { %v9916_v34 = vpop.f32.mrb[13].mxu1 }
 0x1de   :  { %v15796_v48 = vadd.f32 %v9662_v58, %v15727_v6  ;;  %v9663_v20 = vpop.f32.mrb[68].mxu0  ;;  %v15819_v28 = vadd.f32 %v9916_v34, %v9915_v33  ;;  %v9918_v44 = vpop.f32.mrb[14].mxu1 }
 0x1df   :  { %v9664_v39 = vpop.f32.mrb[69].mxu0  ;;  %v9919_v55 = vpop.f32.mrb[15].mxu1 }
 0x1e0   :  { %v9665_v40 = vadd.f32 %v9664_v39, %v9663_v20  ;;  %v15824_v25 = vadd.f32 %v9919_v55, %v9918_v44  ;;  %v9921_v59 = vpop.f32.mrb[16].mxu1 }
 0x1e1   :  { %v9922_v24 = vpop.f32.mrb[17].mxu1 }
 0x1e2   :  { %v15801_v14 = vadd.f32 %v9665_v40, %v15732_v13  ;;  %v9666_v46 = vpop.f32.mrb[70].mxu0  ;;  %v15809_v13 = vadd.f32 %v9910_v54, %v9909_v11  ;;  %v15829_v58 = vadd.f32 %v9922_v24, %v9921_v59  ;;  %v9924_v39 = vpop.f32.mrb[18].mxu1 }
 0x1e3   :  { %v9667_v37 = vpop.f32.mrb[71].mxu0  ;;  %v9925_v40 = vpop.f32.mrb[19].mxu1 }
 0x1e4   :  { %v9668_v45 = vadd.f32 %v9667_v37, %v9666_v46  ;;  %v15834_v41 = vadd.f32 %v9925_v40, %v9924_v39  ;;  %v9927_v19 = vpop.f32.mrb[20].mxu1 }
 0x1e5   :  { %v9928_v2 = vpop.f32.mrb[21].mxu1 }
 0x1e6   :  { %v15807_v6 = vadd.f32 %v9668_v45, %v15737_v31  ;;  %v9669_v52 = vpop.f32.mrb[72].mxu0 }
 0x1e7   :  { %v9670_v36 = vpop.f32.mrb[73].mxu0 }
 0x1e8   :  { %v9671_v22 = vadd.f32 %v9670_v36, %v9669_v52  ;;  %v15839_v52 = vadd.f32 %v9928_v2, %v9927_v19 }
 0x1ea   :  { %v15812_v62 = vadd.f32 %v9671_v22, %v15742_v60  ;;  %v9672_v12 = vpop.f32.mrb[74].mxu0  ;;  %v9930_v22 = vpop.f32.mrb[22].mxu1 }
 0x1eb   :  { %v9673_v15 = vpop.f32.mrb[75].mxu0 }
 0x1ec   :  { %v9674_v10 = vadd.f32 %v9673_v15, %v9672_v12  ;;  %v9931_v12 = vpop.f32.mrb[23].mxu1 }
 0x1ed   :  { %v15844_v15 = vadd.f32 %v9931_v12, %v9930_v22  ;;  %v9933_v26 = vpop.f32.mrb[24].mxu1 }
 0x1ee   :  { %v15817_v31 = vadd.f32 %v9674_v10, %v15747_v29  ;;  %v9675_v63 = vpop.f32.mrb[76].mxu0 }
 0x1ef   :  { %v9676_v18 = vpop.f32.mrb[77].mxu0 }
 0x1f0   :  { %v9677_v51 = vadd.f32 %v9676_v18, %v9675_v63  ;;  %v9934_v18 = vpop.f32.mrb[25].mxu1 }
 0x1f1   :  { %v15849_v33 = vadd.f32 %v9934_v18, %v9933_v26 }
 0x1f2   :  { %v15822_v60 = vadd.f32 %v9677_v51, %v15752_v23  ;;  %v9678_v0 = vpop.f32.mrb[78].mxu0 }
 0x1f3   :  { %v9679_v43 = vpop.f32.mrb[79].mxu0 }
 0x1f4   :  { %v9680_v38 = vadd.f32 %v9679_v43, %v9678_v0  ;;  %v9936_v0 = vpop.f32.mrb[26].mxu1 }
 0x1f5   :  { %v9937_v44 = vpop.f32.mrb[27].mxu1 }
 0x1f6   :  { %v15827_v29 = vadd.f32 %v9680_v38, %v15757_v17  ;;  %v9681_v5 = vpop.f32.mrb[80].mxu0  ;;  %v15854_v38 = vadd.f32 %v9937_v44, %v9936_v0 }
 0x1f7   :  { %v9682_v42 = vpop.f32.mrb[81].mxu0 }
 0x1f8   :  { %v9683_v57 = vadd.f32 %v9682_v42, %v9681_v5  ;;  %v9939_v42 = vpop.f32.mrb[28].mxu1 }
 0x1fa   :  { %v15832_v23 = vadd.f32 %v9683_v57, %v15762_v61  ;;  %v9684_v53 = vpop.f32.mrb[82].mxu0  ;;  %v9940_v57 = vpop.f32.mrb[29].mxu1 }
 0x1fb   :  { %v9685_v20 = vpop.f32.mrb[83].mxu0  ;;  %v15859_v24 = vadd.f32 %v9940_v57, %v9939_v42  ;;  %v9942_v39 = vpop.f32.mrb[30].mxu1 }
 0x1fc   :  { %v9686_v21 = vadd.f32 %v9685_v20, %v9684_v53  ;;  %v9943_v40 = vpop.f32.mrb[31].mxu1 }
 0x1fe   :  { %v15837_v17 = vadd.f32 %v9686_v21, %v15767_v4  ;;  %v9687_v46 = vpop.f32.mrb[84].mxu0 }
 0x1ff   :  { %v9688_v37 = vpop.f32.mrb[85].mxu0 }
 0x200   :  { %v9689_v45 = vadd.f32 %v9688_v37, %v9687_v46  ;;  %v15864_v46 = vadd.f32 %v9943_v40, %v9942_v39 }
 0x202   :  { %v15842_v61 = vadd.f32 %v9689_v45, %v15771_v32  ;;  %v9690_v36 = vpop.f32.mrb[86].mxu0 }
 0x203   :  { %v9691_v11 = vpop.f32.mrb[87].mxu0 }
 0x204   :  { %v9692_v54 = vadd.f32 %v9691_v11, %v9690_v36 }
 0x206   :  { %v15847_v4 = vadd.f32 %v9692_v54, %v15774_v7  ;;  %v9693_v16 = vpop.f32.mrb[88].mxu0 }
 0x207   :  { %v9694_v10 = vpop.f32.mrb[89].mxu0 }
 0x208   :  { %v9695_v63 = vadd.f32 %v9694_v10, %v9693_v16  ;;  %v18922_v10 = vmov 0.0  }
 0x209   :  { %10949 = vmatprep.mubr.msk.f32.mxu0 %vm14729_vm0, %v18922_v10 }
 0x20a   :  { %v15852_v32 = vadd.f32 %v9695_v63, %v15777_v35  ;;  %v9696_v51 = vpop.f32.mrb[90].mxu0 }
 0x20b   :  { %v9697_v34 = vpop.f32.mrb[91].mxu0 }
 0x20c   :  { %v9698_v43 = vadd.f32 %v9697_v34, %v9696_v51 }
 0x20e   :  { %v15857_v7 = vadd.f32 %v9698_v43, %v15780_v47  ;;  %v9699_v55 = vpop.f32.mrb[92].mxu0 }
 0x20f   :  { %v9700_v5 = vpop.f32.mrb[93].mxu0 }
 0x210   :  { %v9701_v59 = vadd.f32 %v9700_v5, %v9699_v55 }
 0x212   :  { %v15862_v35 = vadd.f32 %v9701_v59, %v15783_v56  ;;  %v9702_v53 = vpop.f32.mrb[94].mxu0 }
 0x213   :  { %v9703_v20 = vpop.f32.mrb[95].mxu0 }
 0x214   :  { %v9704_v21 = vadd.f32 %v9703_v20, %v9702_v53 }
 0x216   :  { %v15867_v47 = vadd.f32 %v9704_v21, %v15786_v49  ;;  %v9737_v37 = vpop.f32.mrb[96].mxu0 }
 0x217   :  { %v9738_v19 = vpop.f32.mrb[97].mxu0 }
 0x218   :  { %v9739_v45 = vadd.f32 %v9738_v19, %v9737_v37 }
 0x21a   :  { %v15870_v2 = vadd.f32 %v9739_v45, %v15791_v8  ;;  %v9740_v36 = vpop.f32.mrb[98].mxu0 }
 0x21b   :  { %v9741_v11 = vpop.f32.mrb[99].mxu0 }
 0x21c   :  { %v9742_v56 = vadd.f32 %v9741_v11, %v9740_v36 }
 0x21e   :  { %v15873_v22 = vadd.f32 %v9742_v56, %v15796_v48  ;;  %v9743_v54 = vpop.f32.mrb[100].mxu0 }
 0x21f   :  { %v9744_v12 = vpop.f32.mrb[101].mxu0 }
 0x220   :  { %v9745_v16 = vadd.f32 %v9744_v12, %v9743_v54 }
 0x222   :  { %v15878_v49 = vadd.f32 %v9745_v16, %v15801_v14  ;;  %v9746_v26 = vpop.f32.mrb[102].mxu0 }
 0x223   :  { %v9747_v8 = vpop.f32.mrb[103].mxu0 }
 0x224   :  { %v9748_v63 = vadd.f32 %v9747_v8, %v9746_v26 }
 0x226   :  { %v15881_v18 = vadd.f32 %v9748_v63, %v15807_v6  ;;  %v9749_v51 = vpop.f32.mrb[104].mxu0 }
 0x227   :  { %v9750_v48 = vpop.f32.mrb[105].mxu0 }
 0x228   :  { %v9751_v34 = vadd.f32 %v9750_v48, %v9749_v51 }
 0x22a   :  { %v15884_v0 = vadd.f32 %v9751_v34, %v15812_v62  ;;  %v9752_v43 = vpop.f32.mrb[106].mxu0 }
 0x22b   :  { %v9753_v44 = vpop.f32.mrb[107].mxu0 }
 0x22c   :  { %v9754_v55 = vadd.f32 %v9753_v44, %v9752_v43 }
 0x22e   :  { %v15887_v5 = vadd.f32 %v9754_v55, %v15817_v31  ;;  %v9755_v14 = vpop.f32.mrb[108].mxu0 }
 0x22f   :  { %v9756_v42 = vpop.f32.mrb[109].mxu0 }
 0x230   :  { %v9757_v59 = vadd.f32 %v9756_v42, %v9755_v14 }
 0x232   :  { %v15890_v57 = vadd.f32 %v9757_v59, %v15822_v60  ;;  %v9758_v6 = vpop.f32.mrb[110].mxu0 }
 0x233   :  { %v9759_v53 = vpop.f32.mrb[111].mxu0 }
 0x234   :  { %v9760_v20 = vadd.f32 %v9759_v53, %v9758_v6 }
 0x236   :  { %v15893_v39 = vadd.f32 %v9760_v20, %v15827_v29  ;;  %v9761_v62 = vpop.f32.mrb[112].mxu0 }
 0x237   :  { %v9762_v21 = vpop.f32.mrb[113].mxu0 }
 0x238   :  { %v9763_v40 = vadd.f32 %v9762_v21, %v9761_v62 }
 0x23a   :  { %v15896_v37 = vadd.f32 %v9763_v40, %v15832_v23  ;;  %v9764_v31 = vpop.f32.mrb[114].mxu0  ;;  %v15923_v40 = vld [vmem:[%s18734_s4] ss:$0 sm:$0xff] }
 0x23b   :  { %v9765_v19 = vpop.f32.mrb[115].mxu0 }
 0x23c   :  { %v9766_v45 = vadd.f32 %v9765_v19, %v9764_v31 }
 0x23e   :  { %v15899_v36 = vadd.f32 %v9766_v45, %v15837_v17  ;;  %v9767_v60 = vpop.f32.mrb[116].mxu0 }
 0x23f   :  { %v9768_v11 = vpop.f32.mrb[117].mxu0 }
 0x240   :  { %v9769_v56 = vadd.f32 %v9768_v11, %v9767_v60 }
 0x242   :  { %v15902_v54 = vadd.f32 %v9769_v56, %v15842_v61  ;;  %v9770_v29 = vpop.f32.mrb[118].mxu0 }
 0x243   :  { %v9771_v12 = vpop.f32.mrb[119].mxu0 }
 0x244   :  { %v9772_v16 = vadd.f32 %v9771_v12, %v9770_v29 }
 0x246   :  { %v15905_v26 = vadd.f32 %v9772_v16, %v15847_v4  ;;  %v9773_v23 = vpop.f32.mrb[120].mxu0 }
 0x247   :  { %v9774_v8 = vpop.f32.mrb[121].mxu0 }
 0x248   :  { %v9775_v63 = vadd.f32 %v9774_v8, %v9773_v23 }
 0x24a   :  { %v15908_v51 = vadd.f32 %v9775_v63, %v15852_v32  ;;  %v9776_v17 = vpop.f32.mrb[122].mxu0 }
 0x24b   :  { %v9777_v48 = vpop.f32.mrb[123].mxu0 }
 0x24c   :  { %v9778_v34 = vadd.f32 %v9777_v48, %v9776_v17 }
 0x24e   :  { %v15911_v43 = vadd.f32 %v9778_v34, %v15857_v7  ;;  %v9779_v61 = vpop.f32.mrb[124].mxu0 }
 0x24f   :  { %v9780_v44 = vpop.f32.mrb[125].mxu0 }
 0x250   :  { %v9781_v55 = vadd.f32 %v9780_v44, %v9779_v61 }
 0x252   :  { %v15914_v14 = vadd.f32 %v9781_v55, %v15862_v35  ;;  %v9782_v4 = vpop.f32.mrb[126].mxu0 }
 0x253   :  { %v9783_v42 = vpop.f32.mrb[127].mxu0 }
 0x254   :  { %v9784_v59 = vadd.f32 %v9783_v42, %v9782_v4 }
 0x256   :  { %v15917_v6 = vadd.f32 %v9784_v59, %v15867_v47  ;;  %v9817_v32 = vpop.f32.mrb[128].mxu0 }
 0x257   :  { %v9818_v53 = vpop.f32.mrb[129].mxu0 }
 0x258   :  { %v9819_v20 = vadd.f32 %v9818_v53, %v9817_v32 }
 0x25a   :  { %v1623_v62 = vadd.f32 %v9819_v20, %v15870_v2  ;;  %v9820_v21 = vpop.f32.mrb[130].mxu0 }
 0x25b   :  { %v9821_v7 = vpop.f32.mrb[131].mxu0 }
 0x25c   :  { %v1832_v35 = vadd.f32 %v15788_v27, %v1623_v62  ;;  %v9822_v31 = vadd.f32 %v9821_v7, %v9820_v21 }
 0x25e   :  { %v1995_v19 = vand.u32 4294901760, %v1832_v35  ;;  %v1630_v45 = vadd.f32 %v9822_v31, %v15873_v22  ;;  %v9823_v47 = vpop.f32.mrb[132].mxu0  ;;  %v1946_v60 = vmul.f32 %v15923_v40, %v1832_v35 }
 0x25f   :  { %v9824_v11 = vpop.f32.mrb[133].mxu0 }
 0x260   :  { %v2087_v56 = vsub.f32 %v1832_v35, %v1995_v19  ;;  %v1839_v2 = vadd.f32 %v15793_v9, %v1630_v45  ;;  %v9825_v29 = vadd.f32 %v9824_v11, %v9823_v47  ;;  %1962 = vadd.xlane.f32.xlu0 %v1946_v60 }
 0x262   :  { %v1998_v12 = vand.u32 4294901760, %v1839_v2  ;;  %v1637_v16 = vadd.f32 %v9825_v29, %v15878_v49  ;;  %v9826_v23 = vpop.f32.mrb[134].mxu0  ;;  %v1947_v8 = vmul.f32 %v15923_v40, %v1839_v2  ;;  %v2088_v63 = vand.u32 4294901760, %v2087_v56 }
 0x263   :  { %v9827_v27 = vpop.f32.mrb[135].mxu0 }
 0x264   :  { %v15931_v17 = vpack.c.bf16 %v1998_v12, %v1995_v19  ;;  %v2094_v22 = vsub.f32 %v1839_v2, %v1998_v12  ;;  %v1846_v48 = vadd.f32 %v15798_v30, %v1637_v16  ;;  %v9828_v34 = vadd.f32 %v9827_v27, %v9826_v23  ;;  %1964 = vadd.xlane.f32.xlu0 %v1947_v8 }
 0x265   :  { %v2089_v42 = vsub.f32 %v2087_v56, %v2088_v63 }
 0x266   :  { %v2001_v61 = vand.u32 4294901760, %v1846_v48  ;;  %v1644_v9 = vadd.f32 %v9828_v34, %v15881_v18  ;;  %v9829_v44 = vpop.f32.mrb[136].mxu0  ;;  %12875 = vmatpush3.bf16.xpose.msra.mxu0 %v15931_v17  ;;  %13018 = vmatprep.subr.bf16.mxu1 %v15931_v17  ;;  %v1948_v49 = vmul.f32 %v15923_v40, %v1846_v48  ;;  %v2095_v55 = vand.u32 4294901760, %v2094_v22 }
 0x267   :  { %v9830_v4 = vpop.f32.mrb[137].mxu0  ;;  %13020 = vmatpush3.bf16.msra.mxu1 %v15931_v17  ;;  %12876 = vmatprep.subr.bf16.mxu0 %v18924_v50  ;;  %v15940_v30 = vpack.c.bf16 %v2094_v22, %v2087_v56  ;;  %v2090_v45 = vand.u32 4294901760, %v2089_v42 }
 0x268   :  { %v2101_v59 = vsub.f32 %v1846_v48, %v2001_v61  ;;  %v1853_v32 = vadd.f32 %v15803_v1, %v1644_v9  ;;  %v9831_v18 = vadd.f32 %v9830_v4, %v9829_v44  ;;  %1966 = vadd.xlane.f32.xlu1 %v1948_v49  ;;  %v2096_v53 = vsub.f32 %v2094_v22, %v2095_v55 }
 0x269   :  { %v15943_v20 = vpack.c.bf16 %v2095_v55, %v2088_v63 }
 0x26a   :  { %v2004_v62 = vand.u32 4294901760, %v1853_v32  ;;  %v1651_v21 = vadd.f32 %v9831_v18, %v15884_v0  ;;  %v9832_v7 = vpop.f32.mrb[138].mxu0  ;;  %v1949_v35 = vmul.f32 %v15923_v40, %v1853_v32  ;;  %v2102_v31 = vand.u32 4294901760, %v2101_v59 }
 0x26b   :  { %v9833_v19 = vpop.f32.mrb[139].mxu0  ;;  %v2097_v47 = vand.u32 4294901760, %v2096_v53 }
 0x26c   :  { %v15947_v60 = vpack.c.bf16 %v2004_v62, %v2001_v61  ;;  %v2108_v11 = vsub.f32 %v1853_v32, %v2004_v62  ;;  %v1860_v1 = vadd.f32 %v15809_v13, %v1651_v21  ;;  %v9834_v56 = vadd.f32 %v9833_v19, %v9832_v7  ;;  %1968 = vadd.xlane.f32.xlu1 %v1949_v35 }
 0x26d   :  { %v15950_v2 = vpack.c.bf16 %v2097_v47, %v2090_v45  ;;  %v2103_v13 = vsub.f32 %v2101_v59, %v2102_v31 }
 0x26e   :  { %v2109_v29 = vand.u32 4294901760, %v2108_v11  ;;  %v2007_v12 = vand.u32 4294901760, %v1860_v1  ;;  %v1658_v0 = vadd.f32 %v9834_v56, %v15887_v5  ;;  %v9835_v16 = vpop.f32.mrb[140].mxu0  ;;  %12878 = vmatpush3.bf16.xpose.msra.mxu0 %v15947_v60  ;;  %13022 = vmatprep.subr.bf16.mxu1 %v15947_v60  ;;  %v1950_v23 = vmul.f32 %v15923_v40, %v1860_v1 }
 0x26f   :  { %v9836_v8 = vpop.f32.mrb[141].mxu0  ;;  %13024 = vmatpush3.bf16.msra.mxu1 %v15947_v60  ;;  %12879 = vmatprep.subr.bf16.mxu0 %v18924_v50  ;;  %v15958_v27 = vpack.c.bf16 %v2108_v11, %v2101_v59  ;;  %v2104_v42 = vand.u32 4294901760, %v2103_v13 }
 0x270   :  { %v2115_v63 = vsub.f32 %v1860_v1, %v2007_v12  ;;  %v1867_v22 = vadd.f32 %v15814_v3, %v1658_v0  ;;  %v9837_v48 = vadd.f32 %v9836_v8, %v9835_v16  ;;  %1970 = vadd.xlane.f32.xlu0 %v1950_v23  ;;  %v2110_v5 = vsub.f32 %v2108_v11, %v2109_v29 }
 0x271   :  { %v15961_v34 = vpack.c.bf16 %v2109_v29, %v2102_v31 }
 0x272   :  { %v2010_v61 = vand.u32 4294901760, %v1867_v22  ;;  %v1665_v9 = vadd.f32 %v9837_v48, %v15890_v57  ;;  %v9838_v44 = vpop.f32.mrb[142].mxu0  ;;  %v1951_v49 = vmul.f32 %v15923_v40, %v1867_v22  ;;  %v2116_v55 = vand.u32 4294901760, %v2115_v63 }
 0x273   :  { %v9839_v4 = vpop.f32.mrb[143].mxu0  ;;  %v2111_v32 = vand.u32 4294901760, %v2110_v5 }
 0x274   :  { %v15965_v59 = vpack.c.bf16 %v2010_v61, %v2007_v12  ;;  %v2122_v18 = vsub.f32 %v1867_v22, %v2010_v61  ;;  %v1874_v3 = vadd.f32 %v15819_v28, %v1665_v9  ;;  %v9840_v53 = vadd.f32 %v9839_v4, %v9838_v44  ;;  %1972 = vadd.xlane.f32.xlu1 %v1951_v49 }
 0x275   :  { %v15968_v62 = vpack.c.bf16 %v2111_v32, %v2104_v42  ;;  %v2117_v28 = vsub.f32 %v2115_v63, %v2116_v55 }
 0x276   :  { %v2123_v21 = vand.u32 4294901760, %v2122_v18  ;;  %v2013_v7 = vand.u32 4294901760, %v1874_v3  ;;  %v1672_v57 = vadd.f32 %v9840_v53, %v15893_v39  ;;  %v9841_v35 = vpop.f32.mrb[144].mxu0  ;;  %12881 = vmatpush3.bf16.xpose.msra.mxu0 %v15965_v59  ;;  %13026 = vmatprep.subr.bf16.mxu1 %v15965_v59  ;;  %v1952_v31 = vmul.f32 %v15923_v40, %v1874_v3 }
 0x277   :  { %v9842_v19 = vpop.f32.mrb[145].mxu0  ;;  %13028 = vmatpush3.bf16.msra.mxu1 %v15965_v59  ;;  %12882 = vmatprep.subr.bf16.mxu0 %v18924_v50  ;;  %v15976_v45 = vpack.c.bf16 %v2122_v18, %v2115_v63  ;;  %v2118_v13 = vand.u32 4294901760, %v2117_v28 }
 0x278   :  { %v2129_v47 = vsub.f32 %v1874_v3, %v2013_v7  ;;  %v1881_v11 = vadd.f32 %v15824_v25, %v1672_v57  ;;  %v9843_v1 = vadd.f32 %v9842_v19, %v9841_v35  ;;  %1974 = vadd.xlane.f32.xlu0 %v1952_v31  ;;  %v2124_v39 = vsub.f32 %v2122_v18, %v2123_v21 }
 0x279   :  { %v15979_v56 = vpack.c.bf16 %v2123_v21, %v2116_v55 }
 0x27a   :  { %v2016_v29 = vand.u32 4294901760, %v1881_v11  ;;  %v1679_v12 = vadd.f32 %v9843_v1, %v15896_v37  ;;  %v9844_v0 = vpop.f32.mrb[146].mxu0  ;;  %v1953_v16 = vmul.f32 %v15923_v40, %v1881_v11  ;;  %v2130_v23 = vand.u32 4294901760, %v2129_v47 }
 0x27b   :  { %19325 = vst [vmem:[#allocation21_spill] sm:$0xff] %v15979_v56  ;;  %v9845_v8 = vpop.f32.mrb[147].mxu0  ;;  %v2125_v22 = vand.u32 4294901760, %v2124_v39 }
 0x27c   :  { %v15983_v63 = vpack.c.bf16 %v2016_v29, %v2013_v7  ;;  %v2136_v48 = vsub.f32 %v1881_v11, %v2016_v29  ;;  %v1888_v25 = vadd.f32 %v15829_v58, %v1679_v12  ;;  %v9846_v5 = vadd.f32 %v9845_v8, %v9844_v0  ;;  %1976 = vadd.xlane.f32.xlu1 %v1953_v16 }
 0x27d   :  { %v15986_v61 = vpack.c.bf16 %v2125_v22, %v2118_v13  ;;  %v2131_v58 = vsub.f32 %v2129_v47, %v2130_v23 }
 0x27e   :  { %v2137_v9 = vand.u32 4294901760, %v2136_v48  ;;  %v2019_v44 = vand.u32 4294901760, %v1888_v25  ;;  %v1686_v37 = vadd.f32 %v9846_v5, %v15899_v36  ;;  %v9847_v49 = vpop.f32.mrb[148].mxu0  ;;  %12884 = vmatpush3.bf16.xpose.msra.mxu0 %v15983_v63  ;;  %13030 = vmatprep.subr.bf16.mxu1 %v15983_v63  ;;  %v1954_v55 = vmul.f32 %v15923_v40, %v1888_v25 }
 0x27f   :  { %v9848_v4 = vpop.f32.mrb[149].mxu0  ;;  %13032 = vmatpush3.bf16.msra.mxu1 %v15983_v63  ;;  %12885 = vmatprep.subr.bf16.mxu0 %v18924_v50  ;;  %v15994_v42 = vpack.c.bf16 %v2136_v48, %v2129_v47  ;;  %v2132_v28 = vand.u32 4294901760, %v2131_v58 }
 0x280   :  { %v2143_v32 = vsub.f32 %v1888_v25, %v2019_v44  ;;  %v1895_v18 = vadd.f32 %v15834_v41, %v1686_v37  ;;  %v9849_v3 = vadd.f32 %v9848_v4, %v9847_v49  ;;  %1978 = vadd.xlane.f32.xlu0 %v1954_v55  ;;  %v2138_v36 = vsub.f32 %v2136_v48, %v2137_v9 }
 0x281   :  { %v15997_v53 = vpack.c.bf16 %v2137_v9, %v2130_v23 }
 0x282   :  { %v2022_v21 = vand.u32 4294901760, %v1895_v18  ;;  %v1693_v7 = vadd.f32 %v9849_v3, %v15902_v54  ;;  %v9850_v57 = vpop.f32.mrb[150].mxu0  ;;  %v1955_v35 = vmul.f32 %v15923_v40, %v1895_v18  ;;  %v2144_v31 = vand.u32 4294901760, %v2143_v32 }
 0x283   :  { %19326 = vst [vmem:[#allocation23_spill] sm:$0xff] %v15997_v53  ;;  %v9851_v19 = vpop.f32.mrb[151].mxu0  ;;  %v2139_v11 = vand.u32 4294901760, %v2138_v36 }
 0x284   :  { %v16001_v47 = vpack.c.bf16 %v2022_v21, %v2019_v44  ;;  %v2150_v1 = vsub.f32 %v1895_v18, %v2022_v21  ;;  %v1902_v41 = vadd.f32 %v15839_v52, %v1693_v7  ;;  %v9852_v39 = vadd.f32 %v9851_v19, %v9850_v57  ;;  %1980 = vadd.xlane.f32.xlu1 %v1955_v35  ;;  %v237_v19 = vld [vmem:[%s18735_s5] sm:$0x1] }
 0x285   :  { %v16004_v29 = vpack.c.bf16 %v2139_v11, %v2132_v28  ;;  %v2145_v52 = vsub.f32 %v2143_v32, %v2144_v31 }
 0x286   :  { %v2151_v12 = vand.u32 4294901760, %v2150_v1  ;;  %v2025_v0 = vand.u32 4294901760, %v1902_v41  ;;  %v1700_v54 = vadd.f32 %v9852_v39, %v15905_v26  ;;  %v9853_v16 = vpop.f32.mrb[152].mxu0  ;;  %12887 = vmatpush3.bf16.xpose.msra.mxu0 %v16001_v47  ;;  %13034 = vmatprep.subr.bf16.mxu1 %v16001_v47  ;;  %v1956_v23 = vmul.f32 %v15923_v40, %v1902_v41 }
 0x287   :  { %v9854_v8 = vpop.f32.mrb[153].mxu0  ;;  %13036 = vmatpush3.bf16.msra.mxu1 %v16001_v47  ;;  %12888 = vmatprep.subr.bf16.mxu0 %v18924_v50  ;;  %v16012_v13 = vpack.c.bf16 %v2150_v1, %v2143_v32  ;;  %v2146_v58 = vand.u32 4294901760, %v2145_v52 }
 0x288   :  { %v2157_v22 = vsub.f32 %v1902_v41, %v2025_v0  ;;  %v1909_v48 = vadd.f32 %v15844_v15, %v1700_v54  ;;  %v9855_v25 = vadd.f32 %v9854_v8, %v9853_v16  ;;  %1982 = vadd.xlane.f32.xlu0 %v1956_v23  ;;  %v2152_v26 = vsub.f32 %v2150_v1, %v2151_v12 }
 0x289   :  { %v16015_v5 = vpack.c.bf16 %v2151_v12, %v2144_v31  ;;  %v16036_v12 = vand.u32 4294901760, %v237_v19 }
 0x28a   :  { %v2028_v9 = vand.u32 4294901760, %v1909_v48  ;;  %v1707_v44 = vadd.f32 %v9855_v25, %v15908_v51  ;;  %v9856_v37 = vpop.f32.mrb[154].mxu0  ;;  %v1957_v49 = vmul.f32 %v15923_v40, %v1909_v48  ;;  %v2158_v55 = vand.u32 4294901760, %v2157_v22 }
 0x28b   :  { %19327 = vst [vmem:[#allocation32_spill] sm:$0xff] %v16015_v5  ;;  %v9857_v4 = vpop.f32.mrb[155].mxu0  ;;  %v2153_v18 = vand.u32 4294901760, %v2152_v26 }
 0x28c   :  { %v16019_v32 = vpack.c.bf16 %v2028_v9, %v2025_v0  ;;  %v2164_v3 = vsub.f32 %v1909_v48, %v2028_v9  ;;  %v1916_v15 = vadd.f32 %v15849_v33, %v1707_v44  ;;  %v9858_v36 = vadd.f32 %v9857_v4, %v9856_v37  ;;  %1984 = vadd.xlane.f32.xlu1 %v1957_v49 }
 0x28d   :  { %v16022_v21 = vpack.c.bf16 %v2153_v18, %v2146_v58  ;;  %v2159_v28 = vsub.f32 %v2157_v22, %v2158_v55  ;;  %v16046_v37 = vsub.f32 %v237_v19, %v16036_v12 }
 0x28e   :  { %v2165_v7 = vand.u32 4294901760, %v2164_v3  ;;  %v2031_v57 = vand.u32 4294901760, %v1916_v15  ;;  %v1714_v51 = vadd.f32 %v9858_v36, %v15911_v43  ;;  %v9859_v35 = vpop.f32.mrb[156].mxu0  ;;  %12890 = vmatpush3.bf16.xpose.msra.mxu0 %v16019_v32  ;;  %13038 = vmatprep.subr.bf16.mxu1 %v16019_v32  ;;  %v1958_v31 = vmul.f32 %v15923_v40, %v1916_v15 }
 0x28f   :  { %v9860_v33 = vpop.f32.mrb[157].mxu0  ;;  %13040 = vmatpush3.bf16.msra.mxu1 %v16019_v32  ;;  %12891 = vmatprep.subr.bf16.mxu0 %v18924_v50  ;;  %v16033_v11 = vpack.c.bf16 %v2164_v3, %v2157_v22  ;;  %v2160_v22 = vand.u32 4294901760, %v2159_v28 }
 0x290   :  { %v2171_v43 = vsub.f32 %v1916_v15, %v2031_v57  ;;  %v1923_v1 = vadd.f32 %v15854_v38, %v1714_v51  ;;  %v9861_v41 = vadd.f32 %v9860_v33, %v9859_v35  ;;  %1986 = vadd.xlane.f32.xlu0 %v1958_v31  ;;  %v2166_v39 = vsub.f32 %v2164_v3, %v2165_v7 }
 0x291   :  { %v16038_v0 = vpack.c.bf16 %v2165_v7, %v2158_v55 }
 0x292   :  { %v2172_v54 = vand.u32 4294901760, %v2171_v43  ;;  %v2034_v16 = vand.u32 4294901760, %v1923_v1  ;;  %v1721_v23 = vadd.f32 %v9861_v41, %v15914_v14  ;;  %v9862_v8 = vpop.f32.mrb[158].mxu0  ;;  %v1959_v52 = vmul.f32 %v15923_v40, %v1923_v1 }
 0x293   :  { %19328 = vst [vmem:[#allocation20_spill] sm:$0xff] %v16038_v0  ;;  %v9863_v48 = vpop.f32.mrb[159].mxu0  ;;  %v2167_v25 = vand.u32 4294901760, %v2166_v39 }
 0x294   :  { %v16042_v26 = vpack.c.bf16 %v2034_v16, %v2031_v57  ;;  %v2178_v38 = vsub.f32 %v1923_v1, %v2034_v16  ;;  %v1930_v9 = vadd.f32 %v15859_v24, %v1721_v23  ;;  %v9864_v44 = vadd.f32 %v9863_v48, %v9862_v8  ;;  %1988 = vadd.xlane.f32.xlu1 %v1959_v52 }
 0x295   :  { %v16048_v49 = vpack.c.bf16 %v2167_v25, %v2160_v22  ;;  %v2173_v55 = vsub.f32 %v2171_v43, %v2172_v54  ;;  %v2635_v25 = vlaneseq }
 0x296   :  { %v2179_v14 = vand.u32 4294901760, %v2178_v38  ;;  %v2037_v4 = vand.u32 4294901760, %v1930_v9  ;;  %v1728_v58 = vadd.f32 %v9864_v44, %v15917_v6  ;;  %12893 = vmatpush3.bf16.xpose.msra.mxu0 %v16042_v26  ;;  %13042 = vmatprep.subr.bf16.mxu1 %v16042_v26  ;;  %v1960_v18 = vmul.f32 %v15923_v40, %v1930_v9 }
 0x297   :  { %13044 = vmatpush3.bf16.msra.mxu1 %v16042_v26  ;;  %12894 = vmatprep.subr.bf16.mxu0 %v18924_v50  ;;  %v16056_v24 = vpack.c.bf16 %v2178_v38, %v2171_v43  ;;  %v2077_v6 = vand.u32 4294901760, %v16046_v37  ;;  %v2174_v57 = vand.u32 4294901760, %v2173_v55 }
 0x298   :  { %v2185_v3 = vsub.f32 %v1930_v9, %v2037_v4  ;;  %v1937_v15 = vadd.f32 %v15864_v46, %v1728_v58  ;;  %1990 = vadd.xlane.f32.xlu0 %v1960_v18  ;;  %v2180_v36 = vsub.f32 %v2178_v38, %v2179_v14  ;;  %v16059_v7 = vpack.c.bf16 %v2179_v14, %v2172_v54  ;;  %v136_v38 = vld [vmem:[#allocation6] sm:$0xff] }
 0x299   :  { %v2078_v46 = vsub.f32 %v16046_v37, %v2077_v6  ;;  %v16179_v9 = vshrl.u32 %v2635_v25, 7  ;;  %v140_v44 = vunpack.c.0.s8 %v136_v38  ;;  %v141_v58 = vunpack.c.1.s8 %v136_v38 }
 0x29a   :  { %19329 = vst [vmem:[#allocation41_spill] sm:$0xff] %v16059_v7  ;;  %v2186_v51 = vand.u32 4294901760, %v2185_v3  ;;  %v2040_v35 = vand.u32 4294901760, %v1937_v15  ;;  %v1961_v31 = vmul.f32 %v15923_v40, %v1937_v15  ;;  %v2181_v19 = vand.u32 4294901760, %v2180_v36 }
 0x29b   :  { %v2079_v16 = vand.u32 4294901760, %v2078_v46  ;;  %19331 = vst [vmem:[#allocation22_spill] sm:$0xff] %v16179_v9  ;;  %v18921_v14 = vsub.s32 0, %v16179_v9  ;;  %v142_v18 = vunpack.c.2.s8 %v136_v38  ;;  %v190_v46 = vld [vmem:[#allocation8 + $0x10] sm:$0xff] }
 0x29c   :  { %v16063_v33 = vpack.c.bf16 %v2040_v35, %v2037_v4  ;;  %v2192_v28 = vsub.f32 %v1937_v15, %v2040_v35  ;;  %1992 = vadd.xlane.f32.xlu1 %v1961_v31  ;;  %v16065_v43 = vpack.c.bf16 %v2181_v19, %v2174_v57  ;;  %v2187_v41 = vsub.f32 %v2185_v3, %v2186_v51  ;;  %v16184_v15 = vld [vmem:[#allocation6 + $0x8] sm:$0xff] }
 0x29d   :  { %v16182_v4 = vcvt.s32.f32 %v140_v44  ;;  %v143_v35 = vunpack.c.3.s8 %v136_v38  ;;  %v16191_v31 = vcvt.s32.f32 %v141_v58  ;;  %v189_v19 = vld [vmem:[#allocation8 + $0x8] sm:$0xff] }
 0x29e   :  { %v2193_v1 = vand.u32 4294901760, %v2192_v28  ;;  %12896 = vmatpush3.bf16.xpose.msra.mxu0 %v16063_v33  ;;  %13046 = vmatprep.subr.bf16.mxu1 %v16063_v33  ;;  %v16072_v39 = vpack.c.bf16 %v2192_v28, %v2185_v3  ;;  %v2188_v23 = vand.u32 4294901760, %v2187_v41  ;;  %v145_v41 = vunpack.c.1.s8 %v16184_v15  ;;  %v193_v58 = vld [vmem:[#allocation8 + $0x28] sm:$0xff] }
 0x29f   :  { %13048 = vmatpush3.bf16.msra.mxu1 %v16063_v33  ;;  %12897 = vmatprep.subr.bf16.mxu0 %v18924_v50  ;;  %19332 = vst [vmem:[#allocation45_spill] sm:$0xff] %v16182_v4  ;;  %vm172_vm1 = vcmp.gt.f32.partialorder %v16182_v4, 0.0  ;;  %19333 = vst [vmem:[#allocation24_spill] sm:$0xff] %v16191_v31  ;;  %vm173_vm2 = vcmp.gt.f32.partialorder %v16191_v31, 0.0 }
 0x2a0   :  { %13050 = vmatprep.subr.bf16.mxu1 %v15950_v2  ;;  %v2194_v40 = vsub.f32 %v2192_v28, %v2193_v1  ;;  %v16077_v54 = vpack.c.bf16 %v2193_v1, %v2186_v51  ;;  %v188_v51 = vld [vmem:[#allocation8] sm:$0xff]  ;;  %v16193_v28 = vcvt.s32.f32 %v142_v18  ;;  %v191_v1 = vld [vmem:[#allocation8 + $0x18] sm:$0xff] }
 0x2a2   :  { %19330 = vst [vmem:[#allocation42_spill] sm:$0xff] %v16077_v54  ;;  %v2195_v8 = vand.u32 4294901760, %v2194_v40  ;;  %19334 = vst [vmem:[#allocation46_spill] sm:$0xff] %v16193_v28  ;;  %v144_v40 = vunpack.c.0.s8 %v16184_v15  ;;  %vm174_vm3 = vcmp.gt.f32.partialorder %v16193_v28, 0.0 }
 0x2a4   :  { %v16079_v52 = vpack.c.bf16 %v2195_v8, %v2188_v23 }
 0x2a5   :  { %10950 = vmatmul.mubr.f32.vlgmr.msra.gmra.mrb[160].mxu0 %v2079_v16 }
 0x2a6   :  { %12899 = vmatpush3.bf16.xpose.msra.mxu0 %v15950_v2  ;;  %10984 = vmatprep.mubr.msk.f32.mxu0 %vm14729_vm0, %v18922_v10 }
 0x2a7   :  { %12900 = vmatprep.subr.bf16.mxu0 %v18924_v50 }
 0x2ae   :  { %12902 = vmatpush3.bf16.xpose.msra.mxu0 %v15968_v62 }
 0x2af   :  { %12903 = vmatprep.subr.bf16.mxu0 %v18924_v50 }
 0x2b6   :  { %12905 = vmatpush3.bf16.xpose.msra.mxu0 %v15986_v61 }
 0x2b7   :  { %12906 = vmatprep.subr.bf16.mxu0 %v18924_v50 }
 0x2be   :  { %12908 = vmatpush3.bf16.xpose.msra.mxu0 %v16004_v29 }
 0x2bf   :  { %12909 = vmatprep.subr.bf16.mxu0 %v18924_v50 }
 0x2c6   :  { %12911 = vmatpush3.bf16.xpose.msra.mxu0 %v16022_v21 }
 0x2c7   :  { %12912 = vmatprep.subr.bf16.mxu0 %v18924_v50 }
 0x2ce   :  { %12914 = vmatpush3.bf16.xpose.msra.mxu0 %v16048_v49 }
 0x2cf   :  { %12915 = vmatprep.subr.bf16.mxu0 %v18924_v50 }
 0x2d6   :  { %12917 = vmatpush3.bf16.xpose.msra.mxu0 %v16065_v43 }
 0x2d7   :  { %12918 = vmatprep.subr.bf16.mxu0 %v18924_v50 }
 0x2de   :  { %12920 = vmatpush3.bf16.xpose.msra.mxu0 %v16079_v52 }
 0x2df   :  { %12921 = vmatprep.subr.bf16.mxu0 %v18924_v50 }
 0x2e5   :  { %10985 = vmatmul.mubr.f32.vlgmr.msra.gmra.mrb[160].mxu0 %v16036_v12 }
 0x2e6   :  { %12923 = vmatpush3.bf16.xpose.msra.mxu0 %v15940_v30  ;;  %11019 = vmatprep.mubr.msk.f32.mxu0 %vm14729_vm0, %v18922_v10 }
 0x2e7   :  { %12924 = vmatprep.subr.bf16.mxu0 %v18924_v50 }
 0x2ed   :  { %v1963_v48 = vpop.xlane.xlu0 %1962 }
 0x2ee   :  { %12926 = vmatpush3.bf16.xpose.msra.mxu0 %v15958_v27 }
 0x2ef   :  { %12927 = vmatprep.subr.bf16.mxu0 %v18924_v50 }
 0x2f5   :  { %v1967_v22 = vpop.xlane.xlu1 %1966 }
 0x2f6   :  { %12929 = vmatpush3.bf16.xpose.msra.mxu0 %v15976_v45 }
 0x2f7   :  { %12930 = vmatprep.subr.bf16.mxu0 %v18924_v50 }
 0x2f9   :  { %v1969_v55 = vpop.xlane.xlu1 %1968 }
 0x2fe   :  { %12932 = vmatpush3.bf16.xpose.msra.mxu0 %v15994_v42 }
 0x2ff   :  { %12933 = vmatprep.subr.bf16.mxu0 %v18924_v50 }
 0x306   :  { %12935 = vmatpush3.bf16.xpose.msra.mxu0 %v16012_v13 }
 0x307   :  { %12936 = vmatprep.subr.bf16.mxu0 %v18924_v50 }
 0x30e   :  { %12938 = vmatpush3.bf16.xpose.msra.mxu0 %v16033_v11 }
 0x30f   :  { %12939 = vmatprep.subr.bf16.mxu0 %v18924_v50 }
 0x316   :  { %12941 = vmatpush3.bf16.xpose.msra.mxu0 %v16056_v24 }
 0x317   :  { %12942 = vmatprep.subr.bf16.mxu0 %v18924_v50 }
 0x31e   :  { %12944 = vmatpush3.bf16.xpose.msra.mxu0 %v16072_v39 }
 0x31f   :  { %12945 = vmatprep.subr.bf16.mxu0 %v18924_v50 }
 0x325   :  { %11020 = vmatmul.mubr.f32.vlgmr.msra.gmra.mrb[160].mxu0 %v16046_v37  ;;  %v1965_v37 = vpop.xlane.xlu0 %1964 }
 0x326   :  { %12947 = vmatpush3.bf16.xpose.msra.mxu0 %v15931_v17  ;;  %11054 = vmatprep.mubr.msk.f32.mxu0 %vm14729_vm0, %v18922_v10 }
 0x327   :  { %12948 = vmatprep.subr.bf16.mxu0 %v18924_v50 }
 0x329   :  { %v1971_v3 = vpop.xlane.xlu0 %1970 }
 0x32d   :  { %v1975_v16 = vpop.xlane.xlu0 %1974 }
 0x32e   :  { %12950 = vmatpush3.bf16.xpose.msra.mxu0 %v15947_v60 }
 0x32f   :  { %12951 = vmatprep.subr.bf16.mxu0 %v18924_v50 }
 0x336   :  { %12953 = vmatpush3.bf16.xpose.msra.mxu0 %v15965_v59 }
 0x337   :  { %12954 = vmatprep.subr.bf16.mxu0 %v18924_v50 }
 0x33e   :  { %12956 = vmatpush3.bf16.xpose.msra.mxu0 %v15983_v63 }
 0x33f   :  { %12957 = vmatprep.subr.bf16.mxu0 %v18924_v50 }
 0x346   :  { %12959 = vmatpush3.bf16.xpose.msra.mxu0 %v16001_v47 }
 0x347   :  { %12960 = vmatprep.subr.bf16.mxu0 %v18924_v50 }
 0x34e   :  { %12962 = vmatpush3.bf16.xpose.msra.mxu0 %v16019_v32 }
 0x34f   :  { %12963 = vmatprep.subr.bf16.mxu0 %v18924_v50 }
 0x356   :  { %12965 = vmatpush3.bf16.xpose.msra.mxu0 %v16042_v26 }
 0x357   :  { %12966 = vmatprep.subr.bf16.mxu0 %v18924_v50 }
 0x35e   :  { %12968 = vmatpush3.bf16.xpose.msra.mxu0 %v16063_v33 }
 0x35f   :  { %12969 = vmatprep.subr.bf16.mxu0 %v18924_v50 }
 0x365   :  { %11055 = vmatmul.mubr.f32.vlgmr.msra.gmra.mrb[160].mxu0 %v2077_v6 }
 0x366   :  { %12971 = vmatpush3.bf16.xpose.msra.mxu0 %v15943_v20  ;;  %11089 = vmatprep.mubr.msk.f32.mxu0 %vm14729_vm0, %v18922_v10 }
 0x367   :  { %12972 = vmatprep.subr.bf16.mxu0 %v18924_v50 }
 0x36e   :  { %12974 = vmatpush3.bf16.xpose.msra.mxu0 %v15961_v34 }
 0x36f   :  { %12975 = vmatprep.subr.bf16.mxu0 %v18924_v50 }
 0x376   :  { %12977 = vmatpush3.bf16.xpose.msra.mxu0 %v15979_v56 }
 0x377   :  { %12978 = vmatprep.subr.bf16.mxu0 %v18924_v50 }
 0x37e   :  { %12980 = vmatpush3.bf16.xpose.msra.mxu0 %v15997_v53 }
 0x37f   :  { %12981 = vmatprep.subr.bf16.mxu0 %v18924_v50 }
 0x386   :  { %12983 = vmatpush3.bf16.xpose.msra.mxu0 %v16015_v5 }
 0x387   :  { %12984 = vmatprep.subr.bf16.mxu0 %v18924_v50 }
 0x38e   :  { %12986 = vmatpush3.bf16.xpose.msra.mxu0 %v16038_v0  ;;  %v146_v0 = vunpack.c.2.s8 %v16184_v15 }
 0x38f   :  { %12987 = vmatprep.subr.bf16.mxu0 %v18924_v50 }
 0x396   :  { %12989 = vmatpush3.bf16.xpose.msra.mxu0 %v16059_v7 }
 0x397   :  { %12990 = vmatprep.subr.bf16.mxu0 %v18924_v50 }
 0x39e   :  { %12992 = vmatpush3.bf16.xpose.msra.mxu0 %v16077_v54 }
 0x39f   :  { %12993 = vmatprep.subr.bf16.mxu0 %v18924_v50 }
 0x3a5   :  { %11090 = vmatmul.mubr.f32.vlgmr.msra.gmra.mrb[160].mxu0 %v16036_v12 }
 0x3a6   :  { %12995 = vmatpush3.bf16.xpose.msra.mxu0 %v15931_v17  ;;  %11124 = vmatprep.mubr.msk.f32.mxu0 %vm14729_vm0, %v18922_v10 }
 0x3a7   :  { %12996 = vmatprep.subr.bf16.mxu0 %v18924_v50 }
 0x3ae   :  { %12998 = vmatpush3.bf16.xpose.msra.mxu0 %v15947_v60 }
 0x3af   :  { %12999 = vmatprep.subr.bf16.mxu0 %v18924_v50 }
 0x3b6   :  { %13001 = vmatpush3.bf16.xpose.msra.mxu0 %v15965_v59 }
 0x3b7   :  { %13002 = vmatprep.subr.bf16.mxu0 %v18924_v50 }
 0x3be   :  { %13004 = vmatpush3.bf16.xpose.msra.mxu0 %v15983_v63 }
 0x3bf   :  { %13005 = vmatprep.subr.bf16.mxu0 %v18924_v50 }
 0x3c6   :  { %13007 = vmatpush3.bf16.xpose.msra.mxu0 %v16001_v47 }
 0x3c7   :  { %13008 = vmatprep.subr.bf16.mxu0 %v18924_v50 }
 0x3ce   :  { %13010 = vmatpush3.bf16.xpose.msra.mxu0 %v16019_v32 }
 0x3cf   :  { %13011 = vmatprep.subr.bf16.mxu0 %v18924_v50 }
 0x3d6   :  { %13013 = vmatpush3.bf16.xpose.msra.mxu0 %v16042_v26 }
 0x3d7   :  { %13014 = vmatprep.subr.bf16.mxu0 %v18924_v50 }
 0x3de   :  { %13016 = vmatpush3.bf16.xpose.msra.mxu0 %v16063_v33 }
 0x3df   :  { %13401 = vmatprep.subr.bf16.mxu0 %v18924_v50 }
 0x3e5   :  { %11125 = vmatmul.mubr.f32.vlgmr.msra.gmra.mrb[160].mxu0 %v16036_v12  ;;  %v1973_v12 = vpop.xlane.xlu1 %1972 }
 0x3e6   :  { %11831 = vmatprep.mubr.msk.f32.mxu0 %vm14729_vm0, %v18922_v10 }
 0x3e9   :  { %v1977_v23 = vpop.xlane.xlu1 %1976 }
 0x4b8   :  { %v2631_v36 = vpop.f32.mrb[160].mxu0 }
 0x4b9   :  { %v16188_v6 = vrot.slane %v2631_v36, %v18921_v14  ;;  %v11126_v57 = vpop.f32.mrb[161].mxu0  ;;  %v192_v36 = vld [vmem:[#allocation8 + $0x20] sm:$0xff] }
 0x4bb   :  { %v2639_v8 = vadd.f32 %v16188_v6, %v1963_v48  ;;  %v2640_v25 = vadd.f32 %v16188_v6, %v1965_v37  ;;  %v2641_v44 = vadd.f32 %v16188_v6, %v1967_v22  ;;  %v2642_v38 = vadd.f32 %v16188_v6, %v1969_v55  ;;  %v195_v55 = vld [vmem:[#allocation8 + $0x38] sm:$0xff] }
 0x4bc   :  { %v2644_v18 = vadd.f32 %v16188_v6, %v1973_v12  ;;  %v2643_v57 = vadd.f32 %v16188_v6, %v1971_v3  ;;  %v2646_v14 = vadd.f32 %v16188_v6, %v1977_v23  ;;  %v2645_v10 = vadd.f32 %v16188_v6, %v1975_v16  ;;  %v194_v12 = vld [vmem:[#allocation8 + $0x30] sm:$0xff] }
 0x4bd   :  { %v2655_v50 = vmul.f32 %v2639_v8, %v188_v51  ;;  %v2656_v9 = vmul.f32 %v2640_v25, %v189_v19  ;;  %v2657_v54 = vmul.f32 %v2641_v44, %v190_v46  ;;  %v2658_v48 = vmul.f32 %v2642_v38, %v191_v1  ;;  %v1979_v46 = vpop.xlane.xlu0 %1978  ;;  %v1981_v1 = vpop.xlane.xlu1 %1980 }
 0x4be   :  { %v16205_v7 = vmul.f32 %v2644_v18, %v193_v58  ;;  %v16207_v37 = vmul.f32 %v2643_v57, %v192_v36  ;;  %v147_v22 = vunpack.c.3.s8 %v16184_v15  ;;  %v16211_v23 = vcvt.s32.f32 %v143_v35  ;;  %v16223_v58 = vld [vmem:[#allocation6 + $0x10] sm:$0xff]  ;;  %v196_v18 = vld [vmem:[#allocation8 + $0x40] sm:$0xff] }
 0x4bf   :  { %v2671_v5 = vmul.f32 0.2, %v2655_v50  ;;  %v2672_v3 = vmul.f32 0.2, %v2656_v9  ;;  %v2673_v53 = vmul.f32 0.2, %v2657_v54  ;;  %v16215_v19 = vcvt.s32.f32 %v145_v41 }
 0x4c0   :  { %19335 = vst [vmem:[#allocation48_spill] sm:$0xff] %v16211_v23  ;;  %v2674_v51 = vmul.f32 0.2, %v2658_v48  ;;  %v16217_v25 = vmul.f32 %v2646_v14, %v195_v55  ;;  %v16219_v15 = vmul.f32 %v2645_v10, %v194_v12  ;;  %v2676_v38 = vmul.f32 0.2, %v16205_v7  ;;  %v197_v10 = vld [vmem:[#allocation8 + $0x48] sm:$0xff] }
 0x4c1   :  { %19336 = vst [vmem:[#allocation25_spill] sm:$0xff] %v16215_v19  ;;  %v2687_v16 = vmax.f32 %v2655_v50, %v2671_v5  ;;  %v2688_v8 = vmax.f32 %v2656_v9, %v2672_v3  ;;  %v2689_v44 = vmax.f32 %v2657_v54, %v2673_v53  ;;  %v2675_v35 = vmul.f32 0.2, %v16207_v37  ;;  %v1983_v57 = vpop.xlane.xlu0 %1982  ;;  %v1985_v55 = vpop.xlane.xlu1 %1984 }
 0x4c2   :  { %v2648_v36 = vadd.f32 %v16188_v6, %v1981_v1  ;;  %v2690_v5 = vmax.f32 %v2658_v48, %v2674_v51  ;;  %v2647_v53 = vadd.f32 %v16188_v6, %v1979_v46  ;;  %vm175_vm4 = vcmp.gt.f32.partialorder %v16211_v23, 0.0 }
 0x4c3   :  { %v16228_v41 = vsel %vm172_vm1, %v2687_v16, -9e+15  ;;  %v16232_v50 = vsel %vm173_vm2, %v2688_v8, -9e+15  ;;  %v16238_v54 = vcvt.s32.f32 %v144_v40  ;;  %v16240_v9 = vcvt.s32.f32 %v147_v22 }
 0x4c4   :  { %2751 = vmax.xlane.f32.xlu0 %v16228_v41  ;;  %2753 = vmax.xlane.f32.xlu1 %v16232_v50  ;;  %v16242_v14 = vcvt.s32.f32 %v146_v0  ;;  %vm177_vm5 = vcmp.gt.f32.partialorder %v16215_v19, 0.0  ;;  %v2678_v48 = vmul.f32 0.2, %v16217_v25  ;;  %v2677_v12 = vmul.f32 0.2, %v16219_v15 }
 0x4c5   :  { %19337 = vst [vmem:[#allocation26_spill] sm:$0xff] %v16238_v54  ;;  %19338 = vst [vmem:[#allocation50_spill] sm:$0xff] %v16240_v9  ;;  %v149_v3 = vunpack.c.1.s8 %v16223_v58  ;;  %v16250_v51 = vsel %vm174_vm3, %v2689_v44, -9e+15  ;;  %v2692_v40 = vmax.f32 %v16205_v7, %v2676_v38  ;;  %v2691_v0 = vmax.f32 %v16207_v37, %v2675_v35  ;;  %v199_v37 = vld [vmem:[#allocation8 + $0x58] sm:$0xff]  ;;  %v198_v44 = vld [vmem:[#allocation8 + $0x50] sm:$0xff]  ;;  %v1987_v38 = vpop.xlane.xlu0 %1986  ;;  %v1989_v35 = vpop.xlane.xlu1 %1988 }
 0x4c6   :  { %19339 = vst [vmem:[#allocation54_spill] sm:$0xff] %v16242_v14  ;;  %v2664_v22 = vmul.f32 %v2648_v36, %v197_v10  ;;  %v16256_v46 = vsel %vm175_vm4, %v2690_v5, -9e+15  ;;  %v2663_v1 = vmul.f32 %v2647_v53, %v196_v18  ;;  %v2650_v16 = vadd.f32 %v16188_v6, %v1985_v55 }
 0x4c7   :  { %v2649_v8 = vadd.f32 %v16188_v6, %v1983_v57  ;;  %vm176_vm6 = vcmp.gt.f32.partialorder %v16238_v54, 0.0  ;;  %vm179_vm7 = vcmp.gt.f32.partialorder %v16240_v9, 0.0  ;;  %vm178_vm8 = vcmp.gt.f32.partialorder %v16242_v14, 0.0 }
 0x4c8   :  { %2755 = vmax.xlane.f32.xlu0 %v16250_v51  ;;  %2757 = vmax.xlane.f32.xlu1 %v16256_v46  ;;  %v148_v7 = vunpack.c.0.s8 %v16223_v58  ;;  %v2694_v36 = vmax.f32 %v16217_v25, %v2678_v48  ;;  %v2693_v5 = vmax.f32 %v16219_v15, %v2677_v12  ;;  %v16268_v10 = vcvt.s32.f32 %v149_v3  ;;  %v201_v12 = vld [vmem:[#allocation8 + $0x68] sm:$0xff]  ;;  %v200_v3 = vld [vmem:[#allocation8 + $0x60] sm:$0xff] }
 0x4c9   :  { %v151_v53 = vunpack.c.3.s8 %v16223_v58  ;;  %v16273_v18 = vsel %vm177_vm5, %v2692_v40, -9e+15  ;;  %v2680_v57 = vmul.f32 0.2, %v2664_v22  ;;  %v2652_v55 = vadd.f32 %v16188_v6, %v1989_v35  ;;  %v1993_v35 = vpop.xlane.xlu1 %1992 }
 0x4ca   :  { %19340 = vst [vmem:[#allocation27_spill] sm:$0xff] %v16268_v10  ;;  %v2651_v28 = vadd.f32 %v16188_v6, %v1987_v38  ;;  %v16279_v23 = vsel %vm176_vm6, %v2691_v0, -9e+15  ;;  %v2679_v25 = vmul.f32 0.2, %v2663_v1  ;;  %v2666_v48 = vmul.f32 %v2650_v16, %v199_v37  ;;  %v1991_v37 = vpop.xlane.xlu0 %1990 }
 0x4cb   :  { %v2665_v15 = vmul.f32 %v2649_v8, %v198_v44  ;;  %v16283_v40 = vcvt.s32.f32 %v148_v7  ;;  %v150_v19 = vunpack.c.2.s8 %v16223_v58  ;;  %v16288_v38 = vsel %vm179_vm7, %v2694_v36, -9e+15  ;;  %v139_v8 = vld [vmem:[#allocation6 + $0x18] sm:$0xff] }
 0x4cc   :  { %2761 = vmax.xlane.f32.xlu1 %v16273_v18  ;;  %2759 = vmax.xlane.f32.xlu0 %v16279_v23  ;;  %v16292_v0 = vsel %vm178_vm8, %v2693_v5, -9e+15  ;;  %vm18997_vm9 = vcmp.gt.f32.partialorder %v16268_v10, 0.0  ;;  %v16295_v16 = vcvt.s32.f32 %v151_v53  ;;  %v2696_v44 = vmax.f32 %v2664_v22, %v2680_v57  ;;  %v203_v36 = vld [vmem:[#allocation8 + $0x78] sm:$0xff]  ;;  %v202_v57 = vld [vmem:[#allocation8 + $0x70] sm:$0xff] }
 0x4cd   :  { %19341 = vst [vmem:[#allocation28_spill] sm:$0xff] %v16283_v40  ;;  %v2668_v7 = vmul.f32 %v2652_v55, %v201_v12  ;;  %v2667_v54 = vmul.f32 %v2651_v28, %v200_v3  ;;  %v2654_v58 = vadd.f32 %v16188_v6, %v1993_v35  ;;  %v2695_v4 = vmax.f32 %v2663_v1, %v2679_v25 }
 0x4ce   :  { %19342 = vst [vmem:[#allocation55_spill] sm:$0xff] %v16295_v16  ;;  %v2682_v31 = vmul.f32 0.2, %v2666_v48  ;;  %v2681_v9 = vmul.f32 0.2, %v2665_v15  ;;  %v2653_v56 = vadd.f32 %v16188_v6, %v1991_v37  ;;  %vm18995_vm10 = vcmp.gt.f32.partialorder %v16283_v40, 0.0 }
 0x4cf   :  { %v16302_v5 = vcvt.s32.f32 %v150_v19  ;;  %v153_v53 = vunpack.c.1.s8 %v139_v8  ;;  %v152_v22 = vunpack.c.0.s8 %v139_v8  ;;  %vm18994_vm11 = vcmp.gt.f32.partialorder %v16295_v16, 0.0 }
 0x4d0   :  { %2765 = vmax.xlane.f32.xlu1 %v16288_v38  ;;  %2763 = vmax.xlane.f32.xlu0 %v16292_v0  ;;  %v155_v28 = vunpack.c.3.s8 %v139_v8  ;;  %v16307_v1 = vsel %vm18997_vm9, %v2696_v44, -9e+15  ;;  %v2684_v55 = vmul.f32 0.2, %v2668_v7  ;;  %v2683_v6 = vmul.f32 0.2, %v2667_v54 }
 0x4d1   :  { %19343 = vst [vmem:[#allocation57_spill] sm:$0xff] %v16302_v5  ;;  %v2670_v25 = vmul.f32 %v2654_v58, %v203_v36  ;;  %v16311_v12 = vsel %vm18995_vm10, %v2695_v4, -9e+15  ;;  %v2698_v3 = vmax.f32 %v2666_v48, %v2682_v31  ;;  %v2697_v19 = vmax.f32 %v2665_v15, %v2681_v9 }
 0x4d2   :  { %v2669_v35 = vmul.f32 %v2653_v56, %v202_v57  ;;  %vm18948_vm12 = vcmp.gt.f32.partialorder %v16302_v5, 0.0  ;;  %v16316_v37 = vcvt.s32.f32 %v153_v53  ;;  %v16318_v44 = vcvt.s32.f32 %v152_v22 }
 0x4d3   :  { %v154_v10 = vunpack.c.2.s8 %v139_v8  ;;  %v2700_v14 = vmax.f32 %v2668_v7, %v2684_v55  ;;  %v2686_v58 = vmul.f32 0.2, %v2670_v25  ;;  %v16322_v4 = vsel %vm18994_vm11, %v2698_v3, -9e+15 }
 0x4d4   :  { %2769 = vmax.xlane.f32.xlu1 %v16307_v1  ;;  %2767 = vmax.xlane.f32.xlu0 %v16311_v12  ;;  %19344 = vst [vmem:[#allocation29_spill] sm:$0xff] %v16316_v37  ;;  %19345 = vst [vmem:[#allocation30_spill] sm:$0xff] %v16318_v44  ;;  %v16326_v56 = vsel %vm18948_vm12, %v2697_v19, -9e+15  ;;  %v2699_v31 = vmax.f32 %v2667_v54, %v2683_v6  ;;  %v2685_v9 = vmul.f32 0.2, %v2669_v35  ;;  %v16332_v48 = vcvt.s32.f32 %v155_v28 }
 0x4d5   :  { %vm18993_vm13 = vcmp.gt.f32.partialorder %v16316_v37, 0.0  ;;  %vm18990_vm14 = vcmp.gt.f32.partialorder %v16318_v44, 0.0  ;;  %v16334_v15 = vcvt.s32.f32 %v154_v10  ;;  %v2702_v7 = vmax.f32 %v2670_v25, %v2686_v58 }
 0x4d6   :  { %19346 = vst [vmem:[#allocation58_spill] sm:$0xff] %v16332_v48  ;;  %v16338_v8 = vsel %vm18993_vm13, %v2700_v14, -9e+15  ;;  %v16342_v54 = vsel %vm18990_vm14, %v2699_v31, -9e+15  ;;  %v2701_v36 = vmax.f32 %v2669_v35, %v2685_v9  ;;  %vm18989_vm15 = vcmp.gt.f32.partialorder %v16332_v48, 0.0 }
 0x4d7   :  { %19347 = vst [vmem:[#allocation62_spill] sm:$0xff] %v16334_v15  ;;  %vm18986_vm12 = vcmp.gt.f32.partialorder %v16334_v15, 0.0  ;;  %v16350_v10 = vsel %vm18989_vm15, %v2702_v7, -9e+15 }
 0x4d8   :  { %2773 = vmax.xlane.f32.xlu1 %v16322_v4  ;;  %2771 = vmax.xlane.f32.xlu0 %v16326_v56  ;;  %v16354_v14 = vsel %vm18986_vm12, %v2701_v36, -9e+15 }
 0x4dc   :  { %2777 = vmax.xlane.f32.xlu1 %v16338_v8  ;;  %2775 = vmax.xlane.f32.xlu0 %v16342_v54 }
 0x4e0   :  { %2781 = vmax.xlane.f32.xlu1 %v16350_v10  ;;  %2779 = vmax.xlane.f32.xlu0 %v16354_v14 }
 0x551   :  { %v2754_v53 = vpop.xlane.xlu1 %2753  ;;  %v2752_v22 = vpop.xlane.xlu0 %2751 }
 0x552   :  { %v2784_v57 = vsub.f32 %v16232_v50, %v2754_v53  ;;  %v2783_v28 = vsub.f32 %v16228_v41, %v2752_v22 }
 0x554   :  { %v2801_v55 = vmul.f32 1.442695, %v2784_v57  ;;  %v2799_v6 = vmul.f32 1.442695, %v2783_v28 }
 0x555   :  { %v2758_v25 = vpop.xlane.xlu1 %2757  ;;  %v2756_v3 = vpop.xlane.xlu0 %2755 }
 0x556   :  { %14283 = vpow2.f32 %v2801_v55  ;;  %v2786_v19 = vsub.f32 %v16256_v46, %v2758_v25  ;;  %v2785_v35 = vsub.f32 %v16250_v51, %v2756_v3 }
 0x557   :  { %14285 = vpow2.f32 %v2799_v6 }
 0x558   :  { %v2805_v58 = vmul.f32 1.442695, %v2786_v19  ;;  %v2803_v31 = vmul.f32 1.442695, %v2785_v35 }
 0x559   :  { %v2762_v9 = vpop.xlane.xlu1 %2761  ;;  %v2760_v7 = vpop.xlane.xlu0 %2759 }
 0x55a   :  { %14287 = vpow2.f32 %v2805_v58  ;;  %v2788_v36 = vsub.f32 %v16273_v18, %v2762_v9  ;;  %v2787_v50 = vsub.f32 %v16279_v23, %v2760_v7 }
 0x55b   :  { %14289 = vpow2.f32 %v2803_v31 }
 0x55c   :  { %v2809_v41 = vmul.f32 1.442695, %v2788_v36  ;;  %v2807_v53 = vmul.f32 1.442695, %v2787_v50 }
 0x55d   :  { %v2766_v22 = vpop.xlane.xlu1 %2765  ;;  %v2764_v57 = vpop.xlane.xlu0 %2763 }
 0x55e   :  { %14291 = vpow2.f32 %v2809_v41  ;;  %v2790_v46 = vsub.f32 %v16288_v38, %v2766_v22  ;;  %v2789_v51 = vsub.f32 %v16292_v0, %v2764_v57 }
 0x55f   :  { %14293 = vpow2.f32 %v2807_v53 }
 0x560   :  { %v14284_v28 = vpop.eup %14283  ;;  %v2813_v55 = vmul.f32 1.442695, %v2790_v46  ;;  %v2811_v6 = vmul.f32 1.442695, %v2789_v51 }
 0x561   :  { %v14286_v25 = vpop.eup %14285  ;;  %2833 = vadd.xlane.f32.xlu1 %v14284_v28  ;;  %v2770_v3 = vpop.xlane.xlu1 %2769  ;;  %v16366_v19 = vand.u32 4294901760, %v14284_v28 }
 0x562   :  { %v2768_v18 = vpop.xlane.xlu0 %2767  ;;  %14295 = vpow2.f32 %v2813_v55  ;;  %v2792_v23 = vsub.f32 %v16307_v1, %v2770_v3  ;;  %2831 = vadd.xlane.f32.xlu0 %v14286_v25  ;;  %v16370_v58 = vand.u32 4294901760, %v14286_v25 }
 0x563   :  { %v2791_v35 = vsub.f32 %v16311_v12, %v2768_v18  ;;  %14297 = vpow2.f32 %v2811_v6  ;;  %v16373_v38 = vsub.f32 %v14284_v28, %v16366_v19 }
 0x564   :  { %v14288_v0 = vpop.eup %14287  ;;  %v2817_v31 = vmul.f32 1.442695, %v2792_v23  ;;  %v16376_v7 = vsub.f32 %v14286_v25, %v16370_v58 }
 0x565   :  { %v2815_v9 = vmul.f32 1.442695, %v2791_v35  ;;  %v14290_v36 = vpop.eup %14289  ;;  %2837 = vadd.xlane.f32.xlu1 %v14288_v0  ;;  %v2774_v50 = vpop.xlane.xlu1 %2773  ;;  %v18949_v1 = vand.u32 4294901760, %v16373_v38  ;;  %v16379_v53 = vand.u32 4294901760, %v14288_v0 }
 0x566   :  { %v2772_v41 = vpop.xlane.xlu0 %2771  ;;  %14299 = vpow2.f32 %v2817_v31  ;;  %v2794_v12 = vsub.f32 %v16322_v4, %v2774_v50  ;;  %2835 = vadd.xlane.f32.xlu0 %v14290_v36  ;;  %v18950_v57 = vand.u32 4294901760, %v16376_v7  ;;  %v16387_v51 = vand.u32 4294901760, %v14290_v36 }
 0x567   :  { %v2793_v22 = vsub.f32 %v16326_v56, %v2772_v41  ;;  %14301 = vpow2.f32 %v2815_v9  ;;  %v2973_v46 = vsub.f32 %v16373_v38, %v18949_v1  ;;  %v16390_v28 = vsub.f32 %v14288_v0, %v16379_v53 }
 0x568   :  { %v14292_v55 = vpop.eup %14291  ;;  %v2821_v6 = vmul.f32 1.442695, %v2794_v12  ;;  %v2963_v4 = vsub.f32 %v16376_v7, %v18950_v57  ;;  %v16396_v35 = vsub.f32 %v14290_v36, %v16387_v51 }
 0x569   :  { %v2819_v25 = vmul.f32 1.442695, %v2793_v22  ;;  %v14294_v56 = vpop.eup %14293  ;;  %2841 = vadd.xlane.f32.xlu1 %v14292_v55  ;;  %v2778_v3 = vpop.xlane.xlu1 %2777  ;;  %v2974_v23 = vand.u32 4294901760, %v2973_v46  ;;  %v18951_v31 = vand.u32 4294901760, %v16390_v28  ;;  %v16399_v9 = vand.u32 4294901760, %v14292_v55 }
 0x56a   :  { %v2776_v18 = vpop.xlane.xlu0 %2775  ;;  %14303 = vpow2.f32 %v2821_v6  ;;  %v2796_v0 = vsub.f32 %v16338_v8, %v2778_v3  ;;  %2839 = vadd.xlane.f32.xlu0 %v14294_v56  ;;  %v2964_v41 = vand.u32 4294901760, %v2963_v4  ;;  %v18952_v12 = vand.u32 4294901760, %v16396_v35 }
 0x56b   :  { %v2795_v50 = vsub.f32 %v16342_v54, %v2776_v18  ;;  %14305 = vpow2.f32 %v2819_v25  ;;  %v2993_v22 = vsub.f32 %v16390_v28, %v18951_v31  ;;  %v16407_v36 = vand.u32 4294901760, %v14294_v56 }
 0x56c   :  { %v14296_v46 = vpop.eup %14295  ;;  %v2825_v1 = vmul.f32 1.442695, %v2796_v0  ;;  %11159 = vmatprep.mubr.f32.mxu1 %v2964_v41  ;;  %v16410_v6 = vsub.f32 %v14292_v55, %v16399_v9  ;;  %v2983_v4 = vsub.f32 %v16396_v35, %v18952_v12 }
 0x56d   :  { %v2823_v57 = vmul.f32 1.442695, %v2795_v50  ;;  %v14298_v8 = vpop.eup %14297  ;;  %11160 = vmatmul.mubr.f32.vlgmr.msra.gmra.mrb[32].mxu1 %v2974_v23  ;;  %2845 = vadd.xlane.f32.xlu1 %v14296_v46  ;;  %v2782_v54 = vpop.xlane.xlu1 %2781  ;;  %v2994_v3 = vand.u32 4294901760, %v2993_v22  ;;  %v16416_v18 = vsub.f32 %v14294_v56, %v16407_v36  ;;  %v16418_v31 = vand.u32 4294901760, %v14296_v46 }
 0x56e   :  { %v2780_v25 = vpop.xlane.xlu0 %2779  ;;  %14307 = vpow2.f32 %v2825_v1  ;;  %13052 = vmatpush3.bf16.msra.mxu1 %v15950_v2  ;;  %v2798_v55 = vsub.f32 %v16350_v10, %v2782_v54  ;;  %2843 = vadd.xlane.f32.xlu0 %v14298_v8  ;;  %v18953_v0 = vand.u32 4294901760, %v16410_v6  ;;  %v2984_v50 = vand.u32 4294901760, %v2983_v4 }
 0x56f   :  { %v2797_v23 = vsub.f32 %v16354_v14, %v2780_v25  ;;  %14309 = vpow2.f32 %v2823_v57  ;;  %13054 = vmatprep.subr.bf16.mxu1 %v15968_v62  ;;  %v18954_v41 = vand.u32 4294901760, %v16416_v18  ;;  %v16426_v56 = vand.u32 4294901760, %v14298_v8 }
 0x570   :  { %v14300_v22 = vpop.eup %14299  ;;  %v2829_v12 = vmul.f32 1.442695, %v2798_v55  ;;  %v3013_v2 = vsub.f32 %v16410_v6, %v18953_v0  ;;  %v16432_v10 = vsub.f32 %v14296_v46, %v16418_v31  ;;  %11162 = vmatprep.mubr.f32.mxu1 %v2984_v50 }
 0x571   :  { %v2827_v1 = vmul.f32 1.442695, %v2797_v23  ;;  %v14302_v14 = vpop.eup %14301  ;;  %2849 = vadd.xlane.f32.xlu1 %v14300_v22  ;;  %v3003_v57 = vsub.f32 %v16416_v18, %v18954_v41  ;;  %v16438_v54 = vsub.f32 %v14298_v8, %v16426_v56  ;;  %v16440_v25 = vand.u32 4294901760, %v14300_v22  ;;  %11163 = vmatmul.mubr.f32.gmra.mrb[34].mxu1 %v2994_v3 }
 0x572   :  { %14311 = vpow2.f32 %v2829_v12  ;;  %2847 = vadd.xlane.f32.xlu0 %v14302_v14  ;;  %v3014_v4 = vand.u32 4294901760, %v3013_v2  ;;  %v18955_v55 = vand.u32 4294901760, %v16432_v10  ;;  %v16443_v46 = vand.u32 4294901760, %v14302_v14  ;;  %13056 = vmatpush3.bf16.msra.mxu1 %v15968_v62 }
 0x573   :  { %14313 = vpow2.f32 %v2827_v1  ;;  %v3004_v23 = vand.u32 4294901760, %v3003_v57  ;;  %v18956_v50 = vand.u32 4294901760, %v16438_v54  ;;  %v16448_v0 = vsub.f32 %v14300_v22, %v16440_v25  ;;  %13058 = vmatprep.subr.bf16.mxu1 %v15986_v61 }
 0x574   :  { %v14304_v8 = vpop.eup %14303  ;;  %v3033_v12 = vsub.f32 %v16432_v10, %v18955_v55  ;;  %v16455_v3 = vsub.f32 %v14302_v14, %v16443_v46 }
 0x575   :  { %v14306_v2 = vpop.eup %14305  ;;  %11165 = vmatprep.mubr.f32.mxu1 %v3004_v23  ;;  %2853 = vadd.xlane.f32.xlu1 %v14304_v8  ;;  %v3023_v62 = vsub.f32 %v16438_v54, %v18956_v50  ;;  %v18959_v22 = vand.u32 4294901760, %v16448_v0  ;;  %v16461_v1 = vand.u32 4294901760, %v14304_v8 }
 0x576   :  { %11166 = vmatmul.mubr.f32.gmra.mrb[36].mxu1 %v3014_v4  ;;  %2851 = vadd.xlane.f32.xlu0 %v14306_v2  ;;  %v3034_v57 = vand.u32 4294901760, %v3033_v12  ;;  %v18962_v41 = vand.u32 4294901760, %v16455_v3  ;;  %v16464_v55 = vand.u32 4294901760, %v14306_v2 }
 0x577   :  { %13060 = vmatpush3.bf16.msra.mxu1 %v15986_v61  ;;  %v3024_v14 = vand.u32 4294901760, %v3023_v62  ;;  %v3053_v23 = vsub.f32 %v16448_v0, %v18959_v22  ;;  %v16471_v50 = vsub.f32 %v14304_v8, %v16461_v1 }
 0x578   :  { %v14308_v15 = vpop.eup %14307  ;;  %13062 = vmatprep.subr.bf16.mxu1 %v16004_v29  ;;  %v3043_v4 = vsub.f32 %v16455_v3, %v18962_v41  ;;  %v16478_v12 = vsub.f32 %v14306_v2, %v16464_v55 }
 0x579   :  { %v14310_v48 = vpop.eup %14309  ;;  %11168 = vmatprep.mubr.f32.mxu1 %v3024_v14  ;;  %2857 = vadd.xlane.f32.xlu1 %v14308_v15  ;;  %v18964_v61 = vand.u32 4294901760, %v16471_v50  ;;  %v16481_v62 = vand.u32 4294901760, %v14308_v15  ;;  %v3054_v22 = vand.u32 4294901760, %v3053_v23 }
 0x57a   :  { %11169 = vmatmul.mubr.f32.gmra.mrb[38].mxu1 %v3034_v57  ;;  %2855 = vadd.xlane.f32.xlu0 %v14310_v48  ;;  %v3044_v8 = vand.u32 4294901760, %v3043_v4  ;;  %v18966_v44 = vand.u32 4294901760, %v16478_v12  ;;  %v16484_v37 = vand.u32 4294901760, %v14310_v48 }
 0x57b   :  { %13064 = vmatpush3.bf16.msra.mxu1 %v16004_v29  ;;  %v3073_v2 = vsub.f32 %v16471_v50, %v18964_v61  ;;  %v16491_v14 = vsub.f32 %v14308_v15, %v16481_v62 }
 0x57c   :  { %v14312_v41 = vpop.eup %14311  ;;  %13066 = vmatprep.subr.bf16.mxu1 %v16022_v21  ;;  %11171 = vmatprep.mubr.f32.mxu1 %v3044_v8  ;;  %v3063_v57 = vsub.f32 %v16478_v12, %v18966_v44  ;;  %v16498_v23 = vsub.f32 %v14310_v48, %v16484_v37 }
 0x57d   :  { %v14314_v4 = vpop.eup %14313  ;;  %2861 = vadd.xlane.f32.xlu1 %v14312_v41  ;;  %v18968_v29 = vand.u32 4294901760, %v16491_v14  ;;  %v16501_v5 = vand.u32 4294901760, %v14312_v41  ;;  %v3074_v61 = vand.u32 4294901760, %v3073_v2 }
 0x57e   :  { %11172 = vmatmul.mubr.f32.gmra.mrb[40].mxu1 %v3054_v22  ;;  %2859 = vadd.xlane.f32.xlu0 %v14314_v4  ;;  %v3064_v15 = vand.u32 4294901760, %v3063_v57  ;;  %v3082_v16 = vand.u32 4294901760, %v16498_v23  ;;  %v16504_v8 = vand.u32 4294901760, %v14314_v4 }
 0x57f   :  { %13068 = vmatpush3.bf16.msra.mxu1 %v16022_v21  ;;  %v3093_v48 = vsub.f32 %v16491_v14, %v18968_v29  ;;  %v16511_v44 = vsub.f32 %v14312_v41, %v16501_v5 }
 0x580   :  { %13070 = vmatprep.subr.bf16.mxu1 %v16048_v49  ;;  %11174 = vmatprep.mubr.f32.mxu1 %v3064_v15  ;;  %v3083_v22 = vsub.f32 %v16498_v23, %v3082_v16  ;;  %v16518_v2 = vsub.f32 %v14314_v4, %v16504_v8 }
 0x581   :  { %v3112_v57 = vand.u32 4294901760, %v16511_v44  ;;  %v3094_v40 = vand.u32 4294901760, %v3093_v48 }
 0x582   :  { %11175 = vmatmul.mubr.f32.gmra.mrb[42].mxu1 %v3074_v61  ;;  %v3084_v21 = vand.u32 4294901760, %v3083_v22  ;;  %v3102_v29 = vand.u32 4294901760, %v16518_v2  ;;  %v16745_v22 = vld [vmem:[#allocation11 + $0x70] sm:$0xff] }
 0x583   :  { %13072 = vmatpush3.bf16.msra.mxu1 %v16048_v49  ;;  %v3113_v41 = vsub.f32 %v16511_v44, %v3112_v57  ;;  %v19354_v49 = vand.u32 4294901760, %v16410_v6 }
 0x584   :  { %13074 = vmatprep.subr.bf16.mxu1 %v16065_v43  ;;  %11177 = vmatprep.mubr.f32.mxu1 %v3084_v21  ;;  %v3103_v4 = vsub.f32 %v16518_v2, %v3102_v29 }
 0x585   :  { %v3114_v61 = vand.u32 4294901760, %v3113_v41 }
 0x586   :  { %11178 = vmatmul.mubr.f32.gmra.mrb[44].mxu1 %v3094_v40  ;;  %v3104_v15 = vand.u32 4294901760, %v3103_v4  ;;  %v19361_v40 = vand.u32 4294901760, %v16478_v12 }
 0x587   :  { %13076 = vmatpush3.bf16.msra.mxu1 %v16065_v43  ;;  %v19357_v43 = vand.u32 4294901760, %v16432_v10 }
 0x588   :  { %13078 = vmatprep.subr.bf16.mxu1 %v16079_v52  ;;  %11180 = vmatprep.mubr.f32.mxu1 %v3104_v15 }
 0x58a   :  { %11181 = vmatmul.mubr.f32.gmra.mrb[46].mxu1 %v3114_v61 }
 0x58b   :  { %13080 = vmatpush3.bf16.msra.mxu1 %v16079_v52  ;;  %11215 = vmatprep.mubr.f32.mxu1 %v16370_v58  ;;  %v19360_v52 = vand.u32 4294901760, %v16448_v0 }
 0x58c   :  { %13082 = vmatprep.subr.bf16.mxu1 %v15940_v30 }
 0x58e   :  { %11216 = vmatmul.mubr.f32.vlgmr.msra.gmra.mrb[32].mxu1 %v16366_v19 }
 0x58f   :  { %13084 = vmatpush3.bf16.msra.mxu1 %v15940_v30  ;;  %11218 = vmatprep.mubr.f32.mxu1 %v16387_v51  ;;  %v19348_v30 = vand.u32 4294901760, %v16376_v7 }
 0x590   :  { %13086 = vmatprep.subr.bf16.mxu1 %v15958_v27 }
 0x592   :  { %11219 = vmatmul.mubr.f32.gmra.mrb[34].mxu1 %v16379_v53 }
 0x593   :  { %13088 = vmatpush3.bf16.msra.mxu1 %v15958_v27  ;;  %11221 = vmatprep.mubr.f32.mxu1 %v16407_v36  ;;  %v19349_v27 = vand.u32 4294901760, %v16373_v38 }
 0x594   :  { %13090 = vmatprep.subr.bf16.mxu1 %v15976_v45 }
 0x596   :  { %11222 = vmatmul.mubr.f32.gmra.mrb[36].mxu1 %v16399_v9 }
 0x597   :  { %13092 = vmatpush3.bf16.msra.mxu1 %v15976_v45  ;;  %11224 = vmatprep.mubr.f32.mxu1 %v16426_v56  ;;  %v19350_v45 = vand.u32 4294901760, %v16396_v35 }
 0x598   :  { %13094 = vmatprep.subr.bf16.mxu1 %v15994_v42 }
 0x59a   :  { %11225 = vmatmul.mubr.f32.gmra.mrb[38].mxu1 %v16418_v31 }
 0x59b   :  { %13096 = vmatpush3.bf16.msra.mxu1 %v15994_v42  ;;  %11227 = vmatprep.mubr.f32.mxu1 %v16443_v46  ;;  %v19351_v42 = vand.u32 4294901760, %v16390_v28 }
 0x59c   :  { %13098 = vmatprep.subr.bf16.mxu1 %v16012_v13 }
 0x59e   :  { %11228 = vmatmul.mubr.f32.gmra.mrb[40].mxu1 %v16440_v25 }
 0x59f   :  { %13100 = vmatpush3.bf16.msra.mxu1 %v16012_v13  ;;  %11230 = vmatprep.mubr.f32.mxu1 %v16464_v55  ;;  %v19352_v13 = vand.u32 4294901760, %v16416_v18 }
 0x5a0   :  { %13102 = vmatprep.subr.bf16.mxu1 %v16033_v11 }
 0x5a2   :  { %11231 = vmatmul.mubr.f32.gmra.mrb[42].mxu1 %v16461_v1 }
 0x5a3   :  { %13104 = vmatpush3.bf16.msra.mxu1 %v16033_v11  ;;  %11233 = vmatprep.mubr.f32.mxu1 %v16484_v37  ;;  %v19353_v11 = vld [vmem:[#allocation21_spill] sm:$0xff] }
 0x5a4   :  { %13106 = vmatprep.subr.bf16.mxu1 %v16056_v24 }
 0x5a6   :  { %11234 = vmatmul.mubr.f32.gmra.mrb[44].mxu1 %v16481_v62 }
 0x5a7   :  { %13108 = vmatpush3.bf16.msra.mxu1 %v16056_v24  ;;  %11236 = vmatprep.mubr.f32.mxu1 %v16504_v8  ;;  %v19356_v24 = vld [vmem:[#allocation23_spill] sm:$0xff] }
 0x5a8   :  { %13110 = vmatprep.subr.bf16.mxu1 %v16072_v39 }
 0x5aa   :  { %11237 = vmatmul.mubr.f32.gmra.mrb[46].mxu1 %v16501_v5 }
 0x5ab   :  { %13112 = vmatpush3.bf16.msra.mxu1 %v16072_v39  ;;  %11271 = vmatprep.mubr.f32.mxu1 %v16376_v7  ;;  %v19359_v39 = vld [vmem:[#allocation32_spill] sm:$0xff]  ;;  %v19363_v7 = vand.u32 4294901760, %v16471_v50 }
 0x5ac   :  { %13114 = vmatprep.subr.bf16.mxu1 %v15931_v17 }
 0x5ae   :  { %11272 = vmatmul.mubr.f32.vlgmr.msra.gmra.mrb[32].mxu1 %v16373_v38  ;;  %v19362_v38 = vld [vmem:[#allocation20_spill] sm:$0xff] }
 0x5af   :  { %13116 = vmatpush3.bf16.msra.mxu1 %v15931_v17  ;;  %11274 = vmatprep.mubr.f32.mxu1 %v16396_v35  ;;  %v19365_v35 = vand.u32 4294901760, %v16491_v14 }
 0x5b0   :  { %13118 = vmatprep.subr.bf16.mxu1 %v15947_v60 }
 0x5b2   :  { %11275 = vmatmul.mubr.f32.gmra.mrb[34].mxu1 %v16390_v28  ;;  %v19364_v28 = vld [vmem:[#allocation41_spill] sm:$0xff] }
 0x5b3   :  { %13120 = vmatpush3.bf16.msra.mxu1 %v15947_v60  ;;  %11277 = vmatprep.mubr.f32.mxu1 %v16416_v18 }
 0x5b4   :  { %13122 = vmatprep.subr.bf16.mxu1 %v15965_v59 }
 0x5b6   :  { %11278 = vmatmul.mubr.f32.gmra.mrb[36].mxu1 %v16410_v6  ;;  %v19366_v6 = vld [vmem:[#allocation42_spill] sm:$0xff] }
 0x5b7   :  { %13124 = vmatpush3.bf16.msra.mxu1 %v15965_v59  ;;  %11280 = vmatprep.mubr.f32.mxu1 %v16438_v54 }
 0x5b8   :  { %13126 = vmatprep.subr.bf16.mxu1 %v15983_v63 }
 0x5ba   :  { %11281 = vmatmul.mubr.f32.gmra.mrb[38].mxu1 %v16432_v10 }
 0x5bb   :  { %13128 = vmatpush3.bf16.msra.mxu1 %v15983_v63  ;;  %11283 = vmatprep.mubr.f32.mxu1 %v16455_v3 }
 0x5bc   :  { %13130 = vmatprep.subr.bf16.mxu1 %v16001_v47 }
 0x5be   :  { %11284 = vmatmul.mubr.f32.gmra.mrb[40].mxu1 %v16448_v0  ;;  %v16707_v0 = vld [vmem:[#allocation11 + $0x40] sm:$0xff] }
 0x5bf   :  { %13132 = vmatpush3.bf16.msra.mxu1 %v16001_v47  ;;  %11286 = vmatprep.mubr.f32.mxu1 %v16478_v12  ;;  %v4320_v10 = vand.u32 4294901760, %v16707_v0  ;;  %v16727_v12 = vld [vmem:[#allocation11 + $0x60] sm:$0xff] }
 0x5c0   :  { %13134 = vmatprep.subr.bf16.mxu1 %v16019_v32 }
 0x5c2   :  { %11287 = vmatmul.mubr.f32.gmra.mrb[42].mxu1 %v16471_v50 }
 0x5c3   :  { %13136 = vmatpush3.bf16.msra.mxu1 %v16019_v32  ;;  %11289 = vmatprep.mubr.f32.mxu1 %v16498_v23 }
 0x5c4   :  { %13138 = vmatprep.subr.bf16.mxu1 %v16042_v26 }
 0x5c6   :  { %11290 = vmatmul.mubr.f32.gmra.mrb[44].mxu1 %v16491_v14  ;;  %v4332_v14 = vand.u32 4294901760, %v16727_v12 }
 0x5c7   :  { %13140 = vmatpush3.bf16.msra.mxu1 %v16042_v26  ;;  %11292 = vmatprep.mubr.f32.mxu1 %v16518_v2  ;;  %v16747_v2 = vld [vmem:[#allocation11 + $0x78] sm:$0xff] }
 0x5c8   :  { %13142 = vmatprep.subr.bf16.mxu1 %v16063_v33  ;;  %v4341_v21 = vand.u32 4294901760, %v16747_v2 }
 0x5ca   :  { %11293 = vmatmul.mubr.f32.gmra.mrb[46].mxu1 %v16511_v44  ;;  %v4281_v44 = vld [vmem:[#allocation11 + $0x20] sm:$0xff] }
 0x5cb   :  { %13144 = vmatpush3.bf16.msra.mxu1 %v16063_v33  ;;  %11327 = vmatprep.mubr.f32.mxu1 %v19348_v30 }
 0x5cc   :  { %13146 = vmatprep.subr.bf16.mxu1 %v15943_v20 }
 0x5ce   :  { %11328 = vmatmul.mubr.f32.vlgmr.msra.gmra.mrb[32].mxu1 %v19349_v27 }
 0x5cf   :  { %13148 = vmatpush3.bf16.msra.mxu1 %v15943_v20  ;;  %11330 = vmatprep.mubr.f32.mxu1 %v19350_v45  ;;  %v19355_v20 = vand.u32 4294901760, %v16438_v54 }
 0x5d0   :  { %13150 = vmatprep.subr.bf16.mxu1 %v15961_v34 }
 0x5d2   :  { %11331 = vmatmul.mubr.f32.gmra.mrb[34].mxu1 %v19351_v42 }
 0x5d3   :  { %13152 = vmatpush3.bf16.msra.mxu1 %v15961_v34  ;;  %11333 = vmatprep.mubr.f32.mxu1 %v19352_v13  ;;  %v19358_v34 = vand.u32 4294901760, %v16455_v3 }
 0x5d4   :  { %13154 = vmatprep.subr.bf16.mxu1 %v19353_v11 }
 0x5d6   :  { %11334 = vmatmul.mubr.f32.gmra.mrb[36].mxu1 %v19354_v49 }
 0x5d7   :  { %13156 = vmatpush3.bf16.msra.mxu1 %v19353_v11  ;;  %11336 = vmatprep.mubr.f32.mxu1 %v19355_v20 }
 0x5d8   :  { %13158 = vmatprep.subr.bf16.mxu1 %v19356_v24 }
 0x5da   :  { %11337 = vmatmul.mubr.f32.gmra.mrb[38].mxu1 %v19357_v43 }
 0x5db   :  { %13160 = vmatpush3.bf16.msra.mxu1 %v19356_v24  ;;  %11339 = vmatprep.mubr.f32.mxu1 %v19358_v34 }
 0x5dc   :  { %13162 = vmatprep.subr.bf16.mxu1 %v19359_v39 }
 0x5de   :  { %11340 = vmatmul.mubr.f32.gmra.mrb[40].mxu1 %v19360_v52 }
 0x5df   :  { %13164 = vmatpush3.bf16.msra.mxu1 %v19359_v39  ;;  %11342 = vmatprep.mubr.f32.mxu1 %v19361_v40 }
 0x5e0   :  { %13166 = vmatprep.subr.bf16.mxu1 %v19362_v38 }
 0x5e2   :  { %11343 = vmatmul.mubr.f32.gmra.mrb[42].mxu1 %v19363_v7 }
 0x5e3   :  { %13168 = vmatpush3.bf16.msra.mxu1 %v19362_v38  ;;  %11345 = vmatprep.mubr.f32.mxu1 %v3082_v16 }
 0x5e4   :  { %13170 = vmatprep.subr.bf16.mxu1 %v19364_v28 }
 0x5e6   :  { %11346 = vmatmul.mubr.f32.gmra.mrb[44].mxu1 %v19365_v35 }
 0x5e7   :  { %13172 = vmatpush3.bf16.msra.mxu1 %v19364_v28  ;;  %11348 = vmatprep.mubr.f32.mxu1 %v3102_v29 }
 0x5e8   :  { %13174 = vmatprep.subr.bf16.mxu1 %v19366_v6 }
 0x5ea   :  { %11349 = vmatmul.mubr.f32.gmra.mrb[46].mxu1 %v3112_v57  ;;  %v4338_v57 = vand.u32 4294901760, %v16745_v22 }
 0x5eb   :  { %13176 = vmatpush3.bf16.msra.mxu1 %v19366_v6  ;;  %11383 = vmatprep.mubr.f32.mxu1 %v16370_v58 }
 0x5ec   :  { %13178 = vmatprep.subr.bf16.mxu1 %v15931_v17  ;;  %v16759_v15 = vpack.c.bf16 %v4341_v21, %v4338_v57 }
 0x5ee   :  { %11384 = vmatmul.mubr.f32.vlgmr.msra.gmra.mrb[32].mxu1 %v16366_v19  ;;  %19371 = vst [vmem:[#allocation34_spill] sm:$0xff] %v16759_v15 }
 0x5ef   :  { %13180 = vmatpush3.bf16.msra.mxu1 %v15931_v17  ;;  %11386 = vmatprep.mubr.f32.mxu1 %v16387_v51  ;;  %v4277_v17 = vld [vmem:[#allocation11] sm:$0xff] }
 0x5f0   :  { %13182 = vmatprep.subr.bf16.mxu1 %v15947_v60 }
 0x5f2   :  { %11387 = vmatmul.mubr.f32.gmra.mrb[34].mxu1 %v16379_v53 }
 0x5f3   :  { %13184 = vmatpush3.bf16.msra.mxu1 %v15947_v60  ;;  %11389 = vmatprep.mubr.f32.mxu1 %v16407_v36  ;;  %v4278_v60 = vld [vmem:[#allocation11 + $0x8] sm:$0xff] }
 0x5f4   :  { %13186 = vmatprep.subr.bf16.mxu1 %v15965_v59 }
 0x5f6   :  { %11390 = vmatmul.mubr.f32.gmra.mrb[36].mxu1 %v16399_v9 }
 0x5f7   :  { %13188 = vmatpush3.bf16.msra.mxu1 %v15965_v59  ;;  %11392 = vmatprep.mubr.f32.mxu1 %v16426_v56  ;;  %v4296_v59 = vand.u32 4294901760, %v4277_v17 }
 0x5f8   :  { %13190 = vmatprep.subr.bf16.mxu1 %v15983_v63 }
 0x5fa   :  { %11393 = vmatmul.mubr.f32.gmra.mrb[38].mxu1 %v16418_v31 }
 0x5fb   :  { %13192 = vmatpush3.bf16.msra.mxu1 %v15983_v63  ;;  %11395 = vmatprep.mubr.f32.mxu1 %v16443_v46  ;;  %v4299_v63 = vand.u32 4294901760, %v4278_v60 }
 0x5fc   :  { %13194 = vmatprep.subr.bf16.mxu1 %v16001_v47 }
 0x5fd   :  { %v16743_v48 = vsub.f32 %v4278_v60, %v4299_v63 }
 0x5fe   :  { %11396 = vmatmul.mubr.f32.gmra.mrb[40].mxu1 %v16440_v25 }
 0x5ff   :  { %13196 = vmatpush3.bf16.msra.mxu1 %v16001_v47  ;;  %11398 = vmatprep.mubr.f32.mxu1 %v16464_v55  ;;  %v16693_v47 = vpack.c.bf16 %v4299_v63, %v4296_v59  ;;  %19370 = vst [vmem:[#allocation65_spill] sm:$0xff] %v16743_v48  ;;  %v18983_v4 = vand.u32 4294901760, %v16743_v48 }
 0x600   :  { %13198 = vmatprep.subr.bf16.mxu1 %v16019_v32 }
 0x601   :  { %v4547_v30 = vsub.f32 %v16743_v48, %v18983_v4 }
 0x602   :  { %11399 = vmatmul.mubr.f32.gmra.mrb[42].mxu1 %v16461_v1 }
 0x603   :  { %13200 = vmatpush3.bf16.msra.mxu1 %v16019_v32  ;;  %11401 = vmatprep.mubr.f32.mxu1 %v16484_v37  ;;  %v4279_v32 = vld [vmem:[#allocation11 + $0x10] sm:$0xff]  ;;  %v4548_v13 = vand.u32 4294901760, %v4547_v30 }
 0x604   :  { %13202 = vmatprep.subr.bf16.mxu1 %v16042_v26 }
 0x606   :  { %11402 = vmatmul.mubr.f32.gmra.mrb[44].mxu1 %v16481_v62 }
 0x607   :  { %13204 = vmatpush3.bf16.msra.mxu1 %v16042_v26  ;;  %11404 = vmatprep.mubr.f32.mxu1 %v16504_v8  ;;  %v4280_v26 = vld [vmem:[#allocation11 + $0x18] sm:$0xff] }
 0x608   :  { %13206 = vmatprep.subr.bf16.mxu1 %v16063_v33  ;;  %v4305_v16 = vand.u32 4294901760, %v4280_v26 }
 0x60a   :  { %11405 = vmatmul.mubr.f32.gmra.mrb[46].mxu1 %v16501_v5  ;;  %v16769_v45 = vsub.f32 %v4280_v26, %v4305_v16 }
 0x60b   :  { %13208 = vmatpush3.bf16.msra.mxu1 %v16063_v33  ;;  %11439 = vmatprep.mubr.f32.mxu1 %v16370_v58  ;;  %v4302_v33 = vand.u32 4294901760, %v4279_v32 }
 0x60c   :  { %13210 = vmatprep.subr.bf16.mxu1 %v16693_v47  ;;  %19373 = vst [vmem:[#allocation66_spill] sm:$0xff] %v16769_v45  ;;  %v18981_v49 = vand.u32 4294901760, %v16769_v45 }
 0x60d   :  { %v16767_v27 = vsub.f32 %v4279_v32, %v4302_v33 }
 0x60e   :  { %11440 = vmatmul.mubr.f32.vlgmr.msra.gmra.mrb[32].mxu1 %v16366_v19  ;;  %v4282_v19 = vld [vmem:[#allocation11 + $0x28] sm:$0xff]  ;;  %v4561_v39 = vsub.f32 %v16769_v45, %v18981_v49 }
 0x60f   :  { %11442 = vmatprep.mubr.f32.mxu1 %v16387_v51  ;;  %13212 = vmatpush3.bf16.msra.mxu1 %v16693_v47  ;;  %v4311_v58 = vand.u32 4294901760, %v4282_v19  ;;  %v4283_v51 = vld [vmem:[#allocation11 + $0x30] sm:$0xff]  ;;  %19372 = vst [vmem:[#allocation35_spill] sm:$0xff] %v16767_v27  ;;  %v18982_v11 = vand.u32 4294901760, %v16767_v27 }
 0x610   :  { %v4562_v7 = vand.u32 4294901760, %v4561_v39 }
 0x611   :  { %v4554_v24 = vsub.f32 %v16767_v27, %v18982_v11  ;;  %v16782_v34 = vsub.f32 %v4282_v19, %v4311_v58  ;;  %v16813_v19 = vsub.f32 %v16707_v0, %v4320_v10 }
 0x612   :  { %11443 = vmatmul.mubr.f32.gmra.mrb[34].mxu1 %v16379_v53 }
 0x613   :  { %11445 = vmatprep.mubr.f32.mxu1 %v16407_v36  ;;  %19375 = vst [vmem:[#allocation36_spill] sm:$0xff] %v16782_v34  ;;  %v4555_v52 = vand.u32 4294901760, %v4554_v24  ;;  %v18979_v38 = vand.u32 4294901760, %v16782_v34  ;;  %19378 = vst [vmem:[#allocation73_spill] sm:$0xff] %v16813_v19 }
 0x615   :  { %v4575_v35 = vsub.f32 %v16782_v34, %v18979_v38  ;;  %v16800_v60 = vpack.c.bf16 %v4562_v7, %v4555_v52 }
 0x616   :  { %11446 = vmatmul.mubr.f32.gmra.mrb[36].mxu1 %v16399_v9  ;;  %v4314_v9 = vand.u32 4294901760, %v4283_v51 }
 0x617   :  { %11448 = vmatprep.mubr.f32.mxu1 %v16426_v56  ;;  %v16709_v56 = vld [vmem:[#allocation11 + $0x48] sm:$0xff]  ;;  %v4576_v63 = vand.u32 4294901760, %v4575_v35 }
 0x618   :  { %v4323_v54 = vand.u32 4294901760, %v16709_v56  ;;  %v16796_v6 = vsub.f32 %v4283_v51, %v4314_v9 }
 0x61a   :  { %11449 = vmatmul.mubr.f32.gmra.mrb[38].mxu1 %v16418_v31  ;;  %v4284_v31 = vld [vmem:[#allocation11 + $0x38] sm:$0xff]  ;;  %19376 = vst [vmem:[#allocation39_spill] sm:$0xff] %v16796_v6  ;;  %v18978_v32 = vand.u32 4294901760, %v16796_v6 }
 0x61b   :  { %11451 = vmatprep.mubr.f32.mxu1 %v16443_v46  ;;  %v4317_v36 = vand.u32 4294901760, %v4284_v31  ;;  %v16719_v46 = vld [vmem:[#allocation11 + $0x58] sm:$0xff] }
 0x61c   :  { %v4329_v3 = vand.u32 4294901760, %v16719_v46 }
 0x61d   :  { %v16705_v18 = vpack.c.bf16 %v4317_v36, %v4314_v9 }
 0x61e   :  { %11452 = vmatmul.mubr.f32.gmra.mrb[40].mxu1 %v16440_v25  ;;  %v16715_v25 = vpack.c.bf16 %v4323_v54, %v4320_v10  ;;  %v16829_v0 = vsub.f32 %v16719_v46, %v4329_v3  ;;  %v16845_v46 = vsub.f32 %v16727_v12, %v4332_v14 }
 0x61f   :  { %11454 = vmatprep.mubr.f32.mxu1 %v16464_v55  ;;  %v16717_v55 = vld [vmem:[#allocation11 + $0x50] sm:$0xff] }
 0x620   :  { %v4326_v50 = vand.u32 4294901760, %v16717_v55  ;;  %19381 = vst [vmem:[#allocation78_spill] sm:$0xff] %v16829_v0  ;;  %19382 = vst [vmem:[#allocation80_spill] sm:$0xff] %v16845_v46  ;;  %v18972_v7 = vand.u32 4294901760, %v16845_v46 }
 0x622   :  { %11455 = vmatmul.mubr.f32.gmra.mrb[42].mxu1 %v16461_v1  ;;  %v16725_v1 = vpack.c.bf16 %v4329_v3, %v4326_v50  ;;  %v16826_v30 = vsub.f32 %v16717_v55, %v4326_v50  ;;  %v4624_v12 = vsub.f32 %v16845_v46, %v18972_v7 }
 0x623   :  { %11457 = vmatprep.mubr.f32.mxu1 %v16484_v37  ;;  %v16697_v37 = vpack.c.bf16 %v4305_v16, %v4302_v33  ;;  %v4582_v16 = vsub.f32 %v16796_v6, %v18978_v32 }
 0x624   :  { %19367 = vst [vmem:[#allocation31_spill] sm:$0xff] %v16725_v1  ;;  %19380 = vst [vmem:[#allocation74_spill] sm:$0xff] %v16826_v30 }
 0x625   :  { %13214 = vmatprep.subr.bf16.mxu1 %v16697_v37 }
 0x626   :  { %11458 = vmatmul.mubr.f32.gmra.mrb[44].mxu1 %v16481_v62  ;;  %v16729_v62 = vld [vmem:[#allocation11 + $0x68] sm:$0xff] }
 0x627   :  { %11460 = vmatprep.mubr.f32.mxu1 %v16504_v8  ;;  %13216 = vmatpush3.bf16.msra.mxu1 %v16697_v37  ;;  %v4335_v23 = vand.u32 4294901760, %v16729_v62  ;;  %v16741_v8 = vsub.f32 %v4277_v17, %v4296_v59  ;;  %v16798_v17 = vsub.f32 %v4284_v31, %v4317_v36  ;;  %v18976_v31 = vand.u32 4294901760, %v16813_v19 }
 0x629   :  { %v16739_v29 = vpack.c.bf16 %v4335_v23, %v4332_v14  ;;  %19369 = vst [vmem:[#allocation64_spill] sm:$0xff] %v16741_v8  ;;  %v18984_v41 = vand.u32 4294901760, %v16741_v8  ;;  %19377 = vst [vmem:[#allocation71_spill] sm:$0xff] %v16798_v17  ;;  %v18977_v26 = vand.u32 4294901760, %v16798_v17  ;;  %v16850_v50 = vsub.f32 %v16729_v62, %v4335_v23 }
 0x62a   :  { %11461 = vmatmul.mubr.f32.gmra.mrb[46].mxu1 %v16501_v5  ;;  %v4308_v5 = vand.u32 4294901760, %v4281_v44  ;;  %v16867_v62 = vsub.f32 %v16745_v22, %v4338_v57  ;;  %v16872_v23 = vsub.f32 %v16747_v2, %v4341_v21  ;;  %v16888_v21 = vpack.c.bf16 %v16743_v48, %v16741_v8 }
 0x62b   :  { %19368 = vst [vmem:[#allocation33_spill] sm:$0xff] %v16739_v29  ;;  %v4540_v61 = vsub.f32 %v16741_v8, %v18984_v41  ;;  %19383 = vst [vmem:[#allocation81_spill] sm:$0xff] %v16850_v50 }
 0x62c   :  { %v16701_v53 = vpack.c.bf16 %v4311_v58, %v4308_v5  ;;  %v16780_v43 = vsub.f32 %v4281_v44, %v4308_v5  ;;  %v4589_v44 = vsub.f32 %v16798_v17, %v18977_v26  ;;  %v16816_v5 = vsub.f32 %v16709_v56, %v4323_v54  ;;  %19384 = vst [vmem:[#allocation82_spill] sm:$0xff] %v16867_v62 }
 0x62d   :  { %v4541_v42 = vand.u32 4294901760, %v4540_v61  ;;  %v4583_v58 = vand.u32 4294901760, %v4582_v16  ;;  %v4596_v61 = vsub.f32 %v16813_v19, %v18976_v31  ;;  %v18974_v54 = vand.u32 4294901760, %v16826_v30  ;;  %19385 = vst [vmem:[#allocation85_spill] sm:$0xff] %v16872_v23 }
 0x62e   :  { %13218 = vmatprep.subr.bf16.mxu1 %v16701_v53  ;;  %19374 = vst [vmem:[#allocation69_spill] sm:$0xff] %v16780_v43  ;;  %v18980_v40 = vand.u32 4294901760, %v16780_v43  ;;  %19379 = vst [vmem:[#allocation40_spill] sm:$0xff] %v16816_v5  ;;  %v4590_v51 = vand.u32 4294901760, %v4589_v44  ;;  %v18975_v9 = vand.u32 4294901760, %v16816_v5  ;;  %v18970_v16 = vand.u32 4294901760, %v16867_v62 }
 0x62f   :  { %13220 = vmatpush3.bf16.msra.mxu1 %v16701_v53  ;;  %v16775_v20 = vpack.c.bf16 %v4548_v13, %v4541_v42  ;;  %v4597_v10 = vand.u32 4294901760, %v4596_v61  ;;  %v18973_v42 = vand.u32 4294901760, %v16829_v0  ;;  %v4610_v24 = vsub.f32 %v16826_v30, %v18974_v54 }
 0x630   :  { %13222 = vmatprep.subr.bf16.mxu1 %v16705_v18  ;;  %v4568_v28 = vsub.f32 %v16780_v43, %v18980_v40  ;;  %v16820_v36 = vpack.c.bf16 %v4590_v51, %v4583_v58  ;;  %v4603_v56 = vsub.f32 %v16816_v5, %v18975_v9  ;;  %v18969_v44 = vand.u32 4294901760, %v16872_v23 }
 0x631   :  { %v4617_v55 = vsub.f32 %v16829_v0, %v18973_v42  ;;  %v4611_v39 = vand.u32 4294901760, %v4610_v24  ;;  %v4638_v51 = vsub.f32 %v16867_v62, %v18970_v16  ;;  %v16904_v24 = vpack.c.bf16 %v16816_v5, %v16813_v19 }
 0x632   :  { %v4569_v59 = vand.u32 4294901760, %v4568_v28  ;;  %v4604_v13 = vand.u32 4294901760, %v4603_v56  ;;  %v18971_v28 = vand.u32 4294901760, %v16850_v50  ;;  %v4645_v22 = vsub.f32 %v16872_v23, %v18969_v44 }
 0x633   :  { %13224 = vmatpush3.bf16.msra.mxu1 %v16705_v18  ;;  %v4618_v52 = vand.u32 4294901760, %v4617_v55  ;;  %v4639_v57 = vand.u32 4294901760, %v4638_v51  ;;  %v16892_v56 = vpack.c.bf16 %v16769_v45, %v16767_v27  ;;  %v16908_v55 = vpack.c.bf16 %v16829_v0, %v16826_v30 }
 0x634   :  { %13226 = vmatprep.subr.bf16.mxu1 %v16715_v25  ;;  %v16804_v33 = vpack.c.bf16 %v4576_v63, %v4569_v59  ;;  %v16852_v3 = vpack.c.bf16 %v4604_v13, %v4597_v10  ;;  %v4631_v14 = vsub.f32 %v16850_v50, %v18971_v28  ;;  %v4625_v59 = vand.u32 4294901760, %v4624_v12 }
 0x635   :  { %v16856_v35 = vpack.c.bf16 %v4618_v52, %v4611_v39  ;;  %v4646_v61 = vand.u32 4294901760, %v4645_v22  ;;  %v16896_v10 = vpack.c.bf16 %v16782_v34, %v16780_v43  ;;  %v16900_v13 = vpack.c.bf16 %v16798_v17, %v16796_v6  ;;  %v2834_v39 = vpop.xlane.xlu1 %2833  ;;  %v2832_v52 = vpop.xlane.xlu0 %2831 }
 0x636   :  { %v4632_v63 = vand.u32 4294901760, %v4631_v14  ;;  %v16912_v12 = vpack.c.bf16 %v16850_v50, %v16845_v46  ;;  %v16916_v14 = vpack.c.bf16 %v16872_v23, %v16867_v62  ;;  %14315 = vrcp.f32 %v2834_v39 }
 0x637   :  { %13228 = vmatpush3.bf16.msra.mxu1 %v16715_v25  ;;  %v16884_v2 = vpack.c.bf16 %v4646_v61, %v4639_v57  ;;  %14317 = vrcp.f32 %v2832_v52 }
 0x638   :  { %13230 = vmatprep.subr.bf16.mxu1 %v16725_v1  ;;  %v16876_v58 = vpack.c.bf16 %v4632_v63, %v4625_v59 }
 0x639   :  { %v2838_v59 = vpop.xlane.xlu1 %2837  ;;  %v2836_v63 = vpop.xlane.xlu0 %2835 }
 0x63a   :  { %14319 = vrcp.f32 %v2838_v59 }
 0x63b   :  { %13232 = vmatpush3.bf16.msra.mxu1 %v16725_v1  ;;  %14321 = vrcp.f32 %v2836_v63 }
 0x63c   :  { %13234 = vmatprep.subr.bf16.mxu1 %v16739_v29 }
 0x63d   :  { %v2842_v51 = vpop.xlane.xlu1 %2841  ;;  %v2840_v22 = vpop.xlane.xlu0 %2839 }
 0x63e   :  { %14323 = vrcp.f32 %v2842_v51 }
 0x63f   :  { %13236 = vmatpush3.bf16.msra.mxu1 %v16739_v29  ;;  %14325 = vrcp.f32 %v2840_v22 }
 0x640   :  { %13238 = vmatprep.subr.bf16.mxu1 %v16759_v15  ;;  %v14316_v28 = vpop.eup %14315 }
 0x641   :  { %v2846_v57 = vpop.xlane.xlu1 %2845  ;;  %v2844_v61 = vpop.xlane.xlu0 %2843 }
 0x642   :  { %v14318_v42 = vpop.eup %14317  ;;  %14327 = vrcp.f32 %v2846_v57 }
 0x643   :  { %13240 = vmatpush3.bf16.msra.mxu1 %v16759_v15  ;;  %14329 = vrcp.f32 %v2844_v61 }
 0x644   :  { %13242 = vmatprep.subr.bf16.mxu1 %v16775_v20  ;;  %v14320_v59 = vpop.eup %14319 }
 0x645   :  { %v2850_v44 = vpop.xlane.xlu1 %2849  ;;  %v2848_v16 = vpop.xlane.xlu0 %2847 }
 0x646   :  { %v14322_v51 = vpop.eup %14321  ;;  %14331 = vrcp.f32 %v2850_v44 }
 0x647   :  { %14333 = vrcp.f32 %v2848_v16 }
 0x649   :  { %v2854_v31 = vpop.xlane.xlu1 %2853  ;;  %v2852_v39 = vpop.xlane.xlu0 %2851 }
 0x64d   :  { %v2858_v61 = vpop.xlane.xlu1 %2857  ;;  %v2856_v44 = vpop.xlane.xlu0 %2855 }
 0x6e1   :  { %v11441_v7 = vpop.f32.mrb[32].mxu1 }
 0x6e2   :  { %v16918_v54 = vmul.f32 %v14316_v28, %v11441_v7  ;;  %v4071_v9 = vpop.f32.mrb[33].mxu1 }
 0x6e3   :  { %v16920_v26 = vmul.f32 %v14318_v42, %v4071_v9  ;;  %v14324_v42 = vpop.eup %14323 }
 0x6e4   :  { %v4198_v52 = vmin.f32 %v16918_v54, 0.0  ;;  %v14326_v11 = vpop.eup %14325  ;;  %vm4182_vm12 = vcmp.gt.f32.partialorder %v16918_v54, 0.0 }
 0x6e5   :  { %v4197_v63 = vmin.f32 %v16920_v26, 0.0  ;;  %v11444_v32 = vpop.f32.mrb[34].mxu1  ;;  %vm4181_vm15 = vcmp.gt.f32.partialorder %v16920_v26, 0.0 }
 0x6e6   :  { %v4215_v22 = vmul.f32 1.442695, %v4198_v52  ;;  %v16924_v38 = vmul.f32 %v14320_v59, %v11444_v32  ;;  %v4083_v7 = vpop.f32.mrb[35].mxu1 }
 0x6e7   :  { %v4213_v28 = vmul.f32 1.442695, %v4197_v63  ;;  %v16926_v57 = vmul.f32 %v14322_v51, %v4083_v7 }
 0x6e8   :  { %14335 = vpow2.f32 %v4215_v22  ;;  %v4200_v9 = vmin.f32 %v16924_v38, 0.0  ;;  %v14328_v22 = vpop.eup %14327  ;;  %vm4184_vm14 = vcmp.gt.f32.partialorder %v16924_v38, 0.0 }
 0x6e9   :  { %14337 = vpow2.f32 %v4213_v28  ;;  %v4199_v40 = vmin.f32 %v16926_v57, 0.0  ;;  %v11447_v49 = vpop.f32.mrb[36].mxu1  ;;  %v14330_v4 = vpop.eup %14329 }
 0x6ea   :  { %14339 = vrcp.f32 %v2854_v31  ;;  %v4219_v52 = vmul.f32 1.442695, %v4200_v9  ;;  %v16930_v32 = vmul.f32 %v14324_v42, %v11447_v49  ;;  %v4095_v59 = vpop.f32.mrb[37].mxu1  ;;  %v2862_v9 = vpop.xlane.xlu1 %2861 }
 0x6eb   :  { %14341 = vrcp.f32 %v2852_v39  ;;  %v4217_v16 = vmul.f32 1.442695, %v4199_v40  ;;  %v16932_v63 = vmul.f32 %v14326_v11, %v4095_v59  ;;  %v14332_v11 = vpop.eup %14331  ;;  %v2860_v42 = vpop.xlane.xlu0 %2859 }
 0x6ec   :  { %14343 = vpow2.f32 %v4219_v52  ;;  %v4202_v51 = vmin.f32 %v16930_v32, 0.0  ;;  %v14334_v59 = vpop.eup %14333  ;;  %vm4186_vm13 = vcmp.gt.f32.partialorder %v16930_v32, 0.0 }
 0x6ed   :  { %14345 = vpow2.f32 %v4217_v16  ;;  %v4201_v7 = vmin.f32 %v16932_v63, 0.0  ;;  %v11450_v28 = vpop.f32.mrb[38].mxu1  ;;  %vm4185_vm11 = vcmp.gt.f32.partialorder %v16932_v63, 0.0 }
 0x6ee   :  { %14347 = vrcp.f32 %v2858_v61  ;;  %v4223_v31 = vmul.f32 1.442695, %v4202_v51  ;;  %v16936_v41 = vmul.f32 %v14328_v22, %v11450_v28  ;;  %v4107_v49 = vpop.f32.mrb[39].mxu1 }
 0x6ef   :  { %14349 = vrcp.f32 %v2856_v44  ;;  %v4221_v39 = vmul.f32 1.442695, %v4201_v7  ;;  %v16938_v40 = vmul.f32 %v14330_v4, %v4107_v49 }
 0x6f0   :  { %14351 = vpow2.f32 %v4223_v31  ;;  %v4204_v52 = vmin.f32 %v16936_v41, 0.0  ;;  %vm4188_vm10 = vcmp.gt.f32.partialorder %v16936_v41, 0.0 }
 0x6f1   :  { %14353 = vpow2.f32 %v4221_v39  ;;  %v4203_v16 = vmin.f32 %v16938_v40, 0.0  ;;  %v11453_v23 = vpop.f32.mrb[40].mxu1 }
 0x6f2   :  { %v14336_v61 = vpop.eup %14335  ;;  %14355 = vrcp.f32 %v2862_v9  ;;  %v4227_v51 = vmul.f32 1.442695, %v4204_v52  ;;  %v16942_v22 = vmul.f32 %v14332_v11, %v11453_v23  ;;  %v4119_v44 = vpop.f32.mrb[41].mxu1 }
 0x6f3   :  { %v14338_v28 = vpop.eup %14337  ;;  %14357 = vrcp.f32 %v2860_v42  ;;  %v9433_v4 = vadd.f32 -1.0, %v14336_v61  ;;  %v4225_v7 = vmul.f32 1.442695, %v4203_v16  ;;  %v16944_v49 = vmul.f32 %v14334_v59, %v4119_v44 }
 0x6f4   :  { %v14340_v31 = vpop.eup %14339  ;;  %14359 = vpow2.f32 %v4227_v51  ;;  %v4206_v39 = vmin.f32 %v16942_v22, 0.0  ;;  %v9432_v9 = vadd.f32 -1.0, %v14338_v28 }
 0x6f5   :  { %v14342_v62 = vpop.eup %14341  ;;  %v4262_v50 = vsel %vm4182_vm12, %v16918_v54, %v9433_v4  ;;  %14361 = vpow2.f32 %v4225_v7  ;;  %v4205_v23 = vmin.f32 %v16944_v49, 0.0  ;;  %v11456_v11 = vpop.f32.mrb[42].mxu1  ;;  %vm4183_vm12 = vcmp.gt.f32.partialorder %v16926_v57, 0.0 }
 0x6f6   :  { %v14344_v52 = vpop.eup %14343  ;;  %v16950_v42 = vand.u32 4294901760, %v4262_v50  ;;  %v4231_v59 = vmul.f32 1.442695, %v4206_v39  ;;  %v16953_v16 = vmul.f32 %v14340_v31, %v11456_v11  ;;  %v4131_v61 = vpop.f32.mrb[43].mxu1  ;;  %v4261_v31 = vsel %vm4181_vm15, %v16920_v26, %v9432_v9 }
 0x6f7   :  { %v14346_v51 = vpop.eup %14345  ;;  %v9435_v44 = vadd.f32 -1.0, %v14344_v52  ;;  %v4229_v46 = vmul.f32 1.442695, %v4205_v23  ;;  %v16956_v54 = vmul.f32 %v14342_v62, %v4131_v61  ;;  %v16975_v62 = vand.u32 4294901760, %v4261_v31 }
 0x6f8   :  { %v14348_v28 = vpop.eup %14347  ;;  %v16959_v4 = vsub.f32 %v4262_v50, %v16950_v42  ;;  %v9434_v7 = vadd.f32 -1.0, %v14346_v51  ;;  %14363 = vpow2.f32 %v4231_v59  ;;  %v4208_v39 = vmin.f32 %v16953_v16, 0.0 }
 0x6f9   :  { %v14350_v0 = vpop.eup %14349  ;;  %14365 = vpow2.f32 %v4229_v46  ;;  %v11459_v11 = vpop.f32.mrb[44].mxu1  ;;  %v4264_v50 = vsel %vm4184_vm14, %v16924_v38, %v9435_v44  ;;  %v4207_v61 = vmin.f32 %v16956_v54, 0.0  ;;  %vm4187_vm14 = vcmp.gt.f32.partialorder %v16938_v40, 0.0 }
 0x6fa   :  { %v14352_v23 = vpop.eup %14351  ;;  %v4143_v52 = vpop.f32.mrb[45].mxu1  ;;  %v4263_v26 = vsel %vm4183_vm12, %v16926_v57, %v9434_v7  ;;  %v4235_v9 = vmul.f32 1.442695, %v4208_v39  ;;  %v16978_v38 = vmul.f32 %v14348_v28, %v11459_v11  ;;  %vm4190_vm15 = vcmp.gt.f32.partialorder %v16942_v22, 0.0 }
 0x6fb   :  { %v14354_v59 = vpop.eup %14353  ;;  %v9437_v46 = vadd.f32 -1.0, %v14352_v23  ;;  %vm4189_vm9 = vcmp.gt.f32.partialorder %v16944_v49, 0.0  ;;  %v4233_v5 = vmul.f32 1.442695, %v4207_v61  ;;  %v16982_v39 = vand.u32 4294901760, %v4264_v50 }
 0x6fc   :  { %v14356_v51 = vpop.eup %14355  ;;  %v9436_v30 = vadd.f32 -1.0, %v14354_v59  ;;  %14367 = vpow2.f32 %v4235_v9  ;;  %v16984_v23 = vand.u32 4294901760, %v4263_v26  ;;  %v19386_v17 = vand.u32 4294901760, %v16959_v4 }
 0x6fd   :  { %v14358_v44 = vpop.eup %14357  ;;  %v11462_v57 = vpop.f32.mrb[46].mxu1  ;;  %v4266_v59 = vsel %vm4186_vm13, %v16930_v32, %v9437_v46  ;;  %14369 = vpow2.f32 %v4233_v5  ;;  %v4210_v6 = vmin.f32 %v16978_v38, 0.0  ;;  %v16999_v34 = vsub.f32 %v4261_v31, %v16975_v62 }
 0x6fe   :  { %v14360_v7 = vpop.eup %14359  ;;  %v4265_v28 = vsel %vm4185_vm11, %v16932_v63, %v9436_v30  ;;  %v4155_v11 = vpop.f32.mrb[47].mxu1  ;;  %v16995_v9 = vsub.f32 %v16959_v4, %v19386_v17  ;;  %v17001_v32 = vmul.f32 %v14350_v0, %v4143_v52  ;;  %v17003_v46 = vmul.f32 %v14356_v51, %v11462_v57 }
 0x6ff   :  { %v14362_v19 = vpop.eup %14361  ;;  %v9439_v61 = vadd.f32 -1.0, %v14360_v7  ;;  %v17005_v30 = vand.u32 4294901760, %v4266_v59  ;;  %v17007_v63 = vand.u32 4294901760, %v4265_v28  ;;  %vm4192_vm11 = vcmp.gt.f32.partialorder %v16953_v16, 0.0 }
 0x700   :  { %v9438_v43 = vadd.f32 -1.0, %v14362_v19  ;;  %v4239_v17 = vmul.f32 1.442695, %v4210_v6  ;;  %v17010_v45 = vmul.f32 %v14358_v44, %v4155_v11  ;;  %v17013_v7 = vsub.f32 %v4264_v50, %v16982_v39 }
 0x701   :  { %v4268_v19 = vsel %vm4188_vm10, %v16936_v41, %v9439_v61  ;;  %v4209_v31 = vmin.f32 %v17001_v32, 0.0  ;;  %v4390_v51 = vand.u32 4294901760, %v16995_v9  ;;  %v17024_v6 = vsub.f32 %v4263_v26, %v16984_v23 }
 0x702   :  { %v14364_v5 = vpop.eup %14363  ;;  %v4267_v0 = vsel %vm4187_vm14, %v16938_v40, %v9438_v43  ;;  %vm4191_vm13 = vcmp.gt.f32.partialorder %v16956_v54, 0.0  ;;  %14371 = vpow2.f32 %v4239_v17  ;;  %v4212_v11 = vmin.f32 %v17003_v46, 0.0 }
 0x703   :  { %v14366_v52 = vpop.eup %14365  ;;  %v9441_v44 = vadd.f32 -1.0, %v14364_v5  ;;  %v17027_v50 = vand.u32 4294901760, %v4267_v0  ;;  %v4237_v41 = vmul.f32 1.442695, %v4209_v31  ;;  %v17031_v43 = vsub.f32 %v4266_v59, %v17005_v30 }
 0x704   :  { %v9440_v57 = vadd.f32 -1.0, %v14366_v52  ;;  %v17034_v40 = vsub.f32 %v4265_v28, %v17007_v63  ;;  %v17036_v9 = vand.u32 4294901760, %v4268_v19  ;;  %v4211_v26 = vmin.f32 %v17010_v45, 0.0 }
 0x705   :  { %v4270_v61 = vsel %vm4190_vm15, %v16942_v22, %v9441_v44  ;;  %14373 = vpow2.f32 %v4237_v41  ;;  %v4243_v5 = vmul.f32 1.442695, %v4212_v11  ;;  %v19008_v28 = vand.u32 4294901760, %v16999_v34 }
 0x706   :  { %v4269_v17 = vsel %vm4189_vm9, %v16944_v49, %v9440_v57  ;;  %v14368_v31 = vpop.eup %14367  ;;  %v4241_v52 = vmul.f32 1.442695, %v4211_v26  ;;  %v19009_v27 = vand.u32 4294901760, %v17024_v6  ;;  %v17050_v48 = vsub.f32 %v4267_v0, %v17027_v50 }
 0x707   :  { %v17045_v59 = vand.u32 4294901760, %v4269_v17  ;;  %v9443_v8 = vadd.f32 -1.0, %v14368_v31  ;;  %14375 = vpow2.f32 %v4243_v5  ;;  %v19013_v22 = vand.u32 4294901760, %v17013_v7  ;;  %v14370_v44 = vpop.eup %14369 }
 0x708   :  { %v17054_v49 = vsub.f32 %v4268_v19, %v17036_v9  ;;  %14377 = vpow2.f32 %v4241_v52  ;;  %v4379_v57 = vsub.f32 %v16999_v34, %v19008_v28  ;;  %v4399_v41 = vsub.f32 %v17024_v6, %v19009_v27 }
 0x709   :  { %v17062_v11 = vand.u32 4294901760, %v4270_v61  ;;  %v4272_v0 = vsel %vm4192_vm11, %v16953_v16, %v9443_v8  ;;  %v9442_v26 = vadd.f32 -1.0, %v14370_v44  ;;  %v19012_v5 = vand.u32 4294901760, %v17034_v40 }
 0x70a   :  { %v17069_v19 = vsub.f32 %v4269_v17, %v17045_v59  ;;  %v4380_v31 = vand.u32 4294901760, %v4379_v57  ;;  %v4400_v52 = vand.u32 4294901760, %v4399_v41  ;;  %v19016_v28 = vand.u32 4294901760, %v17031_v43 }
 0x70b   :  { %v4271_v27 = vsel %vm4191_vm13, %v16956_v54, %v9442_v26  ;;  %v4409_v15 = vsub.f32 %v17013_v7, %v19013_v22  ;;  %v4419_v8 = vsub.f32 %v17034_v40, %v19012_v5  ;;  %v19017_v16 = vand.u32 4294901760, %v17050_v48 }
 0x70c   :  { %v14372_v17 = vpop.eup %14371  ;;  %v17082_v44 = vand.u32 4294901760, %v4272_v0  ;;  %v17084_v57 = vand.u32 4294901760, %v4271_v27  ;;  %11495 = vmatprep.mubr.f32.mxu1 %v4380_v31  ;;  %v4429_v54 = vsub.f32 %v17031_v43, %v19016_v28  ;;  %v19020_v5 = vand.u32 4294901760, %v17054_v49 }
 0x70d   :  { %v9445_v41 = vadd.f32 -1.0, %v14372_v17  ;;  %11496 = vmatmul.mubr.f32.vlgmr.msra.gmra.mrb[48].mxu1 %v4390_v51  ;;  %v4439_v26 = vsub.f32 %v17050_v48, %v19017_v16  ;;  %v4420_v29 = vand.u32 4294901760, %v4419_v8  ;;  %v17099_v17 = vsub.f32 %v4270_v61, %v17062_v11 }
 0x70e   :  { %v17094_v22 = vsub.f32 %v4271_v27, %v17084_v57  ;;  %13244 = vmatpush3.bf16.msra.mxu1 %v16775_v20  ;;  %11498 = vmatprep.mubr.f32.mxu1 %v4400_v52  ;;  %vm4194_vm9 = vcmp.gt.f32.partialorder %v16978_v38, 0.0  ;;  %v4410_v28 = vand.u32 4294901760, %v4409_v15  ;;  %vm4193_vm10 = vcmp.gt.f32.partialorder %v17001_v32, 0.0 }
 0x70f   :  { %v14374_v51 = vpop.eup %14373  ;;  %13246 = vmatprep.subr.bf16.mxu1 %v16800_v60  ;;  %v4274_v16 = vsel %vm4194_vm9, %v16978_v38, %v9445_v41  ;;  %vm4196_vm12 = vcmp.gt.f32.partialorder %v17003_v46, 0.0  ;;  %v17107_v52 = vsub.f32 %v4272_v0, %v17082_v44  ;;  %v4430_v8 = vand.u32 4294901760, %v4429_v54 }
 0x710   :  { %v9444_v27 = vadd.f32 -1.0, %v14374_v51  ;;  %v4440_v61 = vand.u32 4294901760, %v4439_v26  ;;  %v4449_v15 = vsub.f32 %v17054_v49, %v19020_v5  ;;  %v19387_v41 = vand.u32 4294901760, %v17069_v19 }
 0x711   :  { %v14376_v20 = vpop.eup %14375  ;;  %11499 = vmatmul.mubr.f32.gmra.mrb[50].mxu1 %v4410_v28  ;;  %v4478_v0 = vand.u32 4294901760, %v17094_v22  ;;  %v17118_v28 = vand.u32 4294901760, %v4274_v16  ;;  %v4468_v5 = vand.u32 4294901760, %v17099_v17  ;;  %vm4195_vm14 = vcmp.gt.f32.partialorder %v17010_v45, 0.0 }
 0x712   :  { %v14378_v31 = vpop.eup %14377  ;;  %v4273_v1 = vsel %vm4193_vm10, %v17001_v32, %v9444_v27  ;;  %v9447_v38 = vadd.f32 -1.0, %v14376_v20  ;;  %13248 = vmatpush3.bf16.msra.mxu1 %v16800_v60  ;;  %11501 = vmatprep.mubr.f32.mxu1 %v4420_v29  ;;  %v4459_v51 = vsub.f32 %v17069_v19, %v19387_v41  ;;  %v4488_v27 = vand.u32 4294901760, %v17107_v52 }
 0x713   :  { %v17120_v54 = vand.u32 4294901760, %v4273_v1  ;;  %v9446_v26 = vadd.f32 -1.0, %v14378_v31  ;;  %13250 = vmatprep.subr.bf16.mxu1 %v16804_v33  ;;  %v4450_v31 = vand.u32 4294901760, %v4449_v15 }
 0x714   :  { %v4276_v60 = vsel %vm4196_vm12, %v17003_v46, %v9447_v38  ;;  %v4460_v41 = vand.u32 4294901760, %v4459_v51  ;;  %v4479_v46 = vsub.f32 %v17094_v22, %v4478_v0  ;;  %v17140_v38 = vsub.f32 %v4274_v16, %v17118_v28 }
 0x715   :  { %v17129_v29 = vsub.f32 %v4273_v1, %v17120_v54  ;;  %v4275_v32 = vsel %vm4195_vm14, %v17010_v45, %v9446_v26  ;;  %11502 = vmatmul.mubr.f32.gmra.mrb[52].mxu1 %v4430_v8  ;;  %v17142_v1 = vand.u32 4294901760, %v4276_v60  ;;  %v4469_v45 = vsub.f32 %v17099_v17, %v4468_v5 }
 0x716   :  { %v17133_v20 = vand.u32 4294901760, %v4275_v32  ;;  %13252 = vmatpush3.bf16.msra.mxu1 %v16804_v33  ;;  %11504 = vmatprep.mubr.f32.mxu1 %v4440_v61  ;;  %v4480_v61 = vand.u32 4294901760, %v4479_v46 }
 0x717   :  { %13254 = vmatprep.subr.bf16.mxu1 %v16820_v36  ;;  %v4498_v33 = vand.u32 4294901760, %v17129_v29  ;;  %v17158_v51 = vsub.f32 %v4276_v60, %v17142_v1  ;;  %v4470_v26 = vand.u32 4294901760, %v4469_v45 }
 0x718   :  { %v17150_v8 = vsub.f32 %v4275_v32, %v17133_v20  ;;  %v4489_v32 = vsub.f32 %v17107_v52, %v4488_v27 }
 0x719   :  { %11505 = vmatmul.mubr.f32.gmra.mrb[54].mxu1 %v4450_v31  ;;  %v4499_v16 = vsub.f32 %v17129_v29, %v4498_v33  ;;  %v4528_v45 = vand.u32 4294901760, %v17158_v51 }
 0x71a   :  { %13256 = vmatpush3.bf16.msra.mxu1 %v16820_v36  ;;  %11507 = vmatprep.mubr.f32.mxu1 %v4460_v41  ;;  %v4518_v15 = vand.u32 4294901760, %v17150_v8  ;;  %v4508_v36 = vand.u32 4294901760, %v17140_v38  ;;  %v4490_v60 = vand.u32 4294901760, %v4489_v32  ;;  %v19398_v32 = vld [vmem:[#allocation66_spill] sm:$0xff] }
 0x71b   :  { %13258 = vmatprep.subr.bf16.mxu1 %v16852_v3  ;;  %v4500_v31 = vand.u32 4294901760, %v4499_v16  ;;  %v4529_v16 = vsub.f32 %v17158_v51, %v4528_v45 }
 0x71c   :  { %v4519_v41 = vsub.f32 %v17150_v8, %v4518_v15  ;;  %v4509_v46 = vsub.f32 %v17140_v38, %v4508_v36 }
 0x71d   :  { %11508 = vmatmul.mubr.f32.gmra.mrb[56].mxu1 %v4470_v26  ;;  %v4530_v26 = vand.u32 4294901760, %v4529_v16  ;;  %v19404_v16 = vld [vmem:[#allocation36_spill] sm:$0xff] }
 0x71e   :  { %13260 = vmatpush3.bf16.msra.mxu1 %v16852_v3  ;;  %11510 = vmatprep.mubr.f32.mxu1 %v4480_v61  ;;  %v4520_v3 = vand.u32 4294901760, %v4519_v41  ;;  %v4510_v61 = vand.u32 4294901760, %v4509_v46  ;;  %v19401_v46 = vand.u32 4294901760, %v17024_v6 }
 0x71f   :  { %13262 = vmatprep.subr.bf16.mxu1 %v16856_v35 }
 0x721   :  { %11511 = vmatmul.mubr.f32.gmra.mrb[58].mxu1 %v4490_v60  ;;  %v19400_v60 = vand.u32 4294901760, %v16959_v4 }
 0x722   :  { %13264 = vmatpush3.bf16.msra.mxu1 %v16856_v35  ;;  %11513 = vmatprep.mubr.f32.mxu1 %v4500_v31  ;;  %v19388_v35 = vld [vmem:[#allocation31_spill] sm:$0xff]  ;;  %v19399_v31 = vand.u32 4294901760, %v19398_v32  ;;  %v19416_v32 = vld [vmem:[#allocation40_spill] sm:$0xff] }
 0x723   :  { %13266 = vmatprep.subr.bf16.mxu1 %v16876_v58 }
 0x725   :  { %11514 = vmatmul.mubr.f32.gmra.mrb[60].mxu1 %v4510_v61 }
 0x726   :  { %13268 = vmatpush3.bf16.msra.mxu1 %v16876_v58  ;;  %11516 = vmatprep.mubr.f32.mxu1 %v4520_v3  ;;  %v19389_v58 = vld [vmem:[#allocation33_spill] sm:$0xff] }
 0x727   :  { %13270 = vmatprep.subr.bf16.mxu1 %v16884_v2  ;;  %v19402_v3 = vld [vmem:[#allocation69_spill] sm:$0xff] }
 0x728   :  { %v19403_v61 = vand.u32 4294901760, %v19402_v3  ;;  %v19422_v3 = vld [vmem:[#allocation78_spill] sm:$0xff] }
 0x729   :  { %11517 = vmatmul.mubr.f32.gmra.mrb[62].mxu1 %v4530_v26  ;;  %v19405_v26 = vand.u32 4294901760, %v19404_v16 }
 0x72a   :  { %13272 = vmatpush3.bf16.msra.mxu1 %v16884_v2  ;;  %11551 = vmatprep.mubr.f32.mxu1 %v16975_v62  ;;  %v19390_v2 = vld [vmem:[#allocation34_spill] sm:$0xff] }
 0x72b   :  { %13274 = vmatprep.subr.bf16.mxu1 %v16888_v21 }
 0x72d   :  { %11552 = vmatmul.mubr.f32.vlgmr.msra.gmra.mrb[48].mxu1 %v16950_v42 }
 0x72e   :  { %11554 = vmatprep.mubr.f32.mxu1 %v16984_v23  ;;  %13276 = vmatpush3.bf16.msra.mxu1 %v16888_v21  ;;  %v19391_v21 = vld [vmem:[#allocation64_spill] sm:$0xff] }
 0x72f   :  { %13278 = vmatprep.subr.bf16.mxu1 %v16892_v56 }
 0x731   :  { %11555 = vmatmul.mubr.f32.gmra.mrb[50].mxu1 %v16982_v39 }
 0x732   :  { %11557 = vmatprep.mubr.f32.mxu1 %v17007_v63  ;;  %13280 = vmatpush3.bf16.msra.mxu1 %v16892_v56  ;;  %v19392_v56 = vand.u32 4294901760, %v19391_v21  ;;  %v19406_v21 = vand.u32 4294901760, %v17013_v7 }
 0x733   :  { %13282 = vmatprep.subr.bf16.mxu1 %v16896_v10 }
 0x735   :  { %11558 = vmatmul.mubr.f32.gmra.mrb[52].mxu1 %v17005_v30 }
 0x736   :  { %11560 = vmatprep.mubr.f32.mxu1 %v17027_v50  ;;  %13284 = vmatpush3.bf16.msra.mxu1 %v16896_v10  ;;  %v19393_v10 = vld [vmem:[#allocation65_spill] sm:$0xff] }
 0x737   :  { %13286 = vmatprep.subr.bf16.mxu1 %v16900_v13 }
 0x739   :  { %11561 = vmatmul.mubr.f32.gmra.mrb[54].mxu1 %v17036_v9 }
 0x73a   :  { %11563 = vmatprep.mubr.f32.mxu1 %v17045_v59  ;;  %13288 = vmatpush3.bf16.msra.mxu1 %v16900_v13  ;;  %v19394_v13 = vand.u32 4294901760, %v19393_v10 }
 0x73b   :  { %13290 = vmatprep.subr.bf16.mxu1 %v16904_v24 }
 0x73d   :  { %11564 = vmatmul.mubr.f32.gmra.mrb[56].mxu1 %v17062_v11 }
 0x73e   :  { %11566 = vmatprep.mubr.f32.mxu1 %v17084_v57  ;;  %13292 = vmatpush3.bf16.msra.mxu1 %v16904_v24  ;;  %v13337_v24 = vpack.c.bf16 %v19394_v13, %v19392_v56  ;;  %v19407_v56 = vand.u32 4294901760, %v17034_v40  ;;  %v19410_v13 = vld [vmem:[#allocation71_spill] sm:$0xff] }
 0x73f   :  { %13294 = vmatprep.subr.bf16.mxu1 %v16908_v55 }
 0x741   :  { %11567 = vmatmul.mubr.f32.gmra.mrb[58].mxu1 %v17082_v44 }
 0x742   :  { %11569 = vmatprep.mubr.f32.mxu1 %v17120_v54  ;;  %13296 = vmatpush3.bf16.msra.mxu1 %v16908_v55  ;;  %v19395_v55 = vand.u32 4294901760, %v16999_v34 }
 0x743   :  { %13298 = vmatprep.subr.bf16.mxu1 %v16912_v12 }
 0x745   :  { %11570 = vmatmul.mubr.f32.gmra.mrb[60].mxu1 %v17118_v28 }
 0x746   :  { %11572 = vmatprep.mubr.f32.mxu1 %v17133_v20  ;;  %13300 = vmatpush3.bf16.msra.mxu1 %v16912_v12  ;;  %v19396_v12 = vld [vmem:[#allocation35_spill] sm:$0xff] }
 0x747   :  { %13302 = vmatprep.subr.bf16.mxu1 %v16916_v14 }
 0x749   :  { %11573 = vmatmul.mubr.f32.gmra.mrb[62].mxu1 %v17142_v1 }
 0x74a   :  { %13304 = vmatpush3.bf16.msra.mxu1 %v16916_v14  ;;  %11607 = vmatprep.mubr.f32.mxu1 %v16999_v34  ;;  %v19397_v14 = vand.u32 4294901760, %v19396_v12  ;;  %v13345_v34 = vpack.c.bf16 %v19405_v26, %v19403_v61  ;;  %v19413_v12 = vand.u32 4294901760, %v17050_v48  ;;  %v19426_v26 = vld [vmem:[#allocation81_spill] sm:$0xff] }
 0x74b   :  { %13306 = vmatprep.subr.bf16.mxu1 %v16693_v47 }
 0x74c   :  { %v13341_v41 = vpack.c.bf16 %v19399_v31, %v19397_v14 }
 0x74d   :  { %11608 = vmatmul.mubr.f32.vlgmr.msra.gmra.mrb[48].mxu1 %v16959_v4  ;;  %v19408_v4 = vld [vmem:[#allocation39_spill] sm:$0xff] }
 0x74e   :  { %11610 = vmatprep.mubr.f32.mxu1 %v17024_v6  ;;  %13308 = vmatpush3.bf16.msra.mxu1 %v16693_v47  ;;  %v19409_v10 = vand.u32 4294901760, %v19408_v4  ;;  %v19411_v6 = vand.u32 4294901760, %v19410_v13 }
 0x74f   :  { %13310 = vmatprep.subr.bf16.mxu1 %v16697_v37 }
 0x751   :  { %11611 = vmatmul.mubr.f32.gmra.mrb[50].mxu1 %v17013_v7  ;;  %v19414_v7 = vld [vmem:[#allocation73_spill] sm:$0xff] }
 0x752   :  { %11613 = vmatprep.mubr.f32.mxu1 %v17034_v40  ;;  %13312 = vmatpush3.bf16.msra.mxu1 %v16697_v37  ;;  %v19415_v14 = vand.u32 4294901760, %v19414_v7  ;;  %v19417_v40 = vand.u32 4294901760, %v19416_v32 }
 0x753   :  { %13314 = vmatprep.subr.bf16.mxu1 %v16701_v53 }
 0x754   :  { %v13353_v31 = vpack.c.bf16 %v19417_v40, %v19415_v14 }
 0x755   :  { %11614 = vmatmul.mubr.f32.gmra.mrb[52].mxu1 %v17031_v43 }
 0x756   :  { %11616 = vmatprep.mubr.f32.mxu1 %v17050_v48  ;;  %13316 = vmatpush3.bf16.msra.mxu1 %v16701_v53  ;;  %v19423_v48 = vand.u32 4294901760, %v19422_v3 }
 0x757   :  { %13318 = vmatprep.subr.bf16.mxu1 %v16705_v18 }
 0x759   :  { %11617 = vmatmul.mubr.f32.gmra.mrb[54].mxu1 %v17054_v49 }
 0x75a   :  { %11619 = vmatprep.mubr.f32.mxu1 %v17069_v19  ;;  %13320 = vmatpush3.bf16.msra.mxu1 %v16705_v18 }
 0x75b   :  { %13322 = vmatprep.subr.bf16.mxu1 %v16715_v25 }
 0x75d   :  { %11620 = vmatmul.mubr.f32.gmra.mrb[56].mxu1 %v17099_v17  ;;  %v19428_v17 = vld [vmem:[#allocation82_spill] sm:$0xff] }
 0x75e   :  { %11622 = vmatprep.mubr.f32.mxu1 %v17094_v22  ;;  %13324 = vmatpush3.bf16.msra.mxu1 %v16715_v25 }
 0x75f   :  { %13326 = vmatprep.subr.bf16.mxu1 %v19388_v35 }
 0x761   :  { %11623 = vmatmul.mubr.f32.gmra.mrb[58].mxu1 %v17107_v52 }
 0x762   :  { %11625 = vmatprep.mubr.f32.mxu1 %v17129_v29  ;;  %13328 = vmatpush3.bf16.msra.mxu1 %v19388_v35 }
 0x763   :  { %13330 = vmatprep.subr.bf16.mxu1 %v19389_v58 }
 0x765   :  { %11626 = vmatmul.mubr.f32.gmra.mrb[60].mxu1 %v17140_v38 }
 0x766   :  { %11628 = vmatprep.mubr.f32.mxu1 %v17150_v8  ;;  %13332 = vmatpush3.bf16.msra.mxu1 %v19389_v58 }
 0x767   :  { %13334 = vmatprep.subr.bf16.mxu1 %v19390_v2 }
 0x769   :  { %11629 = vmatmul.mubr.f32.gmra.mrb[62].mxu1 %v17158_v51 }
 0x76a   :  { %13336 = vmatpush3.bf16.msra.mxu1 %v19390_v2  ;;  %11663 = vmatprep.mubr.f32.mxu1 %v19395_v55  ;;  %v13349_v55 = vpack.c.bf16 %v19411_v6, %v19409_v10 }
 0x76b   :  { %13338 = vmatprep.subr.bf16.mxu1 %v13337_v24 }
 0x76d   :  { %11664 = vmatmul.mubr.f32.vlgmr.msra.gmra.mrb[48].mxu1 %v19400_v60  ;;  %v19419_v60 = vand.u32 4294901760, %v17069_v19  ;;  %v19427_v19 = vand.u32 4294901760, %v19426_v26 }
 0x76e   :  { %11666 = vmatprep.mubr.f32.mxu1 %v19401_v46  ;;  %13340 = vmatpush3.bf16.msra.mxu1 %v13337_v24  ;;  %v19412_v24 = vand.u32 4294901760, %v17031_v43  ;;  %v19420_v43 = vld [vmem:[#allocation74_spill] sm:$0xff] }
 0x76f   :  { %13342 = vmatprep.subr.bf16.mxu1 %v13341_v41  ;;  %v19421_v46 = vand.u32 4294901760, %v19420_v43 }
 0x771   :  { %11667 = vmatmul.mubr.f32.gmra.mrb[50].mxu1 %v19406_v21  ;;  %v13357_v61 = vpack.c.bf16 %v19423_v48, %v19421_v46  ;;  %v19430_v21 = vld [vmem:[#allocation85_spill] sm:$0xff] }
 0x772   :  { %11669 = vmatprep.mubr.f32.mxu1 %v19407_v56  ;;  %13344 = vmatpush3.bf16.msra.mxu1 %v13341_v41  ;;  %v19418_v41 = vand.u32 4294901760, %v17054_v49  ;;  %v19424_v49 = vld [vmem:[#allocation80_spill] sm:$0xff]  ;;  %v19431_v22 = vand.u32 4294901760, %v19430_v21 }
 0x773   :  { %13346 = vmatprep.subr.bf16.mxu1 %v13345_v34  ;;  %v19425_v16 = vand.u32 4294901760, %v19424_v49 }
 0x775   :  { %11670 = vmatmul.mubr.f32.gmra.mrb[52].mxu1 %v19412_v24 }
 0x776   :  { %11672 = vmatprep.mubr.f32.mxu1 %v19413_v12  ;;  %13348 = vmatpush3.bf16.msra.mxu1 %v13345_v34  ;;  %v13361_v34 = vpack.c.bf16 %v19427_v19, %v19425_v16 }
 0x777   :  { %13350 = vmatprep.subr.bf16.mxu1 %v13349_v55 }
 0x779   :  { %11673 = vmatmul.mubr.f32.gmra.mrb[54].mxu1 %v19418_v41 }
 0x77a   :  { %11675 = vmatprep.mubr.f32.mxu1 %v19419_v60  ;;  %13352 = vmatpush3.bf16.msra.mxu1 %v13349_v55 }
 0x77b   :  { %13354 = vmatprep.subr.bf16.mxu1 %v13353_v31 }
 0x77d   :  { %11676 = vmatmul.mubr.f32.gmra.mrb[56].mxu1 %v4468_v5  ;;  %v19429_v5 = vand.u32 4294901760, %v19428_v17 }
 0x77e   :  { %11678 = vmatprep.mubr.f32.mxu1 %v4478_v0  ;;  %13356 = vmatpush3.bf16.msra.mxu1 %v13353_v31 }
 0x77f   :  { %13358 = vmatprep.subr.bf16.mxu1 %v13357_v61  ;;  %v13365_v0 = vpack.c.bf16 %v19431_v22, %v19429_v5 }
 0x781   :  { %11679 = vmatmul.mubr.f32.gmra.mrb[58].mxu1 %v4488_v27 }
 0x782   :  { %11681 = vmatprep.mubr.f32.mxu1 %v4498_v33  ;;  %13360 = vmatpush3.bf16.msra.mxu1 %v13357_v61 }
 0x783   :  { %13362 = vmatprep.subr.bf16.mxu1 %v13361_v34 }
 0x785   :  { %11682 = vmatmul.mubr.f32.gmra.mrb[60].mxu1 %v4508_v36 }
 0x786   :  { %11684 = vmatprep.mubr.f32.mxu1 %v4518_v15  ;;  %13364 = vmatpush3.bf16.msra.mxu1 %v13361_v34 }
 0x787   :  { %13366 = vmatprep.subr.bf16.mxu1 %v13365_v0 }
 0x789   :  { %11685 = vmatmul.mubr.f32.gmra.mrb[62].mxu1 %v4528_v45 }
 0x78a   :  { %13368 = vmatpush3.bf16.msra.mxu1 %v13365_v0  ;;  %11719 = vmatprep.mubr.f32.mxu1 %v16975_v62 }
 0x78b   :  { %13370 = vmatprep.subr.bf16.mxu1 %v16693_v47 }
 0x78d   :  { %11720 = vmatmul.mubr.f32.vlgmr.msra.gmra.mrb[48].mxu1 %v16950_v42 }
 0x78e   :  { %11722 = vmatprep.mubr.f32.mxu1 %v16984_v23  ;;  %13372 = vmatpush3.bf16.msra.mxu1 %v16693_v47  ;;  %v17361_v47 = vld [vmem:[%s18737_s7] ss:$0 sm:$0xff] }
 0x78f   :  { %13374 = vmatprep.subr.bf16.mxu1 %v16697_v37 }
 0x791   :  { %11723 = vmatmul.mubr.f32.gmra.mrb[50].mxu1 %v16982_v39 }
 0x792   :  { %11725 = vmatprep.mubr.f32.mxu1 %v17007_v63  ;;  %13376 = vmatpush3.bf16.msra.mxu1 %v16697_v37 }
 0x793   :  { %13378 = vmatprep.subr.bf16.mxu1 %v16701_v53 }
 0x795   :  { %11726 = vmatmul.mubr.f32.gmra.mrb[52].mxu1 %v17005_v30 }
 0x796   :  { %11728 = vmatprep.mubr.f32.mxu1 %v17027_v50  ;;  %13380 = vmatpush3.bf16.msra.mxu1 %v16701_v53 }
 0x797   :  { %13382 = vmatprep.subr.bf16.mxu1 %v16705_v18 }
 0x799   :  { %11729 = vmatmul.mubr.f32.gmra.mrb[54].mxu1 %v17036_v9 }
 0x79a   :  { %11731 = vmatprep.mubr.f32.mxu1 %v17045_v59  ;;  %13384 = vmatpush3.bf16.msra.mxu1 %v16705_v18 }
 0x79b   :  { %13386 = vmatprep.subr.bf16.mxu1 %v16715_v25 }
 0x79d   :  { %11732 = vmatmul.mubr.f32.gmra.mrb[56].mxu1 %v17062_v11 }
 0x79e   :  { %11734 = vmatprep.mubr.f32.mxu1 %v17084_v57  ;;  %13388 = vmatpush3.bf16.msra.mxu1 %v16715_v25 }
 0x79f   :  { %13390 = vmatprep.subr.bf16.mxu1 %v19388_v35 }
 0x7a1   :  { %11735 = vmatmul.mubr.f32.gmra.mrb[58].mxu1 %v17082_v44 }
 0x7a2   :  { %11737 = vmatprep.mubr.f32.mxu1 %v17120_v54  ;;  %13392 = vmatpush3.bf16.msra.mxu1 %v19388_v35 }
 0x7a3   :  { %13394 = vmatprep.subr.bf16.mxu1 %v19389_v58 }
 0x7a5   :  { %11738 = vmatmul.mubr.f32.gmra.mrb[60].mxu1 %v17118_v28 }
 0x7a6   :  { %11740 = vmatprep.mubr.f32.mxu1 %v17133_v20  ;;  %13396 = vmatpush3.bf16.msra.mxu1 %v19389_v58 }
 0x7a7   :  { %13398 = vmatprep.subr.bf16.mxu1 %v19390_v2 }
 0x7a9   :  { %11741 = vmatmul.mubr.f32.gmra.mrb[62].mxu1 %v17142_v1 }
 0x7aa   :  { %13400 = vmatpush3.bf16.msra.mxu1 %v19390_v2  ;;  %11775 = vmatprep.mubr.f32.mxu1 %v16975_v62 }
 0x7ad   :  { %11776 = vmatmul.mubr.f32.vlgmr.msra.gmra.mrb[48].mxu1 %v16950_v42 }
 0x7ae   :  { %11778 = vmatprep.mubr.f32.mxu1 %v16984_v23 }
 0x7b1   :  { %11779 = vmatmul.mubr.f32.gmra.mrb[50].mxu1 %v16982_v39 }
 0x7b2   :  { %11781 = vmatprep.mubr.f32.mxu1 %v17007_v63 }
 0x7b5   :  { %11782 = vmatmul.mubr.f32.gmra.mrb[52].mxu1 %v17005_v30 }
 0x7b6   :  { %11784 = vmatprep.mubr.f32.mxu1 %v17027_v50 }
 0x7b9   :  { %11785 = vmatmul.mubr.f32.gmra.mrb[54].mxu1 %v17036_v9 }
 0x7ba   :  { %11787 = vmatprep.mubr.f32.mxu1 %v17045_v59 }
 0x7bd   :  { %11788 = vmatmul.mubr.f32.gmra.mrb[56].mxu1 %v17062_v11 }
 0x7be   :  { %11790 = vmatprep.mubr.f32.mxu1 %v17084_v57 }
 0x7c1   :  { %11791 = vmatmul.mubr.f32.gmra.mrb[58].mxu1 %v17082_v44 }
 0x7c2   :  { %11793 = vmatprep.mubr.f32.mxu1 %v17120_v54 }
 0x7c5   :  { %11794 = vmatmul.mubr.f32.gmra.mrb[60].mxu1 %v17118_v28 }
 0x7c6   :  { %11796 = vmatprep.mubr.f32.mxu1 %v17133_v20 }
 0x7c9   :  { %11797 = vmatmul.mubr.f32.gmra.mrb[62].mxu1 %v17142_v1  ;;  %v19432_v1 = vmov 0.0|0.0  }
 0x880   :  { %v11777_v37 = vpop.f32.mrb[48].mxu1 }
 0x881   :  { %v5639_v53 = vand.u32 4294901760, %v11777_v37  ;;  %v5487_v18 = vpop.f32.mrb[49].mxu1  ;;  %v5588_v25 = vmul.f32 %v11777_v37, %v17361_v47 }
 0x882   :  { %v5636_v42 = vand.u32 4294901760, %v5487_v18  ;;  %v5587_v62 = vmul.f32 %v17361_v47, %v5487_v18 }
 0x883   :  { %v17365_v39 = vsub.f32 %v11777_v37, %v5639_v53  ;;  %5605 = vadd.xlane.f32.xlu1 %v5588_v25 }
 0x884   :  { %v17367_v23 = vpack.c.bf16 %v5639_v53, %v5636_v42  ;;  %v17369_v30 = vsub.f32 %v5487_v18, %v5636_v42  ;;  %5603 = vadd.xlane.f32.xlu0 %v5587_v62  ;;  %v11780_v63 = vpop.f32.mrb[50].mxu1 }
 0x885   :  { %v5736_v50 = vand.u32 4294901760, %v17365_v39  ;;  %v5645_v9 = vand.u32 4294901760, %v11780_v63  ;;  %v5499_v59 = vpop.f32.mrb[51].mxu1  ;;  %v5590_v11 = vmul.f32 %v11780_v63, %v17361_v47 }
 0x886   :  { %v5729_v44 = vand.u32 4294901760, %v17369_v30  ;;  %v5642_v57 = vand.u32 4294901760, %v5499_v59  ;;  %13403 = vmatpush3.bf16.xpose.msra.mxu0 %v17367_v23  ;;  %13546 = vmatprep.subr.bf16.mxu1 %v17367_v23  ;;  %v5589_v52 = vmul.f32 %v17361_v47, %v5499_v59  ;;  %v17379_v28 = vpack.c.bf16 %v17365_v39, %v17369_v30 }
 0x887   :  { %v17381_v54 = vsub.f32 %v11780_v63, %v5645_v9  ;;  %13548 = vmatpush3.bf16.msra.mxu1 %v17367_v23  ;;  %5609 = vadd.xlane.f32.xlu1 %v5590_v11  ;;  %v5737_v29 = vsub.f32 %v17365_v39, %v5736_v50 }
 0x888   :  { %v17387_v27 = vpack.c.bf16 %v5645_v9, %v5642_v57  ;;  %v17389_v20 = vsub.f32 %v5499_v59, %v5642_v57  ;;  %5607 = vadd.xlane.f32.xlu0 %v5589_v52  ;;  %v11783_v38 = vpop.f32.mrb[52].mxu1  ;;  %13404 = vmatprep.subr.bf16.mxu0 %v19432_v1  ;;  %v5730_v33 = vsub.f32 %v17369_v30, %v5729_v44 }
 0x889   :  { %v5750_v8 = vand.u32 4294901760, %v17381_v54  ;;  %v5651_v15 = vand.u32 4294901760, %v11783_v38  ;;  %v5511_v51 = vpop.f32.mrb[53].mxu1  ;;  %v5592_v36 = vmul.f32 %v11783_v38, %v17361_v47  ;;  %v5738_v45 = vand.u32 4294901760, %v5737_v29 }
 0x88a   :  { %v5743_v35 = vand.u32 4294901760, %v17389_v20  ;;  %v5648_v58 = vand.u32 4294901760, %v5511_v51  ;;  %13550 = vmatprep.subr.bf16.mxu1 %v17387_v27  ;;  %v5591_v2 = vmul.f32 %v17361_v47, %v5511_v51  ;;  %v5731_v56 = vand.u32 4294901760, %v5730_v33 }
 0x88b   :  { %v5751_v4 = vsub.f32 %v17381_v54, %v5750_v8  ;;  %v17403_v10 = vsub.f32 %v11783_v38, %v5651_v15  ;;  %13552 = vmatpush3.bf16.msra.mxu1 %v17387_v27  ;;  %5613 = vadd.xlane.f32.xlu1 %v5592_v36  ;;  %v17408_v13 = vpack.c.bf16 %v17381_v54, %v17389_v20 }
 0x88c   :  { %v5744_v6 = vsub.f32 %v17389_v20, %v5743_v35  ;;  %v17413_v55 = vpack.c.bf16 %v5651_v15, %v5648_v58  ;;  %v17415_v24 = vsub.f32 %v5511_v51, %v5648_v58  ;;  %5611 = vadd.xlane.f32.xlu0 %v5591_v2  ;;  %v11786_v12 = vpop.f32.mrb[54].mxu1  ;;  %v17417_v7 = vpack.c.bf16 %v5738_v45, %v5731_v56 }
 0x88d   :  { %v5764_v14 = vand.u32 4294901760, %v17403_v10  ;;  %v5657_v32 = vand.u32 4294901760, %v11786_v12  ;;  %v5523_v40 = vpop.f32.mrb[55].mxu1  ;;  %v5594_v31 = vmul.f32 %v11786_v12, %v17361_v47  ;;  %v5752_v41 = vand.u32 4294901760, %v5751_v4 }
 0x88e   :  { %v5757_v60 = vand.u32 4294901760, %v17415_v24  ;;  %v5654_v43 = vand.u32 4294901760, %v5523_v40  ;;  %13406 = vmatpush3.bf16.xpose.msra.mxu0 %v17387_v27  ;;  %13554 = vmatprep.subr.bf16.mxu1 %v17413_v55  ;;  %v5593_v46 = vmul.f32 %v17361_v47, %v5523_v40  ;;  %v5745_v3 = vand.u32 4294901760, %v5744_v6 }
 0x88f   :  { %v5765_v48 = vsub.f32 %v17403_v10, %v5764_v14  ;;  %v17428_v61 = vsub.f32 %v11786_v12, %v5657_v32  ;;  %13556 = vmatpush3.bf16.msra.mxu1 %v17413_v55  ;;  %5617 = vadd.xlane.f32.xlu1 %v5594_v31  ;;  %v17433_v49 = vpack.c.bf16 %v17403_v10, %v17415_v24 }
 0x890   :  { %v5758_v16 = vsub.f32 %v17415_v24, %v5757_v60  ;;  %v17438_v26 = vpack.c.bf16 %v5657_v32, %v5654_v43  ;;  %v17440_v19 = vsub.f32 %v5523_v40, %v5654_v43  ;;  %5615 = vadd.xlane.f32.xlu0 %v5593_v46  ;;  %v11789_v34 = vpop.f32.mrb[56].mxu1  ;;  %13407 = vmatprep.subr.bf16.mxu0 %v19432_v1  ;;  %v4294_v24 = vld [vmem:[%s18738_s8] sm:$0x1]  ;;  %s14731_s8 = smov [#allocation13]  }
 0x891   :  { %v5766_v17 = vand.u32 4294901760, %v5765_v48  ;;  %v5778_v5 = vand.u32 4294901760, %v17428_v61  ;;  %v5663_v21 = vand.u32 4294901760, %v11789_v34  ;;  %v5535_v22 = vpop.f32.mrb[57].mxu1  ;;  %v5596_v0 = vmul.f32 %v11789_v34, %v17361_v47  ;;  %s9413_s19 = sshll.u32 %s14731_s8, 4  ;;  %s9414_s19 = int_to_ptr.vmem [resolvable:$true] %s9413_s19 }
 0x892   :  { %v5759_v37 = vand.u32 4294901760, %v5758_v16  ;;  %v5771_v53 = vand.u32 4294901760, %v17440_v19  ;;  %v5660_v18 = vand.u32 4294901760, %v5535_v22  ;;  %13558 = vmatprep.subr.bf16.mxu1 %v17438_v26  ;;  %v5595_v25 = vmul.f32 %v17361_v47, %v5535_v22  ;;  %s14665_s20 = scalar_lea.vmem %s9414_s19, 2048  ;;  %p14670_p13 = scmp.lt.s32.totalorder %s9414_s19, %s9414_s19 }
 0x893   :  { %v5779_v42 = vsub.f32 %v17428_v61, %v5778_v5  ;;  %v17451_v62 = vsub.f32 %v11789_v34, %v5663_v21  ;;  %13560 = vmatpush3.bf16.msra.mxu1 %v17438_v26  ;;  %5621 = vadd.xlane.f32.xlu1 %v5596_v0  ;;  %v17454_v63 = vpack.c.bf16 %v5752_v41, %v5745_v3  ;;  %p14666_p12 = scmp.ne.s32.totalorder %s9414_s19, %s14665_s20  ;;  %p14671_p0 = scmp.lt.s32.totalorder %s14665_s20, %s14665_s20 }
 0x894   :  { %v5772_v9 = vsub.f32 %v17440_v19, %v5771_v53  ;;  %v17459_v59 = vpack.c.bf16 %v5663_v21, %v5660_v18  ;;  %v17461_v11 = vsub.f32 %v5535_v22, %v5660_v18  ;;  %5619 = vadd.xlane.f32.xlu0 %v5595_v25  ;;  %v11792_v57 = vpop.f32.mrb[58].mxu1  ;;  %v17463_v52 = vpack.c.bf16 %v5766_v17, %v5759_v37 }
 0x895   :  { %v5792_v29 = vand.u32 4294901760, %v17451_v62  ;;  %v5669_v38 = vand.u32 4294901760, %v11792_v57  ;;  %v5547_v33 = vpop.f32.mrb[59].mxu1  ;;  %v5598_v15 = vmul.f32 %v11792_v57, %v17361_v47  ;;  %v5780_v51 = vand.u32 4294901760, %v5779_v42  ;;  %p14672_p1 = por %p14671_p0, %p14670_p13 }
 0x896   :  { %v5785_v36 = vand.u32 4294901760, %v17461_v11  ;;  %v5666_v45 = vand.u32 4294901760, %v5547_v33  ;;  %13409 = vmatpush3.bf16.xpose.msra.mxu0 %v17413_v55  ;;  %13562 = vmatprep.subr.bf16.mxu1 %v17459_v59  ;;  %v5597_v58 = vmul.f32 %v17361_v47, %v5547_v33  ;;  %v5773_v2 = vand.u32 4294901760, %v5772_v9 }
 0x897   :  { %v5793_v56 = vsub.f32 %v17451_v62, %v5792_v29  ;;  %v17474_v4 = vsub.f32 %v11792_v57, %v5669_v38  ;;  %13564 = vmatpush3.bf16.msra.mxu1 %v17459_v59  ;;  %5625 = vadd.xlane.f32.xlu1 %v5598_v15  ;;  %v17479_v6 = vpack.c.bf16 %v17428_v61, %v17440_v19  ;;  %p14673_p2 = pnand %p14672_p1, %p14666_p12 }
 0x898   :  { %v5786_v12 = vsub.f32 %v17461_v11, %v5785_v36  ;;  %v17484_v32 = vpack.c.bf16 %v5669_v38, %v5666_v45  ;;  %v17486_v40 = vsub.f32 %v5547_v33, %v5666_v45  ;;  %5623 = vadd.xlane.f32.xlu0 %v5597_v58  ;;  %v11795_v31 = vpop.f32.mrb[60].mxu1  ;;  %13410 = vmatprep.subr.bf16.mxu0 %v19432_v1 }
 0x899   :  { %v5794_v41 = vand.u32 4294901760, %v5793_v56  ;;  %v5806_v43 = vand.u32 4294901760, %v17474_v4  ;;  %v5675_v46 = vand.u32 4294901760, %v11795_v31  ;;  %v5559_v3 = vpop.f32.mrb[61].mxu1  ;;  %v5600_v48 = vmul.f32 %v11795_v31, %v17361_v47 }
 0x89a   :  { %v5787_v16 = vand.u32 4294901760, %v5786_v12  ;;  %v5799_v34 = vand.u32 4294901760, %v17486_v40  ;;  %v5672_v17 = vand.u32 4294901760, %v5559_v3  ;;  %13566 = vmatprep.subr.bf16.mxu1 %v17484_v32  ;;  %v5599_v21 = vmul.f32 %v17361_v47, %v5559_v3 }
 0x89b   :  { %v5807_v22 = vsub.f32 %v17474_v4, %v5806_v43  ;;  %v5819_v0 = vsub.f32 %v11795_v31, %v5675_v46  ;;  %13568 = vmatpush3.bf16.msra.mxu1 %v17484_v32  ;;  %5629 = vadd.xlane.f32.xlu1 %v5600_v48  ;;  %v17496_v37 = vpack.c.bf16 %v5780_v51, %v5773_v2 }
 0x89c   :  { %v5800_v18 = vsub.f32 %v17486_v40, %v5799_v34  ;;  %v17499_v25 = vpack.c.bf16 %v5675_v46, %v5672_v17  ;;  %v5812_v42 = vsub.f32 %v5559_v3, %v5672_v17  ;;  %5627 = vadd.xlane.f32.xlu0 %v5599_v21  ;;  %v11798_v9 = vpop.f32.mrb[62].mxu1  ;;  %v17501_v57 = vpack.c.bf16 %v5794_v41, %v5787_v16 }
 0x89d   :  { %v5808_v38 = vand.u32 4294901760, %v5807_v22  ;;  %v5820_v33 = vand.u32 4294901760, %v5819_v0  ;;  %v5681_v15 = vand.u32 4294901760, %v11798_v9  ;;  %v5571_v45 = vpop.f32.mrb[63].mxu1  ;;  %v5602_v58 = vmul.f32 %v11798_v9, %v17361_v47 }
 0x89e   :  { %v5801_v56 = vand.u32 4294901760, %v5800_v18  ;;  %v5813_v12 = vand.u32 4294901760, %v5812_v42  ;;  %v5678_v31 = vand.u32 4294901760, %v5571_v45  ;;  %13412 = vmatpush3.bf16.xpose.msra.mxu0 %v17438_v26  ;;  %13570 = vmatprep.subr.bf16.mxu1 %v17499_v25  ;;  %v5601_v51 = vmul.f32 %v17361_v47, %v5571_v45 }
 0x89f   :  { %v5821_v2 = vsub.f32 %v5819_v0, %v5820_v33  ;;  %v5833_v46 = vsub.f32 %v11798_v9, %v5681_v15  ;;  %13572 = vmatpush3.bf16.msra.mxu1 %v17499_v25  ;;  %5633 = vadd.xlane.f32.xlu1 %v5602_v58  ;;  %v17510_v41 = vpack.c.bf16 %v17451_v62, %v17461_v11 }
 0x8a0   :  { %v5814_v3 = vsub.f32 %v5812_v42, %v5813_v12  ;;  %v17512_v48 = vpack.c.bf16 %v5681_v15, %v5678_v31  ;;  %v5826_v16 = vsub.f32 %v5571_v45, %v5678_v31  ;;  %5631 = vadd.xlane.f32.xlu0 %v5601_v51  ;;  %13413 = vmatprep.subr.bf16.mxu0 %v19432_v1 }
 0x8a1   :  { %v5822_v17 = vand.u32 4294901760, %v5821_v2  ;;  %v5834_v21 = vand.u32 4294901760, %v5833_v46  ;;  %v17515_v22 = vpack.c.bf16 %v5808_v38, %v5801_v56  ;;  %v17519_v47 = vpack.c.bf16 %v17474_v4, %v17486_v40 }
 0x8a2   :  { %v5815_v18 = vand.u32 4294901760, %v5814_v3  ;;  %v5827_v9 = vand.u32 4294901760, %v5826_v16  ;;  %13574 = vmatprep.subr.bf16.mxu1 %v17512_v48  ;;  %v17522_v58 = vpack.c.bf16 %v5819_v0, %v5812_v42  ;;  %v17524_v15 = vpack.c.bf16 %v5833_v46, %v5826_v16 }
 0x8a3   :  { %v5835_v45 = vsub.f32 %v5833_v46, %v5834_v21  ;;  %13576 = vmatpush3.bf16.msra.mxu1 %v17512_v48  ;;  %v17531_v38 = vpack.c.bf16 %v5736_v50, %v5729_v44  ;;  %v17537_v4 = vpack.c.bf16 %v5750_v8, %v5743_v35  ;;  %v17543_v40 = vpack.c.bf16 %v5764_v14, %v5757_v60 }
 0x8a4   :  { %v5828_v0 = vsub.f32 %v5826_v16, %v5827_v9  ;;  %13578 = vmatprep.subr.bf16.mxu1 %v17417_v7  ;;  %v17546_v30 = vpack.c.bf16 %v5822_v17, %v5815_v18  ;;  %v17552_v39 = vpack.c.bf16 %v5778_v5, %v5771_v53  ;;  %v17558_v50 = vpack.c.bf16 %v5792_v29, %v5785_v36 }
 0x8a5   :  { %19433 = vst [vmem:[#allocation87_spill] sm:$0xff] %v17543_v40  ;;  %v5836_v44 = vand.u32 4294901760, %v5835_v45  ;;  %v17560_v54 = vpack.c.bf16 %v5806_v43, %v5799_v34  ;;  %v17562_v20 = vpack.c.bf16 %v5820_v33, %v5813_v12  ;;  %v17564_v8 = vpack.c.bf16 %v5834_v21, %v5827_v9  ;;  %v19440_v12 = vld [vmem:[#allocation22_spill] sm:$0xff] }
 0x8a6   :  { %19434 = vst [vmem:[#allocation89_spill] sm:$0xff] %v17552_v39  ;;  %19435 = vst [vmem:[#allocation90_spill] sm:$0xff] %v17558_v50  ;;  %v5829_v35 = vand.u32 4294901760, %v5828_v0  ;;  %13415 = vmatpush3.bf16.xpose.msra.mxu0 %v17459_v59  ;;  %v17575_v14 = vand.u32 4294901760, %v4294_v24  ;;  %v19439_v53 = vmov 0.0   ;;  %v19441_v31 = vsub.s32 0, %v19440_v12 }
 0x8a7   :  { %19436 = vst [vmem:[#allocation94_spill] sm:$0xff] %v17560_v54  ;;  %19437 = vst [vmem:[#allocation96_spill] sm:$0xff] %v17562_v20  ;;  %13416 = vmatprep.subr.bf16.mxu0 %v19432_v1 }
 0x8a8   :  { %19438 = vst [vmem:[#allocation97_spill] sm:$0xff] %v17564_v8  ;;  %v17568_v10 = vpack.c.bf16 %v5836_v44, %v5829_v35  ;;  %v5717_v60 = vsub.f32 %v4294_v24, %v17575_v14  ;;  %v14539_v44 = vld [vmem:[#allocation8 + $0x8] sm:$0xff]  ;;  %v14540_v24 = vld [vmem:[#allocation8] sm:$0xff] }
 0x8aa   :  { %v5718_v61 = vand.u32 4294901760, %v5717_v60 }
 0x8ac   :  { %v5719_v19 = vsub.f32 %v5717_v60, %v5718_v61 }
 0x8ae   :  { %13418 = vmatpush3.bf16.xpose.msra.mxu0 %v17484_v32  ;;  %v5720_v5 = vand.u32 4294901760, %v5719_v19  ;;  %v14542_v19 = vld [vmem:[#allocation8 + $0x10] sm:$0xff] }
 0x8af   :  { %13419 = vmatprep.subr.bf16.mxu0 %v19432_v1 }
 0x8b6   :  { %13421 = vmatpush3.bf16.xpose.msra.mxu0 %v17499_v25 }
 0x8b7   :  { %13422 = vmatprep.subr.bf16.mxu0 %v19432_v1 }
 0x8be   :  { %13424 = vmatpush3.bf16.xpose.msra.mxu0 %v17512_v48 }
 0x8bf   :  { %13425 = vmatprep.subr.bf16.mxu0 %v19432_v1 }
 0x8c5   :  { %11832 = vmatmul.mubr.f32.vlgmr.msra.gmra.mrb[162].mxu0 %v5720_v5 }
 0x8c6   :  { %13427 = vmatpush3.bf16.xpose.msra.mxu0 %v17417_v7  ;;  %11866 = vmatprep.mubr.msk.f32.mxu0 %vm14729_vm0, %v19439_v53 }
 0x8c7   :  { %13428 = vmatprep.subr.bf16.mxu0 %v19432_v1 }
 0x8ce   :  { %13430 = vmatpush3.bf16.xpose.msra.mxu0 %v17454_v63 }
 0x8cf   :  { %13431 = vmatprep.subr.bf16.mxu0 %v19432_v1 }
 0x8d6   :  { %13433 = vmatpush3.bf16.xpose.msra.mxu0 %v17463_v52 }
 0x8d7   :  { %13434 = vmatprep.subr.bf16.mxu0 %v19432_v1 }
 0x8de   :  { %13436 = vmatpush3.bf16.xpose.msra.mxu0 %v17496_v37 }
 0x8df   :  { %13437 = vmatprep.subr.bf16.mxu0 %v19432_v1 }
 0x8e6   :  { %13439 = vmatpush3.bf16.xpose.msra.mxu0 %v17501_v57 }
 0x8e7   :  { %13440 = vmatprep.subr.bf16.mxu0 %v19432_v1 }
 0x8ee   :  { %13442 = vmatpush3.bf16.xpose.msra.mxu0 %v17515_v22 }
 0x8ef   :  { %13443 = vmatprep.subr.bf16.mxu0 %v19432_v1 }
 0x8f6   :  { %13445 = vmatpush3.bf16.xpose.msra.mxu0 %v17546_v30 }
 0x8f7   :  { %13446 = vmatprep.subr.bf16.mxu0 %v19432_v1 }
 0x8fe   :  { %13448 = vmatpush3.bf16.xpose.msra.mxu0 %v17568_v10 }
 0x8ff   :  { %13449 = vmatprep.subr.bf16.mxu0 %v19432_v1 }
 0x905   :  { %11867 = vmatmul.mubr.f32.vlgmr.msra.gmra.mrb[162].mxu0 %v17575_v14 }
 0x906   :  { %13451 = vmatpush3.bf16.xpose.msra.mxu0 %v17379_v28  ;;  %11901 = vmatprep.mubr.msk.f32.mxu0 %vm14729_vm0, %v19439_v53 }
 0x907   :  { %13452 = vmatprep.subr.bf16.mxu0 %v19432_v1 }
 0x90e   :  { %13454 = vmatpush3.bf16.xpose.msra.mxu0 %v17408_v13 }
 0x90f   :  { %13455 = vmatprep.subr.bf16.mxu0 %v19432_v1 }
 0x910   :  { %v5606_v62 = vpop.xlane.xlu1 %5605 }
 0x911   :  { %v5604_v11 = vpop.xlane.xlu0 %5603 }
 0x914   :  { %v5610_v29 = vpop.xlane.xlu1 %5609 }
 0x915   :  { %v5608_v36 = vpop.xlane.xlu0 %5607 }
 0x916   :  { %13457 = vmatpush3.bf16.xpose.msra.mxu0 %v17433_v49 }
 0x917   :  { %13458 = vmatprep.subr.bf16.mxu0 %v19432_v1 }
 0x918   :  { %v5614_v43 = vpop.xlane.xlu1 %5613 }
 0x919   :  { %v5612_v34 = vpop.xlane.xlu0 %5611 }
 0x91c   :  { %v5618_v42 = vpop.xlane.xlu1 %5617 }
 0x91d   :  { %v5616_v33 = vpop.xlane.xlu0 %5615 }
 0x91e   :  { %13460 = vmatpush3.bf16.xpose.msra.mxu0 %v17479_v6 }
 0x91f   :  { %13461 = vmatprep.subr.bf16.mxu0 %v19432_v1 }
 0x920   :  { %v5622_v46 = vpop.xlane.xlu1 %5621 }
 0x921   :  { %v5620_v21 = vpop.xlane.xlu0 %5619 }
 0x924   :  { %v5626_v12 = vpop.xlane.xlu1 %5625 }
 0x926   :  { %13463 = vmatpush3.bf16.xpose.msra.mxu0 %v17510_v41 }
 0x927   :  { %13464 = vmatprep.subr.bf16.mxu0 %v19432_v1 }
 0x92e   :  { %13466 = vmatpush3.bf16.xpose.msra.mxu0 %v17519_v47 }
 0x92f   :  { %13467 = vmatprep.subr.bf16.mxu0 %v19432_v1 }
 0x936   :  { %13469 = vmatpush3.bf16.xpose.msra.mxu0 %v17522_v58 }
 0x937   :  { %13470 = vmatprep.subr.bf16.mxu0 %v19432_v1 }
 0x93e   :  { %13472 = vmatpush3.bf16.xpose.msra.mxu0 %v17524_v15 }
 0x93f   :  { %13473 = vmatprep.subr.bf16.mxu0 %v19432_v1 }
 0x945   :  { %11902 = vmatmul.mubr.f32.vlgmr.msra.gmra.mrb[162].mxu0 %v5717_v60  ;;  %v14541_v60 = vld [vmem:[#allocation8 + $0x18] sm:$0xff] }
 0x946   :  { %13475 = vmatpush3.bf16.xpose.msra.mxu0 %v17367_v23  ;;  %11936 = vmatprep.mubr.msk.f32.mxu0 %vm14729_vm0, %v19439_v53 }
 0x947   :  { %13476 = vmatprep.subr.bf16.mxu0 %v19432_v1 }
 0x94e   :  { %13478 = vmatpush3.bf16.xpose.msra.mxu0 %v17387_v27 }
 0x94f   :  { %13479 = vmatprep.subr.bf16.mxu0 %v19432_v1 }
 0x956   :  { %13481 = vmatpush3.bf16.xpose.msra.mxu0 %v17413_v55 }
 0x957   :  { %13482 = vmatprep.subr.bf16.mxu0 %v19432_v1 }
 0x95e   :  { %13484 = vmatpush3.bf16.xpose.msra.mxu0 %v17438_v26 }
 0x95f   :  { %13485 = vmatprep.subr.bf16.mxu0 %v19432_v1 }
 0x966   :  { %13487 = vmatpush3.bf16.xpose.msra.mxu0 %v17459_v59 }
 0x967   :  { %13488 = vmatprep.subr.bf16.mxu0 %v19432_v1 }
 0x96e   :  { %13490 = vmatpush3.bf16.xpose.msra.mxu0 %v17484_v32 }
 0x96f   :  { %13491 = vmatprep.subr.bf16.mxu0 %v19432_v1 }
 0x976   :  { %13493 = vmatpush3.bf16.xpose.msra.mxu0 %v17499_v25 }
 0x977   :  { %13494 = vmatprep.subr.bf16.mxu0 %v19432_v1 }
 0x97e   :  { %13496 = vmatpush3.bf16.xpose.msra.mxu0 %v17512_v48 }
 0x97f   :  { %13497 = vmatprep.subr.bf16.mxu0 %v19432_v1 }
 0x985   :  { %11937 = vmatmul.mubr.f32.vlgmr.msra.gmra.mrb[162].mxu0 %v5718_v61 }
 0x986   :  { %13499 = vmatpush3.bf16.xpose.msra.mxu0 %v17531_v38  ;;  %11971 = vmatprep.mubr.msk.f32.mxu0 %vm14729_vm0, %v19439_v53 }
 0x987   :  { %13500 = vmatprep.subr.bf16.mxu0 %v19432_v1 }
 0x98e   :  { %13502 = vmatpush3.bf16.xpose.msra.mxu0 %v17537_v4 }
 0x98f   :  { %13503 = vmatprep.subr.bf16.mxu0 %v19432_v1 }
 0x996   :  { %13505 = vmatpush3.bf16.xpose.msra.mxu0 %v17543_v40 }
 0x997   :  { %13506 = vmatprep.subr.bf16.mxu0 %v19432_v1 }
 0x99e   :  { %13508 = vmatpush3.bf16.xpose.msra.mxu0 %v17552_v39 }
 0x99f   :  { %13509 = vmatprep.subr.bf16.mxu0 %v19432_v1 }
 0x9a6   :  { %13511 = vmatpush3.bf16.xpose.msra.mxu0 %v17558_v50 }
 0x9a7   :  { %13512 = vmatprep.subr.bf16.mxu0 %v19432_v1 }
 0x9ae   :  { %13514 = vmatpush3.bf16.xpose.msra.mxu0 %v17560_v54 }
 0x9af   :  { %13515 = vmatprep.subr.bf16.mxu0 %v19432_v1 }
 0x9b6   :  { %13517 = vmatpush3.bf16.xpose.msra.mxu0 %v17562_v20 }
 0x9b7   :  { %13518 = vmatprep.subr.bf16.mxu0 %v19432_v1 }
 0x9be   :  { %13520 = vmatpush3.bf16.xpose.msra.mxu0 %v17564_v8 }
 0x9bf   :  { %13521 = vmatprep.subr.bf16.mxu0 %v19432_v1 }
 0x9c5   :  { %11972 = vmatmul.mubr.f32.vlgmr.msra.gmra.mrb[162].mxu0 %v17575_v14 }
 0x9c6   :  { %13523 = vmatpush3.bf16.xpose.msra.mxu0 %v17367_v23  ;;  %12006 = vmatprep.mubr.msk.f32.mxu0 %vm14729_vm0, %v19439_v53  ;;  %v14543_v53 = vld [vmem:[#allocation8 + $0x28] sm:$0xff] }
 0x9c7   :  { %13524 = vmatprep.subr.bf16.mxu0 %v19432_v1 }
 0x9ce   :  { %13526 = vmatpush3.bf16.xpose.msra.mxu0 %v17387_v27 }
 0x9cf   :  { %13527 = vmatprep.subr.bf16.mxu0 %v19432_v1 }
 0x9d6   :  { %13529 = vmatpush3.bf16.xpose.msra.mxu0 %v17413_v55 }
 0x9d7   :  { %13530 = vmatprep.subr.bf16.mxu0 %v19432_v1 }
 0x9de   :  { %13532 = vmatpush3.bf16.xpose.msra.mxu0 %v17438_v26 }
 0x9df   :  { %13533 = vmatprep.subr.bf16.mxu0 %v19432_v1 }
 0x9e6   :  { %13535 = vmatpush3.bf16.xpose.msra.mxu0 %v17459_v59 }
 0x9e7   :  { %13536 = vmatprep.subr.bf16.mxu0 %v19432_v1 }
 0x9ee   :  { %13538 = vmatpush3.bf16.xpose.msra.mxu0 %v17484_v32 }
 0x9ef   :  { %13539 = vmatprep.subr.bf16.mxu0 %v19432_v1 }
 0x9f6   :  { %13541 = vmatpush3.bf16.xpose.msra.mxu0 %v17499_v25 }
 0x9f7   :  { %13542 = vmatprep.subr.bf16.mxu0 %v19432_v1 }
 0x9fe   :  { %13544 = vmatpush3.bf16.xpose.msra.mxu0 %v17512_v48 }
 0xa05   :  { %12007 = vmatmul.mubr.f32.vlgmr.msra.gmra.mrb[162].mxu0 %v17575_v14 }
 0xad8   :  { %v6272_v56 = vpop.f32.mrb[162].mxu0 }
 0xad9   :  { %v17676_v51 = vrot.slane %v6272_v56, %v19441_v31  ;;  %v12008_v2 = vpop.f32.mrb[163].mxu0 }
 0xadb   :  { %v6281_v1 = vadd.f32 %v17676_v51, %v5606_v62  ;;  %v6280_v3 = vadd.f32 %v17676_v51, %v5604_v11  ;;  %v6283_v16 = vadd.f32 %v17676_v51, %v5610_v29  ;;  %v6282_v17 = vadd.f32 %v17676_v51, %v5608_v36  ;;  %v14544_v11 = vld [vmem:[#allocation8 + $0x20] sm:$0xff] }
 0xadc   :  { %v6285_v18 = vadd.f32 %v17676_v51, %v5614_v43  ;;  %v6284_v9 = vadd.f32 %v17676_v51, %v5612_v34  ;;  %v6287_v45 = vadd.f32 %v17676_v51, %v5618_v42  ;;  %v6286_v0 = vadd.f32 %v17676_v51, %v5616_v33  ;;  %v14545_v33 = vld [vmem:[#allocation8 + $0x38] sm:$0xff] }
 0xadd   :  { %v6297_v35 = vmul.f32 %v14539_v44, %v6281_v1  ;;  %v6296_v14 = vmul.f32 %v14540_v24, %v6280_v3  ;;  %v6299_v61 = vmul.f32 %v14541_v60, %v6283_v16  ;;  %v6298_v5 = vmul.f32 %v14542_v19, %v6282_v17  ;;  %v14546_v1 = vld [vmem:[#allocation8 + $0x30] sm:$0xff]  ;;  %v5624_v3 = vpop.xlane.xlu0 %5623 }
 0xade   :  { %v6301_v62 = vmul.f32 %v14543_v53, %v6285_v18  ;;  %v6300_v29 = vmul.f32 %v14544_v11, %v6284_v9  ;;  %v6303_v2 = vmul.f32 %v14545_v33, %v6287_v45  ;;  %v6302_v44 = vmul.f32 %v14546_v1, %v6286_v0 }
 0xadf   :  { %v6313_v36 = vmul.f32 0.2, %v6297_v35  ;;  %v6312_v43 = vmul.f32 0.2, %v6296_v14  ;;  %v6315_v56 = vmul.f32 0.2, %v6299_v61  ;;  %v6289_v17 = vadd.f32 %v17676_v51, %v5622_v46 }
 0xae0   :  { %v6314_v34 = vmul.f32 0.2, %v6298_v5  ;;  %v6317_v16 = vmul.f32 0.2, %v6301_v62  ;;  %v6316_v60 = vmul.f32 0.2, %v6300_v29  ;;  %v6291_v33 = vadd.f32 %v17676_v51, %v5626_v12 }
 0xae1   :  { %v6329_v42 = vmax.f32 %v6297_v35, %v6313_v36  ;;  %v6328_v31 = vmax.f32 %v6296_v14, %v6312_v43  ;;  %v6331_v24 = vmax.f32 %v6299_v61, %v6315_v56  ;;  %v6288_v14 = vadd.f32 %v17676_v51, %v5620_v21  ;;  %v14547_v43 = vld [vmem:[#allocation8 + $0x48] sm:$0xff]  ;;  %v14548_v21 = vld [vmem:[#allocation8 + $0x40] sm:$0xff]  ;;  %v5628_v18 = vpop.xlane.xlu0 %5627 }
 0xae2   :  { %v6330_v35 = vmax.f32 %v6298_v5, %v6314_v34  ;;  %v6319_v45 = vmul.f32 0.2, %v6303_v2  ;;  %v6318_v0 = vmul.f32 0.2, %v6302_v44  ;;  %v6333_v11 = vmax.f32 %v6301_v62, %v6317_v16 }
 0xae3   :  { %v17689_v9 = vsel %vm173_vm2, %v6329_v42, -9e+15  ;;  %v17693_v53 = vsel %vm172_vm1, %v6328_v31, -9e+15  ;;  %v17700_v46 = vsel %vm175_vm4, %v6331_v24, -9e+15  ;;  %v6332_v36 = vmax.f32 %v6300_v29, %v6316_v60  ;;  %v5630_v42 = vpop.xlane.xlu1 %5629 }
 0xae4   :  { %6394 = vmax.xlane.f32.xlu1 %v17689_v9  ;;  %6392 = vmax.xlane.f32.xlu0 %v17693_v53  ;;  %v6305_v56 = vmul.f32 %v14547_v43, %v6289_v17  ;;  %v17704_v5 = vsel %vm174_vm3, %v6330_v35, -9e+15  ;;  %v6304_v34 = vmul.f32 %v14548_v21, %v6288_v14  ;;  %v6290_v1 = vadd.f32 %v17676_v51, %v5624_v3  ;;  %v14549_v14 = vld [vmem:[#allocation8 + $0x58] sm:$0xff]  ;;  %v14550_v43 = vld [vmem:[#allocation8 + $0x50] sm:$0xff]  ;;  %v14551_v21 = vld [vmem:[#allocation8 + $0x68] sm:$0xff] }
 0xae5   :  { %v6335_v62 = vmax.f32 %v6303_v2, %v6319_v45  ;;  %v6334_v29 = vmax.f32 %v6302_v44, %v6318_v0  ;;  %v17712_v16 = vsel %vm177_vm5, %v6333_v11, -9e+15  ;;  %v6293_v17 = vadd.f32 %v17676_v51, %v5630_v42  ;;  %v14554_v0 = vld [vmem:[#allocation8 + $0x70] sm:$0xff] }
 0xae6   :  { %v6321_v60 = vmul.f32 0.2, %v6305_v56  ;;  %v6292_v19 = vadd.f32 %v17676_v51, %v5628_v18  ;;  %v17718_v12 = vsel %vm176_vm6, %v6332_v36, -9e+15  ;;  %v6320_v3 = vmul.f32 0.2, %v6304_v34  ;;  %v5632_v36 = vpop.xlane.xlu0 %5631 }
 0xae7   :  { %v6307_v61 = vmul.f32 %v14549_v14, %v6291_v33  ;;  %v6306_v31 = vmul.f32 %v14550_v43, %v6290_v1  ;;  %v5634_v2 = vpop.xlane.xlu1 %5633  ;;  %v17724_v45 = vsel %vm179_vm7, %v6335_v62, -9e+15  ;;  %v17728_v11 = vsel %vm178_vm8, %v6334_v29, -9e+15  ;;  %v14552_v33 = vld [vmem:[#allocation8 + $0x60] sm:$0xff]  ;;  %v19450_v62 = vld [vmem:[#allocation27_spill] sm:$0xff] }
 0xae8   :  { %6398 = vmax.xlane.f32.xlu1 %v17700_v46  ;;  %6396 = vmax.xlane.f32.xlu0 %v17704_v5  ;;  %v6337_v42 = vmax.f32 %v6305_v56, %v6321_v60  ;;  %v6309_v18 = vmul.f32 %v14551_v21, %v6293_v17  ;;  %v6308_v24 = vmul.f32 %v14552_v33, %v6292_v19  ;;  %vm19451_vm0 = vcmp.gt.f32.partialorder %v19450_v62, 0.0  ;;  %v14553_v17 = vld [vmem:[#allocation8 + $0x78] sm:$0xff]  ;;  %v19452_v19 = vld [vmem:[#allocation28_spill] sm:$0xff]  ;;  %v19456_v62 = vld [vmem:[#allocation57_spill] sm:$0xff] }
 0xae9   :  { %v6295_v1 = vadd.f32 %v17676_v51, %v5634_v2  ;;  %v6336_v35 = vmax.f32 %v6304_v34, %v6320_v3  ;;  %v6323_v14 = vmul.f32 0.2, %v6307_v61  ;;  %v6322_v43 = vmul.f32 0.2, %v6306_v31 }
 0xaea   :  { %v6294_v8 = vadd.f32 %v17676_v51, %v5632_v36  ;;  %v17736_v29 = vsel %vm19451_vm0, %v6337_v42, -9e+15  ;;  %v6325_v56 = vmul.f32 0.2, %v6309_v18  ;;  %v6324_v60 = vmul.f32 0.2, %v6308_v24 }
 0xaeb   :  { %v6311_v44 = vmul.f32 %v14553_v17, %v6295_v1  ;;  %vm19453_vm1 = vcmp.gt.f32.partialorder %v19452_v19, 0.0  ;;  %v6339_v34 = vmax.f32 %v6307_v61, %v6323_v14  ;;  %v6338_v3 = vmax.f32 %v6306_v31, %v6322_v43  ;;  %v19454_v42 = vld [vmem:[#allocation55_spill] sm:$0xff]  ;;  %v19460_v31 = vld [vmem:[#allocation30_spill] sm:$0xff] }
 0xaec   :  { %6402 = vmax.xlane.f32.xlu1 %v17712_v16  ;;  %6400 = vmax.xlane.f32.xlu0 %v17718_v12  ;;  %v17740_v2 = vsel %vm19453_vm1, %v6336_v35, -9e+15  ;;  %v6310_v51 = vmul.f32 %v14554_v0, %v6294_v8  ;;  %v6341_v36 = vmax.f32 %v6309_v18, %v6325_v56  ;;  %vm19455_vm2 = vcmp.gt.f32.partialorder %v19454_v42, 0.0  ;;  %v19458_v8 = vld [vmem:[#allocation29_spill] sm:$0xff] }
 0xaed   :  { %v6327_v21 = vmul.f32 0.2, %v6311_v44  ;;  %v17746_v33 = vsel %vm19455_vm2, %v6339_v34, -9e+15  ;;  %vm19457_vm3 = vcmp.gt.f32.partialorder %v19456_v62, 0.0  ;;  %v6340_v35 = vmax.f32 %v6308_v24, %v6324_v60  ;;  %v19462_v24 = vld [vmem:[#allocation58_spill] sm:$0xff] }
 0xaee   :  { %v17750_v1 = vsel %vm19457_vm3, %v6338_v3, -9e+15  ;;  %v6326_v17 = vmul.f32 0.2, %v6310_v51  ;;  %vm19459_vm4 = vcmp.gt.f32.partialorder %v19458_v8, 0.0  ;;  %vm19461_vm5 = vcmp.gt.f32.partialorder %v19460_v31, 0.0 }
 0xaef   :  { %v17756_v61 = vsel %vm19459_vm4, %v6341_v36, -9e+15  ;;  %v17760_v18 = vsel %vm19461_vm5, %v6340_v35, -9e+15  ;;  %v6343_v14 = vmax.f32 %v6311_v44, %v6327_v21  ;;  %vm19463_vm6 = vcmp.gt.f32.partialorder %v19462_v24, 0.0  ;;  %v19464_v60 = vld [vmem:[#allocation62_spill] sm:$0xff] }
 0xaf0   :  { %6406 = vmax.xlane.f32.xlu1 %v17724_v45  ;;  %6404 = vmax.xlane.f32.xlu0 %v17728_v11  ;;  %v6342_v43 = vmax.f32 %v6310_v51, %v6326_v17  ;;  %vm19465_vm7 = vcmp.gt.f32.partialorder %v19464_v60, 0.0 }
 0xaf1   :  { %v17766_v56 = vsel %vm19463_vm6, %v6343_v14, -9e+15 }
 0xaf2   :  { %v17770_v19 = vsel %vm19465_vm7, %v6342_v43, -9e+15 }
 0xaf4   :  { %6410 = vmax.xlane.f32.xlu1 %v17736_v29  ;;  %6408 = vmax.xlane.f32.xlu0 %v17740_v2 }
 0xaf8   :  { %6414 = vmax.xlane.f32.xlu1 %v17746_v33  ;;  %6412 = vmax.xlane.f32.xlu0 %v17750_v1 }
 0xafc   :  { %6418 = vmax.xlane.f32.xlu1 %v17756_v61  ;;  %6416 = vmax.xlane.f32.xlu0 %v17760_v18 }
 0xb00   :  { %6422 = vmax.xlane.f32.xlu1 %v17766_v56  ;;  %6420 = vmax.xlane.f32.xlu0 %v17770_v19 }
 0xb71   :  { %v6395_v34 = vpop.xlane.xlu1 %6394  ;;  %v6393_v3 = vpop.xlane.xlu0 %6392 }
 0xb72   :  { %v6425_v44 = vsub.f32 %v17689_v9, %v6395_v34  ;;  %v6424_v0 = vsub.f32 %v17693_v53, %v6393_v3 }
 0xb74   :  { %v6442_v51 = vmul.f32 1.442695, %v6425_v44  ;;  %v6440_v36 = vmul.f32 1.442695, %v6424_v0 }
 0xb75   :  { %v6399_v21 = vpop.xlane.xlu1 %6398  ;;  %v6397_v42 = vpop.xlane.xlu0 %6396 }
 0xb76   :  { %14379 = vpow2.f32 %v6442_v51  ;;  %v6427_v62 = vsub.f32 %v17700_v46, %v6399_v21  ;;  %v6426_v35 = vsub.f32 %v17704_v5, %v6397_v42 }
 0xb77   :  { %14381 = vpow2.f32 %v6440_v36 }
 0xb78   :  { %v6446_v17 = vmul.f32 1.442695, %v6427_v62  ;;  %v6444_v8 = vmul.f32 1.442695, %v6426_v35 }
 0xb79   :  { %v6403_v31 = vpop.xlane.xlu1 %6402  ;;  %v6401_v14 = vpop.xlane.xlu0 %6400 }
 0xb7a   :  { %14383 = vpow2.f32 %v6446_v17  ;;  %v6429_v43 = vsub.f32 %v17712_v16, %v6403_v31  ;;  %v6428_v9 = vsub.f32 %v17718_v12, %v6401_v14 }
 0xb7b   :  { %14385 = vpow2.f32 %v6444_v8 }
 0xb7c   :  { %v6450_v53 = vmul.f32 1.442695, %v6429_v43  ;;  %v6448_v24 = vmul.f32 1.442695, %v6428_v9 }
 0xb7d   :  { %v6407_v60 = vpop.xlane.xlu1 %6406  ;;  %v6405_v34 = vpop.xlane.xlu0 %6404 }
 0xb7e   :  { %14387 = vpow2.f32 %v6450_v53  ;;  %v6431_v46 = vsub.f32 %v17724_v45, %v6407_v60  ;;  %v6430_v5 = vsub.f32 %v17728_v11, %v6405_v34 }
 0xb7f   :  { %14389 = vpow2.f32 %v6448_v24 }
 0xb80   :  { %v14380_v3 = vpop.eup %14379  ;;  %v6454_v44 = vmul.f32 1.442695, %v6431_v46  ;;  %v6452_v0 = vmul.f32 1.442695, %v6430_v5 }
 0xb81   :  { %v14382_v51 = vpop.eup %14381  ;;  %6474 = vadd.xlane.f32.xlu1 %v14380_v3  ;;  %v6411_v36 = vpop.xlane.xlu1 %6410  ;;  %v17782_v21 = vand.u32 4294901760, %v14380_v3 }
 0xb82   :  { %v6409_v16 = vpop.xlane.xlu0 %6408  ;;  %14391 = vpow2.f32 %v6454_v44  ;;  %v6433_v12 = vsub.f32 %v17736_v29, %v6411_v36  ;;  %6472 = vadd.xlane.f32.xlu0 %v14382_v51  ;;  %v17786_v62 = vand.u32 4294901760, %v14382_v51 }
 0xb83   :  { %v6432_v42 = vsub.f32 %v17740_v2, %v6409_v16  ;;  %14393 = vpow2.f32 %v6452_v0  ;;  %v17789_v45 = vsub.f32 %v14380_v3, %v17782_v21 }
 0xb84   :  { %v14384_v11 = vpop.eup %14383  ;;  %v6458_v35 = vmul.f32 1.442695, %v6433_v12  ;;  %v17792_v8 = vsub.f32 %v14382_v51, %v17786_v62 }
 0xb85   :  { %v6456_v17 = vmul.f32 1.442695, %v6432_v42  ;;  %v14386_v31 = vpop.eup %14385  ;;  %6478 = vadd.xlane.f32.xlu1 %v14384_v11  ;;  %v6415_v14 = vpop.xlane.xlu1 %6414  ;;  %v19029_v29 = vand.u32 4294901760, %v17789_v45  ;;  %v17795_v9 = vand.u32 4294901760, %v14384_v11 }
 0xb86   :  { %v6413_v43 = vpop.xlane.xlu0 %6412  ;;  %14395 = vpow2.f32 %v6458_v35  ;;  %v6435_v2 = vsub.f32 %v17746_v33, %v6415_v14  ;;  %6476 = vadd.xlane.f32.xlu0 %v14386_v31  ;;  %v19030_v24 = vand.u32 4294901760, %v17792_v8  ;;  %v17803_v34 = vand.u32 4294901760, %v14386_v31 }
 0xb87   :  { %v6434_v53 = vsub.f32 %v17750_v1, %v6413_v43  ;;  %14397 = vpow2.f32 %v6456_v17  ;;  %v6614_v60 = vsub.f32 %v17789_v45, %v19029_v29  ;;  %v17806_v46 = vsub.f32 %v14384_v11, %v17795_v9 }
 0xb88   :  { %v14388_v5 = vpop.eup %14387  ;;  %v6462_v3 = vmul.f32 1.442695, %v6435_v2  ;;  %v6604_v33 = vsub.f32 %v17792_v8, %v19030_v24  ;;  %v17812_v16 = vsub.f32 %v14386_v31, %v17803_v34 }
 0xb89   :  { %v6460_v44 = vmul.f32 1.442695, %v6434_v53  ;;  %v14390_v1 = vpop.eup %14389  ;;  %6482 = vadd.xlane.f32.xlu1 %v14388_v5  ;;  %v6419_v0 = vpop.xlane.xlu1 %6418  ;;  %v6615_v36 = vand.u32 4294901760, %v6614_v60  ;;  %v19023_v12 = vand.u32 4294901760, %v17806_v46  ;;  %v17815_v42 = vand.u32 4294901760, %v14388_v5 }
 0xb8a   :  { %v6417_v51 = vpop.xlane.xlu0 %6416  ;;  %14399 = vpow2.f32 %v6462_v3  ;;  %v6437_v11 = vsub.f32 %v17756_v61, %v6419_v0  ;;  %6480 = vadd.xlane.f32.xlu0 %v14390_v1  ;;  %v6605_v17 = vand.u32 4294901760, %v6604_v33  ;;  %v19024_v14 = vand.u32 4294901760, %v17812_v16 }
 0xb8b   :  { %v6436_v35 = vsub.f32 %v17760_v18, %v6417_v51  ;;  %14401 = vpow2.f32 %v6460_v44  ;;  %v6634_v43 = vsub.f32 %v17806_v46, %v19023_v12  ;;  %v17823_v31 = vand.u32 4294901760, %v14390_v1 }
 0xb8c   :  { %v14392_v2 = vpop.eup %14391  ;;  %v6466_v53 = vmul.f32 1.442695, %v6437_v11  ;;  %12041 = vmatprep.mubr.f32.mxu1 %v6605_v17  ;;  %v17826_v3 = vsub.f32 %v14388_v5, %v17815_v42  ;;  %v6624_v33 = vsub.f32 %v17812_v16, %v19024_v14 }
 0xb8d   :  { %v6464_v60 = vmul.f32 1.442695, %v6436_v35  ;;  %v14394_v61 = vpop.eup %14393  ;;  %12042 = vmatmul.mubr.f32.vlgmr.msra.gmra.mrb[64].mxu1 %v6615_v36  ;;  %6486 = vadd.xlane.f32.xlu1 %v14392_v2  ;;  %v6423_v18 = vpop.xlane.xlu1 %6422  ;;  %v6635_v0 = vand.u32 4294901760, %v6634_v43  ;;  %v17832_v51 = vsub.f32 %v14390_v1, %v17823_v31  ;;  %v17834_v12 = vand.u32 4294901760, %v14392_v2 }
 0xb8e   :  { %v6421_v44 = vpop.xlane.xlu0 %6420  ;;  %14403 = vpow2.f32 %v6466_v53  ;;  %13580 = vmatpush3.bf16.msra.mxu1 %v17417_v7  ;;  %v6439_v5 = vsub.f32 %v17766_v56, %v6423_v18  ;;  %6484 = vadd.xlane.f32.xlu0 %v14394_v61  ;;  %v19025_v11 = vand.u32 4294901760, %v17826_v3  ;;  %v6625_v35 = vand.u32 4294901760, %v6624_v33 }
 0xb8f   :  { %v6438_v36 = vsub.f32 %v17770_v19, %v6421_v44  ;;  %14405 = vpow2.f32 %v6464_v60  ;;  %13582 = vmatprep.subr.bf16.mxu1 %v17454_v63  ;;  %v19026_v17 = vand.u32 4294901760, %v17832_v51  ;;  %v17842_v1 = vand.u32 4294901760, %v14394_v61 }
 0xb90   :  { %v14396_v43 = vpop.eup %14395  ;;  %v6470_v14 = vmul.f32 1.442695, %v6439_v5  ;;  %v6654_v7 = vsub.f32 %v17826_v3, %v19025_v11  ;;  %v17848_v56 = vsub.f32 %v14392_v2, %v17834_v12  ;;  %12044 = vmatprep.mubr.f32.mxu1 %v6625_v35 }
 0xb91   :  { %v6468_v53 = vmul.f32 1.442695, %v6438_v36  ;;  %v14398_v19 = vpop.eup %14397  ;;  %6490 = vadd.xlane.f32.xlu1 %v14396_v43  ;;  %v6644_v60 = vsub.f32 %v17832_v51, %v19026_v17  ;;  %v17854_v18 = vsub.f32 %v14394_v61, %v17842_v1  ;;  %v17856_v44 = vand.u32 4294901760, %v14396_v43  ;;  %12045 = vmatmul.mubr.f32.gmra.mrb[66].mxu1 %v6635_v0 }
 0xb92   :  { %14407 = vpow2.f32 %v6470_v14  ;;  %6488 = vadd.xlane.f32.xlu0 %v14398_v19  ;;  %v6655_v33 = vand.u32 4294901760, %v6654_v7  ;;  %v19027_v5 = vand.u32 4294901760, %v17848_v56  ;;  %v17859_v2 = vand.u32 4294901760, %v14398_v19  ;;  %13584 = vmatpush3.bf16.msra.mxu1 %v17454_v63 }
 0xb93   :  { %14409 = vpow2.f32 %v6468_v53  ;;  %v6645_v36 = vand.u32 4294901760, %v6644_v60  ;;  %v19028_v35 = vand.u32 4294901760, %v17854_v18  ;;  %v17864_v11 = vsub.f32 %v14396_v43, %v17856_v44  ;;  %13586 = vmatprep.subr.bf16.mxu1 %v17463_v52 }
 0xb94   :  { %v14400_v61 = vpop.eup %14399  ;;  %v6674_v14 = vsub.f32 %v17848_v56, %v19027_v5  ;;  %v17871_v0 = vsub.f32 %v14398_v19, %v17859_v2 }
 0xb95   :  { %v14402_v7 = vpop.eup %14401  ;;  %12047 = vmatprep.mubr.f32.mxu1 %v6645_v36  ;;  %6494 = vadd.xlane.f32.xlu1 %v14400_v61  ;;  %v6664_v63 = vsub.f32 %v17854_v18, %v19028_v35  ;;  %v19031_v43 = vand.u32 4294901760, %v17864_v11  ;;  %v17877_v53 = vand.u32 4294901760, %v14400_v61 }
 0xb96   :  { %12048 = vmatmul.mubr.f32.gmra.mrb[68].mxu1 %v6655_v33  ;;  %6492 = vadd.xlane.f32.xlu0 %v14402_v7  ;;  %v6675_v60 = vand.u32 4294901760, %v6674_v14  ;;  %v19036_v17 = vand.u32 4294901760, %v17871_v0  ;;  %v17880_v5 = vand.u32 4294901760, %v14402_v7 }
 0xb97   :  { %13588 = vmatpush3.bf16.msra.mxu1 %v17463_v52  ;;  %v6665_v19 = vand.u32 4294901760, %v6664_v63  ;;  %v6694_v36 = vsub.f32 %v17864_v11, %v19031_v43  ;;  %v17887_v35 = vsub.f32 %v14400_v61, %v17877_v53 }
 0xb98   :  { %v14404_v29 = vpop.eup %14403  ;;  %13590 = vmatprep.subr.bf16.mxu1 %v17496_v37  ;;  %v6684_v33 = vsub.f32 %v17871_v0, %v19036_v17  ;;  %v17894_v14 = vsub.f32 %v14402_v7, %v17880_v5 }
 0xb99   :  { %v14406_v24 = vpop.eup %14405  ;;  %12050 = vmatprep.mubr.f32.mxu1 %v6665_v19  ;;  %6498 = vadd.xlane.f32.xlu1 %v14404_v29  ;;  %v19039_v52 = vand.u32 4294901760, %v17887_v35  ;;  %v17897_v63 = vand.u32 4294901760, %v14404_v29  ;;  %v6695_v43 = vand.u32 4294901760, %v6694_v36 }
 0xb9a   :  { %12051 = vmatmul.mubr.f32.gmra.mrb[70].mxu1 %v6675_v60  ;;  %6496 = vadd.xlane.f32.xlu0 %v14406_v24  ;;  %v6685_v61 = vand.u32 4294901760, %v6684_v33  ;;  %v19042_v20 = vand.u32 4294901760, %v17894_v14  ;;  %v17900_v54 = vand.u32 4294901760, %v14406_v24 }
 0xb9b   :  { %13592 = vmatpush3.bf16.msra.mxu1 %v17496_v37  ;;  %v6714_v7 = vsub.f32 %v17887_v35, %v19039_v52  ;;  %v17907_v19 = vsub.f32 %v14404_v29, %v17897_v63 }
 0xb9c   :  { %v14408_v17 = vpop.eup %14407  ;;  %13594 = vmatprep.subr.bf16.mxu1 %v17501_v57  ;;  %12053 = vmatprep.mubr.f32.mxu1 %v6685_v61  ;;  %v6704_v60 = vsub.f32 %v17894_v14, %v19042_v20  ;;  %v17914_v36 = vsub.f32 %v14406_v24, %v17900_v54 }
 0xb9d   :  { %v14410_v33 = vpop.eup %14409  ;;  %6502 = vadd.xlane.f32.xlu1 %v14408_v17  ;;  %v19045_v37 = vand.u32 4294901760, %v17907_v19  ;;  %v17917_v50 = vand.u32 4294901760, %v14408_v17  ;;  %v6715_v52 = vand.u32 4294901760, %v6714_v7 }
 0xb9e   :  { %12054 = vmatmul.mubr.f32.gmra.mrb[72].mxu1 %v6695_v43  ;;  %6500 = vadd.xlane.f32.xlu0 %v14410_v33  ;;  %v6705_v29 = vand.u32 4294901760, %v6704_v60  ;;  %v6723_v39 = vand.u32 4294901760, %v17914_v36  ;;  %v17920_v61 = vand.u32 4294901760, %v14410_v33 }
 0xb9f   :  { %13596 = vmatpush3.bf16.msra.mxu1 %v17501_v57  ;;  %v6734_v24 = vsub.f32 %v17907_v19, %v19045_v37  ;;  %v17927_v20 = vsub.f32 %v14408_v17, %v17917_v50 }
 0xba0   :  { %13598 = vmatprep.subr.bf16.mxu1 %v17515_v22  ;;  %12056 = vmatprep.mubr.f32.mxu1 %v6705_v29  ;;  %v6724_v43 = vsub.f32 %v17914_v36, %v6723_v39  ;;  %v17934_v7 = vsub.f32 %v14410_v33, %v17920_v61 }
 0xba1   :  { %v6753_v60 = vand.u32 4294901760, %v17927_v20  ;;  %v6735_v40 = vand.u32 4294901760, %v6734_v24 }
 0xba2   :  { %12057 = vmatmul.mubr.f32.gmra.mrb[74].mxu1 %v6715_v52  ;;  %v6725_v57 = vand.u32 4294901760, %v6724_v43  ;;  %v6743_v37 = vand.u32 4294901760, %v17934_v7 }
 0xba3   :  { %13600 = vmatpush3.bf16.msra.mxu1 %v17515_v22  ;;  %v6754_v17 = vsub.f32 %v17927_v20, %v6753_v60  ;;  %v19471_v22 = vld [vmem:[#allocation87_spill] sm:$0xff] }
 0xba4   :  { %13602 = vmatprep.subr.bf16.mxu1 %v17546_v30  ;;  %12059 = vmatprep.mubr.f32.mxu1 %v6725_v57  ;;  %v6744_v33 = vsub.f32 %v17934_v7, %v6743_v37 }
 0xba5   :  { %v6755_v52 = vand.u32 4294901760, %v6754_v17 }
 0xba6   :  { %12060 = vmatmul.mubr.f32.gmra.mrb[76].mxu1 %v6735_v40  ;;  %v6745_v29 = vand.u32 4294901760, %v6744_v33  ;;  %v19477_v40 = vld [vmem:[#allocation90_spill] sm:$0xff] }
 0xba7   :  { %13604 = vmatpush3.bf16.msra.mxu1 %v17546_v30  ;;  %v19478_v30 = vand.u32 4294901760, %v17864_v11 }
 0xba8   :  { %13606 = vmatprep.subr.bf16.mxu1 %v17568_v10  ;;  %12062 = vmatprep.mubr.f32.mxu1 %v6745_v29 }
 0xbaa   :  { %12063 = vmatmul.mubr.f32.gmra.mrb[78].mxu1 %v6755_v52 }
 0xbab   :  { %13608 = vmatpush3.bf16.msra.mxu1 %v17568_v10  ;;  %12097 = vmatprep.mubr.f32.mxu1 %v17786_v62  ;;  %v19479_v10 = vand.u32 4294901760, %v17894_v14 }
 0xbac   :  { %13610 = vmatprep.subr.bf16.mxu1 %v17379_v28 }
 0xbae   :  { %12098 = vmatmul.mubr.f32.vlgmr.msra.gmra.mrb[64].mxu1 %v17782_v21 }
 0xbaf   :  { %13612 = vmatpush3.bf16.msra.mxu1 %v17379_v28  ;;  %12100 = vmatprep.mubr.f32.mxu1 %v17803_v34  ;;  %v19466_v28 = vand.u32 4294901760, %v17792_v8 }
 0xbb0   :  { %13614 = vmatprep.subr.bf16.mxu1 %v17408_v13 }
 0xbb2   :  { %12101 = vmatmul.mubr.f32.gmra.mrb[66].mxu1 %v17795_v9 }
 0xbb3   :  { %13616 = vmatpush3.bf16.msra.mxu1 %v17408_v13  ;;  %12103 = vmatprep.mubr.f32.mxu1 %v17823_v31  ;;  %v19467_v13 = vand.u32 4294901760, %v17789_v45 }
 0xbb4   :  { %13618 = vmatprep.subr.bf16.mxu1 %v17433_v49 }
 0xbb6   :  { %12104 = vmatmul.mubr.f32.gmra.mrb[68].mxu1 %v17815_v42 }
 0xbb7   :  { %13620 = vmatpush3.bf16.msra.mxu1 %v17433_v49  ;;  %12106 = vmatprep.mubr.f32.mxu1 %v17842_v1  ;;  %v19468_v49 = vand.u32 4294901760, %v17812_v16 }
 0xbb8   :  { %13622 = vmatprep.subr.bf16.mxu1 %v17479_v6 }
 0xbba   :  { %12107 = vmatmul.mubr.f32.gmra.mrb[70].mxu1 %v17834_v12 }
 0xbbb   :  { %13624 = vmatpush3.bf16.msra.mxu1 %v17479_v6  ;;  %12109 = vmatprep.mubr.f32.mxu1 %v17859_v2  ;;  %v19469_v6 = vand.u32 4294901760, %v17806_v46 }
 0xbbc   :  { %13626 = vmatprep.subr.bf16.mxu1 %v17510_v41 }
 0xbbe   :  { %12110 = vmatmul.mubr.f32.gmra.mrb[72].mxu1 %v17856_v44 }
 0xbbf   :  { %13628 = vmatpush3.bf16.msra.mxu1 %v17510_v41  ;;  %12112 = vmatprep.mubr.f32.mxu1 %v17880_v5  ;;  %v19470_v41 = vand.u32 4294901760, %v17832_v51 }
 0xbc0   :  { %13630 = vmatprep.subr.bf16.mxu1 %v17519_v47 }
 0xbc2   :  { %12113 = vmatmul.mubr.f32.gmra.mrb[74].mxu1 %v17877_v53 }
 0xbc3   :  { %13632 = vmatpush3.bf16.msra.mxu1 %v17519_v47  ;;  %12115 = vmatprep.mubr.f32.mxu1 %v17900_v54  ;;  %v19472_v47 = vand.u32 4294901760, %v17826_v3 }
 0xbc4   :  { %13634 = vmatprep.subr.bf16.mxu1 %v17522_v58 }
 0xbc6   :  { %12116 = vmatmul.mubr.f32.gmra.mrb[76].mxu1 %v17897_v63 }
 0xbc7   :  { %13636 = vmatpush3.bf16.msra.mxu1 %v17522_v58  ;;  %12118 = vmatprep.mubr.f32.mxu1 %v17920_v61  ;;  %v19473_v58 = vand.u32 4294901760, %v17854_v18 }
 0xbc8   :  { %13638 = vmatprep.subr.bf16.mxu1 %v17524_v15 }
 0xbca   :  { %12119 = vmatmul.mubr.f32.gmra.mrb[78].mxu1 %v17917_v50 }
 0xbcb   :  { %13640 = vmatpush3.bf16.msra.mxu1 %v17524_v15  ;;  %12153 = vmatprep.mubr.f32.mxu1 %v17792_v8  ;;  %v19474_v15 = vld [vmem:[#allocation89_spill] sm:$0xff]  ;;  %v19481_v8 = vand.u32 4294901760, %v17887_v35 }
 0xbcc   :  { %13642 = vmatprep.subr.bf16.mxu1 %v17367_v23 }
 0xbce   :  { %12154 = vmatmul.mubr.f32.vlgmr.msra.gmra.mrb[64].mxu1 %v17789_v45  ;;  %v19480_v45 = vld [vmem:[#allocation94_spill] sm:$0xff] }
 0xbcf   :  { %13644 = vmatpush3.bf16.msra.mxu1 %v17367_v23  ;;  %12156 = vmatprep.mubr.f32.mxu1 %v17812_v16  ;;  %v19483_v16 = vand.u32 4294901760, %v17907_v19 }
 0xbd0   :  { %13646 = vmatprep.subr.bf16.mxu1 %v17387_v27 }
 0xbd2   :  { %12157 = vmatmul.mubr.f32.gmra.mrb[66].mxu1 %v17806_v46  ;;  %v19482_v46 = vld [vmem:[#allocation96_spill] sm:$0xff] }
 0xbd3   :  { %13648 = vmatpush3.bf16.msra.mxu1 %v17387_v27  ;;  %12159 = vmatprep.mubr.f32.mxu1 %v17832_v51 }
 0xbd4   :  { %13650 = vmatprep.subr.bf16.mxu1 %v17413_v55 }
 0xbd6   :  { %12160 = vmatmul.mubr.f32.gmra.mrb[68].mxu1 %v17826_v3  ;;  %v19484_v3 = vld [vmem:[#allocation97_spill] sm:$0xff] }
 0xbd7   :  { %13652 = vmatpush3.bf16.msra.mxu1 %v17413_v55  ;;  %12162 = vmatprep.mubr.f32.mxu1 %v17854_v18 }
 0xbd8   :  { %13654 = vmatprep.subr.bf16.mxu1 %v17438_v26 }
 0xbda   :  { %12163 = vmatmul.mubr.f32.gmra.mrb[70].mxu1 %v17848_v56 }
 0xbdb   :  { %13656 = vmatpush3.bf16.msra.mxu1 %v17438_v26  ;;  %12165 = vmatprep.mubr.f32.mxu1 %v17871_v0 }
 0xbdc   :  { %13658 = vmatprep.subr.bf16.mxu1 %v17459_v59 }
 0xbde   :  { %12166 = vmatmul.mubr.f32.gmra.mrb[72].mxu1 %v17864_v11 }
 0xbdf   :  { %13660 = vmatpush3.bf16.msra.mxu1 %v17459_v59  ;;  %12168 = vmatprep.mubr.f32.mxu1 %v17894_v14 }
 0xbe0   :  { %13662 = vmatprep.subr.bf16.mxu1 %v17484_v32 }
 0xbe2   :  { %12169 = vmatmul.mubr.f32.gmra.mrb[74].mxu1 %v17887_v35 }
 0xbe3   :  { %13664 = vmatpush3.bf16.msra.mxu1 %v17484_v32  ;;  %12171 = vmatprep.mubr.f32.mxu1 %v17914_v36 }
 0xbe4   :  { %13666 = vmatprep.subr.bf16.mxu1 %v17499_v25 }
 0xbe6   :  { %12172 = vmatmul.mubr.f32.gmra.mrb[76].mxu1 %v17907_v19 }
 0xbe7   :  { %13668 = vmatpush3.bf16.msra.mxu1 %v17499_v25  ;;  %12174 = vmatprep.mubr.f32.mxu1 %v17934_v7 }
 0xbe8   :  { %13670 = vmatprep.subr.bf16.mxu1 %v17512_v48 }
 0xbea   :  { %12175 = vmatmul.mubr.f32.gmra.mrb[78].mxu1 %v17927_v20 }
 0xbeb   :  { %13672 = vmatpush3.bf16.msra.mxu1 %v17512_v48  ;;  %12209 = vmatprep.mubr.f32.mxu1 %v19466_v28 }
 0xbec   :  { %13674 = vmatprep.subr.bf16.mxu1 %v17531_v38 }
 0xbee   :  { %12210 = vmatmul.mubr.f32.vlgmr.msra.gmra.mrb[64].mxu1 %v19467_v13 }
 0xbef   :  { %13676 = vmatpush3.bf16.msra.mxu1 %v17531_v38  ;;  %12212 = vmatprep.mubr.f32.mxu1 %v19468_v49  ;;  %v19475_v38 = vand.u32 4294901760, %v17848_v56 }
 0xbf0   :  { %13678 = vmatprep.subr.bf16.mxu1 %v17537_v4 }
 0xbf2   :  { %12213 = vmatmul.mubr.f32.gmra.mrb[66].mxu1 %v19469_v6 }
 0xbf3   :  { %13680 = vmatpush3.bf16.msra.mxu1 %v17537_v4  ;;  %12215 = vmatprep.mubr.f32.mxu1 %v19470_v41  ;;  %v19476_v4 = vand.u32 4294901760, %v17871_v0 }
 0xbf4   :  { %13682 = vmatprep.subr.bf16.mxu1 %v19471_v22 }
 0xbf6   :  { %12216 = vmatmul.mubr.f32.gmra.mrb[68].mxu1 %v19472_v47 }
 0xbf7   :  { %13684 = vmatpush3.bf16.msra.mxu1 %v19471_v22  ;;  %12218 = vmatprep.mubr.f32.mxu1 %v19473_v58 }
 0xbf8   :  { %13686 = vmatprep.subr.bf16.mxu1 %v19474_v15 }
 0xbfa   :  { %12219 = vmatmul.mubr.f32.gmra.mrb[70].mxu1 %v19475_v38 }
 0xbfb   :  { %13688 = vmatpush3.bf16.msra.mxu1 %v19474_v15  ;;  %12221 = vmatprep.mubr.f32.mxu1 %v19476_v4 }
 0xbfc   :  { %13690 = vmatprep.subr.bf16.mxu1 %v19477_v40 }
 0xbfe   :  { %12222 = vmatmul.mubr.f32.gmra.mrb[72].mxu1 %v19478_v30 }
 0xbff   :  { %13692 = vmatpush3.bf16.msra.mxu1 %v19477_v40  ;;  %12224 = vmatprep.mubr.f32.mxu1 %v19479_v10 }
 0xc00   :  { %13694 = vmatprep.subr.bf16.mxu1 %v19480_v45 }
 0xc02   :  { %12225 = vmatmul.mubr.f32.gmra.mrb[74].mxu1 %v19481_v8 }
 0xc03   :  { %13696 = vmatpush3.bf16.msra.mxu1 %v19480_v45  ;;  %12227 = vmatprep.mubr.f32.mxu1 %v6723_v39 }
 0xc04   :  { %13698 = vmatprep.subr.bf16.mxu1 %v19482_v46 }
 0xc06   :  { %12228 = vmatmul.mubr.f32.gmra.mrb[76].mxu1 %v19483_v16 }
 0xc07   :  { %13700 = vmatpush3.bf16.msra.mxu1 %v19482_v46  ;;  %12230 = vmatprep.mubr.f32.mxu1 %v6743_v37 }
 0xc08   :  { %13702 = vmatprep.subr.bf16.mxu1 %v19484_v3 }
 0xc0a   :  { %12231 = vmatmul.mubr.f32.gmra.mrb[78].mxu1 %v6753_v60 }
 0xc0b   :  { %13704 = vmatpush3.bf16.msra.mxu1 %v19484_v3  ;;  %12265 = vmatprep.mubr.f32.mxu1 %v17786_v62 }
 0xc0c   :  { %13706 = vmatprep.subr.bf16.mxu1 %v17367_v23 }
 0xc0e   :  { %12266 = vmatmul.mubr.f32.vlgmr.msra.gmra.mrb[64].mxu1 %v17782_v21 }
 0xc0f   :  { %13708 = vmatpush3.bf16.msra.mxu1 %v17367_v23  ;;  %12268 = vmatprep.mubr.f32.mxu1 %v17803_v34  ;;  %v6475_v23 = vpop.xlane.xlu1 %6474 }
 0xc10   :  { %13710 = vmatprep.subr.bf16.mxu1 %v17387_v27  ;;  %14411 = vrcp.f32 %v6475_v23 }
 0xc12   :  { %12269 = vmatmul.mubr.f32.gmra.mrb[66].mxu1 %v17795_v9 }
 0xc13   :  { %13712 = vmatpush3.bf16.msra.mxu1 %v17387_v27  ;;  %12271 = vmatprep.mubr.f32.mxu1 %v17823_v31  ;;  %v6473_v27 = vpop.xlane.xlu0 %6472 }
 0xc14   :  { %13714 = vmatprep.subr.bf16.mxu1 %v17413_v55  ;;  %14413 = vrcp.f32 %v6473_v27 }
 0xc16   :  { %12272 = vmatmul.mubr.f32.gmra.mrb[68].mxu1 %v17815_v42 }
 0xc17   :  { %13716 = vmatpush3.bf16.msra.mxu1 %v17413_v55  ;;  %12274 = vmatprep.mubr.f32.mxu1 %v17842_v1  ;;  %v6479_v55 = vpop.xlane.xlu1 %6478 }
 0xc18   :  { %13718 = vmatprep.subr.bf16.mxu1 %v17438_v26  ;;  %14415 = vrcp.f32 %v6479_v55 }
 0xc1a   :  { %12275 = vmatmul.mubr.f32.gmra.mrb[70].mxu1 %v17834_v12  ;;  %v14412_v20 = vpop.eup %14411 }
 0xc1b   :  { %13720 = vmatpush3.bf16.msra.mxu1 %v17438_v26  ;;  %12277 = vmatprep.mubr.f32.mxu1 %v17859_v2  ;;  %v6477_v26 = vpop.xlane.xlu0 %6476 }
 0xc1c   :  { %13722 = vmatprep.subr.bf16.mxu1 %v17459_v59  ;;  %14417 = vrcp.f32 %v6477_v26 }
 0xc1e   :  { %12278 = vmatmul.mubr.f32.gmra.mrb[72].mxu1 %v17856_v44 }
 0xc1f   :  { %13724 = vmatpush3.bf16.msra.mxu1 %v17459_v59  ;;  %12280 = vmatprep.mubr.f32.mxu1 %v17880_v5  ;;  %v6483_v59 = vpop.xlane.xlu1 %6482 }
 0xc20   :  { %13726 = vmatprep.subr.bf16.mxu1 %v17484_v32  ;;  %14419 = vrcp.f32 %v6483_v59 }
 0xc22   :  { %12281 = vmatmul.mubr.f32.gmra.mrb[74].mxu1 %v17877_v53 }
 0xc23   :  { %13728 = vmatpush3.bf16.msra.mxu1 %v17484_v32  ;;  %12283 = vmatprep.mubr.f32.mxu1 %v17900_v54  ;;  %v6481_v32 = vpop.xlane.xlu0 %6480 }
 0xc24   :  { %13730 = vmatprep.subr.bf16.mxu1 %v17499_v25  ;;  %14421 = vrcp.f32 %v6481_v32 }
 0xc26   :  { %12284 = vmatmul.mubr.f32.gmra.mrb[76].mxu1 %v17897_v63 }
 0xc27   :  { %13732 = vmatpush3.bf16.msra.mxu1 %v17499_v25  ;;  %12286 = vmatprep.mubr.f32.mxu1 %v17920_v61  ;;  %v6487_v25 = vpop.xlane.xlu1 %6486 }
 0xc28   :  { %13734 = vmatprep.subr.bf16.mxu1 %v17512_v48  ;;  %14423 = vrcp.f32 %v6487_v25 }
 0xc2a   :  { %12287 = vmatmul.mubr.f32.gmra.mrb[78].mxu1 %v17917_v50 }
 0xc2b   :  { %13736 = vmatpush3.bf16.msra.mxu1 %v17512_v48  ;;  %12321 = vmatprep.mubr.f32.mxu1 %v17786_v62  ;;  %v6485_v48 = vpop.xlane.xlu0 %6484  ;;  %v6491_v39 = vpop.xlane.xlu1 %6490 }
 0xc2c   :  { %v14414_v62 = vpop.eup %14413  ;;  %14425 = vrcp.f32 %v6485_v48 }
 0xc2d   :  { %v14416_v51 = vpop.eup %14415  ;;  %14427 = vrcp.f32 %v6491_v39 }
 0xc2e   :  { %12322 = vmatmul.mubr.f32.vlgmr.msra.gmra.mrb[64].mxu1 %v17782_v21  ;;  %v14418_v56 = vpop.eup %14417 }
 0xc2f   :  { %12324 = vmatprep.mubr.f32.mxu1 %v17803_v34  ;;  %v6495_v34 = vpop.xlane.xlu1 %6494 }
 0xc32   :  { %12325 = vmatmul.mubr.f32.gmra.mrb[66].mxu1 %v17795_v9 }
 0xc33   :  { %12327 = vmatprep.mubr.f32.mxu1 %v17823_v31  ;;  %v6499_v14 = vpop.xlane.xlu1 %6498 }
 0xc36   :  { %12328 = vmatmul.mubr.f32.gmra.mrb[68].mxu1 %v17815_v42 }
 0xc37   :  { %12330 = vmatprep.mubr.f32.mxu1 %v17842_v1  ;;  %v6503_v6 = vpop.xlane.xlu1 %6502 }
 0xc3a   :  { %12331 = vmatmul.mubr.f32.gmra.mrb[70].mxu1 %v17834_v12 }
 0xc3b   :  { %12333 = vmatprep.mubr.f32.mxu1 %v17859_v2 }
 0xc3e   :  { %12334 = vmatmul.mubr.f32.gmra.mrb[72].mxu1 %v17856_v44 }
 0xc3f   :  { %12336 = vmatprep.mubr.f32.mxu1 %v17880_v5 }
 0xc42   :  { %12337 = vmatmul.mubr.f32.gmra.mrb[74].mxu1 %v17877_v53  ;;  %v14420_v53 = vpop.eup %14419 }
 0xc43   :  { %12339 = vmatprep.mubr.f32.mxu1 %v17900_v54  ;;  %v6489_v54 = vpop.xlane.xlu0 %6488  ;;  %v14422_v36 = vpop.eup %14421 }
 0xc44   :  { %14429 = vrcp.f32 %v6489_v54  ;;  %v14424_v17 = vpop.eup %14423 }
 0xc45   :  { %v14426_v52 = vpop.eup %14425 }
 0xc46   :  { %12340 = vmatmul.mubr.f32.gmra.mrb[76].mxu1 %v17897_v63  ;;  %v14428_v47 = vpop.eup %14427 }
 0xc47   :  { %12342 = vmatprep.mubr.f32.mxu1 %v17920_v61  ;;  %v6493_v42 = vpop.xlane.xlu0 %6492 }
 0xc4a   :  { %12343 = vmatmul.mubr.f32.gmra.mrb[78].mxu1 %v17917_v50 }
 0xc4b   :  { %v6497_v37 = vpop.xlane.xlu0 %6496 }
 0xc4e   :  { %v14430_v38 = vpop.eup %14429 }
 0xc4f   :  { %v6501_v58 = vpop.xlane.xlu0 %6500 }
 0xd01   :  { %v12323_v21 = vpop.f32.mrb[64].mxu1 }
 0xd02   :  { %v18109_v50 = vmul.f32 %v14412_v20, %v12323_v21  ;;  %v7712_v9 = vpop.f32.mrb[65].mxu1 }
 0xd03   :  { %v18111_v12 = vmul.f32 %v14414_v62, %v7712_v9 }
 0xd04   :  { %v7839_v31 = vmin.f32 %v18109_v50, 0.0  ;;  %vm7823_vm8 = vcmp.gt.f32.partialorder %v18109_v50, 0.0 }
 0xd05   :  { %v7838_v11 = vmin.f32 %v18111_v12, 0.0  ;;  %v12326_v1 = vpop.f32.mrb[66].mxu1  ;;  %vm7822_vm15 = vcmp.gt.f32.partialorder %v18111_v12, 0.0 }
 0xd06   :  { %v7856_v18 = vmul.f32 1.442695, %v7839_v31  ;;  %v18115_v44 = vmul.f32 %v14416_v51, %v12326_v1  ;;  %v7724_v5 = vpop.f32.mrb[67].mxu1 }
 0xd07   :  { %v7854_v2 = vmul.f32 1.442695, %v7838_v11  ;;  %v18117_v35 = vmul.f32 %v14418_v56, %v7724_v5 }
 0xd08   :  { %14431 = vpow2.f32 %v7856_v18  ;;  %v7841_v0 = vmin.f32 %v18115_v44, 0.0  ;;  %vm7825_vm11 = vcmp.gt.f32.partialorder %v18115_v44, 0.0 }
 0xd09   :  { %14433 = vpow2.f32 %v7854_v2  ;;  %v7840_v63 = vmin.f32 %v18117_v35, 0.0  ;;  %v12329_v19 = vpop.f32.mrb[68].mxu1  ;;  %vm7824_vm13 = vcmp.gt.f32.partialorder %v18117_v35, 0.0 }
 0xd0a   :  { %14435 = vrcp.f32 %v6495_v34  ;;  %v7860_v61 = vmul.f32 1.442695, %v7841_v0  ;;  %v18121_v24 = vmul.f32 %v14420_v53, %v12329_v19  ;;  %v7736_v43 = vpop.f32.mrb[69].mxu1 }
 0xd0b   :  { %14437 = vrcp.f32 %v6493_v42  ;;  %v7858_v7 = vmul.f32 1.442695, %v7840_v63  ;;  %v18123_v60 = vmul.f32 %v14422_v36, %v7736_v43 }
 0xd0c   :  { %14439 = vpow2.f32 %v7860_v61  ;;  %v7843_v57 = vmin.f32 %v18121_v24, 0.0  ;;  %vm7827_vm9 = vcmp.gt.f32.partialorder %v18121_v24, 0.0 }
 0xd0d   :  { %14441 = vpow2.f32 %v7858_v7  ;;  %v7842_v33 = vmin.f32 %v18123_v60, 0.0  ;;  %v12332_v29 = vpop.f32.mrb[70].mxu1  ;;  %vm7826_vm10 = vcmp.gt.f32.partialorder %v18123_v60, 0.0 }
 0xd0e   :  { %14443 = vrcp.f32 %v6499_v14  ;;  %v7864_v28 = vmul.f32 1.442695, %v7843_v57  ;;  %v18127_v13 = vmul.f32 %v14424_v17, %v12332_v29  ;;  %v7748_v49 = vpop.f32.mrb[71].mxu1 }
 0xd0f   :  { %14445 = vrcp.f32 %v6497_v37  ;;  %v7862_v41 = vmul.f32 1.442695, %v7842_v33  ;;  %v18129_v22 = vmul.f32 %v14426_v52, %v7748_v49 }
 0xd10   :  { %14447 = vpow2.f32 %v7864_v28  ;;  %v7845_v15 = vmin.f32 %v18127_v13, 0.0  ;;  %vm7829_vm12 = vcmp.gt.f32.partialorder %v18127_v13, 0.0 }
 0xd11   :  { %14449 = vpow2.f32 %v7862_v41  ;;  %v7844_v4 = vmin.f32 %v18129_v22, 0.0  ;;  %v12335_v40 = vpop.f32.mrb[72].mxu1  ;;  %vm7828_vm14 = vcmp.gt.f32.partialorder %v18129_v22, 0.0 }
 0xd12   :  { %v14432_v30 = vpop.eup %14431  ;;  %14451 = vrcp.f32 %v6503_v6  ;;  %v7868_v10 = vmul.f32 1.442695, %v7845_v15  ;;  %v18133_v45 = vmul.f32 %v14428_v47, %v12335_v40  ;;  %v7760_v8 = vpop.f32.mrb[73].mxu1 }
 0xd13   :  { %v14434_v46 = vpop.eup %14433  ;;  %14453 = vrcp.f32 %v6501_v58  ;;  %v7866_v16 = vmul.f32 1.442695, %v7844_v4  ;;  %v18135_v3 = vmul.f32 %v14430_v38, %v7760_v8  ;;  %v9450_v23 = vadd.f32 -1.0, %v14432_v30 }
 0xd14   :  { %v14436_v27 = vpop.eup %14435  ;;  %14455 = vpow2.f32 %v7868_v10  ;;  %v7847_v55 = vmin.f32 %v18133_v45, 0.0  ;;  %v9449_v26 = vadd.f32 -1.0, %v14434_v46  ;;  %vm7831_vm0 = vcmp.gt.f32.partialorder %v18133_v45, 0.0 }
 0xd15   :  { %v14438_v59 = vpop.eup %14437  ;;  %14457 = vpow2.f32 %v7866_v16  ;;  %v7846_v32 = vmin.f32 %v18135_v3, 0.0  ;;  %v12338_v25 = vpop.f32.mrb[74].mxu1  ;;  %v18141_v48 = vsel %vm7823_vm8, %v18109_v50, %v9450_v23  ;;  %vm7830_vm1 = vcmp.gt.f32.partialorder %v18135_v3, 0.0 }
 0xd16   :  { %v14440_v39 = vpop.eup %14439  ;;  %v7872_v54 = vmul.f32 1.442695, %v7847_v55  ;;  %v18144_v20 = vmul.f32 %v14436_v27, %v12338_v25  ;;  %v7772_v21 = vpop.f32.mrb[75].mxu1  ;;  %v7919_v62 = vmul.f32 %v18141_v48, %v18141_v48  ;;  %v18149_v9 = vsel %vm7822_vm15, %v18111_v12, %v9449_v26 }
 0xd17   :  { %v14442_v34 = vpop.eup %14441  ;;  %v9452_v42 = vadd.f32 -1.0, %v14440_v39  ;;  %v7870_v31 = vmul.f32 1.442695, %v7846_v32  ;;  %v18151_v51 = vmul.f32 %v14438_v59, %v7772_v21  ;;  %v7918_v50 = vmul.f32 %v18149_v9, %v18149_v9 }
 0xd18   :  { %v14444_v11 = vpop.eup %14443  ;;  %v9451_v1 = vadd.f32 -1.0, %v14442_v34  ;;  %14459 = vpow2.f32 %v7872_v54  ;;  %v7849_v56 = vmin.f32 %v18144_v20, 0.0  ;;  %7936 = vadd.xlane.f32.xlu1 %v7919_v62  ;;  %vm7833_vm2 = vcmp.gt.f32.partialorder %v18144_v20, 0.0 }
 0xd19   :  { %v14446_v18 = vpop.eup %14445  ;;  %14461 = vpow2.f32 %v7870_v31  ;;  %v7848_v12 = vmin.f32 %v18151_v51, 0.0  ;;  %v12341_v5 = vpop.f32.mrb[76].mxu1  ;;  %7934 = vadd.xlane.f32.xlu0 %v7918_v50  ;;  %v18160_v2 = vsel %vm7825_vm11, %v18115_v44, %v9452_v42  ;;  %vm7832_vm3 = vcmp.gt.f32.partialorder %v18151_v51, 0.0 }
 0xd1a   :  { %v14448_v0 = vpop.eup %14447  ;;  %v7876_v53 = vmul.f32 1.442695, %v7849_v56  ;;  %v18162_v14 = vmul.f32 %v14444_v11, %v12341_v5  ;;  %v7784_v63 = vpop.f32.mrb[77].mxu1  ;;  %v7921_v19 = vmul.f32 %v18160_v2, %v18160_v2  ;;  %v18167_v36 = vsel %vm7824_vm13, %v18117_v35, %v9451_v1 }
 0xd1b   :  { %v14450_v37 = vpop.eup %14449  ;;  %v9454_v61 = vadd.f32 -1.0, %v14448_v0  ;;  %v7874_v43 = vmul.f32 1.442695, %v7848_v12  ;;  %v18169_v7 = vmul.f32 %v14446_v18, %v7784_v63  ;;  %v7920_v44 = vmul.f32 %v18167_v36, %v18167_v36 }
 0xd1c   :  { %v14452_v57 = vpop.eup %14451  ;;  %v9453_v17 = vadd.f32 -1.0, %v14450_v37  ;;  %14463 = vpow2.f32 %v7876_v53  ;;  %v7851_v33 = vmin.f32 %v18162_v14, 0.0  ;;  %7940 = vadd.xlane.f32.xlu1 %v7921_v19  ;;  %vm7835_vm4 = vcmp.gt.f32.partialorder %v18162_v14, 0.0 }
 0xd1d   :  { %v14454_v29 = vpop.eup %14453  ;;  %14465 = vpow2.f32 %v7874_v43  ;;  %v7850_v35 = vmin.f32 %v18169_v7, 0.0  ;;  %v12344_v52 = vpop.f32.mrb[78].mxu1  ;;  %7938 = vadd.xlane.f32.xlu0 %v7920_v44  ;;  %v18178_v28 = vsel %vm7827_vm9, %v18121_v24, %v9454_v61  ;;  %vm7834_vm5 = vcmp.gt.f32.partialorder %v18169_v7, 0.0 }
 0xd1e   :  { %v14456_v49 = vpop.eup %14455  ;;  %v7880_v6 = vmul.f32 1.442695, %v7851_v33  ;;  %v18180_v41 = vmul.f32 %v14452_v57, %v12344_v52  ;;  %v7796_v47 = vpop.f32.mrb[79].mxu1  ;;  %v7923_v58 = vmul.f32 %v18178_v28, %v18178_v28  ;;  %v18185_v15 = vsel %vm7826_vm10, %v18123_v60, %v9453_v17 }
 0xd1f   :  { %v14458_v38 = vpop.eup %14457  ;;  %v9456_v4 = vadd.f32 -1.0, %v14456_v49  ;;  %v7878_v40 = vmul.f32 1.442695, %v7850_v35  ;;  %v18187_v30 = vmul.f32 %v14454_v29, %v7796_v47  ;;  %v7922_v24 = vmul.f32 %v18185_v15, %v18185_v15 }
 0xd20   :  { %v9455_v10 = vadd.f32 -1.0, %v14458_v38  ;;  %14467 = vpow2.f32 %v7880_v6  ;;  %v7853_v8 = vmin.f32 %v18180_v41, 0.0  ;;  %7944 = vadd.xlane.f32.xlu1 %v7923_v58  ;;  %vm7837_vm6 = vcmp.gt.f32.partialorder %v18180_v41, 0.0 }
 0xd21   :  { %14469 = vpow2.f32 %v7878_v40  ;;  %v7852_v60 = vmin.f32 %v18187_v30, 0.0  ;;  %7942 = vadd.xlane.f32.xlu0 %v7922_v24  ;;  %v18196_v46 = vsel %vm7829_vm12, %v18127_v13, %v9456_v4  ;;  %vm7836_vm7 = vcmp.gt.f32.partialorder %v18187_v30, 0.0 }
 0xd22   :  { %v14460_v16 = vpop.eup %14459  ;;  %v7884_v23 = vmul.f32 1.442695, %v7853_v8  ;;  %v7925_v27 = vmul.f32 %v18196_v46, %v18196_v46  ;;  %v18201_v55 = vsel %vm7828_vm14, %v18129_v22, %v9455_v10 }
 0xd23   :  { %v14462_v26 = vpop.eup %14461  ;;  %v9458_v59 = vadd.f32 -1.0, %v14460_v16  ;;  %v7882_v32 = vmul.f32 1.442695, %v7852_v60  ;;  %v7924_v25 = vmul.f32 %v18201_v55, %v18201_v55 }
 0xd24   :  { %v9457_v39 = vadd.f32 -1.0, %v14462_v26  ;;  %14471 = vpow2.f32 %v7884_v23  ;;  %7948 = vadd.xlane.f32.xlu1 %v7925_v27 }
 0xd25   :  { %14473 = vpow2.f32 %v7882_v32  ;;  %7946 = vadd.xlane.f32.xlu0 %v7924_v25  ;;  %v18208_v13 = vsel %vm7831_vm0, %v18133_v45, %v9458_v59 }
 0xd26   :  { %v14464_v22 = vpop.eup %14463  ;;  %v7927_v54 = vmul.f32 %v18208_v13, %v18208_v13  ;;  %v18213_v21 = vsel %vm7830_vm1, %v18135_v3, %v9457_v39 }
 0xd27   :  { %v14466_v62 = vpop.eup %14465  ;;  %v9460_v34 = vadd.f32 -1.0, %v14464_v22  ;;  %v7926_v42 = vmul.f32 %v18213_v21, %v18213_v21 }
 0xd28   :  { %v9459_v31 = vadd.f32 -1.0, %v14466_v62  ;;  %7952 = vadd.xlane.f32.xlu1 %v7927_v54 }
 0xd29   :  { %7950 = vadd.xlane.f32.xlu0 %v7926_v42  ;;  %v18220_v45 = vsel %vm7833_vm2, %v18144_v20, %v9460_v34 }
 0xd2a   :  { %v14468_v50 = vpop.eup %14467  ;;  %v7929_v3 = vmul.f32 %v18220_v45, %v18220_v45  ;;  %v18225_v11 = vsel %vm7832_vm3, %v18151_v51, %v9459_v31 }
 0xd2b   :  { %v14470_v1 = vpop.eup %14469  ;;  %v9462_v56 = vadd.f32 -1.0, %v14468_v50  ;;  %v7928_v18 = vmul.f32 %v18225_v11, %v18225_v11 }
 0xd2c   :  { %v9461_v12 = vadd.f32 -1.0, %v14470_v1  ;;  %7956 = vadd.xlane.f32.xlu1 %v7929_v3 }
 0xd2d   :  { %7954 = vadd.xlane.f32.xlu0 %v7928_v18  ;;  %v18232_v20 = vsel %vm7835_vm4, %v18162_v14, %v9462_v56 }
 0xd2e   :  { %v14472_v5 = vpop.eup %14471  ;;  %v7931_v51 = vmul.f32 %v18232_v20, %v18232_v20  ;;  %v18237_v0 = vsel %vm7834_vm5, %v18169_v7, %v9461_v12 }
 0xd2f   :  { %v14474_v53 = vpop.eup %14473  ;;  %v9464_v63 = vadd.f32 -1.0, %v14472_v5  ;;  %v7930_v19 = vmul.f32 %v18237_v0, %v18237_v0 }
 0xd30   :  { %v9463_v37 = vadd.f32 -1.0, %v14474_v53  ;;  %7960 = vadd.xlane.f32.xlu1 %v7931_v51 }
 0xd31   :  { %7958 = vadd.xlane.f32.xlu0 %v7930_v19  ;;  %v18244_v14 = vsel %vm7837_vm6, %v18180_v41, %v9464_v63 }
 0xd32   :  { %v7933_v61 = vmul.f32 %v18244_v14, %v18244_v14  ;;  %v18249_v43 = vsel %vm7836_vm7, %v18187_v30, %v9463_v37 }
 0xd33   :  { %v7932_v7 = vmul.f32 %v18249_v43, %v18249_v43 }
 0xd34   :  { %7964 = vadd.xlane.f32.xlu1 %v7933_v61 }
 0xd35   :  { %7962 = vadd.xlane.f32.xlu0 %v7932_v7 }
 0xda5   :  { %v7937_v44 = vpop.xlane.xlu1 %7936 }
 0xda6   :  { %v7967_v57 = vmax.f32 %v7937_v44, 1e-24  ;;  %v7935_v17 = vpop.xlane.xlu0 %7934 }
 0xda7   :  { %v7966_v33 = vmax.f32 %v7935_v17, 1e-24 }
 0xda8   :  { %14475 = vrsqrt.f32 %v7967_v57 }
 0xda9   :  { %14477 = vrsqrt.f32 %v7966_v33  ;;  %v7941_v29 = vpop.xlane.xlu1 %7940 }
 0xdaa   :  { %v7969_v35 = vmax.f32 %v7941_v29, 1e-24  ;;  %v7939_v52 = vpop.xlane.xlu0 %7938 }
 0xdab   :  { %v7968_v49 = vmax.f32 %v7939_v52, 1e-24 }
 0xdac   :  { %14479 = vrsqrt.f32 %v7969_v35 }
 0xdad   :  { %14481 = vrsqrt.f32 %v7968_v49  ;;  %v7945_v6 = vpop.xlane.xlu1 %7944 }
 0xdae   :  { %v7971_v41 = vmax.f32 %v7945_v6, 1e-24  ;;  %v7943_v47 = vpop.xlane.xlu0 %7942 }
 0xdaf   :  { %v7970_v58 = vmax.f32 %v7943_v47, 1e-24 }
 0xdb0   :  { %14483 = vrsqrt.f32 %v7971_v41 }
 0xdb1   :  { %14485 = vrsqrt.f32 %v7970_v58  ;;  %v7949_v38 = vpop.xlane.xlu1 %7948 }
 0xdb2   :  { %v14476_v4 = vpop.eup %14475  ;;  %v7973_v40 = vmax.f32 %v7949_v38, 1e-24  ;;  %v7947_v30 = vpop.xlane.xlu0 %7946 }
 0xdb3   :  { %v14478_v24 = vpop.eup %14477  ;;  %v18254_v10 = vmul.f32 %v14476_v4, %v18141_v48  ;;  %v7972_v8 = vmax.f32 %v7947_v30, 1e-24 }
 0xdb4   :  { %v7998_v60 = vmul.f32 %v14478_v24, %v18149_v9  ;;  %14487 = vrsqrt.f32 %v7973_v40 }
 0xdb5   :  { %v18258_v16 = vand.u32 4294901760, %v18254_v10  ;;  %9381 = vst [vmem:[#allocation13 + $0x8] sm:$0xff] %v18254_v10  ;;  %14489 = vrsqrt.f32 %v7972_v8  ;;  %v7953_v23 = vpop.xlane.xlu1 %7952 }
 0xdb6   :  { %v14480_v27 = vpop.eup %14479  ;;  %v18261_v26 = vand.u32 4294901760, %v7998_v60  ;;  %9380 = vst [vmem:[#allocation13] sm:$0xff] %v7998_v60  ;;  %v7975_v59 = vmax.f32 %v7953_v23, 1e-24  ;;  %v7951_v32 = vpop.xlane.xlu0 %7950 }
 0xdb7   :  { %v14482_v25 = vpop.eup %14481  ;;  %v18264_v48 = vmul.f32 %v14480_v27, %v18160_v2  ;;  %v7974_v39 = vmax.f32 %v7951_v32, 1e-24 }
 0xdb8   :  { %v18267_v9 = vmul.f32 %v14482_v25, %v18167_v36  ;;  %14491 = vrsqrt.f32 %v7975_v59  ;;  %v18271_v22 = vpack.c.bf16 %v18258_v16, %v18261_v26  ;;  %v18274_v54 = vsub.f32 %v7998_v60, %v18261_v26 }
 0xdb9   :  { %v18277_v62 = vand.u32 4294901760, %v18264_v48  ;;  %9383 = vst [vmem:[#allocation13 + $0x18] sm:$0xff] %v18264_v48  ;;  %14493 = vrsqrt.f32 %v7974_v39  ;;  %v7957_v2 = vpop.xlane.xlu1 %7956 }
 0xdba   :  { %v14484_v34 = vpop.eup %14483  ;;  %v18281_v42 = vand.u32 4294901760, %v18267_v9  ;;  %9382 = vst [vmem:[#allocation13 + $0x10] sm:$0xff] %v18267_v9  ;;  %v7977_v36 = vmax.f32 %v7957_v2, 1e-24  ;;  %13738 = vmatprep.subr.bf16.mxu1 %v18271_v22  ;;  %v7955_v31 = vpop.xlane.xlu0 %7954  ;;  %v18286_v50 = vand.u32 4294901760, %v18274_v54  ;;  %v18407_v2 = vsub.f32 %v18254_v10, %v18258_v16 }
 0xdbb   :  { %v14486_v3 = vpop.eup %14485  ;;  %v18289_v1 = vmul.f32 %v14484_v34, %v18178_v28  ;;  %v7976_v56 = vmax.f32 %v7955_v31, 1e-24  ;;  %13740 = vmatpush3.bf16.xpose.msra.mxu1 %v18271_v22 }
 0xdbc   :  { %v18293_v18 = vmul.f32 %v14486_v3, %v18185_v15  ;;  %14495 = vrsqrt.f32 %v7977_v36  ;;  %v18297_v12 = vpack.c.bf16 %v18277_v62, %v18281_v42  ;;  %v8098_v5 = vsub.f32 %v18274_v54, %v18286_v50 }
 0xdbd   :  { %9385 = vst [vmem:[#allocation13 + $0x28] sm:$0xff] %v18289_v1  ;;  %14497 = vrsqrt.f32 %v7976_v56  ;;  %v7961_v51 = vpop.xlane.xlu1 %7960  ;;  %v18303_v53 = vand.u32 4294901760, %v18289_v1  ;;  %v18418_v31 = vand.u32 4294901760, %v18407_v2  ;;  %v18428_v56 = vsub.f32 %v18267_v9, %v18281_v42 }
 0xdbe   :  { %v14488_v28 = vpop.eup %14487  ;;  %v18306_v63 = vand.u32 4294901760, %v18293_v18  ;;  %9384 = vst [vmem:[#allocation13 + $0x20] sm:$0xff] %v18293_v18  ;;  %v7979_v15 = vmax.f32 %v7961_v51, 1e-24  ;;  %13742 = vmatprep.subr.bf16.mxu1 %v18297_v12  ;;  %v7959_v19 = vpop.xlane.xlu0 %7958  ;;  %v18310_v37 = vand.u32 4294901760, %v8098_v5  ;;  %v18432_v5 = vsub.f32 %v18264_v48, %v18277_v62 }
 0xdbf   :  { %v14490_v61 = vpop.eup %14489  ;;  %v18313_v7 = vmul.f32 %v14488_v28, %v18196_v46  ;;  %v7978_v44 = vmax.f32 %v7959_v19, 1e-24  ;;  %v8108_v10 = vsub.f32 %v18407_v2, %v18418_v31  ;;  %v18437_v28 = vand.u32 4294901760, %v18428_v56 }
 0xdc0   :  { %v18316_v57 = vmul.f32 %v14490_v61, %v18201_v55  ;;  %14499 = vrsqrt.f32 %v7979_v15  ;;  %12377 = vmatprep.mubr.f32.mxu1 %v18310_v37  ;;  %v18323_v46 = vpack.c.bf16 %v18303_v53, %v18306_v63  ;;  %v18440_v15 = vand.u32 4294901760, %v18432_v5 }
 0xdc1   :  { %9387 = vst [vmem:[#allocation13 + $0x38] sm:$0xff] %v18313_v7  ;;  %14501 = vrsqrt.f32 %v7978_v44  ;;  %v7965_v17 = vpop.xlane.xlu1 %7964  ;;  %v18335_v47 = vand.u32 4294901760, %v18313_v7  ;;  %v8109_v51 = vand.u32 4294901760, %v8108_v10  ;;  %v18444_v19 = vsub.f32 %v18293_v18, %v18306_v63 }
 0xdc2   :  { %v14492_v33 = vpop.eup %14491  ;;  %9386 = vst [vmem:[#allocation13 + $0x30] sm:$0xff] %v18316_v57  ;;  %v7981_v29 = vmax.f32 %v7965_v17, 1e-24  ;;  %v7963_v35 = vpop.xlane.xlu0 %7962  ;;  %v18338_v58 = vand.u32 4294901760, %v18316_v57  ;;  %v8118_v48 = vsub.f32 %v18428_v56, %v18437_v28  ;;  %v8128_v61 = vsub.f32 %v18432_v5, %v18440_v15 }
 0xdc3   :  { %v14494_v52 = vpop.eup %14493  ;;  %v18326_v55 = vmul.f32 %v14492_v33, %v18208_v13  ;;  %v7980_v49 = vmax.f32 %v7963_v35, 1e-24  ;;  %13744 = vmatpush3.bf16.xpose.msra.mxu1 %v18297_v12  ;;  %v13769_v9 = vpack.c.bf16 %v8109_v51, %v18310_v37  ;;  %v18453_v44 = vsub.f32 %v18289_v1, %v18303_v53 }
 0xdc4   :  { %v18330_v6 = vmul.f32 %v14494_v52, %v18213_v21  ;;  %14503 = vrsqrt.f32 %v7981_v29  ;;  %13746 = vmatprep.subr.bf16.mxu1 %v18323_v46  ;;  %v18351_v40 = vpack.c.bf16 %v18335_v47, %v18338_v58  ;;  %v18457_v17 = vand.u32 4294901760, %v18444_v19 }
 0xdc5   :  { %9389 = vst [vmem:[#allocation13 + $0x48] sm:$0xff] %v18326_v55  ;;  %14505 = vrsqrt.f32 %v7980_v49  ;;  %v18363_v8 = vand.u32 4294901760, %v18326_v55  ;;  %v18461_v18 = vsub.f32 %v18316_v57, %v18338_v58  ;;  %v8119_v37 = vand.u32 4294901760, %v8118_v48 }
 0xdc6   :  { %v14496_v41 = vpop.eup %14495  ;;  %9388 = vst [vmem:[#allocation13 + $0x40] sm:$0xff] %v18330_v6  ;;  %v18366_v60 = vand.u32 4294901760, %v18330_v6  ;;  %v8129_v33 = vand.u32 4294901760, %v8128_v61  ;;  %v18464_v29 = vand.u32 4294901760, %v18453_v44  ;;  %v18468_v35 = vsub.f32 %v18313_v7, %v18335_v47 }
 0xdc7   :  { %v14498_v13 = vpop.eup %14497  ;;  %v18342_v38 = vmul.f32 %v14496_v41, %v18220_v45  ;;  %v8138_v1 = vsub.f32 %v18444_v19, %v18457_v17  ;;  %v18473_v52 = vand.u32 4294901760, %v18461_v18 }
 0xdc8   :  { %v18345_v21 = vmul.f32 %v14498_v13, %v18225_v11  ;;  %v18379_v27 = vpack.c.bf16 %v18363_v8, %v18366_v60  ;;  %v18477_v49 = vsub.f32 %v18330_v6, %v18366_v60  ;;  %v13773_v57 = vpack.c.bf16 %v8129_v33, %v8119_v37 }
 0xdc9   :  { %9391 = vst [vmem:[#allocation13 + $0x58] sm:$0xff] %v18342_v38  ;;  %v18384_v59 = vand.u32 4294901760, %v18342_v38  ;;  %v8148_v41 = vsub.f32 %v18453_v44, %v18464_v29  ;;  %v18482_v7 = vand.u32 4294901760, %v18468_v35  ;;  %v18486_v13 = vsub.f32 %v18326_v55, %v18363_v8 }
 0xdca   :  { %v14500_v4 = vpop.eup %14499  ;;  %9390 = vst [vmem:[#allocation13 + $0x50] sm:$0xff] %v18345_v21  ;;  %v8158_v6 = vsub.f32 %v18461_v18, %v18473_v52 }
 0xdcb   :  { %v14502_v30 = vpop.eup %14501  ;;  %v18354_v24 = vmul.f32 %v14500_v4, %v18232_v20  ;;  %13748 = vmatpush3.bf16.xpose.msra.mxu1 %v18323_v46  ;;  %19485 = vst [vmem:[#allocation100_spill] sm:$0xff] %v18482_v7  ;;  %v8139_v4 = vand.u32 4294901760, %v8138_v1  ;;  %v8168_v10 = vsub.f32 %v18468_v35, %v18482_v7  ;;  %v18500_v55 = vand.u32 4294901760, %v18486_v13 }
 0xdcc   :  { %v18358_v45 = vmul.f32 %v14502_v30, %v18237_v0  ;;  %13750 = vmatprep.subr.bf16.mxu1 %v18351_v40  ;;  %v18491_v30 = vand.u32 4294901760, %v18477_v49 }
 0xdcd   :  { %9393 = vst [vmem:[#allocation13 + $0x68] sm:$0xff] %v18354_v24  ;;  %v18396_v32 = vand.u32 4294901760, %v18354_v24  ;;  %19487 = vst [vmem:[#allocation38_spill] sm:$0xff] %v18500_v55 }
 0xdce   :  { %v14504_v11 = vpop.eup %14503  ;;  %9392 = vst [vmem:[#allocation13 + $0x60] sm:$0xff] %v18358_v45  ;;  %v18399_v25 = vand.u32 4294901760, %v18358_v45  ;;  %19486 = vst [vmem:[#allocation37_spill] sm:$0xff] %v18491_v30  ;;  %v8178_v48 = vsub.f32 %v18477_v49, %v18491_v30 }
 0xdcf   :  { %v14506_v20 = vpop.eup %14505  ;;  %v18370_v23 = vmul.f32 %v14504_v11, %v18244_v14  ;;  %v18387_v14 = vand.u32 4294901760, %v18345_v21 }
 0xdd0   :  { %v18373_v0 = vmul.f32 %v14506_v20, %v18249_v43  ;;  %v18403_v39 = vpack.c.bf16 %v18396_v32, %v18399_v25  ;;  %v8149_v20 = vand.u32 4294901760, %v8148_v41  ;;  %v18513_v61 = vsub.f32 %v18358_v45, %v18399_v25 }
 0xdd1   :  { %9395 = vst [vmem:[#allocation13 + $0x78] sm:$0xff] %v18370_v23  ;;  %v18391_v43 = vpack.c.bf16 %v18384_v59, %v18387_v14  ;;  %v18412_v34 = vand.u32 4294901760, %v18370_v23  ;;  %v18495_v11 = vsub.f32 %v18345_v21, %v18387_v14  ;;  %v18522_v41 = vsub.f32 %v18354_v24, %v18396_v32 }
 0xdd2   :  { %9394 = vst [vmem:[#allocation13 + $0x70] sm:$0xff] %v18373_v0  ;;  %v18415_v36 = vand.u32 4294901760, %v18373_v0 }
 0xdd3   :  { %13752 = vmatpush3.bf16.xpose.msra.mxu1 %v18351_v40  ;;  %v18509_v21 = vand.u32 4294901760, %v18495_v11  ;;  %v18536_v24 = vand.u32 4294901760, %v18522_v41 }
 0xdd4   :  { %13754 = vmatprep.subr.bf16.mxu1 %v18379_v27  ;;  %v18422_v3 = vpack.c.bf16 %v18412_v34, %v18415_v36 }
 0xdd5   :  { %19488 = vst [vmem:[#allocation43_spill] sm:$0xff] %v18509_v21  ;;  %v8198_v45 = vsub.f32 %v18495_v11, %v18509_v21 }
 0xdd7   :  { %v8199_v21 = vand.u32 4294901760, %v8198_v45 }
 0xddb   :  { %13756 = vmatpush3.bf16.xpose.msra.mxu1 %v18379_v27 }
 0xddc   :  { %13758 = vmatprep.subr.bf16.mxu1 %v18391_v43 }
 0xde3   :  { %13760 = vmatpush3.bf16.xpose.msra.mxu1 %v18391_v43 }
 0xde4   :  { %13762 = vmatprep.subr.bf16.mxu1 %v18403_v39 }
 0xdeb   :  { %13764 = vmatpush3.bf16.xpose.msra.mxu1 %v18403_v39 }
 0xdec   :  { %13766 = vmatprep.subr.bf16.mxu1 %v18422_v3 }
 0xdf3   :  { %13768 = vmatpush3.bf16.xpose.msra.mxu1 %v18422_v3 }
 0xdf4   :  { %13770 = vmatprep.subr.bf16.mxu1 %v13769_v9 }
 0xdfa   :  { %12378 = vmatmul.mubr.f32.vlgmr.msra.gmra.mrb[80].mxu1 %v8109_v51  ;;  %v18504_v51 = vsub.f32 %v18342_v38, %v18384_v59  ;;  %v8188_v38 = vsub.f32 %v18486_v13, %v18500_v55 }
 0xdfb   :  { %12380 = vmatprep.mubr.f32.mxu1 %v8119_v37  ;;  %13772 = vmatpush3.bf16.xpose.msra.mxu1 %v13769_v9  ;;  %v8159_v9 = vand.u32 4294901760, %v8158_v6  ;;  %v13777_v37 = vpack.c.bf16 %v8149_v20, %v8139_v4  ;;  %v8179_v6 = vand.u32 4294901760, %v8178_v48  ;;  %v18540_v48 = vsub.f32 %v18370_v23, %v18412_v34 }
 0xdfc   :  { %13774 = vmatprep.subr.bf16.mxu1 %v13773_v57  ;;  %v18518_v1 = vand.u32 4294901760, %v18504_v51 }
 0xdfd   :  { %v18550_v7 = vand.u32 4294901760, %v18540_v48 }
 0xdfe   :  { %12381 = vmatmul.mubr.f32.gmra.mrb[82].mxu1 %v8129_v33  ;;  %v8169_v33 = vand.u32 4294901760, %v8168_v10  ;;  %19489 = vst [vmem:[#allocation44_spill] sm:$0xff] %v18518_v1  ;;  %v8208_v10 = vsub.f32 %v18504_v51, %v18518_v1  ;;  %v8228_v1 = vsub.f32 %v18522_v41, %v18536_v24 }
 0xdff   :  { %12383 = vmatprep.mubr.f32.mxu1 %v8139_v4  ;;  %v18527_v4 = vand.u32 4294901760, %v18513_v61 }
 0xe00   :  { %v13781_v30 = vpack.c.bf16 %v8169_v33, %v8159_v9 }
 0xe01   :  { %19490 = vst [vmem:[#allocation47_spill] sm:$0xff] %v18527_v4  ;;  %v8218_v55 = vsub.f32 %v18513_v61, %v18527_v4  ;;  %v8229_v4 = vand.u32 4294901760, %v8228_v1 }
 0xe02   :  { %12384 = vmatmul.mubr.f32.gmra.mrb[84].mxu1 %v8149_v20  ;;  %v8189_v20 = vand.u32 4294901760, %v8188_v38  ;;  %v8209_v38 = vand.u32 4294901760, %v8208_v10 }
 0xe03   :  { %12386 = vmatprep.mubr.f32.mxu1 %v8159_v9  ;;  %13776 = vmatpush3.bf16.xpose.msra.mxu1 %v13773_v57  ;;  %v18531_v57 = vsub.f32 %v18373_v0, %v18415_v36  ;;  %v8219_v23 = vand.u32 4294901760, %v8218_v55  ;;  %v8248_v9 = vsub.f32 %v18540_v48, %v18550_v7 }
 0xe04   :  { %13778 = vmatprep.subr.bf16.mxu1 %v13777_v37  ;;  %v13789_v55 = vpack.c.bf16 %v8209_v38, %v8199_v21 }
 0xe05   :  { %v18545_v0 = vand.u32 4294901760, %v18531_v57  ;;  %v8249_v10 = vand.u32 4294901760, %v8248_v9 }
 0xe06   :  { %12387 = vmatmul.mubr.f32.gmra.mrb[86].mxu1 %v8169_v33 }
 0xe07   :  { %12389 = vmatprep.mubr.f32.mxu1 %v8179_v6  ;;  %19491 = vst [vmem:[#allocation49_spill] sm:$0xff] %v18545_v0  ;;  %v8238_v45 = vsub.f32 %v18531_v57, %v18545_v0  ;;  %v13793_v0 = vpack.c.bf16 %v8229_v4, %v8219_v23 }
 0xe09   :  { %v8239_v33 = vand.u32 4294901760, %v8238_v45  ;;  %v13801_v45 = vpack.c.bf16 %v18407_v2, %v18274_v54 }
 0xe0a   :  { %12390 = vmatmul.mubr.f32.gmra.mrb[88].mxu1 %v8189_v20 }
 0xe0b   :  { %12392 = vmatprep.mubr.f32.mxu1 %v8199_v21  ;;  %13780 = vmatpush3.bf16.xpose.msra.mxu1 %v13777_v37  ;;  %v13785_v37 = vpack.c.bf16 %v8189_v20, %v8179_v6  ;;  %v13797_v1 = vpack.c.bf16 %v8249_v10, %v8239_v33  ;;  %v13809_v21 = vpack.c.bf16 %v18453_v44, %v18444_v19 }
 0xe0c   :  { %13782 = vmatprep.subr.bf16.mxu1 %v13781_v30  ;;  %v13813_v6 = vpack.c.bf16 %v18468_v35, %v18461_v18  ;;  %v13821_v20 = vpack.c.bf16 %v18504_v51, %v18495_v11 }
 0xe0e   :  { %12393 = vmatmul.mubr.f32.gmra.mrb[90].mxu1 %v8209_v38  ;;  %v13829_v38 = vpack.c.bf16 %v18540_v48, %v18531_v57 }
 0xe0f   :  { %12395 = vmatprep.mubr.f32.mxu1 %v8219_v23 }
 0xe12   :  { %12396 = vmatmul.mubr.f32.gmra.mrb[92].mxu1 %v8229_v4  ;;  %v13817_v4 = vpack.c.bf16 %v18486_v13, %v18477_v49 }
 0xe13   :  { %12398 = vmatprep.mubr.f32.mxu1 %v8239_v33  ;;  %13784 = vmatpush3.bf16.xpose.msra.mxu1 %v13781_v30  ;;  %v13805_v30 = vpack.c.bf16 %v18432_v5, %v18428_v56 }
 0xe14   :  { %13786 = vmatprep.subr.bf16.mxu1 %v13785_v37 }
 0xe16   :  { %12399 = vmatmul.mubr.f32.gmra.mrb[94].mxu1 %v8249_v10 }
 0xe17   :  { %12433 = vmatprep.mubr.f32.mxu1 %v18261_v26 }
 0xe1b   :  { %13788 = vmatpush3.bf16.xpose.msra.mxu1 %v13785_v37 }
 0xe1c   :  { %13790 = vmatprep.subr.bf16.mxu1 %v13789_v55 }
 0xe23   :  { %13792 = vmatpush3.bf16.xpose.msra.mxu1 %v13789_v55 }
 0xe24   :  { %13794 = vmatprep.subr.bf16.mxu1 %v13793_v0 }
 0xe2b   :  { %13796 = vmatpush3.bf16.xpose.msra.mxu1 %v13793_v0  ;;  %v13825_v0 = vpack.c.bf16 %v18522_v41, %v18513_v61 }
 0xe2c   :  { %13798 = vmatprep.subr.bf16.mxu1 %v13797_v1 }
 0xe33   :  { %13800 = vmatpush3.bf16.xpose.msra.mxu1 %v13797_v1 }
 0xe34   :  { %13802 = vmatprep.subr.bf16.mxu1 %v13801_v45 }
 0xe3a   :  { %12434 = vmatmul.mubr.f32.vlgmr.msra.gmra.mrb[80].mxu1 %v18258_v16 }
 0xe3b   :  { %12436 = vmatprep.mubr.f32.mxu1 %v18281_v42  ;;  %13804 = vmatpush3.bf16.xpose.msra.mxu1 %v13801_v45 }
 0xe3c   :  { %13806 = vmatprep.subr.bf16.mxu1 %v13805_v30 }
 0xe3e   :  { %12437 = vmatmul.mubr.f32.gmra.mrb[82].mxu1 %v18277_v62 }
 0xe3f   :  { %12439 = vmatprep.mubr.f32.mxu1 %v18306_v63 }
 0xe42   :  { %12440 = vmatmul.mubr.f32.gmra.mrb[84].mxu1 %v18303_v53 }
 0xe43   :  { %12442 = vmatprep.mubr.f32.mxu1 %v18338_v58  ;;  %13808 = vmatpush3.bf16.xpose.msra.mxu1 %v13805_v30 }
 0xe44   :  { %13810 = vmatprep.subr.bf16.mxu1 %v13809_v21 }
 0xe46   :  { %12443 = vmatmul.mubr.f32.gmra.mrb[86].mxu1 %v18335_v47 }
 0xe47   :  { %12445 = vmatprep.mubr.f32.mxu1 %v18366_v60 }
 0xe4a   :  { %12446 = vmatmul.mubr.f32.gmra.mrb[88].mxu1 %v18363_v8 }
 0xe4b   :  { %12448 = vmatprep.mubr.f32.mxu1 %v18387_v14  ;;  %13812 = vmatpush3.bf16.xpose.msra.mxu1 %v13809_v21 }
 0xe4c   :  { %13814 = vmatprep.subr.bf16.mxu1 %v13813_v6 }
 0xe4e   :  { %12449 = vmatmul.mubr.f32.gmra.mrb[90].mxu1 %v18384_v59 }
 0xe4f   :  { %12451 = vmatprep.mubr.f32.mxu1 %v18399_v25 }
 0xe52   :  { %12452 = vmatmul.mubr.f32.gmra.mrb[92].mxu1 %v18396_v32 }
 0xe53   :  { %12454 = vmatprep.mubr.f32.mxu1 %v18415_v36  ;;  %13816 = vmatpush3.bf16.xpose.msra.mxu1 %v13813_v6 }
 0xe54   :  { %13818 = vmatprep.subr.bf16.mxu1 %v13817_v4 }
 0xe56   :  { %12455 = vmatmul.mubr.f32.gmra.mrb[94].mxu1 %v18412_v34 }
 0xe57   :  { %12489 = vmatprep.mubr.f32.mxu1 %v18274_v54  ;;  %v13865_v54 = vpack.c.bf16 %v18418_v31, %v18286_v50 }
 0xe5b   :  { %13820 = vmatpush3.bf16.xpose.msra.mxu1 %v13817_v4 }
 0xe5c   :  { %13822 = vmatprep.subr.bf16.mxu1 %v13821_v20 }
 0xe63   :  { %13824 = vmatpush3.bf16.xpose.msra.mxu1 %v13821_v20 }
 0xe64   :  { %13826 = vmatprep.subr.bf16.mxu1 %v13825_v0 }
 0xe6b   :  { %13828 = vmatpush3.bf16.xpose.msra.mxu1 %v13825_v0 }
 0xe6c   :  { %13830 = vmatprep.subr.bf16.mxu1 %v13829_v38 }
 0xe73   :  { %13832 = vmatpush3.bf16.xpose.msra.mxu1 %v13829_v38 }
 0xe74   :  { %13834 = vmatprep.subr.bf16.mxu1 %v18271_v22 }
 0xe7a   :  { %12490 = vmatmul.mubr.f32.vlgmr.msra.gmra.mrb[80].mxu1 %v18407_v2  ;;  %v13869_v2 = vpack.c.bf16 %v18440_v15, %v18437_v28 }
 0xe7b   :  { %12492 = vmatprep.mubr.f32.mxu1 %v18428_v56  ;;  %13836 = vmatpush3.bf16.xpose.msra.mxu1 %v18271_v22  ;;  %v19493_v56 = vld [vmem:[#allocation37_spill] sm:$0xff] }
 0xe7c   :  { %13838 = vmatprep.subr.bf16.mxu1 %v18297_v12 }
 0xe7e   :  { %12493 = vmatmul.mubr.f32.gmra.mrb[82].mxu1 %v18432_v5  ;;  %v19494_v5 = vld [vmem:[#allocation38_spill] sm:$0xff] }
 0xe7f   :  { %12495 = vmatprep.mubr.f32.mxu1 %v18444_v19  ;;  %v19496_v19 = vld [vmem:[#allocation44_spill] sm:$0xff] }
 0xe82   :  { %12496 = vmatmul.mubr.f32.gmra.mrb[84].mxu1 %v18453_v44  ;;  %v19497_v44 = vld [vmem:[#allocation47_spill] sm:$0xff] }
 0xe83   :  { %12498 = vmatprep.mubr.f32.mxu1 %v18461_v18  ;;  %13840 = vmatpush3.bf16.xpose.msra.mxu1 %v18297_v12  ;;  %v19498_v18 = vld [vmem:[#allocation49_spill] sm:$0xff] }
 0xe84   :  { %13842 = vmatprep.subr.bf16.mxu1 %v18323_v46 }
 0xe86   :  { %12499 = vmatmul.mubr.f32.gmra.mrb[86].mxu1 %v18468_v35  ;;  %v13889_v35 = vpack.c.bf16 %v18536_v24, %v19497_v44 }
 0xe87   :  { %12501 = vmatprep.mubr.f32.mxu1 %v18477_v49 }
 0xe8a   :  { %12502 = vmatmul.mubr.f32.gmra.mrb[88].mxu1 %v18486_v13 }
 0xe8b   :  { %12504 = vmatprep.mubr.f32.mxu1 %v18495_v11  ;;  %13844 = vmatpush3.bf16.xpose.msra.mxu1 %v18323_v46 }
 0xe8c   :  { %13846 = vmatprep.subr.bf16.mxu1 %v18351_v40 }
 0xe8e   :  { %12505 = vmatmul.mubr.f32.gmra.mrb[90].mxu1 %v18504_v51 }
 0xe8f   :  { %12507 = vmatprep.mubr.f32.mxu1 %v18513_v61 }
 0xe92   :  { %12508 = vmatmul.mubr.f32.gmra.mrb[92].mxu1 %v18522_v41 }
 0xe93   :  { %12510 = vmatprep.mubr.f32.mxu1 %v18531_v57  ;;  %13848 = vmatpush3.bf16.xpose.msra.mxu1 %v18351_v40 }
 0xe94   :  { %13850 = vmatprep.subr.bf16.mxu1 %v18379_v27 }
 0xe96   :  { %12511 = vmatmul.mubr.f32.gmra.mrb[94].mxu1 %v18540_v48 }
 0xe97   :  { %12545 = vmatprep.mubr.f32.mxu1 %v18286_v50  ;;  %v13873_v50 = vpack.c.bf16 %v18464_v29, %v18457_v17 }
 0xe9b   :  { %13852 = vmatpush3.bf16.xpose.msra.mxu1 %v18379_v27 }
 0xe9c   :  { %13854 = vmatprep.subr.bf16.mxu1 %v18391_v43 }
 0xea3   :  { %13856 = vmatpush3.bf16.xpose.msra.mxu1 %v18391_v43 }
 0xea4   :  { %13858 = vmatprep.subr.bf16.mxu1 %v18403_v39 }
 0xeab   :  { %13860 = vmatpush3.bf16.xpose.msra.mxu1 %v18403_v39 }
 0xeac   :  { %13862 = vmatprep.subr.bf16.mxu1 %v18422_v3 }
 0xeb3   :  { %13864 = vmatpush3.bf16.xpose.msra.mxu1 %v18422_v3 }
 0xeb4   :  { %13866 = vmatprep.subr.bf16.mxu1 %v13865_v54 }
 0xeba   :  { %12546 = vmatmul.mubr.f32.vlgmr.msra.gmra.mrb[80].mxu1 %v18418_v31  ;;  %v19492_v31 = vld [vmem:[#allocation100_spill] sm:$0xff] }
 0xebb   :  { %12548 = vmatprep.mubr.f32.mxu1 %v18437_v28  ;;  %13868 = vmatpush3.bf16.xpose.msra.mxu1 %v13865_v54  ;;  %v13877_v28 = vpack.c.bf16 %v19492_v31, %v18473_v52 }
 0xebc   :  { %13870 = vmatprep.subr.bf16.mxu1 %v13869_v2 }
 0xebe   :  { %12549 = vmatmul.mubr.f32.gmra.mrb[82].mxu1 %v18440_v15  ;;  %v19495_v15 = vld [vmem:[#allocation43_spill] sm:$0xff] }
 0xebf   :  { %12551 = vmatprep.mubr.f32.mxu1 %v18457_v17  ;;  %v13881_v17 = vpack.c.bf16 %v19494_v5, %v19493_v56 }
 0xec2   :  { %12552 = vmatmul.mubr.f32.gmra.mrb[84].mxu1 %v18464_v29  ;;  %v13885_v29 = vpack.c.bf16 %v19496_v19, %v19495_v15 }
 0xec3   :  { %12554 = vmatprep.mubr.f32.mxu1 %v18473_v52  ;;  %13872 = vmatpush3.bf16.xpose.msra.mxu1 %v13869_v2  ;;  %v13893_v52 = vpack.c.bf16 %v18550_v7, %v19498_v18 }
 0xec4   :  { %13874 = vmatprep.subr.bf16.mxu1 %v13873_v50 }
 0xec6   :  { %12555 = vmatmul.mubr.f32.gmra.mrb[86].mxu1 %v19492_v31 }
 0xec7   :  { %12557 = vmatprep.mubr.f32.mxu1 %v19493_v56 }
 0xeca   :  { %12558 = vmatmul.mubr.f32.gmra.mrb[88].mxu1 %v19494_v5 }
 0xecb   :  { %12560 = vmatprep.mubr.f32.mxu1 %v19495_v15  ;;  %13876 = vmatpush3.bf16.xpose.msra.mxu1 %v13873_v50 }
 0xecc   :  { %13878 = vmatprep.subr.bf16.mxu1 %v13877_v28 }
 0xece   :  { %12561 = vmatmul.mubr.f32.gmra.mrb[90].mxu1 %v19496_v19 }
 0xecf   :  { %12563 = vmatprep.mubr.f32.mxu1 %v19497_v44 }
 0xed2   :  { %12564 = vmatmul.mubr.f32.gmra.mrb[92].mxu1 %v18536_v24 }
 0xed3   :  { %12566 = vmatprep.mubr.f32.mxu1 %v19498_v18  ;;  %13880 = vmatpush3.bf16.xpose.msra.mxu1 %v13877_v28 }
 0xed4   :  { %13882 = vmatprep.subr.bf16.mxu1 %v13881_v17 }
 0xed6   :  { %12567 = vmatmul.mubr.f32.gmra.mrb[94].mxu1 %v18550_v7 }
 0xed7   :  { %12601 = vmatprep.mubr.f32.mxu1 %v18261_v26 }
 0xedb   :  { %13884 = vmatpush3.bf16.xpose.msra.mxu1 %v13881_v17 }
 0xedc   :  { %13886 = vmatprep.subr.bf16.mxu1 %v13885_v29 }
 0xee3   :  { %13888 = vmatpush3.bf16.xpose.msra.mxu1 %v13885_v29 }
 0xee4   :  { %13890 = vmatprep.subr.bf16.mxu1 %v13889_v35 }
 0xeeb   :  { %13892 = vmatpush3.bf16.xpose.msra.mxu1 %v13889_v35 }
 0xeec   :  { %13894 = vmatprep.subr.bf16.mxu1 %v13893_v52 }
 0xef3   :  { %13896 = vmatpush3.bf16.xpose.msra.mxu1 %v13893_v52 }
 0xef4   :  { %13898 = vmatprep.subr.bf16.mxu1 %v18271_v22 }
 0xefa   :  { %12602 = vmatmul.mubr.f32.vlgmr.msra.gmra.mrb[80].mxu1 %v18258_v16 }
 0xefb   :  { %12604 = vmatprep.mubr.f32.mxu1 %v18281_v42  ;;  %13900 = vmatpush3.bf16.xpose.msra.mxu1 %v18271_v22 }
 0xefc   :  { %13902 = vmatprep.subr.bf16.mxu1 %v18297_v12 }
 0xefe   :  { %12605 = vmatmul.mubr.f32.gmra.mrb[82].mxu1 %v18277_v62 }
 0xeff   :  { %12607 = vmatprep.mubr.f32.mxu1 %v18306_v63 }
 0xf02   :  { %12608 = vmatmul.mubr.f32.gmra.mrb[84].mxu1 %v18303_v53 }
 0xf03   :  { %12610 = vmatprep.mubr.f32.mxu1 %v18338_v58  ;;  %13904 = vmatpush3.bf16.xpose.msra.mxu1 %v18297_v12 }
 0xf04   :  { %13906 = vmatprep.subr.bf16.mxu1 %v18323_v46 }
 0xf06   :  { %12611 = vmatmul.mubr.f32.gmra.mrb[86].mxu1 %v18335_v47 }
 0xf07   :  { %12613 = vmatprep.mubr.f32.mxu1 %v18366_v60 }
 0xf0a   :  { %12614 = vmatmul.mubr.f32.gmra.mrb[88].mxu1 %v18363_v8 }
 0xf0b   :  { %12616 = vmatprep.mubr.f32.mxu1 %v18387_v14  ;;  %13908 = vmatpush3.bf16.xpose.msra.mxu1 %v18323_v46 }
 0xf0c   :  { %13910 = vmatprep.subr.bf16.mxu1 %v18351_v40 }
 0xf0e   :  { %12617 = vmatmul.mubr.f32.gmra.mrb[90].mxu1 %v18384_v59 }
 0xf0f   :  { %12619 = vmatprep.mubr.f32.mxu1 %v18399_v25 }
 0xf12   :  { %12620 = vmatmul.mubr.f32.gmra.mrb[92].mxu1 %v18396_v32 }
 0xf13   :  { %12622 = vmatprep.mubr.f32.mxu1 %v18415_v36  ;;  %13912 = vmatpush3.bf16.xpose.msra.mxu1 %v18351_v40 }
 0xf14   :  { %13914 = vmatprep.subr.bf16.mxu1 %v18379_v27 }
 0xf16   :  { %12623 = vmatmul.mubr.f32.gmra.mrb[94].mxu1 %v18412_v34 }
 0xf17   :  { %12657 = vmatprep.mubr.f32.mxu1 %v18261_v26 }
 0xf1b   :  { %13916 = vmatpush3.bf16.xpose.msra.mxu1 %v18379_v27 }
 0xf1c   :  { %13918 = vmatprep.subr.bf16.mxu1 %v18391_v43 }
 0xf23   :  { %13920 = vmatpush3.bf16.xpose.msra.mxu1 %v18391_v43 }
 0xf24   :  { %13922 = vmatprep.subr.bf16.mxu1 %v18403_v39 }
 0xf2b   :  { %13924 = vmatpush3.bf16.xpose.msra.mxu1 %v18403_v39 }
 0xf2c   :  { %13926 = vmatprep.subr.bf16.mxu1 %v18422_v3 }
 0xf33   :  { %13928 = vmatpush3.bf16.xpose.msra.mxu1 %v18422_v3 }
 0xf3a   :  { %12658 = vmatmul.mubr.f32.vlgmr.msra.gmra.mrb[80].mxu1 %v18258_v16 }
 0xf3b   :  { %12660 = vmatprep.mubr.f32.mxu1 %v18281_v42 }
 0xf3e   :  { %12661 = vmatmul.mubr.f32.gmra.mrb[82].mxu1 %v18277_v62 }
 0xf3f   :  { %12663 = vmatprep.mubr.f32.mxu1 %v18306_v63 }
 0xf42   :  { %12664 = vmatmul.mubr.f32.gmra.mrb[84].mxu1 %v18303_v53 }
 0xf43   :  { %12666 = vmatprep.mubr.f32.mxu1 %v18338_v58 }
 0xf46   :  { %12667 = vmatmul.mubr.f32.gmra.mrb[86].mxu1 %v18335_v47 }
 0xf47   :  { %12669 = vmatprep.mubr.f32.mxu1 %v18366_v60 }
 0xf4a   :  { %12670 = vmatmul.mubr.f32.gmra.mrb[88].mxu1 %v18363_v8 }
 0xf4b   :  { %12672 = vmatprep.mubr.f32.mxu1 %v18387_v14 }
 0xf4e   :  { %12673 = vmatmul.mubr.f32.gmra.mrb[90].mxu1 %v18384_v59 }
 0xf4f   :  { %12675 = vmatprep.mubr.f32.mxu1 %v18399_v25 }
 0xf52   :  { %12676 = vmatmul.mubr.f32.gmra.mrb[92].mxu1 %v18396_v32 }
 0xf53   :  { %12678 = vmatprep.mubr.f32.mxu1 %v18415_v36 }
 0xf56   :  { %12679 = vmatmul.mubr.f32.gmra.mrb[94].mxu1 %v18412_v34 }
 0xf57   :  { %14676 = shalt.err (!%p14673_p2)
}
 0xf58   :  { %s14677_s25 = scalar_lea.hbm %s18740_s10, 2048 }
 0xf59   :  { %p14678_p3 = scmp.ne.s32.totalorder %s18740_s10, %s14677_s25  ;;  %p14681_p4 = scmp.lt.u32.totalorder %s14677_s25, %s18740_s10 }
 0xf5b   :  { %p14683_p5 = pnand %p14681_p4, %p14678_p3 }
 0xf5d   :  { %14686 = shalt.err (!%p14683_p5)
}
 0xf5e   :  { %9419 = dma.vmem_to_hbm [thread:$0]  %s9414_s19, 2048, %s18740_s10, [#allocation14], %s14720_s23, %s14720_s23, %s14721_s24  }
 0xf5f   :  { %s14732_s10 = smov [#allocation12]  }
 0xf60   :  { %s9401_s3 = sshll.u32 %s14732_s10, 4  ;;  %s9402_s3 = int_to_ptr.vmem [resolvable:$true] %s9401_s3 }
 0xf61   :  { %s14687_s28 = scalar_lea.vmem %s9402_s3, 2048  ;;  %p14692_p7 = scmp.lt.s32.totalorder %s9402_s3, %s9402_s3 }
 0xf62   :  { %p14688_p6 = scmp.ne.s32.totalorder %s9402_s3, %s14687_s28  ;;  %p14693_p8 = scmp.lt.s32.totalorder %s14687_s28, %s14687_s28 }
 0xf64   :  { %p14694_p9 = por %p14693_p8, %p14692_p7 }
 0xf66   :  { %p14695_p10 = pnand %p14694_p9, %p14688_p6 }
0x100d   :  { %v12659_v16 = vpop.f32.mrb[80].mxu1 }
0x100e   :  { %v9301_v26 = vmul.f32 0.5, %v12659_v16  ;;  %v9206_v22 = vpop.f32.mrb[81].mxu1 }
0x100f   :  { %v9300_v62 = vmul.f32 0.5, %v9206_v22 }
0x1010   :  { %14507 = vtanh.f32 %v9301_v26 }
0x1011   :  { %14509 = vtanh.f32 %v9300_v62  ;;  %v12662_v42 = vpop.f32.mrb[82].mxu1 }
0x1012   :  { %v9303_v12 = vmul.f32 0.5, %v12662_v42  ;;  %v9218_v53 = vpop.f32.mrb[83].mxu1 }
0x1013   :  { %v9302_v63 = vmul.f32 0.5, %v9218_v53 }
0x1014   :  { %14511 = vtanh.f32 %v9303_v12 }
0x1015   :  { %14513 = vtanh.f32 %v9302_v63  ;;  %v12665_v46 = vpop.f32.mrb[84].mxu1 }
0x1016   :  { %v9305_v47 = vmul.f32 0.5, %v12665_v46  ;;  %v9230_v58 = vpop.f32.mrb[85].mxu1 }
0x1017   :  { %v9304_v40 = vmul.f32 0.5, %v9230_v58 }
0x1018   :  { %14515 = vtanh.f32 %v9305_v47 }
0x1019   :  { %14517 = vtanh.f32 %v9304_v40  ;;  %v12668_v8 = vpop.f32.mrb[86].mxu1 }
0x101a   :  { %v14508_v60 = vpop.eup %14507  ;;  %v9307_v27 = vmul.f32 0.5, %v12668_v8  ;;  %v9242_v59 = vpop.f32.mrb[87].mxu1 }
0x101b   :  { %v14510_v14 = vpop.eup %14509  ;;  %v9333_v43 = vadd.f32 1.0, %v14508_v60  ;;  %v9306_v32 = vmul.f32 0.5, %v9242_v59 }
0x101c   :  { %v9332_v25 = vadd.f32 1.0, %v14510_v14  ;;  %14519 = vtanh.f32 %v9307_v27 }
0x101d   :  { %v9349_v39 = vmul.f32 0.5, %v9333_v43  ;;  %14521 = vtanh.f32 %v9306_v32  ;;  %v12671_v34 = vpop.f32.mrb[88].mxu1 }
0x101e   :  { %v14512_v36 = vpop.eup %14511  ;;  %v9348_v3 = vmul.f32 0.5, %v9332_v25  ;;  %v9309_v49 = vmul.f32 0.5, %v12671_v34  ;;  %v9254_v7 = vpop.f32.mrb[89].mxu1 }
0x101f   :  { %v14514_v13 = vpop.eup %14513  ;;  %9365 = vst [vmem:[#allocation12 + $0x8] sm:$0xff] %v9349_v39  ;;  %v9335_v11 = vadd.f32 1.0, %v14512_v36  ;;  %v9308_v51 = vmul.f32 0.5, %v9254_v7 }
0x1020   :  { %9364 = vst [vmem:[#allocation12] sm:$0xff] %v9348_v3  ;;  %v9334_v61 = vadd.f32 1.0, %v14514_v13  ;;  %14523 = vtanh.f32 %v9309_v49 }
0x1021   :  { %v9351_v41 = vmul.f32 0.5, %v9335_v11  ;;  %14525 = vtanh.f32 %v9308_v51  ;;  %v12674_v57 = vpop.f32.mrb[90].mxu1 }
0x1022   :  { %v14516_v24 = vpop.eup %14515  ;;  %v9350_v48 = vmul.f32 0.5, %v9334_v61  ;;  %v9311_v23 = vmul.f32 0.5, %v12674_v57  ;;  %v9266_v9 = vpop.f32.mrb[91].mxu1 }
0x1023   :  { %v14518_v33 = vpop.eup %14517  ;;  %9367 = vst [vmem:[#allocation12 + $0x18] sm:$0xff] %v9351_v41  ;;  %v9337_v37 = vadd.f32 1.0, %v14516_v24  ;;  %v9310_v10 = vmul.f32 0.5, %v9266_v9 }
0x1024   :  { %9366 = vst [vmem:[#allocation12 + $0x10] sm:$0xff] %v9350_v48  ;;  %v9336_v55 = vadd.f32 1.0, %v14518_v33  ;;  %14527 = vtanh.f32 %v9311_v23 }
0x1025   :  { %v9353_v1 = vmul.f32 0.5, %v9337_v37  ;;  %14529 = vtanh.f32 %v9310_v10  ;;  %v12677_v45 = vpop.f32.mrb[92].mxu1 }
0x1026   :  { %v14520_v30 = vpop.eup %14519  ;;  %v9352_v21 = vmul.f32 0.5, %v9336_v55  ;;  %v9313_v6 = vmul.f32 0.5, %v12677_v45  ;;  %v9278_v4 = vpop.f32.mrb[93].mxu1 }
0x1027   :  { %v14522_v20 = vpop.eup %14521  ;;  %9369 = vst [vmem:[#allocation12 + $0x28] sm:$0xff] %v9353_v1  ;;  %v9339_v0 = vadd.f32 1.0, %v14520_v30  ;;  %v9312_v38 = vmul.f32 0.5, %v9278_v4 }
0x1028   :  { %9368 = vst [vmem:[#allocation12 + $0x20] sm:$0xff] %v9352_v21  ;;  %v9338_v54 = vadd.f32 1.0, %v14522_v20  ;;  %14531 = vtanh.f32 %v9313_v6 }
0x1029   :  { %v9355_v2 = vmul.f32 0.5, %v9339_v0  ;;  %14533 = vtanh.f32 %v9312_v38  ;;  %v12680_v50 = vpop.f32.mrb[94].mxu1 }
0x102a   :  { %v14524_v31 = vpop.eup %14523  ;;  %v9354_v56 = vmul.f32 0.5, %v9338_v54  ;;  %v9315_v5 = vmul.f32 0.5, %v12680_v50  ;;  %v9290_v28 = vpop.f32.mrb[95].mxu1 }
0x102b   :  { %v14526_v15 = vpop.eup %14525  ;;  %9371 = vst [vmem:[#allocation12 + $0x38] sm:$0xff] %v9355_v2  ;;  %v9341_v19 = vadd.f32 1.0, %v14524_v31  ;;  %v9314_v44 = vmul.f32 0.5, %v9290_v28 }
0x102c   :  { %9370 = vst [vmem:[#allocation12 + $0x30] sm:$0xff] %v9354_v56  ;;  %v9340_v17 = vadd.f32 1.0, %v14526_v15  ;;  %14535 = vtanh.f32 %v9315_v5 }
0x102d   :  { %v9357_v18 = vmul.f32 0.5, %v9341_v19  ;;  %14537 = vtanh.f32 %v9314_v44 }
0x102e   :  { %v14528_v29 = vpop.eup %14527  ;;  %v9356_v35 = vmul.f32 0.5, %v9340_v17 }
0x102f   :  { %v14530_v52 = vpop.eup %14529  ;;  %9373 = vst [vmem:[#allocation12 + $0x48] sm:$0xff] %v9357_v18  ;;  %v9343_v16 = vadd.f32 1.0, %v14528_v29 }
0x1030   :  { %9372 = vst [vmem:[#allocation12 + $0x40] sm:$0xff] %v9356_v35  ;;  %v9342_v26 = vadd.f32 1.0, %v14530_v52 }
0x1031   :  { %v9359_v22 = vmul.f32 0.5, %v9343_v16 }
0x1032   :  { %v14532_v62 = vpop.eup %14531  ;;  %v9358_v42 = vmul.f32 0.5, %v9342_v26 }
0x1033   :  { %v14534_v12 = vpop.eup %14533  ;;  %9375 = vst [vmem:[#allocation12 + $0x58] sm:$0xff] %v9359_v22  ;;  %v9345_v53 = vadd.f32 1.0, %v14532_v62 }
0x1034   :  { %9374 = vst [vmem:[#allocation12 + $0x50] sm:$0xff] %v9358_v42  ;;  %v9344_v63 = vadd.f32 1.0, %v14534_v12 }
0x1035   :  { %v9361_v46 = vmul.f32 0.5, %v9345_v53 }
0x1036   :  { %v14536_v47 = vpop.eup %14535  ;;  %v9360_v58 = vmul.f32 0.5, %v9344_v63 }
0x1037   :  { %v14538_v40 = vpop.eup %14537  ;;  %9377 = vst [vmem:[#allocation12 + $0x68] sm:$0xff] %v9361_v46  ;;  %v9347_v8 = vadd.f32 1.0, %v14536_v47 }
0x1038   :  { %9376 = vst [vmem:[#allocation12 + $0x60] sm:$0xff] %v9360_v58  ;;  %v9346_v60 = vadd.f32 1.0, %v14538_v40 }
0x1039   :  { %v9363_v27 = vmul.f32 0.5, %v9347_v8 }
0x103a   :  { %v9362_v59 = vmul.f32 0.5, %v9346_v60 }
0x103b   :  { %9379 = vst [vmem:[#allocation12 + $0x78] sm:$0xff] %v9363_v27 }
0x103c   :  { %9378 = vst [vmem:[#allocation12 + $0x70] sm:$0xff] %v9362_v59 }
0x103d   :  { %14698 = shalt.err (!%p14695_p10)
}
0x103e   :  { %s14699_s15 = scalar_lea.hbm %s18739_s9, 2048 }
0x103f   :  { %p14700_p11 = scmp.ne.s32.totalorder %s18739_s9, %s14699_s15  ;;  %p14703_p12 = scmp.lt.u32.totalorder %s14699_s15, %s18739_s9 }
0x1041   :  { %p14705_p13 = pnand %p14703_p12, %p14700_p11 }
0x1043   :  { %14708 = shalt.err (!%p14705_p13)
}
0x1044   :  { %9407 = dma.vmem_to_hbm [thread:$0]  %s9402_s3, 2048, %s18739_s9, [#allocation5], %s14720_s23, %s14720_s23, %s14721_s24  }
0x1045   :  { %14715 = dma.done.wait [#allocation5], 2048  }
0x1046   :  { %14716 = vsyncadd [#allocation5], 4294965248 }
0x1047   :  { %14717 = dma.done.wait [#allocation14], 2048  }
0x1048   :  { %14718 = vsyncadd [#allocation14], 4294965248 }
0x1049   :  { %9426 = vsyncpa [#allocation4], 1 }
0x104a   :  { %9427 = vsyncpa [#allocation7], 1 }
0x104b   :  { %9428 = vsyncpa [#allocation10], 1 }
0x104c   :  { %9429 = vsyncpa [#allocation5], 1 }
0x104d   :  { %9430 = vsyncpa [#allocation14], 1 }

</bundles_post_ra>
